<compile_context>
chip_gen: v7x
topology: tpu7x:2x2x1
jax: 0.10.0
libtpu: 0.0.40
codegen_flags: <defaults>
</compile_context>

<pallas_src>
import jax
import jax.numpy as jnp
from jax.experimental import pallas as pl
from jax.experimental.pallas import tpu as pltpu


BATCH_TILE = 128   # images per grid step (multiple of 16); clamped in the wrapper


# ----------------------------------------------------------------------------
# Fused Pallas kernel: the whole DungNet forward for one batch tile
# ----------------------------------------------------------------------------
def _dungnet_kernel(a1_ref, w1e_ref, b1_ref, w2e_ref, b2_ref,
                    wf1_ref, bf1_ref, wf2_ref, bf2_ref,
                    out_ref, p1_ref, a2_ref, f1_ref):
    """Whole DungNet forward for one batch tile.

    a1_ref : (tb*144, 16)  bf16  4x4 input window per pool1 output pixel,
                                 rows ordered (wo, ho, b); col s16 = sh*4+sw
    w1e_ref: (16, 128)     bf16  conv1 taps, pool-fused (4 quadrants x 32 ch)
    b1_ref : (1, 32)       f32
    w2e_ref: (512, 256)    bf16  conv2 taps, pool-fused (16 offsets x 32 ch in,
                                 4 quadrants x 64 ch out)
    b2_ref : (1, 64)       f32
    wf1_ref: (1600, 64)    bf16  fc1 weight, torch NCHW flatten pre-folded
    bf1_ref: (1, 64)       f32
    wf2_ref: (64, 10)      f32
    bf2_ref: (1, 10)       f32
    out_ref: (tb, 10)      f32   softmax probabilities
    p1_ref : (12*tb, 384)  bf16  pool1 repack: rows (ho, b), lanes (wo, ch)
    a2_ref : (25*tb, 512)  bf16  conv2 im2col: rows (oh, ow, b), lanes (s16, ch)
    f1_ref : (tb, 1600)    bf16  fc1 operand: lanes (pixel, ch)
    """
    tb = out_ref.shape[0]
    n1 = 12 * tb

    # ---- conv1 + pool1 + bias + ReLU: one (tb*144,16)@(16,128) GEMM ----
    # (pool before +bias/ReLU is exact: bias is per-channel, ReLU/max monotone)
    s1 = jnp.dot(a1_ref[...], w1e_ref[...], preferred_element_type=jnp.float32)
    m1 = jnp.maximum(jnp.maximum(s1[:, 0:32], s1[:, 32:64]),
                     jnp.maximum(s1[:, 64:96], s1[:, 96:128]))
    m1 = jnp.maximum(m1 + b1_ref[...], 0.0).astype(jnp.bfloat16)   # (144tb, 32)

    # Repack pool1 into rows=(ho,b), lanes=(wo,ch) so that conv2's windows
    # become contiguous 128-lane ref slices (12 column-block stores, no
    # reshapes / strided access in-kernel).
    for wo in range(12):
        p1_ref[:, wo * 32:(wo + 1) * 32] = m1[wo * n1:(wo + 1) * n1, :]

    # ---- conv2 im2col assembly in VMEM: 100 contiguous (tb,128) copies ----
    for oh in range(5):
        for ow in range(5):
            r0 = (oh * 5 + ow) * tb
            for sh in range(4):
                a2_ref[r0:r0 + tb, sh * 128:(sh + 1) * 128] = \
                    p1_ref[(2 * oh + sh) * tb:(2 * oh + sh + 1) * tb,
                           (2 * ow) * 32:(2 * ow + 4) * 32]

    # ---- conv2 + pool2 + bias + ReLU: one (25*tb,512)@(512,256) GEMM ----
    # (w2e keeps the 512-vs-288 structural zeros: free while HBM-bound on
    #  v6e/v7x; revisit only if v5e profiling shows this GEMM MXU-bound.)
    s2 = jnp.dot(a2_ref[...], w2e_ref[...], preferred_element_type=jnp.float32)
    m2 = jnp.maximum(jnp.maximum(s2[:, 0:64], s2[:, 64:128]),
                     jnp.maximum(s2[:, 128:192], s2[:, 192:256]))
    m2 = jnp.maximum(m2 + b2_ref[...], 0.0).astype(jnp.bfloat16)   # (25tb, 64)

    # ---- fc1 operand: (tb, 1600), lanes (pixel, ch); 25 column-block stores ----
    for p in range(25):
        f1_ref[:, p * 64:(p + 1) * 64] = m2[p * tb:(p + 1) * tb, :]

    # ---- fc1 + ReLU + fc2 + softmax (torch nn.Softmax() on 2-D => dim=1) ----
    z1 = jnp.dot(f1_ref[...], wf1_ref[...], preferred_element_type=jnp.float32)
    z1 = jnp.maximum(z1 + bf1_ref[...], 0.0)                       # (tb, 64)
    z2 = jnp.dot(z1, wf2_ref[...], preferred_element_type=jnp.float32) + bf2_ref[...]
    z2 = z2 - jnp.max(z2, axis=-1, keepdims=True)
    e = jnp.exp(z2)
    out_ref[...] = (e / jnp.sum(e, axis=-1, keepdims=True)).astype(out_ref.dtype)


# ----------------------------------------------------------------------------
# XLA glue: pool-fused im2col window gather for stage 1 only
# ----------------------------------------------------------------------------
def _build_a1(x, tb):
    """x: (bp, 28, 28) f32 -> (bp*144, 16) bf16, rows ordered (tile, wo, ho, b).

    Column s16 = sh*4 + sw holds x[b, 2*ho+sh, 2*wo+sw].  Only the 12x12 pool1
    sub-grid that conv2 consumes is materialized.
    """
    bp = x.shape[0]
    offs = [x[:, sh:sh + 23:2, sw:sw + 23:2]                 # each (bp, 12, 12)
            for sh in range(4) for sw in range(4)]
    a1 = jnp.stack(offs, axis=-1)                            # (bp, 12, 12, 16)
    a1 = a1.reshape(bp // tb, tb, 12, 12, 16)
    a1 = jnp.transpose(a1, (0, 3, 2, 1, 4))                  # (nt, wo, ho, b, 16)
    return a1.reshape(bp * 144, 16).astype(jnp.bfloat16)


# ----------------------------------------------------------------------------
# Forward pass (mirrors DungNet.forward)
# ----------------------------------------------------------------------------
def dungnet_forward(params, x_nchw, *, batch_tile=BATCH_TILE):
    """x_nchw: (B, 1, 28, 28) float32 (fc1's 64*5*5 forces 28x28 inputs)."""
    assert batch_tile % 16 == 0
    b = x_nchw.shape[0]
    bp16 = max(16, ((b + 15) // 16) * 16)
    tb = min(batch_tile, bp16)
    if tb == bp16 and bp16 >= 32:       # keep >= 2 grid steps for v7x dual-TC
        tb = max(16, (bp16 // 2) // 16 * 16)
    bp = ((bp16 + tb - 1) // tb) * tb

    x = x_nchw.reshape(b, 28, 28).astype(jnp.float32)
    if bp != b:
        x = jnp.pad(x, ((0, bp - b), (0, 0), (0, 0)))

    a1 = _build_a1(x, tb)                                    # (bp*144, 16) bf16
    r1 = 144 * tb

    out = pl.pallas_call(
        _dungnet_kernel,
        out_shape=jax.ShapeDtypeStruct((bp, 10), jnp.float32),
        grid=(bp // tb,),
        in_specs=[
            pl.BlockSpec((r1, 16), lambda i: (i, 0)),        # A1 (streamed)
            pl.BlockSpec((16, 128), lambda i: (0, 0)),       # w1e (resident)
            pl.BlockSpec((1, 32), lambda i: (0, 0)),         # b1
            pl.BlockSpec((512, 256), lambda i: (0, 0)),      # w2e
            pl.BlockSpec((1, 64), lambda i: (0, 0)),         # b2
            pl.BlockSpec((1600, 64), lambda i: (0, 0)),      # fc1 weight
            pl.BlockSpec((1, 64), lambda i: (0, 0)),         # fc1 bias
            pl.BlockSpec((64, 10), lambda i: (0, 0)),        # fc2 weight
            pl.BlockSpec((1, 10), lambda i: (0, 0)),         # fc2 bias
        ],
        out_specs=pl.BlockSpec((tb, 10), lambda i: (i, 0)),
        scratch_shapes=[
            pltpu.VMEM((12 * tb, 384), jnp.bfloat16),        # pool1 repack
            pltpu.VMEM((25 * tb, 512), jnp.bfloat16),        # conv2 im2col
            pltpu.VMEM((tb, 1600), jnp.bfloat16),            # fc1 operand
        ],
        compiler_params=pltpu.CompilerParams(
            dimension_semantics=("parallel",),
            vmem_limit_bytes=32 * 1024 * 1024),
    )(a1, params["w1e"], params["b1"], params["w2e"], params["b2"],
      params["wf1"], params["bf1"], params["wf2"], params["bf2"])
    return out[:b]


# ----------------------------------------------------------------------------
# Parameters: torch-layout init + one-time conversion to fused-kernel layout
# ----------------------------------------------------------------------------
def init_params(key):
    """Deterministic PyTorch-layout parameters (uniform(+-1/sqrt(fan_in)))."""
    def uni(k, shape, fan_in):
        bound = 1.0 / jnp.sqrt(jnp.float32(fan_in))
        return jax.random.uniform(k, shape, jnp.float32, -bound, bound)

    ks = jax.random.split(key, 8)
    return {
        "conv1_w": uni(ks[0], (32, 1, 3, 3), 1 * 9),
        "conv1_b": uni(ks[1], (32,), 1 * 9),
        "conv2_w": uni(ks[2], (64, 32, 3, 3), 32 * 9),
        "conv2_b": uni(ks[3], (64,), 32 * 9),
        "fc1_w": uni(ks[4], (64, 64 * 5 * 5), 64 * 5 * 5),   # torch (out, in)
        "fc1_b": uni(ks[5], (64,), 64 * 5 * 5),
        "fc2_w": uni(ks[6], (10, 64), 64),
        "fc2_b": uni(ks[7], (10,), 64),
    }


def prepare_params(p):
    """One-time (load-time) conversion of torch weights to kernel layout."""
    f32, bf16 = jnp.float32, jnp.bfloat16

    # conv1: (32,1,3,3) -> taps (9,32), replicated per 2x2 pool-window member
    # over the 4x4 union of input offsets each pooled output pixel touches.
    w1 = jnp.transpose(p["conv1_w"], (2, 3, 1, 0)).reshape(9, 32)
    w1e = jnp.zeros((16, 4, 32), f32)
    for qh in range(2):
        for qw in range(2):
            q = qh * 2 + qw
            for di in range(3):
                for dj in range(3):
                    s16 = (qh + di) * 4 + (qw + dj)
                    w1e = w1e.at[s16, q, :].set(w1[di * 3 + dj])
    w1e = w1e.reshape(16, 128).astype(bf16)

    # conv2: (64,32,3,3) -> (3,3,32,64); same pool-fused expansion, bf16.
    w2 = jnp.transpose(p["conv2_w"], (2, 3, 1, 0))
    w2e = jnp.zeros((16, 32, 4, 64), f32)
    for qh in range(2):
        for qw in range(2):
            q = qh * 2 + qw
            for di in range(3):
                for dj in range(3):
                    s16 = (qh + di) * 4 + (qw + dj)
                    w2e = w2e.at[s16, :, q, :].set(w2[di, dj])
    w2e = w2e.reshape(512, 256).astype(bf16)

    # fc1: fold torch's NCHW flatten (idx = c*25 + h*5 + w) into the weight so
    # the kernel consumes its (pixel, channel)-ordered fc1 operand directly.
    wf1 = p["fc1_w"].reshape(64, 64, 5, 5)                   # (out, c, h, w)
    wf1 = jnp.transpose(wf1, (2, 3, 1, 0)).reshape(1600, 64).astype(bf16)

    return {
        "w1e": w1e, "b1": p["conv1_b"].reshape(1, 32).astype(f32),
        "w2e": w2e, "b2": p["conv2_b"].reshape(1, 64).astype(f32),
        "wf1": wf1, "bf1": p["fc1_b"].reshape(1, 64).astype(f32),
        "wf2": jnp.transpose(p["fc2_w"]).astype(f32),        # (64, 10)
        "bf2": p["fc2_b"].reshape(1, 10).astype(f32),
    }


# ----------------------------------------------------------------------------
# Pure-JAX reference (fp32) for validation
# ----------------------------------------------------------------------------
def _reference_forward(p, x_nchw):
    dn = ("NCHW", "OIHW", "NCHW")
    y = jax.lax.conv_general_dilated(x_nchw, p["conv1_w"], (1, 1), "VALID",
                                     dimension_numbers=dn)
    y = jax.nn.relu(y + p["conv1_b"][None, :, None, None])
    y = jax.lax.reduce_window(y, -jnp.inf, jax.lax.max,
                              (1, 1, 2, 2), (1, 1, 2, 2), "VALID")
    y = jax.lax.conv_general_dilated(y, p["conv2_w"], (1, 1), "VALID",
                                     dimension_numbers=dn)
    y = jax.nn.relu(y + p["conv2_b"][None, :, None, None])
    y = jax.lax.reduce_window(y, -jnp.inf, jax.lax.max,
                              (1, 1, 2, 2), (1, 1, 2, 2), "VALID")
    y = y.reshape(y.shape[0], -1)
    y = jax.nn.relu(y @ p["fc1_w"].T + p["fc1_b"])
    y = y @ p["fc2_w"].T + p["fc2_b"]
    return jax.nn.softmax(y, axis=1)


if __name__ == "__main__":
    key = jax.random.PRNGKey(0)
    pkey, xkey = jax.random.split(key)
    torch_params = init_params(pkey)
    params = prepare_params(torch_params)

    # Input size is dictated by the module: fc1 expects 64*5*5 => 28x28 input.
    x = jax.random.normal(xkey, (2, 1, 28, 28), jnp.float32)

    out = jax.jit(dungnet_forward)(params, x)
    out = jax.block_until_ready(out)

    assert out.shape == (2, 10), out.shape
    assert bool(jnp.all(jnp.isfinite(out)))
    assert bool(jnp.allclose(jnp.sum(out, axis=-1), 1.0, atol=1e-4))

    ref = _reference_forward(torch_params, x)
    err = float(jnp.max(jnp.abs(out - ref)))
    assert bool(jnp.allclose(out, ref, atol=2e-2)), err

    print("KERNEL_OK")
</pallas_src>

<mosaic_0001>
module attributes {stable_mosaic.version = 11 : i64} {
  func.func @_dungnet_kernel(%arg0: i32, %arg1: memref<2304x16xbf16, #tpu.memory_space<vmem>>, %arg2: memref<16x128xbf16, #tpu.memory_space<vmem>>, %arg3: memref<1x32xf32, #tpu.memory_space<vmem>>, %arg4: memref<512x256xbf16, #tpu.memory_space<vmem>>, %arg5: memref<1x64xf32, #tpu.memory_space<vmem>>, %arg6: memref<1600x64xbf16, #tpu.memory_space<vmem>>, %arg7: memref<1x64xf32, #tpu.memory_space<vmem>>, %arg8: memref<64x10xf32, #tpu.memory_space<vmem>>, %arg9: memref<1x10xf32, #tpu.memory_space<vmem>>, %arg10: memref<16x10xf32, #tpu.memory_space<vmem>>, %arg11: memref<192x384xbf16, #tpu.memory_space<vmem>>, %arg12: memref<400x512xbf16, #tpu.memory_space<vmem>>, %arg13: memref<16x1600xbf16, #tpu.memory_space<vmem>>) attributes {dimension_semantics = [#tpu.dimension_semantics<parallel>], iteration_bounds = array<i64: 1>, scalar_prefetch = 0 : i64, scratch_operands = 3 : i64, tpu.core_type = #tpu.core_type<tc>, window_params = [{transform_indices = @transform_0, window_bounds = array<i64: 2304, 16>}, {pipeline_mode = #tpu.pipeline_mode<synchronous>, transform_indices = @transform_1, window_bounds = array<i64: 16, 128>}, {pipeline_mode = #tpu.pipeline_mode<synchronous>, transform_indices = @transform_2, window_bounds = array<i64: 1, 32>}, {pipeline_mode = #tpu.pipeline_mode<synchronous>, transform_indices = @transform_3, window_bounds = array<i64: 512, 256>}, {pipeline_mode = #tpu.pipeline_mode<synchronous>, transform_indices = @transform_4, window_bounds = array<i64: 1, 64>}, {pipeline_mode = #tpu.pipeline_mode<synchronous>, transform_indices = @transform_5, window_bounds = array<i64: 1600, 64>}, {pipeline_mode = #tpu.pipeline_mode<synchronous>, transform_indices = @transform_6, window_bounds = array<i64: 1, 64>}, {pipeline_mode = #tpu.pipeline_mode<synchronous>, transform_indices = @transform_7, window_bounds = array<i64: 64, 10>}, {pipeline_mode = #tpu.pipeline_mode<synchronous>, transform_indices = @transform_8, window_bounds = array<i64: 1, 10>}, {transform_indices = @transform_9, window_bounds = array<i64: 16, 10>}]} {
    %c0 = arith.constant 0 : index
    %c0_0 = arith.constant 0 : index
    %0 = vector.load %arg1[%c0, %c0_0] : memref<2304x16xbf16, #tpu.memory_space<vmem>>, vector<2304x16xbf16>
    %c0_1 = arith.constant 0 : index
    %c0_2 = arith.constant 0 : index
    %1 = vector.load %arg2[%c0_1, %c0_2] : memref<16x128xbf16, #tpu.memory_space<vmem>>, vector<16x128xbf16>
    %cst = arith.constant dense<0.000000e+00> : vector<2304x128xf32>
    %2 = tpu.matmul %0, %1, %cst {dimension_numbers = #tpu.dot_dimension_numbers<[1], [0], [0], [1], [0, 0, 1, 1], [], []>} : vector<2304x16xbf16>, vector<16x128xbf16>, vector<2304x128xf32> -> vector<2304x128xf32>
    %3 = vector.extract_strided_slice %2 {offsets = [0, 0], sizes = [2304, 32], strides = [1, 1]} : vector<2304x128xf32> to vector<2304x32xf32>
    %4 = vector.extract_strided_slice %2 {offsets = [0, 32], sizes = [2304, 32], strides = [1, 1]} : vector<2304x128xf32> to vector<2304x32xf32>
    %5 = arith.maximumf %3, %4 : vector<2304x32xf32>
    %6 = vector.extract_strided_slice %2 {offsets = [0, 64], sizes = [2304, 32], strides = [1, 1]} : vector<2304x128xf32> to vector<2304x32xf32>
    %7 = vector.extract_strided_slice %2 {offsets = [0, 96], sizes = [2304, 32], strides = [1, 1]} : vector<2304x128xf32> to vector<2304x32xf32>
    %8 = arith.maximumf %6, %7 : vector<2304x32xf32>
    %9 = arith.maximumf %5, %8 : vector<2304x32xf32>
    %c0_3 = arith.constant 0 : index
    %c0_4 = arith.constant 0 : index
    %10 = vector.load %arg3[%c0_3, %c0_4] : memref<1x32xf32, #tpu.memory_space<vmem>>, vector<1x32xf32>
    %11 = vector.broadcast %10 : vector<1x32xf32> to vector<2304x32xf32>
    %12 = arith.addf %9, %11 : vector<2304x32xf32>
    %cst_5 = arith.constant 0.000000e+00 : f32
    %13 = vector.broadcast %cst_5 : f32 to vector<2304x32xf32>
    %14 = arith.maximumf %12, %13 : vector<2304x32xf32>
    %15 = arith.truncf %14 : vector<2304x32xf32> to vector<2304x32xbf16>
    %16 = vector.extract_strided_slice %15 {offsets = [0, 0], sizes = [192, 32], strides = [1, 1]} : vector<2304x32xbf16> to vector<192x32xbf16>
    %c0_6 = arith.constant 0 : index
    %c0_7 = arith.constant 0 : index
    %17 = vector.load %arg11[%c0_6, %c0_7] : memref<192x384xbf16, #tpu.memory_space<vmem>>, vector<192x32xbf16>
    tpu.vector_store %arg11[%c0_6, %c0_7], %16 {strides = array<i32>} : memref<192x384xbf16, #tpu.memory_space<vmem>>, vector<192x32xbf16>,
    %18 = vector.extract_strided_slice %15 {offsets = [192, 0], sizes = [192, 32], strides = [1, 1]} : vector<2304x32xbf16> to vector<192x32xbf16>
    %c0_8 = arith.constant 0 : index
    %c32 = arith.constant 32 : index
    %19 = vector.load %arg11[%c0_8, %c32] : memref<192x384xbf16, #tpu.memory_space<vmem>>, vector<192x32xbf16>
    tpu.vector_store %arg11[%c0_8, %c32], %18 {strides = array<i32>} : memref<192x384xbf16, #tpu.memory_space<vmem>>, vector<192x32xbf16>,
    %20 = vector.extract_strided_slice %15 {offsets = [384, 0], sizes = [192, 32], strides = [1, 1]} : vector<2304x32xbf16> to vector<192x32xbf16>
    %c0_9 = arith.constant 0 : index
    %c64 = arith.constant 64 : index
    %21 = vector.load %arg11[%c0_9, %c64] : memref<192x384xbf16, #tpu.memory_space<vmem>>, vector<192x32xbf16>
    tpu.vector_store %arg11[%c0_9, %c64], %20 {strides = array<i32>} : memref<192x384xbf16, #tpu.memory_space<vmem>>, vector<192x32xbf16>,
    %22 = vector.extract_strided_slice %15 {offsets = [576, 0], sizes = [192, 32], strides = [1, 1]} : vector<2304x32xbf16> to vector<192x32xbf16>
    %c0_10 = arith.constant 0 : index
    %c96 = arith.constant 96 : index
    %23 = vector.load %arg11[%c0_10, %c96] : memref<192x384xbf16, #tpu.memory_space<vmem>>, vector<192x32xbf16>
    tpu.vector_store %arg11[%c0_10, %c96], %22 {strides = array<i32>} : memref<192x384xbf16, #tpu.memory_space<vmem>>, vector<192x32xbf16>,
    %24 = vector.extract_strided_slice %15 {offsets = [768, 0], sizes = [192, 32], strides = [1, 1]} : vector<2304x32xbf16> to vector<192x32xbf16>
    %c0_11 = arith.constant 0 : index
    %c128 = arith.constant 128 : index
    %25 = vector.load %arg11[%c0_11, %c128] : memref<192x384xbf16, #tpu.memory_space<vmem>>, vector<192x32xbf16>
    tpu.vector_store %arg11[%c0_11, %c128], %24 {strides = array<i32>} : memref<192x384xbf16, #tpu.memory_space<vmem>>, vector<192x32xbf16>,
    %26 = vector.extract_strided_slice %15 {offsets = [960, 0], sizes = [192, 32], strides = [1, 1]} : vector<2304x32xbf16> to vector<192x32xbf16>
    %c0_12 = arith.constant 0 : index
    %c160 = arith.constant 160 : index
    %27 = vector.load %arg11[%c0_12, %c160] : memref<192x384xbf16, #tpu.memory_space<vmem>>, vector<192x32xbf16>
    tpu.vector_store %arg11[%c0_12, %c160], %26 {strides = array<i32>} : memref<192x384xbf16, #tpu.memory_space<vmem>>, vector<192x32xbf16>,
    %28 = vector.extract_strided_slice %15 {offsets = [1152, 0], sizes = [192, 32], strides = [1, 1]} : vector<2304x32xbf16> to vector<192x32xbf16>
    %c0_13 = arith.constant 0 : index
    %c192 = arith.constant 192 : index
    %29 = vector.load %arg11[%c0_13, %c192] : memref<192x384xbf16, #tpu.memory_space<vmem>>, vector<192x32xbf16>
    tpu.vector_store %arg11[%c0_13, %c192], %28 {strides = array<i32>} : memref<192x384xbf16, #tpu.memory_space<vmem>>, vector<192x32xbf16>,
    %30 = vector.extract_strided_slice %15 {offsets = [1344, 0], sizes = [192, 32], strides = [1, 1]} : vector<2304x32xbf16> to vector<192x32xbf16>
    %c0_14 = arith.constant 0 : index
    %c224 = arith.constant 224 : index
    %31 = vector.load %arg11[%c0_14, %c224] : memref<192x384xbf16, #tpu.memory_space<vmem>>, vector<192x32xbf16>
    tpu.vector_store %arg11[%c0_14, %c224], %30 {strides = array<i32>} : memref<192x384xbf16, #tpu.memory_space<vmem>>, vector<192x32xbf16>,
    %32 = vector.extract_strided_slice %15 {offsets = [1536, 0], sizes = [192, 32], strides = [1, 1]} : vector<2304x32xbf16> to vector<192x32xbf16>
    %c0_15 = arith.constant 0 : index
    %c256 = arith.constant 256 : index
    %33 = vector.load %arg11[%c0_15, %c256] : memref<192x384xbf16, #tpu.memory_space<vmem>>, vector<192x32xbf16>
    tpu.vector_store %arg11[%c0_15, %c256], %32 {strides = array<i32>} : memref<192x384xbf16, #tpu.memory_space<vmem>>, vector<192x32xbf16>,
    %34 = vector.extract_strided_slice %15 {offsets = [1728, 0], sizes = [192, 32], strides = [1, 1]} : vector<2304x32xbf16> to vector<192x32xbf16>
    %c0_16 = arith.constant 0 : index
    %c288 = arith.constant 288 : index
    %35 = vector.load %arg11[%c0_16, %c288] : memref<192x384xbf16, #tpu.memory_space<vmem>>, vector<192x32xbf16>
    tpu.vector_store %arg11[%c0_16, %c288], %34 {strides = array<i32>} : memref<192x384xbf16, #tpu.memory_space<vmem>>, vector<192x32xbf16>,
    %36 = vector.extract_strided_slice %15 {offsets = [1920, 0], sizes = [192, 32], strides = [1, 1]} : vector<2304x32xbf16> to vector<192x32xbf16>
    %c0_17 = arith.constant 0 : index
    %c320 = arith.constant 320 : index
    %37 = vector.load %arg11[%c0_17, %c320] : memref<192x384xbf16, #tpu.memory_space<vmem>>, vector<192x32xbf16>
    tpu.vector_store %arg11[%c0_17, %c320], %36 {strides = array<i32>} : memref<192x384xbf16, #tpu.memory_space<vmem>>, vector<192x32xbf16>,
    %38 = vector.extract_strided_slice %15 {offsets = [2112, 0], sizes = [192, 32], strides = [1, 1]} : vector<2304x32xbf16> to vector<192x32xbf16>
    %c0_18 = arith.constant 0 : index
    %c352 = arith.constant 352 : index
    %39 = vector.load %arg11[%c0_18, %c352] : memref<192x384xbf16, #tpu.memory_space<vmem>>, vector<192x32xbf16>
    tpu.vector_store %arg11[%c0_18, %c352], %38 {strides = array<i32>} : memref<192x384xbf16, #tpu.memory_space<vmem>>, vector<192x32xbf16>,
    %c0_19 = arith.constant 0 : index
    %c0_20 = arith.constant 0 : index
    %40 = vector.load %arg11[%c0_19, %c0_20] : memref<192x384xbf16, #tpu.memory_space<vmem>>, vector<16x128xbf16>
    %c0_21 = arith.constant 0 : index
    %c0_22 = arith.constant 0 : index
    %41 = vector.load %arg12[%c0_21, %c0_22] : memref<400x512xbf16, #tpu.memory_space<vmem>>, vector<16x128xbf16>
    tpu.vector_store %arg12[%c0_21, %c0_22], %40 {strides = array<i32>} : memref<400x512xbf16, #tpu.memory_space<vmem>>, vector<16x128xbf16>,
    %c16 = arith.constant 16 : index
    %c0_23 = arith.constant 0 : index
    %42 = vector.load %arg11[%c16, %c0_23] : memref<192x384xbf16, #tpu.memory_space<vmem>>, vector<16x128xbf16>
    %c0_24 = arith.constant 0 : index
    %c128_25 = arith.constant 128 : index
    %43 = vector.load %arg12[%c0_24, %c128_25] : memref<400x512xbf16, #tpu.memory_space<vmem>>, vector<16x128xbf16>
    tpu.vector_store %arg12[%c0_24, %c128_25], %42 {strides = array<i32>} : memref<400x512xbf16, #tpu.memory_space<vmem>>, vector<16x128xbf16>,
    %c32_26 = arith.constant 32 : index
    %c0_27 = arith.constant 0 : index
    %44 = vector.load %arg11[%c32_26, %c0_27] : memref<192x384xbf16, #tpu.memory_space<vmem>>, vector<16x128xbf16>
    %c0_28 = arith.constant 0 : index
    %c256_29 = arith.constant 256 : index
    %45 = vector.load %arg12[%c0_28, %c256_29] : memref<400x512xbf16, #tpu.memory_space<vmem>>, vector<16x128xbf16>
    tpu.vector_store %arg12[%c0_28, %c256_29], %44 {strides = array<i32>} : memref<400x512xbf16, #tpu.memory_space<vmem>>, vector<16x128xbf16>,
    %c48 = arith.constant 48 : index
    %c0_30 = arith.constant 0 : index
    %46 = vector.load %arg11[%c48, %c0_30] : memref<192x384xbf16, #tpu.memory_space<vmem>>, vector<16x128xbf16>
    %c0_31 = arith.constant 0 : index
    %c384 = arith.constant 384 : index
    %47 = vector.load %arg12[%c0_31, %c384] : memref<400x512xbf16, #tpu.memory_space<vmem>>, vector<16x128xbf16>
    tpu.vector_store %arg12[%c0_31, %c384], %46 {strides = array<i32>} : memref<400x512xbf16, #tpu.memory_space<vmem>>, vector<16x128xbf16>,
    %c0_32 = arith.constant 0 : index
    %c64_33 = arith.constant 64 : index
    %48 = vector.load %arg11[%c0_32, %c64_33] : memref<192x384xbf16, #tpu.memory_space<vmem>>, vector<16x128xbf16>
    %c16_34 = arith.constant 16 : index
    %c0_35 = arith.constant 0 : index
    %49 = vector.load %arg12[%c16_34, %c0_35] : memref<400x512xbf16, #tpu.memory_space<vmem>>, vector<16x128xbf16>
    tpu.vector_store %arg12[%c16_34, %c0_35], %48 {strides = array<i32>} : memref<400x512xbf16, #tpu.memory_space<vmem>>, vector<16x128xbf16>,
    %c16_36 = arith.constant 16 : index
    %c64_37 = arith.constant 64 : index
    %50 = vector.load %arg11[%c16_36, %c64_37] : memref<192x384xbf16, #tpu.memory_space<vmem>>, vector<16x128xbf16>
    %c16_38 = arith.constant 16 : index
    %c128_39 = arith.constant 128 : index
    %51 = vector.load %arg12[%c16_38, %c128_39] : memref<400x512xbf16, #tpu.memory_space<vmem>>, vector<16x128xbf16>
    tpu.vector_store %arg12[%c16_38, %c128_39], %50 {strides = array<i32>} : memref<400x512xbf16, #tpu.memory_space<vmem>>, vector<16x128xbf16>,
    %c32_40 = arith.constant 32 : index
    %c64_41 = arith.constant 64 : index
    %52 = vector.load %arg11[%c32_40, %c64_41] : memref<192x384xbf16, #tpu.memory_space<vmem>>, vector<16x128xbf16>
    %c16_42 = arith.constant 16 : index
    %c256_43 = arith.constant 256 : index
    %53 = vector.load %arg12[%c16_42, %c256_43] : memref<400x512xbf16, #tpu.memory_space<vmem>>, vector<16x128xbf16>
    tpu.vector_store %arg12[%c16_42, %c256_43], %52 {strides = array<i32>} : memref<400x512xbf16, #tpu.memory_space<vmem>>, vector<16x128xbf16>,
    %c48_44 = arith.constant 48 : index
    %c64_45 = arith.constant 64 : index
    %54 = vector.load %arg11[%c48_44, %c64_45] : memref<192x384xbf16, #tpu.memory_space<vmem>>, vector<16x128xbf16>
    %c16_46 = arith.constant 16 : index
    %c384_47 = arith.constant 384 : index
    %55 = vector.load %arg12[%c16_46, %c384_47] : memref<400x512xbf16, #tpu.memory_space<vmem>>, vector<16x128xbf16>
    tpu.vector_store %arg12[%c16_46, %c384_47], %54 {strides = array<i32>} : memref<400x512xbf16, #tpu.memory_space<vmem>>, vector<16x128xbf16>,
    %c0_48 = arith.constant 0 : index
    %c128_49 = arith.constant 128 : index
    %56 = vector.load %arg11[%c0_48, %c128_49] : memref<192x384xbf16, #tpu.memory_space<vmem>>, vector<16x128xbf16>
    %c32_50 = arith.constant 32 : index
    %c0_51 = arith.constant 0 : index
    %57 = vector.load %arg12[%c32_50, %c0_51] : memref<400x512xbf16, #tpu.memory_space<vmem>>, vector<16x128xbf16>
    tpu.vector_store %arg12[%c32_50, %c0_51], %56 {strides = array<i32>} : memref<400x512xbf16, #tpu.memory_space<vmem>>, vector<16x128xbf16>,
    %c16_52 = arith.constant 16 : index
    %c128_53 = arith.constant 128 : index
    %58 = vector.load %arg11[%c16_52, %c128_53] : memref<192x384xbf16, #tpu.memory_space<vmem>>, vector<16x128xbf16>
    %c32_54 = arith.constant 32 : index
    %c128_55 = arith.constant 128 : index
    %59 = vector.load %arg12[%c32_54, %c128_55] : memref<400x512xbf16, #tpu.memory_space<vmem>>, vector<16x128xbf16>
    tpu.vector_store %arg12[%c32_54, %c128_55], %58 {strides = array<i32>} : memref<400x512xbf16, #tpu.memory_space<vmem>>, vector<16x128xbf16>,
    %c32_56 = arith.constant 32 : index
    %c128_57 = arith.constant 128 : index
    %60 = vector.load %arg11[%c32_56, %c128_57] : memref<192x384xbf16, #tpu.memory_space<vmem>>, vector<16x128xbf16>
    %c32_58 = arith.constant 32 : index
    %c256_59 = arith.constant 256 : index
    %61 = vector.load %arg12[%c32_58, %c256_59] : memref<400x512xbf16, #tpu.memory_space<vmem>>, vector<16x128xbf16>
    tpu.vector_store %arg12[%c32_58, %c256_59], %60 {strides = array<i32>} : memref<400x512xbf16, #tpu.memory_space<vmem>>, vector<16x128xbf16>,
    %c48_60 = arith.constant 48 : index
    %c128_61 = arith.constant 128 : index
    %62 = vector.load %arg11[%c48_60, %c128_61] : memref<192x384xbf16, #tpu.memory_space<vmem>>, vector<16x128xbf16>
    %c32_62 = arith.constant 32 : index
    %c384_63 = arith.constant 384 : index
    %63 = vector.load %arg12[%c32_62, %c384_63] : memref<400x512xbf16, #tpu.memory_space<vmem>>, vector<16x128xbf16>
    tpu.vector_store %arg12[%c32_62, %c384_63], %62 {strides = array<i32>} : memref<400x512xbf16, #tpu.memory_space<vmem>>, vector<16x128xbf16>,
    %c0_64 = arith.constant 0 : index
    %c192_65 = arith.constant 192 : index
    %64 = vector.load %arg11[%c0_64, %c192_65] : memref<192x384xbf16, #tpu.memory_space<vmem>>, vector<16x128xbf16>
    %c48_66 = arith.constant 48 : index
    %c0_67 = arith.constant 0 : index
    %65 = vector.load %arg12[%c48_66, %c0_67] : memref<400x512xbf16, #tpu.memory_space<vmem>>, vector<16x128xbf16>
    tpu.vector_store %arg12[%c48_66, %c0_67], %64 {strides = array<i32>} : memref<400x512xbf16, #tpu.memory_space<vmem>>, vector<16x128xbf16>,
    %c16_68 = arith.constant 16 : index
    %c192_69 = arith.constant 192 : index
    %66 = vector.load %arg11[%c16_68, %c192_69] : memref<192x384xbf16, #tpu.memory_space<vmem>>, vector<16x128xbf16>
    %c48_70 = arith.constant 48 : index
    %c128_71 = arith.constant 128 : index
    %67 = vector.load %arg12[%c48_70, %c128_71] : memref<400x512xbf16, #tpu.memory_space<vmem>>, vector<16x128xbf16>
    tpu.vector_store %arg12[%c48_70, %c128_71], %66 {strides = array<i32>} : memref<400x512xbf16, #tpu.memory_space<vmem>>, vector<16x128xbf16>,
    %c32_72 = arith.constant 32 : index
    %c192_73 = arith.constant 192 : index
    %68 = vector.load %arg11[%c32_72, %c192_73] : memref<192x384xbf16, #tpu.memory_space<vmem>>, vector<16x128xbf16>
    %c48_74 = arith.constant 48 : index
    %c256_75 = arith.constant 256 : index
    %69 = vector.load %arg12[%c48_74, %c256_75] : memref<400x512xbf16, #tpu.memory_space<vmem>>, vector<16x128xbf16>
    tpu.vector_store %arg12[%c48_74, %c256_75], %68 {strides = array<i32>} : memref<400x512xbf16, #tpu.memory_space<vmem>>, vector<16x128xbf16>,
    %c48_76 = arith.constant 48 : index
    %c192_77 = arith.constant 192 : index
    %70 = vector.load %arg11[%c48_76, %c192_77] : memref<192x384xbf16, #tpu.memory_space<vmem>>, vector<16x128xbf16>
    %c48_78 = arith.constant 48 : index
    %c384_79 = arith.constant 384 : index
    %71 = vector.load %arg12[%c48_78, %c384_79] : memref<400x512xbf16, #tpu.memory_space<vmem>>, vector<16x128xbf16>
    tpu.vector_store %arg12[%c48_78, %c384_79], %70 {strides = array<i32>} : memref<400x512xbf16, #tpu.memory_space<vmem>>, vector<16x128xbf16>,
    %c0_80 = arith.constant 0 : index
    %c256_81 = arith.constant 256 : index
    %72 = vector.load %arg11[%c0_80, %c256_81] : memref<192x384xbf16, #tpu.memory_space<vmem>>, vector<16x128xbf16>
    %c64_82 = arith.constant 64 : index
    %c0_83 = arith.constant 0 : index
    %73 = vector.load %arg12[%c64_82, %c0_83] : memref<400x512xbf16, #tpu.memory_space<vmem>>, vector<16x128xbf16>
    tpu.vector_store %arg12[%c64_82, %c0_83], %72 {strides = array<i32>} : memref<400x512xbf16, #tpu.memory_space<vmem>>, vector<16x128xbf16>,
    %c16_84 = arith.constant 16 : index
    %c256_85 = arith.constant 256 : index
    %74 = vector.load %arg11[%c16_84, %c256_85] : memref<192x384xbf16, #tpu.memory_space<vmem>>, vector<16x128xbf16>
    %c64_86 = arith.constant 64 : index
    %c128_87 = arith.constant 128 : index
    %75 = vector.load %arg12[%c64_86, %c128_87] : memref<400x512xbf16, #tpu.memory_space<vmem>>, vector<16x128xbf16>
    tpu.vector_store %arg12[%c64_86, %c128_87], %74 {strides = array<i32>} : memref<400x512xbf16, #tpu.memory_space<vmem>>, vector<16x128xbf16>,
    %c32_88 = arith.constant 32 : index
    %c256_89 = arith.constant 256 : index
    %76 = vector.load %arg11[%c32_88, %c256_89] : memref<192x384xbf16, #tpu.memory_space<vmem>>, vector<16x128xbf16>
    %c64_90 = arith.constant 64 : index
    %c256_91 = arith.constant 256 : index
    %77 = vector.load %arg12[%c64_90, %c256_91] : memref<400x512xbf16, #tpu.memory_space<vmem>>, vector<16x128xbf16>
    tpu.vector_store %arg12[%c64_90, %c256_91], %76 {strides = array<i32>} : memref<400x512xbf16, #tpu.memory_space<vmem>>, vector<16x128xbf16>,
    %c48_92 = arith.constant 48 : index
    %c256_93 = arith.constant 256 : index
    %78 = vector.load %arg11[%c48_92, %c256_93] : memref<192x384xbf16, #tpu.memory_space<vmem>>, vector<16x128xbf16>
    %c64_94 = arith.constant 64 : index
    %c384_95 = arith.constant 384 : index
    %79 = vector.load %arg12[%c64_94, %c384_95] : memref<400x512xbf16, #tpu.memory_space<vmem>>, vector<16x128xbf16>
    tpu.vector_store %arg12[%c64_94, %c384_95], %78 {strides = array<i32>} : memref<400x512xbf16, #tpu.memory_space<vmem>>, vector<16x128xbf16>,
    %c32_96 = arith.constant 32 : index
    %c0_97 = arith.constant 0 : index
    %80 = vector.load %arg11[%c32_96, %c0_97] : memref<192x384xbf16, #tpu.memory_space<vmem>>, vector<16x128xbf16>
    %c80 = arith.constant 80 : index
    %c0_98 = arith.constant 0 : index
    %81 = vector.load %arg12[%c80, %c0_98] : memref<400x512xbf16, #tpu.memory_space<vmem>>, vector<16x128xbf16>
    tpu.vector_store %arg12[%c80, %c0_98], %80 {strides = array<i32>} : memref<400x512xbf16, #tpu.memory_space<vmem>>, vector<16x128xbf16>,
    %c48_99 = arith.constant 48 : index
    %c0_100 = arith.constant 0 : index
    %82 = vector.load %arg11[%c48_99, %c0_100] : memref<192x384xbf16, #tpu.memory_space<vmem>>, vector<16x128xbf16>
    %c80_101 = arith.constant 80 : index
    %c128_102 = arith.constant 128 : index
    %83 = vector.load %arg12[%c80_101, %c128_102] : memref<400x512xbf16, #tpu.memory_space<vmem>>, vector<16x128xbf16>
    tpu.vector_store %arg12[%c80_101, %c128_102], %82 {strides = array<i32>} : memref<400x512xbf16, #tpu.memory_space<vmem>>, vector<16x128xbf16>,
    %c64_103 = arith.constant 64 : index
    %c0_104 = arith.constant 0 : index
    %84 = vector.load %arg11[%c64_103, %c0_104] : memref<192x384xbf16, #tpu.memory_space<vmem>>, vector<16x128xbf16>
    %c80_105 = arith.constant 80 : index
    %c256_106 = arith.constant 256 : index
    %85 = vector.load %arg12[%c80_105, %c256_106] : memref<400x512xbf16, #tpu.memory_space<vmem>>, vector<16x128xbf16>
    tpu.vector_store %arg12[%c80_105, %c256_106], %84 {strides = array<i32>} : memref<400x512xbf16, #tpu.memory_space<vmem>>, vector<16x128xbf16>,
    %c80_107 = arith.constant 80 : index
    %c0_108 = arith.constant 0 : index
    %86 = vector.load %arg11[%c80_107, %c0_108] : memref<192x384xbf16, #tpu.memory_space<vmem>>, vector<16x128xbf16>
    %c80_109 = arith.constant 80 : index
    %c384_110 = arith.constant 384 : index
    %87 = vector.load %arg12[%c80_109, %c384_110] : memref<400x512xbf16, #tpu.memory_space<vmem>>, vector<16x128xbf16>
    tpu.vector_store %arg12[%c80_109, %c384_110], %86 {strides = array<i32>} : memref<400x512xbf16, #tpu.memory_space<vmem>>, vector<16x128xbf16>,
    %c32_111 = arith.constant 32 : index
    %c64_112 = arith.constant 64 : index
    %88 = vector.load %arg11[%c32_111, %c64_112] : memref<192x384xbf16, #tpu.memory_space<vmem>>, vector<16x128xbf16>
    %c96_113 = arith.constant 96 : index
    %c0_114 = arith.constant 0 : index
    %89 = vector.load %arg12[%c96_113, %c0_114] : memref<400x512xbf16, #tpu.memory_space<vmem>>, vector<16x128xbf16>
    tpu.vector_store %arg12[%c96_113, %c0_114], %88 {strides = array<i32>} : memref<400x512xbf16, #tpu.memory_space<vmem>>, vector<16x128xbf16>,
    %c48_115 = arith.constant 48 : index
    %c64_116 = arith.constant 64 : index
    %90 = vector.load %arg11[%c48_115, %c64_116] : memref<192x384xbf16, #tpu.memory_space<vmem>>, vector<16x128xbf16>
    %c96_117 = arith.constant 96 : index
    %c128_118 = arith.constant 128 : index
    %91 = vector.load %arg12[%c96_117, %c128_118] : memref<400x512xbf16, #tpu.memory_space<vmem>>, vector<16x128xbf16>
    tpu.vector_store %arg12[%c96_117, %c128_118], %90 {strides = array<i32>} : memref<400x512xbf16, #tpu.memory_space<vmem>>, vector<16x128xbf16>,
    %c64_119 = arith.constant 64 : index
    %c64_120 = arith.constant 64 : index
    %92 = vector.load %arg11[%c64_119, %c64_120] : memref<192x384xbf16, #tpu.memory_space<vmem>>, vector<16x128xbf16>
    %c96_121 = arith.constant 96 : index
    %c256_122 = arith.constant 256 : index
    %93 = vector.load %arg12[%c96_121, %c256_122] : memref<400x512xbf16, #tpu.memory_space<vmem>>, vector<16x128xbf16>
    tpu.vector_store %arg12[%c96_121, %c256_122], %92 {strides = array<i32>} : memref<400x512xbf16, #tpu.memory_space<vmem>>, vector<16x128xbf16>,
    %c80_123 = arith.constant 80 : index
    %c64_124 = arith.constant 64 : index
    %94 = vector.load %arg11[%c80_123, %c64_124] : memref<192x384xbf16, #tpu.memory_space<vmem>>, vector<16x128xbf16>
    %c96_125 = arith.constant 96 : index
    %c384_126 = arith.constant 384 : index
    %95 = vector.load %arg12[%c96_125, %c384_126] : memref<400x512xbf16, #tpu.memory_space<vmem>>, vector<16x128xbf16>
    tpu.vector_store %arg12[%c96_125, %c384_126], %94 {strides = array<i32>} : memref<400x512xbf16, #tpu.memory_space<vmem>>, vector<16x128xbf16>,
    %c32_127 = arith.constant 32 : index
    %c128_128 = arith.constant 128 : index
    %96 = vector.load %arg11[%c32_127, %c128_128] : memref<192x384xbf16, #tpu.memory_space<vmem>>, vector<16x128xbf16>
    %c112 = arith.constant 112 : index
    %c0_129 = arith.constant 0 : index
    %97 = vector.load %arg12[%c112, %c0_129] : memref<400x512xbf16, #tpu.memory_space<vmem>>, vector<16x128xbf16>
    tpu.vector_store %arg12[%c112, %c0_129], %96 {strides = array<i32>} : memref<400x512xbf16, #tpu.memory_space<vmem>>, vector<16x128xbf16>,
    %c48_130 = arith.constant 48 : index
    %c128_131 = arith.constant 128 : index
    %98 = vector.load %arg11[%c48_130, %c128_131] : memref<192x384xbf16, #tpu.memory_space<vmem>>, vector<16x128xbf16>
    %c112_132 = arith.constant 112 : index
    %c128_133 = arith.constant 128 : index
    %99 = vector.load %arg12[%c112_132, %c128_133] : memref<400x512xbf16, #tpu.memory_space<vmem>>, vector<16x128xbf16>
    tpu.vector_store %arg12[%c112_132, %c128_133], %98 {strides = array<i32>} : memref<400x512xbf16, #tpu.memory_space<vmem>>, vector<16x128xbf16>,
    %c64_134 = arith.constant 64 : index
    %c128_135 = arith.constant 128 : index
    %100 = vector.load %arg11[%c64_134, %c128_135] : memref<192x384xbf16, #tpu.memory_space<vmem>>, vector<16x128xbf16>
    %c112_136 = arith.constant 112 : index
    %c256_137 = arith.constant 256 : index
    %101 = vector.load %arg12[%c112_136, %c256_137] : memref<400x512xbf16, #tpu.memory_space<vmem>>, vector<16x128xbf16>
    tpu.vector_store %arg12[%c112_136, %c256_137], %100 {strides = array<i32>} : memref<400x512xbf16, #tpu.memory_space<vmem>>, vector<16x128xbf16>,
    %c80_138 = arith.constant 80 : index
    %c128_139 = arith.constant 128 : index
    %102 = vector.load %arg11[%c80_138, %c128_139] : memref<192x384xbf16, #tpu.memory_space<vmem>>, vector<16x128xbf16>
    %c112_140 = arith.constant 112 : index
    %c384_141 = arith.constant 384 : index
    %103 = vector.load %arg12[%c112_140, %c384_141] : memref<400x512xbf16, #tpu.memory_space<vmem>>, vector<16x128xbf16>
    tpu.vector_store %arg12[%c112_140, %c384_141], %102 {strides = array<i32>} : memref<400x512xbf16, #tpu.memory_space<vmem>>, vector<16x128xbf16>,
    %c32_142 = arith.constant 32 : index
    %c192_143 = arith.constant 192 : index
    %104 = vector.load %arg11[%c32_142, %c192_143] : memref<192x384xbf16, #tpu.memory_space<vmem>>, vector<16x128xbf16>
    %c128_144 = arith.constant 128 : index
    %c0_145 = arith.constant 0 : index
    %105 = vector.load %arg12[%c128_144, %c0_145] : memref<400x512xbf16, #tpu.memory_space<vmem>>, vector<16x128xbf16>
    tpu.vector_store %arg12[%c128_144, %c0_145], %104 {strides = array<i32>} : memref<400x512xbf16, #tpu.memory_space<vmem>>, vector<16x128xbf16>,
    %c48_146 = arith.constant 48 : index
    %c192_147 = arith.constant 192 : index
    %106 = vector.load %arg11[%c48_146, %c192_147] : memref<192x384xbf16, #tpu.memory_space<vmem>>, vector<16x128xbf16>
    %c128_148 = arith.constant 128 : index
    %c128_149 = arith.constant 128 : index
    %107 = vector.load %arg12[%c128_148, %c128_149] : memref<400x512xbf16, #tpu.memory_space<vmem>>, vector<16x128xbf16>
    tpu.vector_store %arg12[%c128_148, %c128_149], %106 {strides = array<i32>} : memref<400x512xbf16, #tpu.memory_space<vmem>>, vector<16x128xbf16>,
    %c64_150 = arith.constant 64 : index
    %c192_151 = arith.constant 192 : index
    %108 = vector.load %arg11[%c64_150, %c192_151] : memref<192x384xbf16, #tpu.memory_space<vmem>>, vector<16x128xbf16>
    %c128_152 = arith.constant 128 : index
    %c256_153 = arith.constant 256 : index
    %109 = vector.load %arg12[%c128_152, %c256_153] : memref<400x512xbf16, #tpu.memory_space<vmem>>, vector<16x128xbf16>
    tpu.vector_store %arg12[%c128_152, %c256_153], %108 {strides = array<i32>} : memref<400x512xbf16, #tpu.memory_space<vmem>>, vector<16x128xbf16>,
    %c80_154 = arith.constant 80 : index
    %c192_155 = arith.constant 192 : index
    %110 = vector.load %arg11[%c80_154, %c192_155] : memref<192x384xbf16, #tpu.memory_space<vmem>>, vector<16x128xbf16>
    %c128_156 = arith.constant 128 : index
    %c384_157 = arith.constant 384 : index
    %111 = vector.load %arg12[%c128_156, %c384_157] : memref<400x512xbf16, #tpu.memory_space<vmem>>, vector<16x128xbf16>
    tpu.vector_store %arg12[%c128_156, %c384_157], %110 {strides = array<i32>} : memref<400x512xbf16, #tpu.memory_space<vmem>>, vector<16x128xbf16>,
    %c32_158 = arith.constant 32 : index
    %c256_159 = arith.constant 256 : index
    %112 = vector.load %arg11[%c32_158, %c256_159] : memref<192x384xbf16, #tpu.memory_space<vmem>>, vector<16x128xbf16>
    %c144 = arith.constant 144 : index
    %c0_160 = arith.constant 0 : index
    %113 = vector.load %arg12[%c144, %c0_160] : memref<400x512xbf16, #tpu.memory_space<vmem>>, vector<16x128xbf16>
    tpu.vector_store %arg12[%c144, %c0_160], %112 {strides = array<i32>} : memref<400x512xbf16, #tpu.memory_space<vmem>>, vector<16x128xbf16>,
    %c48_161 = arith.constant 48 : index
    %c256_162 = arith.constant 256 : index
    %114 = vector.load %arg11[%c48_161, %c256_162] : memref<192x384xbf16, #tpu.memory_space<vmem>>, vector<16x128xbf16>
    %c144_163 = arith.constant 144 : index
    %c128_164 = arith.constant 128 : index
    %115 = vector.load %arg12[%c144_163, %c128_164] : memref<400x512xbf16, #tpu.memory_space<vmem>>, vector<16x128xbf16>
    tpu.vector_store %arg12[%c144_163, %c128_164], %114 {strides = array<i32>} : memref<400x512xbf16, #tpu.memory_space<vmem>>, vector<16x128xbf16>,
    %c64_165 = arith.constant 64 : index
    %c256_166 = arith.constant 256 : index
    %116 = vector.load %arg11[%c64_165, %c256_166] : memref<192x384xbf16, #tpu.memory_space<vmem>>, vector<16x128xbf16>
    %c144_167 = arith.constant 144 : index
    %c256_168 = arith.constant 256 : index
    %117 = vector.load %arg12[%c144_167, %c256_168] : memref<400x512xbf16, #tpu.memory_space<vmem>>, vector<16x128xbf16>
    tpu.vector_store %arg12[%c144_167, %c256_168], %116 {strides = array<i32>} : memref<400x512xbf16, #tpu.memory_space<vmem>>, vector<16x128xbf16>,
    %c80_169 = arith.constant 80 : index
    %c256_170 = arith.constant 256 : index
    %118 = vector.load %arg11[%c80_169, %c256_170] : memref<192x384xbf16, #tpu.memory_space<vmem>>, vector<16x128xbf16>
    %c144_171 = arith.constant 144 : index
    %c384_172 = arith.constant 384 : index
    %119 = vector.load %arg12[%c144_171, %c384_172] : memref<400x512xbf16, #tpu.memory_space<vmem>>, vector<16x128xbf16>
    tpu.vector_store %arg12[%c144_171, %c384_172], %118 {strides = array<i32>} : memref<400x512xbf16, #tpu.memory_space<vmem>>, vector<16x128xbf16>,
    %c64_173 = arith.constant 64 : index
    %c0_174 = arith.constant 0 : index
    %120 = vector.load %arg11[%c64_173, %c0_174] : memref<192x384xbf16, #tpu.memory_space<vmem>>, vector<16x128xbf16>
    %c160_175 = arith.constant 160 : index
    %c0_176 = arith.constant 0 : index
    %121 = vector.load %arg12[%c160_175, %c0_176] : memref<400x512xbf16, #tpu.memory_space<vmem>>, vector<16x128xbf16>
    tpu.vector_store %arg12[%c160_175, %c0_176], %120 {strides = array<i32>} : memref<400x512xbf16, #tpu.memory_space<vmem>>, vector<16x128xbf16>,
    %c80_177 = arith.constant 80 : index
    %c0_178 = arith.constant 0 : index
    %122 = vector.load %arg11[%c80_177, %c0_178] : memref<192x384xbf16, #tpu.memory_space<vmem>>, vector<16x128xbf16>
    %c160_179 = arith.constant 160 : index
    %c128_180 = arith.constant 128 : index
    %123 = vector.load %arg12[%c160_179, %c128_180] : memref<400x512xbf16, #tpu.memory_space<vmem>>, vector<16x128xbf16>
    tpu.vector_store %arg12[%c160_179, %c128_180], %122 {strides = array<i32>} : memref<400x512xbf16, #tpu.memory_space<vmem>>, vector<16x128xbf16>,
    %c96_181 = arith.constant 96 : index
    %c0_182 = arith.constant 0 : index
    %124 = vector.load %arg11[%c96_181, %c0_182] : memref<192x384xbf16, #tpu.memory_space<vmem>>, vector<16x128xbf16>
    %c160_183 = arith.constant 160 : index
    %c256_184 = arith.constant 256 : index
    %125 = vector.load %arg12[%c160_183, %c256_184] : memref<400x512xbf16, #tpu.memory_space<vmem>>, vector<16x128xbf16>
    tpu.vector_store %arg12[%c160_183, %c256_184], %124 {strides = array<i32>} : memref<400x512xbf16, #tpu.memory_space<vmem>>, vector<16x128xbf16>,
    %c112_185 = arith.constant 112 : index
    %c0_186 = arith.constant 0 : index
    %126 = vector.load %arg11[%c112_185, %c0_186] : memref<192x384xbf16, #tpu.memory_space<vmem>>, vector<16x128xbf16>
    %c160_187 = arith.constant 160 : index
    %c384_188 = arith.constant 384 : index
    %127 = vector.load %arg12[%c160_187, %c384_188] : memref<400x512xbf16, #tpu.memory_space<vmem>>, vector<16x128xbf16>
    tpu.vector_store %arg12[%c160_187, %c384_188], %126 {strides = array<i32>} : memref<400x512xbf16, #tpu.memory_space<vmem>>, vector<16x128xbf16>,
    %c64_189 = arith.constant 64 : index
    %c64_190 = arith.constant 64 : index
    %128 = vector.load %arg11[%c64_189, %c64_190] : memref<192x384xbf16, #tpu.memory_space<vmem>>, vector<16x128xbf16>
    %c176 = arith.constant 176 : index
    %c0_191 = arith.constant 0 : index
    %129 = vector.load %arg12[%c176, %c0_191] : memref<400x512xbf16, #tpu.memory_space<vmem>>, vector<16x128xbf16>
    tpu.vector_store %arg12[%c176, %c0_191], %128 {strides = array<i32>} : memref<400x512xbf16, #tpu.memory_space<vmem>>, vector<16x128xbf16>,
    %c80_192 = arith.constant 80 : index
    %c64_193 = arith.constant 64 : index
    %130 = vector.load %arg11[%c80_192, %c64_193] : memref<192x384xbf16, #tpu.memory_space<vmem>>, vector<16x128xbf16>
    %c176_194 = arith.constant 176 : index
    %c128_195 = arith.constant 128 : index
    %131 = vector.load %arg12[%c176_194, %c128_195] : memref<400x512xbf16, #tpu.memory_space<vmem>>, vector<16x128xbf16>
    tpu.vector_store %arg12[%c176_194, %c128_195], %130 {strides = array<i32>} : memref<400x512xbf16, #tpu.memory_space<vmem>>, vector<16x128xbf16>,
    %c96_196 = arith.constant 96 : index
    %c64_197 = arith.constant 64 : index
    %132 = vector.load %arg11[%c96_196, %c64_197] : memref<192x384xbf16, #tpu.memory_space<vmem>>, vector<16x128xbf16>
    %c176_198 = arith.constant 176 : index
    %c256_199 = arith.constant 256 : index
    %133 = vector.load %arg12[%c176_198, %c256_199] : memref<400x512xbf16, #tpu.memory_space<vmem>>, vector<16x128xbf16>
    tpu.vector_store %arg12[%c176_198, %c256_199], %132 {strides = array<i32>} : memref<400x512xbf16, #tpu.memory_space<vmem>>, vector<16x128xbf16>,
    %c112_200 = arith.constant 112 : index
    %c64_201 = arith.constant 64 : index
    %134 = vector.load %arg11[%c112_200, %c64_201] : memref<192x384xbf16, #tpu.memory_space<vmem>>, vector<16x128xbf16>
    %c176_202 = arith.constant 176 : index
    %c384_203 = arith.constant 384 : index
    %135 = vector.load %arg12[%c176_202, %c384_203] : memref<400x512xbf16, #tpu.memory_space<vmem>>, vector<16x128xbf16>
    tpu.vector_store %arg12[%c176_202, %c384_203], %134 {strides = array<i32>} : memref<400x512xbf16, #tpu.memory_space<vmem>>, vector<16x128xbf16>,
    %c64_204 = arith.constant 64 : index
    %c128_205 = arith.constant 128 : index
    %136 = vector.load %arg11[%c64_204, %c128_205] : memref<192x384xbf16, #tpu.memory_space<vmem>>, vector<16x128xbf16>
    %c192_206 = arith.constant 192 : index
    %c0_207 = arith.constant 0 : index
    %137 = vector.load %arg12[%c192_206, %c0_207] : memref<400x512xbf16, #tpu.memory_space<vmem>>, vector<16x128xbf16>
    tpu.vector_store %arg12[%c192_206, %c0_207], %136 {strides = array<i32>} : memref<400x512xbf16, #tpu.memory_space<vmem>>, vector<16x128xbf16>,
    %c80_208 = arith.constant 80 : index
    %c128_209 = arith.constant 128 : index
    %138 = vector.load %arg11[%c80_208, %c128_209] : memref<192x384xbf16, #tpu.memory_space<vmem>>, vector<16x128xbf16>
    %c192_210 = arith.constant 192 : index
    %c128_211 = arith.constant 128 : index
    %139 = vector.load %arg12[%c192_210, %c128_211] : memref<400x512xbf16, #tpu.memory_space<vmem>>, vector<16x128xbf16>
    tpu.vector_store %arg12[%c192_210, %c128_211], %138 {strides = array<i32>} : memref<400x512xbf16, #tpu.memory_space<vmem>>, vector<16x128xbf16>,
    %c96_212 = arith.constant 96 : index
    %c128_213 = arith.constant 128 : index
    %140 = vector.load %arg11[%c96_212, %c128_213] : memref<192x384xbf16, #tpu.memory_space<vmem>>, vector<16x128xbf16>
    %c192_214 = arith.constant 192 : index
    %c256_215 = arith.constant 256 : index
    %141 = vector.load %arg12[%c192_214, %c256_215] : memref<400x512xbf16, #tpu.memory_space<vmem>>, vector<16x128xbf16>
    tpu.vector_store %arg12[%c192_214, %c256_215], %140 {strides = array<i32>} : memref<400x512xbf16, #tpu.memory_space<vmem>>, vector<16x128xbf16>,
    %c112_216 = arith.constant 112 : index
    %c128_217 = arith.constant 128 : index
    %142 = vector.load %arg11[%c112_216, %c128_217] : memref<192x384xbf16, #tpu.memory_space<vmem>>, vector<16x128xbf16>
    %c192_218 = arith.constant 192 : index
    %c384_219 = arith.constant 384 : index
    %143 = vector.load %arg12[%c192_218, %c384_219] : memref<400x512xbf16, #tpu.memory_space<vmem>>, vector<16x128xbf16>
    tpu.vector_store %arg12[%c192_218, %c384_219], %142 {strides = array<i32>} : memref<400x512xbf16, #tpu.memory_space<vmem>>, vector<16x128xbf16>,
    %c64_220 = arith.constant 64 : index
    %c192_221 = arith.constant 192 : index
    %144 = vector.load %arg11[%c64_220, %c192_221] : memref<192x384xbf16, #tpu.memory_space<vmem>>, vector<16x128xbf16>
    %c208 = arith.constant 208 : index
    %c0_222 = arith.constant 0 : index
    %145 = vector.load %arg12[%c208, %c0_222] : memref<400x512xbf16, #tpu.memory_space<vmem>>, vector<16x128xbf16>
    tpu.vector_store %arg12[%c208, %c0_222], %144 {strides = array<i32>} : memref<400x512xbf16, #tpu.memory_space<vmem>>, vector<16x128xbf16>,
    %c80_223 = arith.constant 80 : index
    %c192_224 = arith.constant 192 : index
    %146 = vector.load %arg11[%c80_223, %c192_224] : memref<192x384xbf16, #tpu.memory_space<vmem>>, vector<16x128xbf16>
    %c208_225 = arith.constant 208 : index
    %c128_226 = arith.constant 128 : index
    %147 = vector.load %arg12[%c208_225, %c128_226] : memref<400x512xbf16, #tpu.memory_space<vmem>>, vector<16x128xbf16>
    tpu.vector_store %arg12[%c208_225, %c128_226], %146 {strides = array<i32>} : memref<400x512xbf16, #tpu.memory_space<vmem>>, vector<16x128xbf16>,
    %c96_227 = arith.constant 96 : index
    %c192_228 = arith.constant 192 : index
    %148 = vector.load %arg11[%c96_227, %c192_228] : memref<192x384xbf16, #tpu.memory_space<vmem>>, vector<16x128xbf16>
    %c208_229 = arith.constant 208 : index
    %c256_230 = arith.constant 256 : index
    %149 = vector.load %arg12[%c208_229, %c256_230] : memref<400x512xbf16, #tpu.memory_space<vmem>>, vector<16x128xbf16>
    tpu.vector_store %arg12[%c208_229, %c256_230], %148 {strides = array<i32>} : memref<400x512xbf16, #tpu.memory_space<vmem>>, vector<16x128xbf16>,
    %c112_231 = arith.constant 112 : index
    %c192_232 = arith.constant 192 : index
    %150 = vector.load %arg11[%c112_231, %c192_232] : memref<192x384xbf16, #tpu.memory_space<vmem>>, vector<16x128xbf16>
    %c208_233 = arith.constant 208 : index
    %c384_234 = arith.constant 384 : index
    %151 = vector.load %arg12[%c208_233, %c384_234] : memref<400x512xbf16, #tpu.memory_space<vmem>>, vector<16x128xbf16>
    tpu.vector_store %arg12[%c208_233, %c384_234], %150 {strides = array<i32>} : memref<400x512xbf16, #tpu.memory_space<vmem>>, vector<16x128xbf16>,
    %c64_235 = arith.constant 64 : index
    %c256_236 = arith.constant 256 : index
    %152 = vector.load %arg11[%c64_235, %c256_236] : memref<192x384xbf16, #tpu.memory_space<vmem>>, vector<16x128xbf16>
    %c224_237 = arith.constant 224 : index
    %c0_238 = arith.constant 0 : index
    %153 = vector.load %arg12[%c224_237, %c0_238] : memref<400x512xbf16, #tpu.memory_space<vmem>>, vector<16x128xbf16>
    tpu.vector_store %arg12[%c224_237, %c0_238], %152 {strides = array<i32>} : memref<400x512xbf16, #tpu.memory_space<vmem>>, vector<16x128xbf16>,
    %c80_239 = arith.constant 80 : index
    %c256_240 = arith.constant 256 : index
    %154 = vector.load %arg11[%c80_239, %c256_240] : memref<192x384xbf16, #tpu.memory_space<vmem>>, vector<16x128xbf16>
    %c224_241 = arith.constant 224 : index
    %c128_242 = arith.constant 128 : index
    %155 = vector.load %arg12[%c224_241, %c128_242] : memref<400x512xbf16, #tpu.memory_space<vmem>>, vector<16x128xbf16>
    tpu.vector_store %arg12[%c224_241, %c128_242], %154 {strides = array<i32>} : memref<400x512xbf16, #tpu.memory_space<vmem>>, vector<16x128xbf16>,
    %c96_243 = arith.constant 96 : index
    %c256_244 = arith.constant 256 : index
    %156 = vector.load %arg11[%c96_243, %c256_244] : memref<192x384xbf16, #tpu.memory_space<vmem>>, vector<16x128xbf16>
    %c224_245 = arith.constant 224 : index
    %c256_246 = arith.constant 256 : index
    %157 = vector.load %arg12[%c224_245, %c256_246] : memref<400x512xbf16, #tpu.memory_space<vmem>>, vector<16x128xbf16>
    tpu.vector_store %arg12[%c224_245, %c256_246], %156 {strides = array<i32>} : memref<400x512xbf16, #tpu.memory_space<vmem>>, vector<16x128xbf16>,
    %c112_247 = arith.constant 112 : index
    %c256_248 = arith.constant 256 : index
    %158 = vector.load %arg11[%c112_247, %c256_248] : memref<192x384xbf16, #tpu.memory_space<vmem>>, vector<16x128xbf16>
    %c224_249 = arith.constant 224 : index
    %c384_250 = arith.constant 384 : index
    %159 = vector.load %arg12[%c224_249, %c384_250] : memref<400x512xbf16, #tpu.memory_space<vmem>>, vector<16x128xbf16>
    tpu.vector_store %arg12[%c224_249, %c384_250], %158 {strides = array<i32>} : memref<400x512xbf16, #tpu.memory_space<vmem>>, vector<16x128xbf16>,
    %c96_251 = arith.constant 96 : index
    %c0_252 = arith.constant 0 : index
    %160 = vector.load %arg11[%c96_251, %c0_252] : memref<192x384xbf16, #tpu.memory_space<vmem>>, vector<16x128xbf16>
    %c240 = arith.constant 240 : index
    %c0_253 = arith.constant 0 : index
    %161 = vector.load %arg12[%c240, %c0_253] : memref<400x512xbf16, #tpu.memory_space<vmem>>, vector<16x128xbf16>
    tpu.vector_store %arg12[%c240, %c0_253], %160 {strides = array<i32>} : memref<400x512xbf16, #tpu.memory_space<vmem>>, vector<16x128xbf16>,
    %c112_254 = arith.constant 112 : index
    %c0_255 = arith.constant 0 : index
    %162 = vector.load %arg11[%c112_254, %c0_255] : memref<192x384xbf16, #tpu.memory_space<vmem>>, vector<16x128xbf16>
    %c240_256 = arith.constant 240 : index
    %c128_257 = arith.constant 128 : index
    %163 = vector.load %arg12[%c240_256, %c128_257] : memref<400x512xbf16, #tpu.memory_space<vmem>>, vector<16x128xbf16>
    tpu.vector_store %arg12[%c240_256, %c128_257], %162 {strides = array<i32>} : memref<400x512xbf16, #tpu.memory_space<vmem>>, vector<16x128xbf16>,
    %c128_258 = arith.constant 128 : index
    %c0_259 = arith.constant 0 : index
    %164 = vector.load %arg11[%c128_258, %c0_259] : memref<192x384xbf16, #tpu.memory_space<vmem>>, vector<16x128xbf16>
    %c240_260 = arith.constant 240 : index
    %c256_261 = arith.constant 256 : index
    %165 = vector.load %arg12[%c240_260, %c256_261] : memref<400x512xbf16, #tpu.memory_space<vmem>>, vector<16x128xbf16>
    tpu.vector_store %arg12[%c240_260, %c256_261], %164 {strides = array<i32>} : memref<400x512xbf16, #tpu.memory_space<vmem>>, vector<16x128xbf16>,
    %c144_262 = arith.constant 144 : index
    %c0_263 = arith.constant 0 : index
    %166 = vector.load %arg11[%c144_262, %c0_263] : memref<192x384xbf16, #tpu.memory_space<vmem>>, vector<16x128xbf16>
    %c240_264 = arith.constant 240 : index
    %c384_265 = arith.constant 384 : index
    %167 = vector.load %arg12[%c240_264, %c384_265] : memref<400x512xbf16, #tpu.memory_space<vmem>>, vector<16x128xbf16>
    tpu.vector_store %arg12[%c240_264, %c384_265], %166 {strides = array<i32>} : memref<400x512xbf16, #tpu.memory_space<vmem>>, vector<16x128xbf16>,
    %c96_266 = arith.constant 96 : index
    %c64_267 = arith.constant 64 : index
    %168 = vector.load %arg11[%c96_266, %c64_267] : memref<192x384xbf16, #tpu.memory_space<vmem>>, vector<16x128xbf16>
    %c256_268 = arith.constant 256 : index
    %c0_269 = arith.constant 0 : index
    %169 = vector.load %arg12[%c256_268, %c0_269] : memref<400x512xbf16, #tpu.memory_space<vmem>>, vector<16x128xbf16>
    tpu.vector_store %arg12[%c256_268, %c0_269], %168 {strides = array<i32>} : memref<400x512xbf16, #tpu.memory_space<vmem>>, vector<16x128xbf16>,
    %c112_270 = arith.constant 112 : index
    %c64_271 = arith.constant 64 : index
    %170 = vector.load %arg11[%c112_270, %c64_271] : memref<192x384xbf16, #tpu.memory_space<vmem>>, vector<16x128xbf16>
    %c256_272 = arith.constant 256 : index
    %c128_273 = arith.constant 128 : index
    %171 = vector.load %arg12[%c256_272, %c128_273] : memref<400x512xbf16, #tpu.memory_space<vmem>>, vector<16x128xbf16>
    tpu.vector_store %arg12[%c256_272, %c128_273], %170 {strides = array<i32>} : memref<400x512xbf16, #tpu.memory_space<vmem>>, vector<16x128xbf16>,
    %c128_274 = arith.constant 128 : index
    %c64_275 = arith.constant 64 : index
    %172 = vector.load %arg11[%c128_274, %c64_275] : memref<192x384xbf16, #tpu.memory_space<vmem>>, vector<16x128xbf16>
    %c256_276 = arith.constant 256 : index
    %c256_277 = arith.constant 256 : index
    %173 = vector.load %arg12[%c256_276, %c256_277] : memref<400x512xbf16, #tpu.memory_space<vmem>>, vector<16x128xbf16>
    tpu.vector_store %arg12[%c256_276, %c256_277], %172 {strides = array<i32>} : memref<400x512xbf16, #tpu.memory_space<vmem>>, vector<16x128xbf16>,
    %c144_278 = arith.constant 144 : index
    %c64_279 = arith.constant 64 : index
    %174 = vector.load %arg11[%c144_278, %c64_279] : memref<192x384xbf16, #tpu.memory_space<vmem>>, vector<16x128xbf16>
    %c256_280 = arith.constant 256 : index
    %c384_281 = arith.constant 384 : index
    %175 = vector.load %arg12[%c256_280, %c384_281] : memref<400x512xbf16, #tpu.memory_space<vmem>>, vector<16x128xbf16>
    tpu.vector_store %arg12[%c256_280, %c384_281], %174 {strides = array<i32>} : memref<400x512xbf16, #tpu.memory_space<vmem>>, vector<16x128xbf16>,
    %c96_282 = arith.constant 96 : index
    %c128_283 = arith.constant 128 : index
    %176 = vector.load %arg11[%c96_282, %c128_283] : memref<192x384xbf16, #tpu.memory_space<vmem>>, vector<16x128xbf16>
    %c272 = arith.constant 272 : index
    %c0_284 = arith.constant 0 : index
    %177 = vector.load %arg12[%c272, %c0_284] : memref<400x512xbf16, #tpu.memory_space<vmem>>, vector<16x128xbf16>
    tpu.vector_store %arg12[%c272, %c0_284], %176 {strides = array<i32>} : memref<400x512xbf16, #tpu.memory_space<vmem>>, vector<16x128xbf16>,
    %c112_285 = arith.constant 112 : index
    %c128_286 = arith.constant 128 : index
    %178 = vector.load %arg11[%c112_285, %c128_286] : memref<192x384xbf16, #tpu.memory_space<vmem>>, vector<16x128xbf16>
    %c272_287 = arith.constant 272 : index
    %c128_288 = arith.constant 128 : index
    %179 = vector.load %arg12[%c272_287, %c128_288] : memref<400x512xbf16, #tpu.memory_space<vmem>>, vector<16x128xbf16>
    tpu.vector_store %arg12[%c272_287, %c128_288], %178 {strides = array<i32>} : memref<400x512xbf16, #tpu.memory_space<vmem>>, vector<16x128xbf16>,
    %c128_289 = arith.constant 128 : index
    %c128_290 = arith.constant 128 : index
    %180 = vector.load %arg11[%c128_289, %c128_290] : memref<192x384xbf16, #tpu.memory_space<vmem>>, vector<16x128xbf16>
    %c272_291 = arith.constant 272 : index
    %c256_292 = arith.constant 256 : index
    %181 = vector.load %arg12[%c272_291, %c256_292] : memref<400x512xbf16, #tpu.memory_space<vmem>>, vector<16x128xbf16>
    tpu.vector_store %arg12[%c272_291, %c256_292], %180 {strides = array<i32>} : memref<400x512xbf16, #tpu.memory_space<vmem>>, vector<16x128xbf16>,
    %c144_293 = arith.constant 144 : index
    %c128_294 = arith.constant 128 : index
    %182 = vector.load %arg11[%c144_293, %c128_294] : memref<192x384xbf16, #tpu.memory_space<vmem>>, vector<16x128xbf16>
    %c272_295 = arith.constant 272 : index
    %c384_296 = arith.constant 384 : index
    %183 = vector.load %arg12[%c272_295, %c384_296] : memref<400x512xbf16, #tpu.memory_space<vmem>>, vector<16x128xbf16>
    tpu.vector_store %arg12[%c272_295, %c384_296], %182 {strides = array<i32>} : memref<400x512xbf16, #tpu.memory_space<vmem>>, vector<16x128xbf16>,
    %c96_297 = arith.constant 96 : index
    %c192_298 = arith.constant 192 : index
    %184 = vector.load %arg11[%c96_297, %c192_298] : memref<192x384xbf16, #tpu.memory_space<vmem>>, vector<16x128xbf16>
    %c288_299 = arith.constant 288 : index
    %c0_300 = arith.constant 0 : index
    %185 = vector.load %arg12[%c288_299, %c0_300] : memref<400x512xbf16, #tpu.memory_space<vmem>>, vector<16x128xbf16>
    tpu.vector_store %arg12[%c288_299, %c0_300], %184 {strides = array<i32>} : memref<400x512xbf16, #tpu.memory_space<vmem>>, vector<16x128xbf16>,
    %c112_301 = arith.constant 112 : index
    %c192_302 = arith.constant 192 : index
    %186 = vector.load %arg11[%c112_301, %c192_302] : memref<192x384xbf16, #tpu.memory_space<vmem>>, vector<16x128xbf16>
    %c288_303 = arith.constant 288 : index
    %c128_304 = arith.constant 128 : index
    %187 = vector.load %arg12[%c288_303, %c128_304] : memref<400x512xbf16, #tpu.memory_space<vmem>>, vector<16x128xbf16>
    tpu.vector_store %arg12[%c288_303, %c128_304], %186 {strides = array<i32>} : memref<400x512xbf16, #tpu.memory_space<vmem>>, vector<16x128xbf16>,
    %c128_305 = arith.constant 128 : index
    %c192_306 = arith.constant 192 : index
    %188 = vector.load %arg11[%c128_305, %c192_306] : memref<192x384xbf16, #tpu.memory_space<vmem>>, vector<16x128xbf16>
    %c288_307 = arith.constant 288 : index
    %c256_308 = arith.constant 256 : index
    %189 = vector.load %arg12[%c288_307, %c256_308] : memref<400x512xbf16, #tpu.memory_space<vmem>>, vector<16x128xbf16>
    tpu.vector_store %arg12[%c288_307, %c256_308], %188 {strides = array<i32>} : memref<400x512xbf16, #tpu.memory_space<vmem>>, vector<16x128xbf16>,
    %c144_309 = arith.constant 144 : index
    %c192_310 = arith.constant 192 : index
    %190 = vector.load %arg11[%c144_309, %c192_310] : memref<192x384xbf16, #tpu.memory_space<vmem>>, vector<16x128xbf16>
    %c288_311 = arith.constant 288 : index
    %c384_312 = arith.constant 384 : index
    %191 = vector.load %arg12[%c288_311, %c384_312] : memref<400x512xbf16, #tpu.memory_space<vmem>>, vector<16x128xbf16>
    tpu.vector_store %arg12[%c288_311, %c384_312], %190 {strides = array<i32>} : memref<400x512xbf16, #tpu.memory_space<vmem>>, vector<16x128xbf16>,
    %c96_313 = arith.constant 96 : index
    %c256_314 = arith.constant 256 : index
    %192 = vector.load %arg11[%c96_313, %c256_314] : memref<192x384xbf16, #tpu.memory_space<vmem>>, vector<16x128xbf16>
    %c304 = arith.constant 304 : index
    %c0_315 = arith.constant 0 : index
    %193 = vector.load %arg12[%c304, %c0_315] : memref<400x512xbf16, #tpu.memory_space<vmem>>, vector<16x128xbf16>
    tpu.vector_store %arg12[%c304, %c0_315], %192 {strides = array<i32>} : memref<400x512xbf16, #tpu.memory_space<vmem>>, vector<16x128xbf16>,
    %c112_316 = arith.constant 112 : index
    %c256_317 = arith.constant 256 : index
    %194 = vector.load %arg11[%c112_316, %c256_317] : memref<192x384xbf16, #tpu.memory_space<vmem>>, vector<16x128xbf16>
    %c304_318 = arith.constant 304 : index
    %c128_319 = arith.constant 128 : index
    %195 = vector.load %arg12[%c304_318, %c128_319] : memref<400x512xbf16, #tpu.memory_space<vmem>>, vector<16x128xbf16>
    tpu.vector_store %arg12[%c304_318, %c128_319], %194 {strides = array<i32>} : memref<400x512xbf16, #tpu.memory_space<vmem>>, vector<16x128xbf16>,
    %c128_320 = arith.constant 128 : index
    %c256_321 = arith.constant 256 : index
    %196 = vector.load %arg11[%c128_320, %c256_321] : memref<192x384xbf16, #tpu.memory_space<vmem>>, vector<16x128xbf16>
    %c304_322 = arith.constant 304 : index
    %c256_323 = arith.constant 256 : index
    %197 = vector.load %arg12[%c304_322, %c256_323] : memref<400x512xbf16, #tpu.memory_space<vmem>>, vector<16x128xbf16>
    tpu.vector_store %arg12[%c304_322, %c256_323], %196 {strides = array<i32>} : memref<400x512xbf16, #tpu.memory_space<vmem>>, vector<16x128xbf16>,
    %c144_324 = arith.constant 144 : index
    %c256_325 = arith.constant 256 : index
    %198 = vector.load %arg11[%c144_324, %c256_325] : memref<192x384xbf16, #tpu.memory_space<vmem>>, vector<16x128xbf16>
    %c304_326 = arith.constant 304 : index
    %c384_327 = arith.constant 384 : index
    %199 = vector.load %arg12[%c304_326, %c384_327] : memref<400x512xbf16, #tpu.memory_space<vmem>>, vector<16x128xbf16>
    tpu.vector_store %arg12[%c304_326, %c384_327], %198 {strides = array<i32>} : memref<400x512xbf16, #tpu.memory_space<vmem>>, vector<16x128xbf16>,
    %c128_328 = arith.constant 128 : index
    %c0_329 = arith.constant 0 : index
    %200 = vector.load %arg11[%c128_328, %c0_329] : memref<192x384xbf16, #tpu.memory_space<vmem>>, vector<16x128xbf16>
    %c320_330 = arith.constant 320 : index
    %c0_331 = arith.constant 0 : index
    %201 = vector.load %arg12[%c320_330, %c0_331] : memref<400x512xbf16, #tpu.memory_space<vmem>>, vector<16x128xbf16>
    tpu.vector_store %arg12[%c320_330, %c0_331], %200 {strides = array<i32>} : memref<400x512xbf16, #tpu.memory_space<vmem>>, vector<16x128xbf16>,
    %c144_332 = arith.constant 144 : index
    %c0_333 = arith.constant 0 : index
    %202 = vector.load %arg11[%c144_332, %c0_333] : memref<192x384xbf16, #tpu.memory_space<vmem>>, vector<16x128xbf16>
    %c320_334 = arith.constant 320 : index
    %c128_335 = arith.constant 128 : index
    %203 = vector.load %arg12[%c320_334, %c128_335] : memref<400x512xbf16, #tpu.memory_space<vmem>>, vector<16x128xbf16>
    tpu.vector_store %arg12[%c320_334, %c128_335], %202 {strides = array<i32>} : memref<400x512xbf16, #tpu.memory_space<vmem>>, vector<16x128xbf16>,
    %c160_336 = arith.constant 160 : index
    %c0_337 = arith.constant 0 : index
    %204 = vector.load %arg11[%c160_336, %c0_337] : memref<192x384xbf16, #tpu.memory_space<vmem>>, vector<16x128xbf16>
    %c320_338 = arith.constant 320 : index
    %c256_339 = arith.constant 256 : index
    %205 = vector.load %arg12[%c320_338, %c256_339] : memref<400x512xbf16, #tpu.memory_space<vmem>>, vector<16x128xbf16>
    tpu.vector_store %arg12[%c320_338, %c256_339], %204 {strides = array<i32>} : memref<400x512xbf16, #tpu.memory_space<vmem>>, vector<16x128xbf16>,
    %c176_340 = arith.constant 176 : index
    %c0_341 = arith.constant 0 : index
    %206 = vector.load %arg11[%c176_340, %c0_341] : memref<192x384xbf16, #tpu.memory_space<vmem>>, vector<16x128xbf16>
    %c320_342 = arith.constant 320 : index
    %c384_343 = arith.constant 384 : index
    %207 = vector.load %arg12[%c320_342, %c384_343] : memref<400x512xbf16, #tpu.memory_space<vmem>>, vector<16x128xbf16>
    tpu.vector_store %arg12[%c320_342, %c384_343], %206 {strides = array<i32>} : memref<400x512xbf16, #tpu.memory_space<vmem>>, vector<16x128xbf16>,
    %c128_344 = arith.constant 128 : index
    %c64_345 = arith.constant 64 : index
    %208 = vector.load %arg11[%c128_344, %c64_345] : memref<192x384xbf16, #tpu.memory_space<vmem>>, vector<16x128xbf16>
    %c336 = arith.constant 336 : index
    %c0_346 = arith.constant 0 : index
    %209 = vector.load %arg12[%c336, %c0_346] : memref<400x512xbf16, #tpu.memory_space<vmem>>, vector<16x128xbf16>
    tpu.vector_store %arg12[%c336, %c0_346], %208 {strides = array<i32>} : memref<400x512xbf16, #tpu.memory_space<vmem>>, vector<16x128xbf16>,
    %c144_347 = arith.constant 144 : index
    %c64_348 = arith.constant 64 : index
    %210 = vector.load %arg11[%c144_347, %c64_348] : memref<192x384xbf16, #tpu.memory_space<vmem>>, vector<16x128xbf16>
    %c336_349 = arith.constant 336 : index
    %c128_350 = arith.constant 128 : index
    %211 = vector.load %arg12[%c336_349, %c128_350] : memref<400x512xbf16, #tpu.memory_space<vmem>>, vector<16x128xbf16>
    tpu.vector_store %arg12[%c336_349, %c128_350], %210 {strides = array<i32>} : memref<400x512xbf16, #tpu.memory_space<vmem>>, vector<16x128xbf16>,
    %c160_351 = arith.constant 160 : index
    %c64_352 = arith.constant 64 : index
    %212 = vector.load %arg11[%c160_351, %c64_352] : memref<192x384xbf16, #tpu.memory_space<vmem>>, vector<16x128xbf16>
    %c336_353 = arith.constant 336 : index
    %c256_354 = arith.constant 256 : index
    %213 = vector.load %arg12[%c336_353, %c256_354] : memref<400x512xbf16, #tpu.memory_space<vmem>>, vector<16x128xbf16>
    tpu.vector_store %arg12[%c336_353, %c256_354], %212 {strides = array<i32>} : memref<400x512xbf16, #tpu.memory_space<vmem>>, vector<16x128xbf16>,
    %c176_355 = arith.constant 176 : index
    %c64_356 = arith.constant 64 : index
    %214 = vector.load %arg11[%c176_355, %c64_356] : memref<192x384xbf16, #tpu.memory_space<vmem>>, vector<16x128xbf16>
    %c336_357 = arith.constant 336 : index
    %c384_358 = arith.constant 384 : index
    %215 = vector.load %arg12[%c336_357, %c384_358] : memref<400x512xbf16, #tpu.memory_space<vmem>>, vector<16x128xbf16>
    tpu.vector_store %arg12[%c336_357, %c384_358], %214 {strides = array<i32>} : memref<400x512xbf16, #tpu.memory_space<vmem>>, vector<16x128xbf16>,
    %c128_359 = arith.constant 128 : index
    %c128_360 = arith.constant 128 : index
    %216 = vector.load %arg11[%c128_359, %c128_360] : memref<192x384xbf16, #tpu.memory_space<vmem>>, vector<16x128xbf16>
    %c352_361 = arith.constant 352 : index
    %c0_362 = arith.constant 0 : index
    %217 = vector.load %arg12[%c352_361, %c0_362] : memref<400x512xbf16, #tpu.memory_space<vmem>>, vector<16x128xbf16>
    tpu.vector_store %arg12[%c352_361, %c0_362], %216 {strides = array<i32>} : memref<400x512xbf16, #tpu.memory_space<vmem>>, vector<16x128xbf16>,
    %c144_363 = arith.constant 144 : index
    %c128_364 = arith.constant 128 : index
    %218 = vector.load %arg11[%c144_363, %c128_364] : memref<192x384xbf16, #tpu.memory_space<vmem>>, vector<16x128xbf16>
    %c352_365 = arith.constant 352 : index
    %c128_366 = arith.constant 128 : index
    %219 = vector.load %arg12[%c352_365, %c128_366] : memref<400x512xbf16, #tpu.memory_space<vmem>>, vector<16x128xbf16>
    tpu.vector_store %arg12[%c352_365, %c128_366], %218 {strides = array<i32>} : memref<400x512xbf16, #tpu.memory_space<vmem>>, vector<16x128xbf16>,
    %c160_367 = arith.constant 160 : index
    %c128_368 = arith.constant 128 : index
    %220 = vector.load %arg11[%c160_367, %c128_368] : memref<192x384xbf16, #tpu.memory_space<vmem>>, vector<16x128xbf16>
    %c352_369 = arith.constant 352 : index
    %c256_370 = arith.constant 256 : index
    %221 = vector.load %arg12[%c352_369, %c256_370] : memref<400x512xbf16, #tpu.memory_space<vmem>>, vector<16x128xbf16>
    tpu.vector_store %arg12[%c352_369, %c256_370], %220 {strides = array<i32>} : memref<400x512xbf16, #tpu.memory_space<vmem>>, vector<16x128xbf16>,
    %c176_371 = arith.constant 176 : index
    %c128_372 = arith.constant 128 : index
    %222 = vector.load %arg11[%c176_371, %c128_372] : memref<192x384xbf16, #tpu.memory_space<vmem>>, vector<16x128xbf16>
    %c352_373 = arith.constant 352 : index
    %c384_374 = arith.constant 384 : index
    %223 = vector.load %arg12[%c352_373, %c384_374] : memref<400x512xbf16, #tpu.memory_space<vmem>>, vector<16x128xbf16>
    tpu.vector_store %arg12[%c352_373, %c384_374], %222 {strides = array<i32>} : memref<400x512xbf16, #tpu.memory_space<vmem>>, vector<16x128xbf16>,
    %c128_375 = arith.constant 128 : index
    %c192_376 = arith.constant 192 : index
    %224 = vector.load %arg11[%c128_375, %c192_376] : memref<192x384xbf16, #tpu.memory_space<vmem>>, vector<16x128xbf16>
    %c368 = arith.constant 368 : index
    %c0_377 = arith.constant 0 : index
    %225 = vector.load %arg12[%c368, %c0_377] : memref<400x512xbf16, #tpu.memory_space<vmem>>, vector<16x128xbf16>
    tpu.vector_store %arg12[%c368, %c0_377], %224 {strides = array<i32>} : memref<400x512xbf16, #tpu.memory_space<vmem>>, vector<16x128xbf16>,
    %c144_378 = arith.constant 144 : index
    %c192_379 = arith.constant 192 : index
    %226 = vector.load %arg11[%c144_378, %c192_379] : memref<192x384xbf16, #tpu.memory_space<vmem>>, vector<16x128xbf16>
    %c368_380 = arith.constant 368 : index
    %c128_381 = arith.constant 128 : index
    %227 = vector.load %arg12[%c368_380, %c128_381] : memref<400x512xbf16, #tpu.memory_space<vmem>>, vector<16x128xbf16>
    tpu.vector_store %arg12[%c368_380, %c128_381], %226 {strides = array<i32>} : memref<400x512xbf16, #tpu.memory_space<vmem>>, vector<16x128xbf16>,
    %c160_382 = arith.constant 160 : index
    %c192_383 = arith.constant 192 : index
    %228 = vector.load %arg11[%c160_382, %c192_383] : memref<192x384xbf16, #tpu.memory_space<vmem>>, vector<16x128xbf16>
    %c368_384 = arith.constant 368 : index
    %c256_385 = arith.constant 256 : index
    %229 = vector.load %arg12[%c368_384, %c256_385] : memref<400x512xbf16, #tpu.memory_space<vmem>>, vector<16x128xbf16>
    tpu.vector_store %arg12[%c368_384, %c256_385], %228 {strides = array<i32>} : memref<400x512xbf16, #tpu.memory_space<vmem>>, vector<16x128xbf16>,
    %c176_386 = arith.constant 176 : index
    %c192_387 = arith.constant 192 : index
    %230 = vector.load %arg11[%c176_386, %c192_387] : memref<192x384xbf16, #tpu.memory_space<vmem>>, vector<16x128xbf16>
    %c368_388 = arith.constant 368 : index
    %c384_389 = arith.constant 384 : index
    %231 = vector.load %arg12[%c368_388, %c384_389] : memref<400x512xbf16, #tpu.memory_space<vmem>>, vector<16x128xbf16>
    tpu.vector_store %arg12[%c368_388, %c384_389], %230 {strides = array<i32>} : memref<400x512xbf16, #tpu.memory_space<vmem>>, vector<16x128xbf16>,
    %c128_390 = arith.constant 128 : index
    %c256_391 = arith.constant 256 : index
    %232 = vector.load %arg11[%c128_390, %c256_391] : memref<192x384xbf16, #tpu.memory_space<vmem>>, vector<16x128xbf16>
    %c384_392 = arith.constant 384 : index
    %c0_393 = arith.constant 0 : index
    %233 = vector.load %arg12[%c384_392, %c0_393] : memref<400x512xbf16, #tpu.memory_space<vmem>>, vector<16x128xbf16>
    tpu.vector_store %arg12[%c384_392, %c0_393], %232 {strides = array<i32>} : memref<400x512xbf16, #tpu.memory_space<vmem>>, vector<16x128xbf16>,
    %c144_394 = arith.constant 144 : index
    %c256_395 = arith.constant 256 : index
    %234 = vector.load %arg11[%c144_394, %c256_395] : memref<192x384xbf16, #tpu.memory_space<vmem>>, vector<16x128xbf16>
    %c384_396 = arith.constant 384 : index
    %c128_397 = arith.constant 128 : index
    %235 = vector.load %arg12[%c384_396, %c128_397] : memref<400x512xbf16, #tpu.memory_space<vmem>>, vector<16x128xbf16>
    tpu.vector_store %arg12[%c384_396, %c128_397], %234 {strides = array<i32>} : memref<400x512xbf16, #tpu.memory_space<vmem>>, vector<16x128xbf16>,
    %c160_398 = arith.constant 160 : index
    %c256_399 = arith.constant 256 : index
    %236 = vector.load %arg11[%c160_398, %c256_399] : memref<192x384xbf16, #tpu.memory_space<vmem>>, vector<16x128xbf16>
    %c384_400 = arith.constant 384 : index
    %c256_401 = arith.constant 256 : index
    %237 = vector.load %arg12[%c384_400, %c256_401] : memref<400x512xbf16, #tpu.memory_space<vmem>>, vector<16x128xbf16>
    tpu.vector_store %arg12[%c384_400, %c256_401], %236 {strides = array<i32>} : memref<400x512xbf16, #tpu.memory_space<vmem>>, vector<16x128xbf16>,
    %c176_402 = arith.constant 176 : index
    %c256_403 = arith.constant 256 : index
    %238 = vector.load %arg11[%c176_402, %c256_403] : memref<192x384xbf16, #tpu.memory_space<vmem>>, vector<16x128xbf16>
    %c384_404 = arith.constant 384 : index
    %c384_405 = arith.constant 384 : index
    %239 = vector.load %arg12[%c384_404, %c384_405] : memref<400x512xbf16, #tpu.memory_space<vmem>>, vector<16x128xbf16>
    tpu.vector_store %arg12[%c384_404, %c384_405], %238 {strides = array<i32>} : memref<400x512xbf16, #tpu.memory_space<vmem>>, vector<16x128xbf16>,
    %c0_406 = arith.constant 0 : index
    %c0_407 = arith.constant 0 : index
    %240 = vector.load %arg12[%c0_406, %c0_407] : memref<400x512xbf16, #tpu.memory_space<vmem>>, vector<400x512xbf16>
    %c0_408 = arith.constant 0 : index
    %c0_409 = arith.constant 0 : index
    %241 = vector.load %arg4[%c0_408, %c0_409] : memref<512x256xbf16, #tpu.memory_space<vmem>>, vector<512x256xbf16>
    %cst_410 = arith.constant dense<0.000000e+00> : vector<400x256xf32>
    %242 = tpu.matmul %240, %241, %cst_410 {dimension_numbers = #tpu.dot_dimension_numbers<[1], [0], [0], [1], [0, 0, 1, 1], [], []>} : vector<400x512xbf16>, vector<512x256xbf16>, vector<400x256xf32> -> vector<400x256xf32>
    %243 = vector.extract_strided_slice %242 {offsets = [0, 0], sizes = [400, 64], strides = [1, 1]} : vector<400x256xf32> to vector<400x64xf32>
    %244 = vector.extract_strided_slice %242 {offsets = [0, 64], sizes = [400, 64], strides = [1, 1]} : vector<400x256xf32> to vector<400x64xf32>
    %245 = arith.maximumf %243, %244 : vector<400x64xf32>
    %246 = vector.extract_strided_slice %242 {offsets = [0, 128], sizes = [400, 64], strides = [1, 1]} : vector<400x256xf32> to vector<400x64xf32>
    %247 = vector.extract_strided_slice %242 {offsets = [0, 192], sizes = [400, 64], strides = [1, 1]} : vector<400x256xf32> to vector<400x64xf32>
    %248 = arith.maximumf %246, %247 : vector<400x64xf32>
    %249 = arith.maximumf %245, %248 : vector<400x64xf32>
    %c0_411 = arith.constant 0 : index
    %c0_412 = arith.constant 0 : index
    %250 = vector.load %arg5[%c0_411, %c0_412] : memref<1x64xf32, #tpu.memory_space<vmem>>, vector<1x64xf32>
    %251 = vector.broadcast %250 : vector<1x64xf32> to vector<400x64xf32>
    %252 = arith.addf %249, %251 : vector<400x64xf32>
    %cst_413 = arith.constant 0.000000e+00 : f32
    %253 = vector.broadcast %cst_413 : f32 to vector<400x64xf32>
    %254 = arith.maximumf %252, %253 : vector<400x64xf32>
    %255 = arith.truncf %254 : vector<400x64xf32> to vector<400x64xbf16>
    %256 = vector.extract_strided_slice %255 {offsets = [0, 0], sizes = [16, 64], strides = [1, 1]} : vector<400x64xbf16> to vector<16x64xbf16>
    %c0_414 = arith.constant 0 : index
    %c0_415 = arith.constant 0 : index
    %257 = vector.load %arg13[%c0_414, %c0_415] : memref<16x1600xbf16, #tpu.memory_space<vmem>>, vector<16x64xbf16>
    tpu.vector_store %arg13[%c0_414, %c0_415], %256 {strides = array<i32>} : memref<16x1600xbf16, #tpu.memory_space<vmem>>, vector<16x64xbf16>,
    %258 = vector.extract_strided_slice %255 {offsets = [16, 0], sizes = [16, 64], strides = [1, 1]} : vector<400x64xbf16> to vector<16x64xbf16>
    %c0_416 = arith.constant 0 : index
    %c64_417 = arith.constant 64 : index
    %259 = vector.load %arg13[%c0_416, %c64_417] : memref<16x1600xbf16, #tpu.memory_space<vmem>>, vector<16x64xbf16>
    tpu.vector_store %arg13[%c0_416, %c64_417], %258 {strides = array<i32>} : memref<16x1600xbf16, #tpu.memory_space<vmem>>, vector<16x64xbf16>,
    %260 = vector.extract_strided_slice %255 {offsets = [32, 0], sizes = [16, 64], strides = [1, 1]} : vector<400x64xbf16> to vector<16x64xbf16>
    %c0_418 = arith.constant 0 : index
    %c128_419 = arith.constant 128 : index
    %261 = vector.load %arg13[%c0_418, %c128_419] : memref<16x1600xbf16, #tpu.memory_space<vmem>>, vector<16x64xbf16>
    tpu.vector_store %arg13[%c0_418, %c128_419], %260 {strides = array<i32>} : memref<16x1600xbf16, #tpu.memory_space<vmem>>, vector<16x64xbf16>,
    %262 = vector.extract_strided_slice %255 {offsets = [48, 0], sizes = [16, 64], strides = [1, 1]} : vector<400x64xbf16> to vector<16x64xbf16>
    %c0_420 = arith.constant 0 : index
    %c192_421 = arith.constant 192 : index
    %263 = vector.load %arg13[%c0_420, %c192_421] : memref<16x1600xbf16, #tpu.memory_space<vmem>>, vector<16x64xbf16>
    tpu.vector_store %arg13[%c0_420, %c192_421], %262 {strides = array<i32>} : memref<16x1600xbf16, #tpu.memory_space<vmem>>, vector<16x64xbf16>,
    %264 = vector.extract_strided_slice %255 {offsets = [64, 0], sizes = [16, 64], strides = [1, 1]} : vector<400x64xbf16> to vector<16x64xbf16>
    %c0_422 = arith.constant 0 : index
    %c256_423 = arith.constant 256 : index
    %265 = vector.load %arg13[%c0_422, %c256_423] : memref<16x1600xbf16, #tpu.memory_space<vmem>>, vector<16x64xbf16>
    tpu.vector_store %arg13[%c0_422, %c256_423], %264 {strides = array<i32>} : memref<16x1600xbf16, #tpu.memory_space<vmem>>, vector<16x64xbf16>,
    %266 = vector.extract_strided_slice %255 {offsets = [80, 0], sizes = [16, 64], strides = [1, 1]} : vector<400x64xbf16> to vector<16x64xbf16>
    %c0_424 = arith.constant 0 : index
    %c320_425 = arith.constant 320 : index
    %267 = vector.load %arg13[%c0_424, %c320_425] : memref<16x1600xbf16, #tpu.memory_space<vmem>>, vector<16x64xbf16>
    tpu.vector_store %arg13[%c0_424, %c320_425], %266 {strides = array<i32>} : memref<16x1600xbf16, #tpu.memory_space<vmem>>, vector<16x64xbf16>,
    %268 = vector.extract_strided_slice %255 {offsets = [96, 0], sizes = [16, 64], strides = [1, 1]} : vector<400x64xbf16> to vector<16x64xbf16>
    %c0_426 = arith.constant 0 : index
    %c384_427 = arith.constant 384 : index
    %269 = vector.load %arg13[%c0_426, %c384_427] : memref<16x1600xbf16, #tpu.memory_space<vmem>>, vector<16x64xbf16>
    tpu.vector_store %arg13[%c0_426, %c384_427], %268 {strides = array<i32>} : memref<16x1600xbf16, #tpu.memory_space<vmem>>, vector<16x64xbf16>,
    %270 = vector.extract_strided_slice %255 {offsets = [112, 0], sizes = [16, 64], strides = [1, 1]} : vector<400x64xbf16> to vector<16x64xbf16>
    %c0_428 = arith.constant 0 : index
    %c448 = arith.constant 448 : index
    %271 = vector.load %arg13[%c0_428, %c448] : memref<16x1600xbf16, #tpu.memory_space<vmem>>, vector<16x64xbf16>
    tpu.vector_store %arg13[%c0_428, %c448], %270 {strides = array<i32>} : memref<16x1600xbf16, #tpu.memory_space<vmem>>, vector<16x64xbf16>,
    %272 = vector.extract_strided_slice %255 {offsets = [128, 0], sizes = [16, 64], strides = [1, 1]} : vector<400x64xbf16> to vector<16x64xbf16>
    %c0_429 = arith.constant 0 : index
    %c512 = arith.constant 512 : index
    %273 = vector.load %arg13[%c0_429, %c512] : memref<16x1600xbf16, #tpu.memory_space<vmem>>, vector<16x64xbf16>
    tpu.vector_store %arg13[%c0_429, %c512], %272 {strides = array<i32>} : memref<16x1600xbf16, #tpu.memory_space<vmem>>, vector<16x64xbf16>,
    %274 = vector.extract_strided_slice %255 {offsets = [144, 0], sizes = [16, 64], strides = [1, 1]} : vector<400x64xbf16> to vector<16x64xbf16>
    %c0_430 = arith.constant 0 : index
    %c576 = arith.constant 576 : index
    %275 = vector.load %arg13[%c0_430, %c576] : memref<16x1600xbf16, #tpu.memory_space<vmem>>, vector<16x64xbf16>
    tpu.vector_store %arg13[%c0_430, %c576], %274 {strides = array<i32>} : memref<16x1600xbf16, #tpu.memory_space<vmem>>, vector<16x64xbf16>,
    %276 = vector.extract_strided_slice %255 {offsets = [160, 0], sizes = [16, 64], strides = [1, 1]} : vector<400x64xbf16> to vector<16x64xbf16>
    %c0_431 = arith.constant 0 : index
    %c640 = arith.constant 640 : index
    %277 = vector.load %arg13[%c0_431, %c640] : memref<16x1600xbf16, #tpu.memory_space<vmem>>, vector<16x64xbf16>
    tpu.vector_store %arg13[%c0_431, %c640], %276 {strides = array<i32>} : memref<16x1600xbf16, #tpu.memory_space<vmem>>, vector<16x64xbf16>,
    %278 = vector.extract_strided_slice %255 {offsets = [176, 0], sizes = [16, 64], strides = [1, 1]} : vector<400x64xbf16> to vector<16x64xbf16>
    %c0_432 = arith.constant 0 : index
    %c704 = arith.constant 704 : index
    %279 = vector.load %arg13[%c0_432, %c704] : memref<16x1600xbf16, #tpu.memory_space<vmem>>, vector<16x64xbf16>
    tpu.vector_store %arg13[%c0_432, %c704], %278 {strides = array<i32>} : memref<16x1600xbf16, #tpu.memory_space<vmem>>, vector<16x64xbf16>,
    %280 = vector.extract_strided_slice %255 {offsets = [192, 0], sizes = [16, 64], strides = [1, 1]} : vector<400x64xbf16> to vector<16x64xbf16>
    %c0_433 = arith.constant 0 : index
    %c768 = arith.constant 768 : index
    %281 = vector.load %arg13[%c0_433, %c768] : memref<16x1600xbf16, #tpu.memory_space<vmem>>, vector<16x64xbf16>
    tpu.vector_store %arg13[%c0_433, %c768], %280 {strides = array<i32>} : memref<16x1600xbf16, #tpu.memory_space<vmem>>, vector<16x64xbf16>,
    %282 = vector.extract_strided_slice %255 {offsets = [208, 0], sizes = [16, 64], strides = [1, 1]} : vector<400x64xbf16> to vector<16x64xbf16>
    %c0_434 = arith.constant 0 : index
    %c832 = arith.constant 832 : index
    %283 = vector.load %arg13[%c0_434, %c832] : memref<16x1600xbf16, #tpu.memory_space<vmem>>, vector<16x64xbf16>
    tpu.vector_store %arg13[%c0_434, %c832], %282 {strides = array<i32>} : memref<16x1600xbf16, #tpu.memory_space<vmem>>, vector<16x64xbf16>,
    %284 = vector.extract_strided_slice %255 {offsets = [224, 0], sizes = [16, 64], strides = [1, 1]} : vector<400x64xbf16> to vector<16x64xbf16>
    %c0_435 = arith.constant 0 : index
    %c896 = arith.constant 896 : index
    %285 = vector.load %arg13[%c0_435, %c896] : memref<16x1600xbf16, #tpu.memory_space<vmem>>, vector<16x64xbf16>
    tpu.vector_store %arg13[%c0_435, %c896], %284 {strides = array<i32>} : memref<16x1600xbf16, #tpu.memory_space<vmem>>, vector<16x64xbf16>,
    %286 = vector.extract_strided_slice %255 {offsets = [240, 0], sizes = [16, 64], strides = [1, 1]} : vector<400x64xbf16> to vector<16x64xbf16>
    %c0_436 = arith.constant 0 : index
    %c960 = arith.constant 960 : index
    %287 = vector.load %arg13[%c0_436, %c960] : memref<16x1600xbf16, #tpu.memory_space<vmem>>, vector<16x64xbf16>
    tpu.vector_store %arg13[%c0_436, %c960], %286 {strides = array<i32>} : memref<16x1600xbf16, #tpu.memory_space<vmem>>, vector<16x64xbf16>,
    %288 = vector.extract_strided_slice %255 {offsets = [256, 0], sizes = [16, 64], strides = [1, 1]} : vector<400x64xbf16> to vector<16x64xbf16>
    %c0_437 = arith.constant 0 : index
    %c1024 = arith.constant 1024 : index
    %289 = vector.load %arg13[%c0_437, %c1024] : memref<16x1600xbf16, #tpu.memory_space<vmem>>, vector<16x64xbf16>
    tpu.vector_store %arg13[%c0_437, %c1024], %288 {strides = array<i32>} : memref<16x1600xbf16, #tpu.memory_space<vmem>>, vector<16x64xbf16>,
    %290 = vector.extract_strided_slice %255 {offsets = [272, 0], sizes = [16, 64], strides = [1, 1]} : vector<400x64xbf16> to vector<16x64xbf16>
    %c0_438 = arith.constant 0 : index
    %c1088 = arith.constant 1088 : index
    %291 = vector.load %arg13[%c0_438, %c1088] : memref<16x1600xbf16, #tpu.memory_space<vmem>>, vector<16x64xbf16>
    tpu.vector_store %arg13[%c0_438, %c1088], %290 {strides = array<i32>} : memref<16x1600xbf16, #tpu.memory_space<vmem>>, vector<16x64xbf16>,
    %292 = vector.extract_strided_slice %255 {offsets = [288, 0], sizes = [16, 64], strides = [1, 1]} : vector<400x64xbf16> to vector<16x64xbf16>
    %c0_439 = arith.constant 0 : index
    %c1152 = arith.constant 1152 : index
    %293 = vector.load %arg13[%c0_439, %c1152] : memref<16x1600xbf16, #tpu.memory_space<vmem>>, vector<16x64xbf16>
    tpu.vector_store %arg13[%c0_439, %c1152], %292 {strides = array<i32>} : memref<16x1600xbf16, #tpu.memory_space<vmem>>, vector<16x64xbf16>,
    %294 = vector.extract_strided_slice %255 {offsets = [304, 0], sizes = [16, 64], strides = [1, 1]} : vector<400x64xbf16> to vector<16x64xbf16>
    %c0_440 = arith.constant 0 : index
    %c1216 = arith.constant 1216 : index
    %295 = vector.load %arg13[%c0_440, %c1216] : memref<16x1600xbf16, #tpu.memory_space<vmem>>, vector<16x64xbf16>
    tpu.vector_store %arg13[%c0_440, %c1216], %294 {strides = array<i32>} : memref<16x1600xbf16, #tpu.memory_space<vmem>>, vector<16x64xbf16>,
    %296 = vector.extract_strided_slice %255 {offsets = [320, 0], sizes = [16, 64], strides = [1, 1]} : vector<400x64xbf16> to vector<16x64xbf16>
    %c0_441 = arith.constant 0 : index
    %c1280 = arith.constant 1280 : index
    %297 = vector.load %arg13[%c0_441, %c1280] : memref<16x1600xbf16, #tpu.memory_space<vmem>>, vector<16x64xbf16>
    tpu.vector_store %arg13[%c0_441, %c1280], %296 {strides = array<i32>} : memref<16x1600xbf16, #tpu.memory_space<vmem>>, vector<16x64xbf16>,
    %298 = vector.extract_strided_slice %255 {offsets = [336, 0], sizes = [16, 64], strides = [1, 1]} : vector<400x64xbf16> to vector<16x64xbf16>
    %c0_442 = arith.constant 0 : index
    %c1344 = arith.constant 1344 : index
    %299 = vector.load %arg13[%c0_442, %c1344] : memref<16x1600xbf16, #tpu.memory_space<vmem>>, vector<16x64xbf16>
    tpu.vector_store %arg13[%c0_442, %c1344], %298 {strides = array<i32>} : memref<16x1600xbf16, #tpu.memory_space<vmem>>, vector<16x64xbf16>,
    %300 = vector.extract_strided_slice %255 {offsets = [352, 0], sizes = [16, 64], strides = [1, 1]} : vector<400x64xbf16> to vector<16x64xbf16>
    %c0_443 = arith.constant 0 : index
    %c1408 = arith.constant 1408 : index
    %301 = vector.load %arg13[%c0_443, %c1408] : memref<16x1600xbf16, #tpu.memory_space<vmem>>, vector<16x64xbf16>
    tpu.vector_store %arg13[%c0_443, %c1408], %300 {strides = array<i32>} : memref<16x1600xbf16, #tpu.memory_space<vmem>>, vector<16x64xbf16>,
    %302 = vector.extract_strided_slice %255 {offsets = [368, 0], sizes = [16, 64], strides = [1, 1]} : vector<400x64xbf16> to vector<16x64xbf16>
    %c0_444 = arith.constant 0 : index
    %c1472 = arith.constant 1472 : index
    %303 = vector.load %arg13[%c0_444, %c1472] : memref<16x1600xbf16, #tpu.memory_space<vmem>>, vector<16x64xbf16>
    tpu.vector_store %arg13[%c0_444, %c1472], %302 {strides = array<i32>} : memref<16x1600xbf16, #tpu.memory_space<vmem>>, vector<16x64xbf16>,
    %304 = vector.extract_strided_slice %255 {offsets = [384, 0], sizes = [16, 64], strides = [1, 1]} : vector<400x64xbf16> to vector<16x64xbf16>
    %c0_445 = arith.constant 0 : index
    %c1536 = arith.constant 1536 : index
    %305 = vector.load %arg13[%c0_445, %c1536] : memref<16x1600xbf16, #tpu.memory_space<vmem>>, vector<16x64xbf16>
    tpu.vector_store %arg13[%c0_445, %c1536], %304 {strides = array<i32>} : memref<16x1600xbf16, #tpu.memory_space<vmem>>, vector<16x64xbf16>,
    %c0_446 = arith.constant 0 : index
    %c0_447 = arith.constant 0 : index
    %306 = vector.load %arg13[%c0_446, %c0_447] : memref<16x1600xbf16, #tpu.memory_space<vmem>>, vector<16x1600xbf16>
    %c0_448 = arith.constant 0 : index
    %c0_449 = arith.constant 0 : index
    %307 = vector.load %arg6[%c0_448, %c0_449] : memref<1600x64xbf16, #tpu.memory_space<vmem>>, vector<1600x64xbf16>
    %cst_450 = arith.constant dense<0.000000e+00> : vector<16x64xf32>
    %308 = tpu.matmul %306, %307, %cst_450 {dimension_numbers = #tpu.dot_dimension_numbers<[1], [0], [0], [1], [0, 0, 1, 1], [], []>} : vector<16x1600xbf16>, vector<1600x64xbf16>, vector<16x64xf32> -> vector<16x64xf32>
    %c0_451 = arith.constant 0 : index
    %c0_452 = arith.constant 0 : index
    %309 = vector.load %arg7[%c0_451, %c0_452] : memref<1x64xf32, #tpu.memory_space<vmem>>, vector<1x64xf32>
    %310 = vector.broadcast %309 : vector<1x64xf32> to vector<16x64xf32>
    %311 = arith.addf %308, %310 : vector<16x64xf32>
    %cst_453 = arith.constant 0.000000e+00 : f32
    %312 = vector.broadcast %cst_453 : f32 to vector<16x64xf32>
    %313 = arith.maximumf %311, %312 : vector<16x64xf32>
    %c0_454 = arith.constant 0 : index
    %c0_455 = arith.constant 0 : index
    %314 = vector.load %arg8[%c0_454, %c0_455] : memref<64x10xf32, #tpu.memory_space<vmem>>, vector<64x10xf32>
    %cst_456 = arith.constant dense<0.000000e+00> : vector<16x10xf32>
    %315 = tpu.matmul %313, %314, %cst_456 {dimension_numbers = #tpu.dot_dimension_numbers<[1], [0], [0], [1], [0, 0, 1, 1], [], []>} : vector<16x64xf32>, vector<64x10xf32>, vector<16x10xf32> -> vector<16x10xf32>
    %c0_457 = arith.constant 0 : index
    %c0_458 = arith.constant 0 : index
    %316 = vector.load %arg9[%c0_457, %c0_458] : memref<1x10xf32, #tpu.memory_space<vmem>>, vector<1x10xf32>
    %317 = vector.broadcast %316 : vector<1x10xf32> to vector<16x10xf32>
    %318 = arith.addf %315, %317 : vector<16x10xf32>
    %cst_459 = arith.constant dense<0xFF800000> : vector<16xf32>
    %319 = vector.multi_reduction <maximumf>, %318, %cst_459 [1] : vector<16x10xf32> to vector<16xf32>
    %320 = vector.shape_cast %319 : vector<16xf32> to vector<16x1xf32>
    %321 = vector.broadcast %320 : vector<16x1xf32> to vector<16x10xf32>
    %322 = arith.subf %318, %321 : vector<16x10xf32>
    %323 = math.exp %322 : vector<16x10xf32>
    %cst_460 = arith.constant dense<0.000000e+00> : vector<16xf32>
    %324 = vector.multi_reduction <add>, %323, %cst_460 [1] : vector<16x10xf32> to vector<16xf32>
    %325 = vector.shape_cast %324 : vector<16xf32> to vector<16x1xf32>
    %326 = vector.broadcast %325 : vector<16x1xf32> to vector<16x10xf32>
    %327 = arith.divf %323, %326 : vector<16x10xf32>
    %c0_461 = arith.constant 0 : index
    %c0_462 = arith.constant 0 : index
    %328 = vector.load %arg10[%c0_461, %c0_462] : memref<16x10xf32, #tpu.memory_space<vmem>>, vector<16x10xf32>
    tpu.vector_store %arg10[%c0_461, %c0_462], %327 {strides = array<i32>} : memref<16x10xf32, #tpu.memory_space<vmem>>, vector<16x10xf32>,
    return
  }
  func.func @transform_0(%arg0: i32) -> (i32, i32) {
    %c0_i32 = arith.constant 0 : i32
    %c0_i32_0 = arith.constant 0 : i32
    return %arg0, %c0_i32 : i32, i32
  }
  func.func @transform_1(%arg0: i32) -> (i32, i32) {
    %c0_i32 = arith.constant 0 : i32
    %c0_i32_0 = arith.constant 0 : i32
    %c0_i32_1 = arith.constant 0 : i32
    return %c0_i32, %c0_i32_0 : i32, i32
  }
  func.func @transform_2(%arg0: i32) -> (i32, i32) {
    %c0_i32 = arith.constant 0 : i32
    %c0_i32_0 = arith.constant 0 : i32
    %c0_i32_1 = arith.constant 0 : i32
    return %c0_i32, %c0_i32_0 : i32, i32
  }
  func.func @transform_3(%arg0: i32) -> (i32, i32) {
    %c0_i32 = arith.constant 0 : i32
    %c0_i32_0 = arith.constant 0 : i32
    %c0_i32_1 = arith.constant 0 : i32
    return %c0_i32, %c0_i32_0 : i32, i32
  }
  func.func @transform_4(%arg0: i32) -> (i32, i32) {
    %c0_i32 = arith.constant 0 : i32
    %c0_i32_0 = arith.constant 0 : i32
    %c0_i32_1 = arith.constant 0 : i32
    return %c0_i32, %c0_i32_0 : i32, i32
  }
  func.func @transform_5(%arg0: i32) -> (i32, i32) {
    %c0_i32 = arith.constant 0 : i32
    %c0_i32_0 = arith.constant 0 : i32
    %c0_i32_1 = arith.constant 0 : i32
    return %c0_i32, %c0_i32_0 : i32, i32
  }
  func.func @transform_6(%arg0: i32) -> (i32, i32) {
    %c0_i32 = arith.constant 0 : i32
    %c0_i32_0 = arith.constant 0 : i32
    %c0_i32_1 = arith.constant 0 : i32
    return %c0_i32, %c0_i32_0 : i32, i32
  }
  func.func @transform_7(%arg0: i32) -> (i32, i32) {
    %c0_i32 = arith.constant 0 : i32
    %c0_i32_0 = arith.constant 0 : i32
    %c0_i32_1 = arith.constant 0 : i32
    return %c0_i32, %c0_i32_0 : i32, i32
  }
  func.func @transform_8(%arg0: i32) -> (i32, i32) {
    %c0_i32 = arith.constant 0 : i32
    %c0_i32_0 = arith.constant 0 : i32
    %c0_i32_1 = arith.constant 0 : i32
    return %c0_i32, %c0_i32_0 : i32, i32
  }
  func.func @transform_9(%arg0: i32) -> (i32, i32) {
    %c0_i32 = arith.constant 0 : i32
    %c0_i32_0 = arith.constant 0 : i32
    return %arg0, %c0_i32 : i32, i32
  }
}

</mosaic_0001>

<bundles_post_ra>
// kernel: dungnet_forward.1
= control target key start
LH: loop header
LB: loop body
LE: loop exit
PB: predicated region body
PF: predicated region fallthrough
CT: control target
= control target key end

     0   :  { %vm1049_vm0 = vcmask 130048   ;;  %s12014_s11 = smov 96   ;;  %s12015_s10 = smov 64   ;;  %vm6274_vm1 = vcmask 261120   ;;  %vm6335_vm2 = vcmask 523520   ;;  %vm6396_vm3 = vcmask 785920   ;;  %s18799_s1 = inlined_call_operand.vmem [shape: bf16[16,128], index: 1, kind: input, shape index: {}]   ;;  %s18800_s0 = inlined_call_operand.vmem [shape: bf16[2304,16], index: 0, kind: input, shape index: {}]   ;;  %s18801_s2 = inlined_call_operand.vmem [shape: f32[1,32], index: 2, kind: input, shape index: {}]   ;;  %s18802_s3 = inlined_call_operand.vmem [shape: bf16[512,256], index: 3, kind: input, shape index: {}]   ;;  %s18803_s5 = inlined_call_operand.vmem [shape: bf16[1600,64], index: 5, kind: input, shape index: {}]   ;;  %s18804_s4 = inlined_call_operand.vmem [shape: f32[1,64], index: 4, kind: input, shape index: {}]   ;;  %s18805_s6 = inlined_call_operand.vmem [shape: f32[1,64], index: 6, kind: input, shape index: {}]   ;;  %s18806_s7 = inlined_call_operand.vmem [shape: f32[64,10], index: 7, kind: input, shape index: {}]   ;;  %s18807_s8 = inlined_call_operand.vmem [shape: f32[1,10], index: 8, kind: input, shape index: {}]   ;;  %s18808_s9 = inlined_call_operand.vmem [shape: f32[16,10], index: 9, kind: output, shape index: {}]  }
   0x1   :  { %v11653_v0 = vld [vmem:[%s18799_s1] sm:$0xff]   ;;  %v11655_v2 = vld [vmem:[%s18800_s0 + $0x8] sm:$0xff]   ;;  %v11656_v3 = vld [vmem:[%s18800_s0 + $0x10] sm:$0xff]   ;;  %s12016_s29 = smov 32   ;;  %vm6457_vm4 = vcmask 1048320   ;;  %vm6870_vm5 = vcmask 523264  }
   0x2   :  { %v11654_v1 = vld [vmem:[%s18800_s0] sm:$0xff]   ;;  %11211 = vmatprep.subr.bf16.mxu0 %v11653_v0  ;;  %v11657_v4 = vld [vmem:[%s18800_s0 + $0x18] sm:$0xff]   ;;  %v11659_v6 = vld [vmem:[%s18800_s0 + $0x28] sm:$0xff]   ;;  %vm9153_vm6 = vcmask 1048064   ;;  %vm12018_vm7 = vmmov 0   ;;  %vm10430_vm8 = vcmask 80896  }
   0x3   :  { %11212 = vmatpush3.bf16.msra.mxu0 %v11653_v0  ;;  %11213 = vmatprep.mubr.msk.bf16.mxu0 %vm1049_vm0, %v11654_v1  ;;  %v11658_v5 = vld [vmem:[%s18800_s0 + $0x20] sm:$0xff]   ;;  %v11660_v7 = vld [vmem:[%s18800_s0 + $0x30] sm:$0xff]   ;;  %v11661_v8 = vld [vmem:[%s18800_s0 + $0x38] sm:$0xff]  }
   0x4   :  { %v11662_v9 = vld [vmem:[%s18800_s0 + $0x40] sm:$0xff]   ;;  %v11663_v10 = vld [vmem:[%s18800_s0 + $0x48] sm:$0xff]   ;;  %v11664_v11 = vld [vmem:[%s18800_s0 + $0x50] sm:$0xff]  }
   0x5   :  { %v11665_v12 = vld [vmem:[%s18800_s0 + $0x58] sm:$0xff]   ;;  %v11666_v13 = vld [vmem:[%s18800_s0 + $0x60] sm:$0xff]   ;;  %v11667_v14 = vld [vmem:[%s18800_s0 + $0x68] sm:$0xff]  }
   0x6   :  { %11214 = vmatmul.mubr.msk.bf16.vlgmr.msra.gmra.mrb[0].mxu0 %vm1049_vm0, %v11655_v2  ;;  %v11668_v15 = vld [vmem:[%s18800_s0 + $0x70] sm:$0xff]   ;;  %v11669_v16 = vld [vmem:[%s18800_s0 + $0x78] sm:$0xff]   ;;  %v11670_v17 = vld [vmem:[%s18800_s0 + $0x80] sm:$0xff]  }
   0x7   :  { %11217 = vmatprep.mubr.msk.bf16.mxu0 %vm1049_vm0, %v11656_v3  ;;  %v11671_v18 = vld [vmem:[%s18800_s0 + $0x88] sm:$0xff]   ;;  %v11672_v19 = vld [vmem:[%s18800_s0 + $0x90] sm:$0xff]   ;;  %v11673_v20 = vld [vmem:[%s18800_s0 + $0x98] sm:$0xff]  }
   0x8   :  { %v11674_v21 = vld [vmem:[%s18800_s0 + $0xa0] sm:$0xff]   ;;  %v11675_v22 = vld [vmem:[%s18800_s0 + $0xa8] sm:$0xff]   ;;  %v11676_v23 = vld [vmem:[%s18800_s0 + $0xb0] sm:$0xff]  }
   0x9   :  { %v11677_v24 = vld [vmem:[%s18800_s0 + $0xb8] sm:$0xff]   ;;  %v11678_v25 = vld [vmem:[%s18800_s0 + $0xc0] sm:$0xff]   ;;  %v11679_v26 = vld [vmem:[%s18800_s0 + $0xc8] sm:$0xff]  }
   0xa   :  { %v11680_v27 = vld [vmem:[%s18800_s0 + $0xd0] sm:$0xff]   ;;  %v11681_v28 = vld [vmem:[%s18800_s0 + $0xd8] sm:$0xff]   ;;  %v11682_v29 = vld [vmem:[%s18800_s0 + $0xe0] sm:$0xff]  }
   0xb   :  { %v11683_v30 = vld [vmem:[%s18800_s0 + $0xe8] sm:$0xff]   ;;  %v11684_v31 = vld [vmem:[%s18800_s0 + $0xf0] sm:$0xff]   ;;  %v11685_v32 = vld [vmem:[%s18800_s0 + $0xf8] sm:$0xff]  }
   0xc   :  { %v11686_v33 = vld [vmem:[%s18800_s0 + $0x100] sm:$0xff]   ;;  %v11687_v34 = vld [vmem:[%s18800_s0 + $0x108] sm:$0xff]   ;;  %v11688_v35 = vld [vmem:[%s18800_s0 + $0x110] sm:$0xff]  }
   0xd   :  { %v11689_v36 = vld [vmem:[%s18800_s0 + $0x118] sm:$0xff]   ;;  %v11690_v37 = vld [vmem:[%s18800_s0 + $0x120] sm:$0xff]   ;;  %v11691_v38 = vld [vmem:[%s18800_s0 + $0x128] sm:$0xff]  }
   0xe   :  { %11218 = vmatmul.mubr.msk.bf16.gmra.mrb[4].mxu0 %vm1049_vm0, %v11657_v4  ;;  %v11692_v39 = vld [vmem:[%s18800_s0 + $0x130] sm:$0xff]   ;;  %v11693_v40 = vld [vmem:[%s18800_s0 + $0x138] sm:$0xff]   ;;  %v11694_v41 = vld [vmem:[%s18800_s0 + $0x140] sm:$0xff]  }
   0xf   :  { %11221 = vmatprep.mubr.msk.bf16.mxu0 %vm1049_vm0, %v11658_v5  ;;  %v11695_v42 = vld [vmem:[%s18800_s0 + $0x148] sm:$0xff]   ;;  %v11696_v43 = vld [vmem:[%s18800_s0 + $0x150] sm:$0xff]   ;;  %v11697_v44 = vld [vmem:[%s18800_s0 + $0x158] sm:$0xff]  }
  0x10   :  { %v11698_v45 = vld [vmem:[%s18800_s0 + $0x160] sm:$0xff]   ;;  %v11699_v46 = vld [vmem:[%s18800_s0 + $0x168] sm:$0xff]   ;;  %v11700_v47 = vld [vmem:[%s18800_s0 + $0x170] sm:$0xff]  }
  0x11   :  { %v11701_v48 = vld [vmem:[%s18800_s0 + $0x178] sm:$0xff]   ;;  %v11702_v49 = vld [vmem:[%s18800_s0 + $0x180] sm:$0xff]   ;;  %v11703_v50 = vld [vmem:[%s18800_s0 + $0x188] sm:$0xff]  }
  0x12   :  { %v11704_v51 = vld [vmem:[%s18800_s0 + $0x190] sm:$0xff]   ;;  %v11705_v52 = vld [vmem:[%s18800_s0 + $0x198] sm:$0xff]   ;;  %v11706_v53 = vld [vmem:[%s18800_s0 + $0x1a0] sm:$0xff]  }
  0x13   :  { %v11707_v54 = vld [vmem:[%s18800_s0 + $0x1a8] sm:$0xff]   ;;  %v11708_v55 = vld [vmem:[%s18800_s0 + $0x1b0] sm:$0xff]   ;;  %v11709_v58 = vld [vmem:[%s18800_s0 + $0x1b8] sm:$0xff]  }
  0x14   :  { %v11710_v60 = vld [vmem:[%s18800_s0 + $0x1c0] sm:$0xff]   ;;  %v11711_v0 = vld [vmem:[%s18800_s0 + $0x1c8] sm:$0xff]   ;;  %v11712_v2 = vld [vmem:[%s18800_s0 + $0x1d0] sm:$0xff]  }
  0x16   :  { %11222 = vmatmul.mubr.msk.bf16.gmra.mrb[8].mxu0 %vm1049_vm0, %v11659_v6  ;;  %v11713_v6 = vld [vmem:[%s18800_s0 + $0x1d8] sm:$0xff]  }
  0x17   :  { %11225 = vmatprep.mubr.msk.bf16.mxu0 %vm1049_vm0, %v11660_v7 }
  0x1e   :  { %11226 = vmatmul.mubr.msk.bf16.gmra.mrb[12].mxu0 %vm1049_vm0, %v11661_v8  ;;  %v11714_v8 = vld [vmem:[%s18800_s0 + $0x1e0] sm:$0xff]  }
  0x1f   :  { %11229 = vmatprep.mubr.msk.bf16.mxu0 %vm1049_vm0, %v11662_v9 }
  0x26   :  { %11230 = vmatmul.mubr.msk.bf16.gmra.mrb[16].mxu0 %vm1049_vm0, %v11663_v10 }
  0x27   :  { %11233 = vmatprep.mubr.msk.bf16.mxu0 %vm1049_vm0, %v11664_v11 }
  0x2e   :  { %11234 = vmatmul.mubr.msk.bf16.gmra.mrb[20].mxu0 %vm1049_vm0, %v11665_v12  ;;  %v11715_v12 = vld [vmem:[%s18800_s0 + $0x1e8] sm:$0xff]  }
  0x2f   :  { %11237 = vmatprep.mubr.msk.bf16.mxu0 %vm1049_vm0, %v11666_v13 }
  0x36   :  { %11238 = vmatmul.mubr.msk.bf16.gmra.mrb[24].mxu0 %vm1049_vm0, %v11667_v14  ;;  %v11716_v14 = vld [vmem:[%s18800_s0 + $0x1f0] sm:$0xff]  }
  0x37   :  { %11241 = vmatprep.mubr.msk.bf16.mxu0 %vm1049_vm0, %v11668_v15 }
  0x3e   :  { %11242 = vmatmul.mubr.msk.bf16.gmra.mrb[28].mxu0 %vm1049_vm0, %v11669_v16 }
  0x3f   :  { %11245 = vmatprep.mubr.msk.bf16.mxu0 %vm1049_vm0, %v11670_v17 }
  0x46   :  { %11246 = vmatmul.mubr.msk.bf16.gmra.mrb[32].mxu0 %vm1049_vm0, %v11671_v18  ;;  %v11717_v18 = vld [vmem:[%s18800_s0 + $0x1f8] sm:$0xff]  }
  0x47   :  { %11249 = vmatprep.mubr.msk.bf16.mxu0 %vm1049_vm0, %v11672_v19 }
  0x4e   :  { %11250 = vmatmul.mubr.msk.bf16.gmra.mrb[36].mxu0 %vm1049_vm0, %v11673_v20  ;;  %v11718_v20 = vld [vmem:[%s18800_s0 + $0x200] sm:$0xff]  }
  0x4f   :  { %11253 = vmatprep.mubr.msk.bf16.mxu0 %vm1049_vm0, %v11674_v21 }
  0x56   :  { %11254 = vmatmul.mubr.msk.bf16.gmra.mrb[40].mxu0 %vm1049_vm0, %v11675_v22 }
  0x57   :  { %11257 = vmatprep.mubr.msk.bf16.mxu0 %vm1049_vm0, %v11676_v23 }
  0x5e   :  { %11258 = vmatmul.mubr.msk.bf16.gmra.mrb[44].mxu0 %vm1049_vm0, %v11677_v24  ;;  %v11719_v24 = vld [vmem:[%s18800_s0 + $0x208] sm:$0xff]  }
  0x5f   :  { %11261 = vmatprep.mubr.msk.bf16.mxu0 %vm1049_vm0, %v11678_v25 }
  0x66   :  { %11262 = vmatmul.mubr.msk.bf16.gmra.mrb[48].mxu0 %vm1049_vm0, %v11679_v26  ;;  %v11720_v26 = vld [vmem:[%s18800_s0 + $0x210] sm:$0xff]  }
  0x67   :  { %11265 = vmatprep.mubr.msk.bf16.mxu0 %vm1049_vm0, %v11680_v27 }
  0x6e   :  { %11266 = vmatmul.mubr.msk.bf16.gmra.mrb[52].mxu0 %vm1049_vm0, %v11681_v28 }
  0x6f   :  { %11269 = vmatprep.mubr.msk.bf16.mxu0 %vm1049_vm0, %v11682_v29 }
  0x76   :  { %11270 = vmatmul.mubr.msk.bf16.gmra.mrb[56].mxu0 %vm1049_vm0, %v11683_v30  ;;  %v11721_v30 = vld [vmem:[%s18800_s0 + $0x218] sm:$0xff]  }
  0x77   :  { %11273 = vmatprep.mubr.msk.bf16.mxu0 %vm1049_vm0, %v11684_v31 }
  0x7e   :  { %11274 = vmatmul.mubr.msk.bf16.gmra.mrb[60].mxu0 %vm1049_vm0, %v11685_v32  ;;  %v11722_v32 = vld [vmem:[%s18800_s0 + $0x220] sm:$0xff]  }
  0x7f   :  { %11277 = vmatprep.mubr.msk.bf16.mxu0 %vm1049_vm0, %v11686_v33 }
  0x86   :  { %11278 = vmatmul.mubr.msk.bf16.gmra.mrb[64].mxu0 %vm1049_vm0, %v11687_v34 }
  0x87   :  { %11281 = vmatprep.mubr.msk.bf16.mxu0 %vm1049_vm0, %v11688_v35 }
  0x8e   :  { %11282 = vmatmul.mubr.msk.bf16.gmra.mrb[68].mxu0 %vm1049_vm0, %v11689_v36  ;;  %v11723_v36 = vld [vmem:[%s18800_s0 + $0x228] sm:$0xff]  }
  0x8f   :  { %11285 = vmatprep.mubr.msk.bf16.mxu0 %vm1049_vm0, %v11690_v37 }
  0x96   :  { %11286 = vmatmul.mubr.msk.bf16.gmra.mrb[72].mxu0 %vm1049_vm0, %v11691_v38  ;;  %v11724_v38 = vld [vmem:[%s18800_s0 + $0x230] sm:$0xff]  }
  0x97   :  { %11289 = vmatprep.mubr.msk.bf16.mxu0 %vm1049_vm0, %v11692_v39 }
  0x9e   :  { %11290 = vmatmul.mubr.msk.bf16.gmra.mrb[76].mxu0 %vm1049_vm0, %v11693_v40 }
  0x9f   :  { %11293 = vmatprep.mubr.msk.bf16.mxu0 %vm1049_vm0, %v11694_v41 }
  0xa6   :  { %11294 = vmatmul.mubr.msk.bf16.gmra.mrb[80].mxu0 %vm1049_vm0, %v11695_v42  ;;  %v11725_v42 = vld [vmem:[%s18800_s0 + $0x238] sm:$0xff]  }
  0xa7   :  { %11297 = vmatprep.mubr.msk.bf16.mxu0 %vm1049_vm0, %v11696_v43 }
  0xae   :  { %11298 = vmatmul.mubr.msk.bf16.gmra.mrb[84].mxu0 %vm1049_vm0, %v11697_v44  ;;  %v11726_v44 = vld [vmem:[%s18800_s0 + $0x240] sm:$0xff]  }
  0xaf   :  { %11301 = vmatprep.mubr.msk.bf16.mxu0 %vm1049_vm0, %v11698_v45 }
  0xb6   :  { %11302 = vmatmul.mubr.msk.bf16.gmra.mrb[88].mxu0 %vm1049_vm0, %v11699_v46 }
  0xb7   :  { %11305 = vmatprep.mubr.msk.bf16.mxu0 %vm1049_vm0, %v11700_v47 }
  0xbe   :  { %11306 = vmatmul.mubr.msk.bf16.gmra.mrb[92].mxu0 %vm1049_vm0, %v11701_v48  ;;  %v11727_v48 = vld [vmem:[%s18800_s0 + $0x248] sm:$0xff]  }
  0xbf   :  { %11309 = vmatprep.mubr.msk.bf16.mxu0 %vm1049_vm0, %v11702_v49 }
  0xc6   :  { %11310 = vmatmul.mubr.msk.bf16.gmra.mrb[96].mxu0 %vm1049_vm0, %v11703_v50  ;;  %v11728_v50 = vld [vmem:[%s18800_s0 + $0x250] sm:$0xff]  }
  0xc7   :  { %11313 = vmatprep.mubr.msk.bf16.mxu0 %vm1049_vm0, %v11704_v51 }
  0xce   :  { %11314 = vmatmul.mubr.msk.bf16.gmra.mrb[100].mxu0 %vm1049_vm0, %v11705_v52 }
  0xcf   :  { %11317 = vmatprep.mubr.msk.bf16.mxu0 %vm1049_vm0, %v11706_v53 }
  0xd6   :  { %11318 = vmatmul.mubr.msk.bf16.gmra.mrb[104].mxu0 %vm1049_vm0, %v11707_v54  ;;  %v11729_v54 = vld [vmem:[%s18800_s0 + $0x258] sm:$0xff]  }
  0xd7   :  { %11321 = vmatprep.mubr.msk.bf16.mxu0 %vm1049_vm0, %v11708_v55 }
  0xd9   :  { %v12292_v56 = vpop.f32.mrb[0].mxu0 }
  0xda   :  { %2959 = vrot.lane.b32.xlu1 %v12292_v56, %s12014_s11  ;;  %v12296_v57 = vpop.f32.mrb[1].mxu0 }
  0xdb   :  { %2955 = vrot.lane.b32.xlu0 %v12296_v57, %s12014_s11  ;;  %v12303_v59 = vpop.f32.mrb[2].mxu0 }
  0xdc   :  { %v12308_v61 = vpop.f32.mrb[3].mxu0 }
  0xde   :  { %2961 = vrot.lane.b32.xlu1 %v12303_v59, %s12014_s11  ;;  %11322 = vmatmul.mubr.msk.bf16.gmra.mrb[108].mxu0 %vm1049_vm0, %v11709_v58  ;;  %v11730_v58 = vld [vmem:[%s18800_s0 + $0x260] sm:$0xff]  }
  0xdf   :  { %2957 = vrot.lane.b32.xlu0 %v12308_v61, %s12014_s11  ;;  %11325 = vmatprep.mubr.msk.bf16.mxu0 %vm1049_vm0, %v11710_v60 }
  0xe1   :  { %v12316_v62 = vpop.f32.mrb[4].mxu0 }
  0xe2   :  { %v12318_v63 = vpop.f32.mrb[5].mxu0 }
  0xe3   :  { %2967 = vrot.lane.b32.xlu0 %v12316_v62, %s12014_s11  ;;  %v12325_v1 = vpop.f32.mrb[6].mxu0 }
  0xe4   :  { %2969 = vrot.lane.b32.xlu1 %v12325_v1, %s12014_s11  ;;  %v12332_v3 = vpop.f32.mrb[7].mxu0 }
  0xe6   :  { %11326 = vmatmul.mubr.msk.bf16.gmra.mrb[112].mxu0 %vm1049_vm0, %v11711_v0 }
  0xe7   :  { %2963 = vrot.lane.b32.xlu0 %v12318_v63, %s12014_s11  ;;  %11329 = vmatprep.mubr.msk.bf16.mxu0 %vm1049_vm0, %v11712_v2 }
  0xe8   :  { %2965 = vrot.lane.b32.xlu1 %v12332_v3, %s12014_s11 }
  0xe9   :  { %v12340_v4 = vpop.f32.mrb[8].mxu0 }
  0xea   :  { %19194 = vst [vmem:[#allocation5_spill] sm:$0xff] %v12340_v4  ;;  %v12342_v5 = vpop.f32.mrb[9].mxu0 }
  0xeb   :  { %19195 = vst [vmem:[#allocation6_spill] sm:$0xff] %v12342_v5  ;;  %2975 = vrot.lane.b32.xlu0 %v12340_v4, %s12014_s11  ;;  %v12349_v7 = vpop.f32.mrb[10].mxu0 }
  0xec   :  { %19196 = vst [vmem:[#allocation7_spill] sm:$0xff] %v12349_v7  ;;  %2977 = vrot.lane.b32.xlu1 %v12349_v7, %s12014_s11  ;;  %v12356_v9 = vpop.f32.mrb[11].mxu0 }
  0xed   :  { %19197 = vst [vmem:[#allocation8_spill] sm:$0xff] %v12356_v9 }
  0xee   :  { %11330 = vmatmul.mubr.msk.bf16.gmra.mrb[116].mxu0 %vm1049_vm0, %v11713_v6  ;;  %v11731_v6 = vld [vmem:[%s18800_s0 + $0x268] sm:$0xff]  }
  0xef   :  { %2971 = vrot.lane.b32.xlu0 %v12342_v5, %s12014_s11  ;;  %11333 = vmatprep.mubr.msk.bf16.mxu0 %vm1049_vm0, %v11714_v8 }
  0xf0   :  { %2973 = vrot.lane.b32.xlu1 %v12356_v9, %s12014_s11 }
  0xf1   :  { %v12364_v10 = vpop.f32.mrb[12].mxu0 }
  0xf2   :  { %19198 = vst [vmem:[#allocation9_spill] sm:$0xff] %v12364_v10  ;;  %v12366_v11 = vpop.f32.mrb[13].mxu0 }
  0xf3   :  { %19199 = vst [vmem:[#allocation10_spill] sm:$0xff] %v12366_v11  ;;  %2983 = vrot.lane.b32.xlu0 %v12364_v10, %s12014_s11  ;;  %v12373_v13 = vpop.f32.mrb[14].mxu0 }
  0xf4   :  { %19200 = vst [vmem:[#allocation11_spill] sm:$0xff] %v12373_v13  ;;  %2985 = vrot.lane.b32.xlu1 %v12373_v13, %s12014_s11  ;;  %v12380_v15 = vpop.f32.mrb[15].mxu0 }
  0xf5   :  { %19201 = vst [vmem:[#allocation12_spill] sm:$0xff] %v12380_v15 }
  0xf6   :  { %11334 = vmatmul.mubr.msk.bf16.gmra.mrb[120].mxu0 %vm1049_vm0, %v11715_v12  ;;  %v11732_v12 = vld [vmem:[%s18800_s0 + $0x270] sm:$0xff]  }
  0xf7   :  { %2979 = vrot.lane.b32.xlu0 %v12366_v11, %s12014_s11  ;;  %11337 = vmatprep.mubr.msk.bf16.mxu0 %vm1049_vm0, %v11716_v14 }
  0xf8   :  { %2981 = vrot.lane.b32.xlu1 %v12380_v15, %s12014_s11 }
  0xf9   :  { %v12388_v16 = vpop.f32.mrb[16].mxu0 }
  0xfa   :  { %19202 = vst [vmem:[#allocation13_spill] sm:$0xff] %v12388_v16  ;;  %v12390_v17 = vpop.f32.mrb[17].mxu0 }
  0xfb   :  { %19203 = vst [vmem:[#allocation14_spill] sm:$0xff] %v12390_v17  ;;  %2991 = vrot.lane.b32.xlu0 %v12388_v16, %s12014_s11  ;;  %v12397_v19 = vpop.f32.mrb[18].mxu0 }
  0xfc   :  { %19204 = vst [vmem:[#allocation15_spill] sm:$0xff] %v12397_v19  ;;  %2993 = vrot.lane.b32.xlu1 %v12397_v19, %s12014_s11  ;;  %v12404_v21 = vpop.f32.mrb[19].mxu0 }
  0xfd   :  { %19205 = vst [vmem:[#allocation16_spill] sm:$0xff] %v12404_v21 }
  0xfe   :  { %11338 = vmatmul.mubr.msk.bf16.gmra.mrb[124].mxu0 %vm1049_vm0, %v11717_v18 }
  0xff   :  { %2987 = vrot.lane.b32.xlu0 %v12390_v17, %s12014_s11  ;;  %11341 = vmatprep.mubr.msk.bf16.mxu0 %vm1049_vm0, %v11718_v20 }
 0x100   :  { %2989 = vrot.lane.b32.xlu1 %v12404_v21, %s12014_s11 }
 0x101   :  { %v12412_v22 = vpop.f32.mrb[20].mxu0 }
 0x102   :  { %19206 = vst [vmem:[#allocation17_spill] sm:$0xff] %v12412_v22  ;;  %v12414_v23 = vpop.f32.mrb[21].mxu0 }
 0x103   :  { %19207 = vst [vmem:[#allocation18_spill] sm:$0xff] %v12414_v23  ;;  %2999 = vrot.lane.b32.xlu0 %v12412_v22, %s12014_s11  ;;  %v12421_v25 = vpop.f32.mrb[22].mxu0 }
 0x104   :  { %19208 = vst [vmem:[#allocation19_spill] sm:$0xff] %v12421_v25  ;;  %3001 = vrot.lane.b32.xlu1 %v12421_v25, %s12014_s11  ;;  %v12428_v27 = vpop.f32.mrb[23].mxu0 }
 0x105   :  { %19209 = vst [vmem:[#allocation20_spill] sm:$0xff] %v12428_v27 }
 0x106   :  { %11342 = vmatmul.mubr.msk.bf16.gmra.mrb[128].mxu0 %vm1049_vm0, %v11719_v24  ;;  %v11733_v24 = vld [vmem:[%s18800_s0 + $0x278] sm:$0xff]  }
 0x107   :  { %2995 = vrot.lane.b32.xlu0 %v12414_v23, %s12014_s11  ;;  %11345 = vmatprep.mubr.msk.bf16.mxu0 %vm1049_vm0, %v11720_v26 }
 0x108   :  { %2997 = vrot.lane.b32.xlu1 %v12428_v27, %s12014_s11 }
 0x109   :  { %v12436_v28 = vpop.f32.mrb[24].mxu0 }
 0x10a   :  { %v12438_v29 = vpop.f32.mrb[25].mxu0 }
 0x10b   :  { %3007 = vrot.lane.b32.xlu0 %v12436_v28, %s12014_s11  ;;  %v12445_v31 = vpop.f32.mrb[26].mxu0 }
 0x10c   :  { %3009 = vrot.lane.b32.xlu1 %v12445_v31, %s12014_s11  ;;  %v12452_v33 = vpop.f32.mrb[27].mxu0 }
 0x10e   :  { %11346 = vmatmul.mubr.msk.bf16.gmra.mrb[132].mxu0 %vm1049_vm0, %v11721_v30  ;;  %v11734_v30 = vld [vmem:[%s18800_s0 + $0x280] sm:$0xff]  }
 0x10f   :  { %3003 = vrot.lane.b32.xlu0 %v12438_v29, %s12014_s11  ;;  %11349 = vmatprep.mubr.msk.bf16.mxu0 %vm1049_vm0, %v11722_v32 }
 0x110   :  { %3005 = vrot.lane.b32.xlu1 %v12452_v33, %s12014_s11 }
 0x111   :  { %v12460_v34 = vpop.f32.mrb[28].mxu0 }
 0x112   :  { %v12462_v35 = vpop.f32.mrb[29].mxu0 }
 0x113   :  { %3015 = vrot.lane.b32.xlu0 %v12460_v34, %s12014_s11  ;;  %v12469_v37 = vpop.f32.mrb[30].mxu0 }
 0x114   :  { %3017 = vrot.lane.b32.xlu1 %v12469_v37, %s12014_s11  ;;  %v12476_v39 = vpop.f32.mrb[31].mxu0 }
 0x116   :  { %11350 = vmatmul.mubr.msk.bf16.gmra.mrb[136].mxu0 %vm1049_vm0, %v11723_v36 }
 0x117   :  { %3011 = vrot.lane.b32.xlu0 %v12462_v35, %s12014_s11  ;;  %11353 = vmatprep.mubr.msk.bf16.mxu0 %vm1049_vm0, %v11724_v38 }
 0x118   :  { %3013 = vrot.lane.b32.xlu1 %v12476_v39, %s12014_s11 }
 0x119   :  { %v12484_v40 = vpop.f32.mrb[32].mxu0 }
 0x11a   :  { %v12486_v41 = vpop.f32.mrb[33].mxu0 }
 0x11b   :  { %3023 = vrot.lane.b32.xlu0 %v12484_v40, %s12014_s11  ;;  %v12493_v43 = vpop.f32.mrb[34].mxu0 }
 0x11c   :  { %3025 = vrot.lane.b32.xlu1 %v12493_v43, %s12014_s11  ;;  %v12500_v45 = vpop.f32.mrb[35].mxu0 }
 0x11e   :  { %11354 = vmatmul.mubr.msk.bf16.gmra.mrb[140].mxu0 %vm1049_vm0, %v11725_v42  ;;  %v11735_v42 = vld [vmem:[%s18800_s0 + $0x288] sm:$0xff]  }
 0x11f   :  { %3019 = vrot.lane.b32.xlu0 %v12486_v41, %s12014_s11  ;;  %11357 = vmatprep.mubr.msk.bf16.mxu0 %vm1049_vm0, %v11726_v44 }
 0x120   :  { %3021 = vrot.lane.b32.xlu1 %v12500_v45, %s12014_s11 }
 0x121   :  { %v12508_v46 = vpop.f32.mrb[36].mxu0 }
 0x122   :  { %v12510_v47 = vpop.f32.mrb[37].mxu0 }
 0x123   :  { %3031 = vrot.lane.b32.xlu0 %v12508_v46, %s12014_s11  ;;  %v12517_v49 = vpop.f32.mrb[38].mxu0 }
 0x124   :  { %3033 = vrot.lane.b32.xlu1 %v12517_v49, %s12014_s11  ;;  %v12524_v51 = vpop.f32.mrb[39].mxu0 }
 0x126   :  { %11358 = vmatmul.mubr.msk.bf16.gmra.mrb[144].mxu0 %vm1049_vm0, %v11727_v48  ;;  %v11736_v48 = vld [vmem:[%s18800_s0 + $0x290] sm:$0xff]  }
 0x127   :  { %3027 = vrot.lane.b32.xlu0 %v12510_v47, %s12014_s11  ;;  %11361 = vmatprep.mubr.msk.bf16.mxu0 %vm1049_vm0, %v11728_v50 }
 0x128   :  { %3029 = vrot.lane.b32.xlu1 %v12524_v51, %s12014_s11 }
 0x129   :  { %v12532_v52 = vpop.f32.mrb[40].mxu0 }
 0x12a   :  { %19210 = vst [vmem:[#allocation21_spill] sm:$0xff] %v12532_v52  ;;  %v12534_v53 = vpop.f32.mrb[41].mxu0 }
 0x12b   :  { %19211 = vst [vmem:[#allocation22_spill] sm:$0xff] %v12534_v53  ;;  %3039 = vrot.lane.b32.xlu0 %v12532_v52, %s12014_s11  ;;  %v12541_v55 = vpop.f32.mrb[42].mxu0 }
 0x12c   :  { %19212 = vst [vmem:[#allocation23_spill] sm:$0xff] %v12541_v55  ;;  %3041 = vrot.lane.b32.xlu1 %v12541_v55, %s12014_s11  ;;  %v12548_v60 = vpop.f32.mrb[43].mxu0 }
 0x12d   :  { %19213 = vst [vmem:[#allocation24_spill] sm:$0xff] %v12548_v60 }
 0x12e   :  { %11362 = vmatmul.mubr.msk.bf16.gmra.mrb[148].mxu0 %vm1049_vm0, %v11729_v54 }
 0x12f   :  { %3035 = vrot.lane.b32.xlu0 %v12534_v53, %s12014_s11  ;;  %11365 = vmatprep.mubr.msk.bf16.mxu0 %vm1049_vm0, %v11730_v58 }
 0x130   :  { %3037 = vrot.lane.b32.xlu1 %v12548_v60, %s12014_s11 }
 0x131   :  { %v12556_v0 = vpop.f32.mrb[44].mxu0 }
 0x132   :  { %19214 = vst [vmem:[#allocation25_spill] sm:$0xff] %v12556_v0  ;;  %v12558_v2 = vpop.f32.mrb[45].mxu0 }
 0x133   :  { %19215 = vst [vmem:[#allocation26_spill] sm:$0xff] %v12558_v2  ;;  %3047 = vrot.lane.b32.xlu0 %v12556_v0, %s12014_s11  ;;  %v12565_v8 = vpop.f32.mrb[46].mxu0 }
 0x134   :  { %19216 = vst [vmem:[#allocation27_spill] sm:$0xff] %v12565_v8  ;;  %3049 = vrot.lane.b32.xlu1 %v12565_v8, %s12014_s11  ;;  %v12572_v14 = vpop.f32.mrb[47].mxu0 }
 0x135   :  { %19217 = vst [vmem:[#allocation28_spill] sm:$0xff] %v12572_v14 }
 0x136   :  { %11366 = vmatmul.mubr.msk.bf16.gmra.mrb[152].mxu0 %vm1049_vm0, %v11731_v6  ;;  %v11737_v6 = vld [vmem:[%s18800_s0 + $0x298] sm:$0xff]  }
 0x137   :  { %3043 = vrot.lane.b32.xlu0 %v12558_v2, %s12014_s11  ;;  %11369 = vmatprep.mubr.msk.bf16.mxu0 %vm1049_vm0, %v11732_v12 }
 0x138   :  { %3045 = vrot.lane.b32.xlu1 %v12572_v14, %s12014_s11 }
 0x139   :  { %v12580_v18 = vpop.f32.mrb[48].mxu0 }
 0x13a   :  { %v12582_v20 = vpop.f32.mrb[49].mxu0 }
 0x13b   :  { %3055 = vrot.lane.b32.xlu0 %v12580_v18, %s12014_s11  ;;  %v12589_v26 = vpop.f32.mrb[50].mxu0 }
 0x13c   :  { %3057 = vrot.lane.b32.xlu1 %v12589_v26, %s12014_s11  ;;  %v12596_v32 = vpop.f32.mrb[51].mxu0 }
 0x13e   :  { %11370 = vmatmul.mubr.msk.bf16.gmra.mrb[156].mxu0 %vm1049_vm0, %v11733_v24  ;;  %v11738_v24 = vld [vmem:[%s18800_s0 + $0x2a0] sm:$0xff]  }
 0x13f   :  { %3051 = vrot.lane.b32.xlu0 %v12582_v20, %s12014_s11  ;;  %11373 = vmatprep.mubr.msk.bf16.mxu0 %vm1049_vm0, %v11734_v30 }
 0x140   :  { %3053 = vrot.lane.b32.xlu1 %v12596_v32, %s12014_s11 }
 0x141   :  { %v12604_v36 = vpop.f32.mrb[52].mxu0 }
 0x142   :  { %v12606_v38 = vpop.f32.mrb[53].mxu0 }
 0x143   :  { %3063 = vrot.lane.b32.xlu0 %v12604_v36, %s12014_s11  ;;  %v12613_v44 = vpop.f32.mrb[54].mxu0 }
 0x144   :  { %3065 = vrot.lane.b32.xlu1 %v12613_v44, %s12014_s11  ;;  %v12620_v50 = vpop.f32.mrb[55].mxu0 }
 0x146   :  { %11374 = vmatmul.mubr.msk.bf16.gmra.mrb[160].mxu0 %vm1049_vm0, %v11735_v42 }
 0x147   :  { %3059 = vrot.lane.b32.xlu0 %v12606_v38, %s12014_s11  ;;  %11377 = vmatprep.mubr.msk.bf16.mxu0 %vm1049_vm0, %v11736_v48 }
 0x148   :  { %3061 = vrot.lane.b32.xlu1 %v12620_v50, %s12014_s11 }
 0x149   :  { %v12628_v54 = vpop.f32.mrb[56].mxu0 }
 0x14a   :  { %v12630_v58 = vpop.f32.mrb[57].mxu0 }
 0x14b   :  { %3071 = vrot.lane.b32.xlu0 %v12628_v54, %s12014_s11  ;;  %v12637_v12 = vpop.f32.mrb[58].mxu0 }
 0x14c   :  { %v2960_v30 = vpop.permute.xlu1 %2959  ;;  %3073 = vrot.lane.b32.xlu1 %v12637_v12, %s12014_s11  ;;  %v12644_v42 = vpop.f32.mrb[59].mxu0 }
 0x14d   :  { %v2956_v48 = vpop.permute.xlu0 %2955  ;;  %v12658_v14 = vmax.f32 %v12292_v56, %v2960_v30 }
 0x14e   :  { %11378 = vmatmul.mubr.msk.bf16.gmra.mrb[164].mxu0 %vm1049_vm0, %v11737_v6  ;;  %v11739_v6 = vld [vmem:[%s18800_s0 + $0x2a8] sm:$0xff]   ;;  %v12677_v30 = vmax.f32 %v12296_v57, %v2956_v48  ;;  %v11741_v48 = vld [vmem:[%s18800_s0 + $0x2b8] sm:$0xff]  }
 0x14f   :  { %3067 = vrot.lane.b32.xlu0 %v12630_v58, %s12014_s11  ;;  %11381 = vmatprep.mubr.msk.bf16.mxu0 %vm1049_vm0, %v11738_v24 }
 0x150   :  { %v2962_v27 = vpop.permute.xlu1 %2961  ;;  %3069 = vrot.lane.b32.xlu1 %v12644_v42, %s12014_s11 }
 0x151   :  { %v12653_v23 = vmax.f32 %v12303_v59, %v2962_v27  ;;  %v2958_v25 = vpop.permute.xlu0 %2957  ;;  %v12655_v22 = vpop.f32.mrb[60].mxu0  ;;  %v11740_v59 = vld [vmem:[%s18800_s0 + $0x2b0] sm:$0xff]  }
 0x152   :  { %v12660_v2 = vpop.f32.mrb[61].mxu0  ;;  %v12686_v0 = vmax.f32 %v12308_v61, %v2958_v25  ;;  %v11742_v61 = vld [vmem:[%s18800_s0 + $0x2c0] sm:$0xff]  }
 0x153   :  { %19218 = vst [vmem:[#allocation29_spill] sm:$0xff] %v12660_v2  ;;  %4401 = vrot.lane.b32.xlu0 %v12653_v23, %s12015_s10  ;;  %v12667_v24 = vpop.f32.mrb[62].mxu0 }
 0x154   :  { %19219 = vst [vmem:[#allocation30_spill] sm:$0xff] %v12667_v24  ;;  %4399 = vrot.lane.b32.xlu1 %v12658_v14, %s12015_s10  ;;  %v12674_v56 = vpop.f32.mrb[63].mxu0 }
 0x155   :  { %19220 = vst [vmem:[#allocation31_spill] sm:$0xff] %v12674_v56  ;;  %v2968_v27 = vpop.permute.xlu0 %2967 }
 0x156   :  { %v2970_v8 = vpop.permute.xlu1 %2969  ;;  %11382 = vmatmul.mubr.msk.bf16.gmra.mrb[168].mxu0 %vm1049_vm0, %v11739_v6  ;;  %v12724_v13 = vmax.f32 %v12316_v62, %v2968_v27 }
 0x157   :  { %3079 = vrot.lane.b32.xlu0 %v12655_v22, %s12014_s11  ;;  %11385 = vmatprep.mubr.msk.bf16.mxu0 %vm1049_vm0, %v11740_v59  ;;  %v12717_v11 = vmax.f32 %v12325_v1, %v2970_v8  ;;  %v11744_v8 = vld [vmem:[%s18800_s0 + $0x2d0] sm:$0xff]  }
 0x158   :  { %4395 = vrot.lane.b32.xlu1 %v12677_v30, %s12015_s10 }
 0x159   :  { %v2964_v21 = vpop.permute.xlu0 %2963  ;;  %v12688_v17 = vpop.f32.mrb[64].mxu0 }
 0x15a   :  { %19221 = vst [vmem:[#allocation32_spill] sm:$0xff] %v12688_v17  ;;  %v2966_v19 = vpop.permute.xlu1 %2965  ;;  %v12690_v57 = vpop.f32.mrb[65].mxu0  ;;  %v12747_v60 = vmax.f32 %v12318_v63, %v2964_v21 }
 0x15b   :  { %19222 = vst [vmem:[#allocation33_spill] sm:$0xff] %v12690_v57  ;;  %4397 = vrot.lane.b32.xlu0 %v12686_v0, %s12015_s10  ;;  %v12697_v6 = vpop.f32.mrb[66].mxu0  ;;  %v12758_v55 = vmax.f32 %v12332_v3, %v2966_v19  ;;  %v11746_v3 = vld [vmem:[%s18800_s0 + $0x2e0] sm:$0xff]  }
 0x15c   :  { %19223 = vst [vmem:[#allocation34_spill] sm:$0xff] %v12697_v6  ;;  %3081 = vrot.lane.b32.xlu1 %v12667_v24, %s12014_s11  ;;  %v12704_v25 = vpop.f32.mrb[67].mxu0 }
 0x15d   :  { %19224 = vst [vmem:[#allocation35_spill] sm:$0xff] %v12704_v25  ;;  %v12706_v59 = vpop.permute.xlu0 %2975 }
 0x15e   :  { %19225 = vst [vmem:[#allocation36_spill] sm:$0xff] %v12706_v59  ;;  %v12708_v16 = vpop.permute.xlu1 %2977  ;;  %11386 = vmatmul.mubr.msk.bf16.gmra.mrb[172].mxu0 %vm1049_vm0, %v11741_v48 }
 0x15f   :  { %19226 = vst [vmem:[#allocation37_spill] sm:$0xff] %v12708_v16  ;;  %3075 = vrot.lane.b32.xlu0 %v12660_v2, %s12014_s11  ;;  %11389 = vmatprep.mubr.msk.bf16.mxu0 %vm1049_vm0, %v11742_v61  ;;  %v11743_v61 = vld [vmem:[%s18800_s0 + $0x2c8] sm:$0xff]  }
 0x160   :  { %3077 = vrot.lane.b32.xlu1 %v12674_v56, %s12014_s11 }
 0x161   :  { %v12719_v15 = vpop.permute.xlu0 %2971  ;;  %v12721_v10 = vpop.f32.mrb[68].mxu0 }
 0x162   :  { %19227 = vst [vmem:[#allocation38_spill] sm:$0xff] %v12719_v15  ;;  %19228 = vst [vmem:[#allocation39_spill] sm:$0xff] %v12721_v10  ;;  %v12726_v53 = vpop.permute.xlu1 %2973  ;;  %v12728_v48 = vpop.f32.mrb[69].mxu0 }
 0x163   :  { %19229 = vst [vmem:[#allocation40_spill] sm:$0xff] %v12726_v53  ;;  %19230 = vst [vmem:[#allocation41_spill] sm:$0xff] %v12728_v48  ;;  %4409 = vrot.lane.b32.xlu0 %v12717_v11, %s12015_s10  ;;  %v12735_v1 = vpop.f32.mrb[70].mxu0 }
 0x164   :  { %19231 = vst [vmem:[#allocation42_spill] sm:$0xff] %v12735_v1  ;;  %4407 = vrot.lane.b32.xlu1 %v12724_v13, %s12015_s10  ;;  %v12742_v62 = vpop.f32.mrb[71].mxu0 }
 0x165   :  { %19232 = vst [vmem:[#allocation43_spill] sm:$0xff] %v12742_v62  ;;  %v12744_v27 = vpop.permute.xlu0 %2983 }
 0x166   :  { %19233 = vst [vmem:[#allocation44_spill] sm:$0xff] %v12744_v27  ;;  %v12749_v52 = vpop.permute.xlu1 %2985  ;;  %11390 = vmatmul.mubr.msk.bf16.gmra.mrb[176].mxu0 %vm1049_vm0, %v11743_v61  ;;  %v11745_v61 = vld [vmem:[%s18800_s0 + $0x2d8] sm:$0xff]  }
 0x167   :  { %19234 = vst [vmem:[#allocation45_spill] sm:$0xff] %v12749_v52  ;;  %3087 = vrot.lane.b32.xlu0 %v12688_v17, %s12014_s11  ;;  %11393 = vmatprep.mubr.msk.bf16.mxu0 %vm1049_vm0, %v11744_v8 }
 0x168   :  { %4403 = vrot.lane.b32.xlu1 %v12747_v60, %s12015_s10 }
 0x169   :  { %v12760_v5 = vpop.permute.xlu0 %2979  ;;  %v12762_v27 = vpop.f32.mrb[72].mxu0 }
 0x16a   :  { %19235 = vst [vmem:[#allocation46_spill] sm:$0xff] %v12760_v5  ;;  %19236 = vst [vmem:[#allocation47_spill] sm:$0xff] %v12762_v27  ;;  %v12764_v63 = vpop.permute.xlu1 %2981  ;;  %v12766_v21 = vpop.f32.mrb[73].mxu0 }
 0x16b   :  { %19237 = vst [vmem:[#allocation48_spill] sm:$0xff] %v12764_v63  ;;  %19238 = vst [vmem:[#allocation49_spill] sm:$0xff] %v12766_v21  ;;  %4405 = vrot.lane.b32.xlu0 %v12758_v55, %s12015_s10  ;;  %v12773_v8 = vpop.f32.mrb[74].mxu0 }
 0x16c   :  { %19239 = vst [vmem:[#allocation50_spill] sm:$0xff] %v12773_v8  ;;  %3089 = vrot.lane.b32.xlu1 %v12697_v6, %s12014_s11  ;;  %v12780_v19 = vpop.f32.mrb[75].mxu0 }
 0x16d   :  { %19240 = vst [vmem:[#allocation51_spill] sm:$0xff] %v12780_v19  ;;  %v12782_v5 = vpop.permute.xlu0 %2991 }
 0x16e   :  { %19241 = vst [vmem:[#allocation52_spill] sm:$0xff] %v12782_v5  ;;  %v12784_v63 = vpop.permute.xlu1 %2993  ;;  %11394 = vmatmul.mubr.msk.bf16.gmra.mrb[180].mxu0 %vm1049_vm0, %v11745_v61  ;;  %v11747_v61 = vld [vmem:[%s18800_s0 + $0x2e8] sm:$0xff]  }
 0x16f   :  { %19242 = vst [vmem:[#allocation53_spill] sm:$0xff] %v12784_v63  ;;  %3083 = vrot.lane.b32.xlu0 %v12690_v57, %s12014_s11  ;;  %11397 = vmatprep.mubr.msk.bf16.mxu0 %vm1049_vm0, %v11746_v3 }
 0x170   :  { %3085 = vrot.lane.b32.xlu1 %v12704_v25, %s12014_s11 }
 0x171   :  { %v12792_v52 = vpop.permute.xlu0 %2987  ;;  %v12794_v17 = vpop.f32.mrb[76].mxu0 }
 0x172   :  { %19243 = vst [vmem:[#allocation54_spill] sm:$0xff] %v12792_v52  ;;  %19244 = vst [vmem:[#allocation55_spill] sm:$0xff] %v12794_v17  ;;  %v12796_v6 = vpop.permute.xlu1 %2989  ;;  %v12798_v15 = vpop.f32.mrb[77].mxu0 }
 0x173   :  { %19245 = vst [vmem:[#allocation56_spill] sm:$0xff] %v12796_v6  ;;  %19246 = vst [vmem:[#allocation57_spill] sm:$0xff] %v12798_v15  ;;  %3095 = vrot.lane.b32.xlu0 %v12721_v10, %s12014_s11  ;;  %v12805_v63 = vpop.f32.mrb[78].mxu0  ;;  %v11748_v10 = vld [vmem:[%s18800_s0 + $0x2f0] sm:$0xff]  }
 0x174   :  { %19247 = vst [vmem:[#allocation58_spill] sm:$0xff] %v12805_v63  ;;  %3097 = vrot.lane.b32.xlu1 %v12735_v1, %s12014_s11  ;;  %v12809_v3 = vpop.f32.mrb[79].mxu0 }
 0x175   :  { %19248 = vst [vmem:[#allocation59_spill] sm:$0xff] %v12809_v3  ;;  %v12811_v52 = vpop.permute.xlu0 %2999 }
 0x176   :  { %19249 = vst [vmem:[#allocation60_spill] sm:$0xff] %v12811_v52  ;;  %v12813_v5 = vpop.permute.xlu1 %3001  ;;  %11398 = vmatmul.mubr.msk.bf16.gmra.mrb[184].mxu0 %vm1049_vm0, %v11747_v61  ;;  %v11749_v61 = vld [vmem:[%s18800_s0 + $0x2f8] sm:$0xff]  }
 0x177   :  { %19250 = vst [vmem:[#allocation61_spill] sm:$0xff] %v12813_v5  ;;  %3091 = vrot.lane.b32.xlu0 %v12728_v48, %s12014_s11  ;;  %11401 = vmatprep.mubr.msk.bf16.mxu0 %vm1049_vm0, %v11748_v10 }
 0x178   :  { %3093 = vrot.lane.b32.xlu1 %v12742_v62, %s12014_s11 }
 0x179   :  { %v12823_v6 = vpop.permute.xlu0 %2995  ;;  %v12825_v1 = vpop.f32.mrb[80].mxu0 }
 0x17a   :  { %19251 = vst [vmem:[#allocation62_spill] sm:$0xff] %v12823_v6  ;;  %19252 = vst [vmem:[#allocation63_spill] sm:$0xff] %v12825_v1  ;;  %v12828_v52 = vpop.permute.xlu1 %2997  ;;  %v12830_v5 = vpop.f32.mrb[81].mxu0 }
 0x17b   :  { %19253 = vst [vmem:[#allocation64_spill] sm:$0xff] %v12828_v52  ;;  %3103 = vrot.lane.b32.xlu0 %v12762_v27, %s12014_s11  ;;  %v12837_v48 = vpop.f32.mrb[82].mxu0  ;;  %v11750_v52 = vld [vmem:[%s18800_s0 + $0x300] sm:$0xff]  }
 0x17c   :  { %19254 = vst [vmem:[#allocation65_spill] sm:$0xff] %v12837_v48  ;;  %3105 = vrot.lane.b32.xlu1 %v12773_v8, %s12014_s11  ;;  %v12841_v6 = vpop.f32.mrb[83].mxu0 }
 0x17d   :  { %v3008_v62 = vpop.permute.xlu0 %3007 }
 0x17e   :  { %v3010_v10 = vpop.permute.xlu1 %3009  ;;  %11402 = vmatmul.mubr.msk.bf16.gmra.mrb[188].mxu0 %vm1049_vm0, %v11749_v61  ;;  %v11751_v61 = vld [vmem:[%s18800_s0 + $0x308] sm:$0xff]   ;;  %v12908_v2 = vmax.f32 %v12436_v28, %v3008_v62  ;;  %v11754_v62 = vld [vmem:[%s18800_s0 + $0x320] sm:$0xff]  }
 0x17f   :  { %3099 = vrot.lane.b32.xlu0 %v12766_v21, %s12014_s11  ;;  %11405 = vmatprep.mubr.msk.bf16.mxu0 %vm1049_vm0, %v11750_v52 }
 0x180   :  { %3101 = vrot.lane.b32.xlu1 %v12780_v19, %s12014_s11  ;;  %19263 = vst [vmem:[#allocation74_spill] sm:$0xff] %v12908_v2 }
 0x181   :  { %v3004_v57 = vpop.permute.xlu0 %3003  ;;  %v12851_v25 = vpop.f32.mrb[84].mxu0 }
 0x182   :  { %19255 = vst [vmem:[#allocation66_spill] sm:$0xff] %v12851_v25  ;;  %v3006_v9 = vpop.permute.xlu1 %3005  ;;  %v12854_v53 = vpop.f32.mrb[85].mxu0 }
 0x183   :  { %3111 = vrot.lane.b32.xlu0 %v12794_v17, %s12014_s11  ;;  %v12861_v4 = vpop.f32.mrb[86].mxu0 }
 0x184   :  { %19256 = vst [vmem:[#allocation67_spill] sm:$0xff] %v12861_v4  ;;  %3113 = vrot.lane.b32.xlu1 %v12805_v63, %s12014_s11  ;;  %v12865_v59 = vpop.f32.mrb[87].mxu0 }
 0x185   :  { %v3016_v7 = vpop.permute.xlu0 %3015 }
 0x186   :  { %v3018_v16 = vpop.permute.xlu1 %3017  ;;  %11406 = vmatmul.mubr.msk.bf16.gmra.mrb[192].mxu0 %vm1049_vm0, %v11751_v61  ;;  %v11752_v61 = vld [vmem:[%s18800_s0 + $0x310] sm:$0xff]  }
 0x187   :  { %3107 = vrot.lane.b32.xlu0 %v12798_v15, %s12014_s11  ;;  %11409 = vmatprep.mubr.msk.bf16.mxu0 %vm1049_vm0, %v11752_v61 }
 0x188   :  { %3109 = vrot.lane.b32.xlu1 %v12809_v3, %s12014_s11  ;;  %v11753_v3 = vld [vmem:[%s18800_s0 + $0x318] sm:$0xff]  }
 0x189   :  { %v3012_v52 = vpop.permute.xlu0 %3011  ;;  %v12872_v21 = vpop.f32.mrb[88].mxu0 }
 0x18a   :  { %19257 = vst [vmem:[#allocation68_spill] sm:$0xff] %v12872_v21  ;;  %v3014_v17 = vpop.permute.xlu1 %3013  ;;  %v12874_v19 = vpop.f32.mrb[89].mxu0 }
 0x18b   :  { %19258 = vst [vmem:[#allocation69_spill] sm:$0xff] %v12874_v19  ;;  %3119 = vrot.lane.b32.xlu0 %v12825_v1, %s12014_s11  ;;  %v12878_v63 = vpop.f32.mrb[90].mxu0 }
 0x18c   :  { %19259 = vst [vmem:[#allocation70_spill] sm:$0xff] %v12878_v63  ;;  %3121 = vrot.lane.b32.xlu1 %v12837_v48, %s12014_s11  ;;  %v12885_v15 = vpop.f32.mrb[91].mxu0  ;;  %v12901_v48 = vmax.f32 %v12445_v31, %v3010_v10 }
 0x18d   :  { %19260 = vst [vmem:[#allocation71_spill] sm:$0xff] %v12885_v15  ;;  %v12890_v27 = vpop.permute.xlu0 %3023 }
 0x18e   :  { %v12893_v1 = vpop.permute.xlu1 %3025  ;;  %11410 = vmatmul.mubr.msk.bf16.gmra.mrb[196].mxu0 %vm1049_vm0, %v11753_v3  ;;  %19261 = vst [vmem:[#allocation72_spill] sm:$0xff] %v12901_v48 }
 0x18f   :  { %3115 = vrot.lane.b32.xlu0 %v12830_v5, %s12014_s11  ;;  %11413 = vmatprep.mubr.msk.bf16.mxu0 %vm1049_vm0, %v11754_v62 }
 0x190   :  { %3117 = vrot.lane.b32.xlu1 %v12841_v6, %s12014_s11 }
 0x191   :  { %v12903_v8 = vpop.permute.xlu0 %3019  ;;  %v12905_v56 = vpop.f32.mrb[92].mxu0 }
 0x192   :  { %19262 = vst [vmem:[#allocation73_spill] sm:$0xff] %v12905_v56  ;;  %v12910_v61 = vpop.permute.xlu1 %3021  ;;  %v12912_v24 = vpop.f32.mrb[93].mxu0  ;;  %v12925_v56 = vmax.f32 %v12438_v29, %v3004_v57 }
 0x193   :  { %19264 = vst [vmem:[#allocation75_spill] sm:$0xff] %v12912_v24  ;;  %4449 = vrot.lane.b32.xlu0 %v12901_v48, %s12015_s10  ;;  %v12916_v3 = vpop.f32.mrb[94].mxu0  ;;  %v12940_v24 = vmax.f32 %v12452_v33, %v3006_v9 }
 0x194   :  { %19265 = vst [vmem:[#allocation76_spill] sm:$0xff] %v12916_v3  ;;  %4447 = vrot.lane.b32.xlu1 %v12908_v2, %s12015_s10  ;;  %v12920_v31 = vpop.f32.mrb[95].mxu0  ;;  %19267 = vst [vmem:[#allocation78_spill] sm:$0xff] %v12925_v56 }
 0x195   :  { %19266 = vst [vmem:[#allocation77_spill] sm:$0xff] %v12920_v31  ;;  %v12922_v10 = vpop.permute.xlu0 %3031  ;;  %v11755_v31 = vld [vmem:[%s18800_s0 + $0x328] sm:$0xff]   ;;  %19268 = vst [vmem:[#allocation79_spill] sm:$0xff] %v12940_v24 }
 0x196   :  { %v12927_v28 = vpop.permute.xlu1 %3033  ;;  %11414 = vmatmul.mubr.msk.bf16.gmra.mrb[200].mxu0 %vm1049_vm0, %v11755_v31  ;;  %v12969_v31 = vmax.f32 %v12469_v37, %v3018_v16 }
 0x197   :  { %3127 = vrot.lane.b32.xlu0 %v12851_v25, %s12014_s11 }
 0x198   :  { %4443 = vrot.lane.b32.xlu1 %v12925_v56, %s12015_s10 }
 0x199   :  { %v12942_v29 = vpop.permute.xlu0 %3027  ;;  %v12944_v57 = vpop.f32.mrb[96].mxu0 }
 0x19a   :  { %19269 = vst [vmem:[#allocation80_spill] sm:$0xff] %v12944_v57  ;;  %v12947_v3 = vpop.permute.xlu1 %3029  ;;  %v12949_v2 = vpop.f32.mrb[97].mxu0 }
 0x19b   :  { %19270 = vst [vmem:[#allocation81_spill] sm:$0xff] %v12949_v2  ;;  %4445 = vrot.lane.b32.xlu0 %v12940_v24, %s12015_s10  ;;  %v12954_v56 = vpop.f32.mrb[98].mxu0 }
 0x19c   :  { %3129 = vrot.lane.b32.xlu1 %v12861_v4, %s12014_s11  ;;  %v12958_v9 = vpop.f32.mrb[99].mxu0  ;;  %v12976_v4 = vmax.f32 %v12460_v34, %v3016_v7  ;;  %v13002_v34 = vmax.f32 %v12476_v39, %v3014_v17 }
 0x19d   :  { %19271 = vst [vmem:[#allocation82_spill] sm:$0xff] %v12958_v9  ;;  %v12960_v33 = vpop.permute.xlu0 %3039 }
 0x19e   :  { %19272 = vst [vmem:[#allocation83_spill] sm:$0xff] %v12960_v33  ;;  %v12962_v48 = vpop.permute.xlu1 %3041  ;;  %19276 = vst [vmem:[#allocation87_spill] sm:$0xff] %v12976_v4 }
 0x19f   :  { %19273 = vst [vmem:[#allocation84_spill] sm:$0xff] %v12962_v48  ;;  %3123 = vrot.lane.b32.xlu0 %v12854_v53, %s12014_s11  ;;  %19284 = vst [vmem:[#allocation95_spill] sm:$0xff] %v13002_v34 }
 0x1a0   :  { %3125 = vrot.lane.b32.xlu1 %v12865_v59, %s12014_s11 }
 0x1a1   :  { %v12971_v62 = vpop.permute.xlu0 %3035  ;;  %v12973_v24 = vpop.f32.mrb[100].mxu0 }
 0x1a2   :  { %19274 = vst [vmem:[#allocation85_spill] sm:$0xff] %v12971_v62  ;;  %19275 = vst [vmem:[#allocation86_spill] sm:$0xff] %v12973_v24  ;;  %v12978_v25 = vpop.permute.xlu1 %3037  ;;  %v12980_v33 = vpop.f32.mrb[101].mxu0  ;;  %v12993_v62 = vmax.f32 %v12462_v35, %v3012_v52  ;;  %v11756_v35 = vld [vmem:[%s18800_s0 + $0x330] sm:$0xff]  }
 0x1a3   :  { %19277 = vst [vmem:[#allocation88_spill] sm:$0xff] %v12978_v25  ;;  %19278 = vst [vmem:[#allocation89_spill] sm:$0xff] %v12980_v33  ;;  %4457 = vrot.lane.b32.xlu0 %v12969_v31, %s12015_s10  ;;  %v12984_v48 = vpop.f32.mrb[102].mxu0  ;;  %11417 = vmatprep.mubr.msk.bf16.mxu0 %vm1049_vm0, %v11756_v35  ;;  %v13038_v35 = vmax.f32 %v12493_v43, %v12893_v1  ;;  %v13062_v1 = vmax.f32 %v12500_v45, %v12910_v61 }
 0x1a4   :  { %19279 = vst [vmem:[#allocation90_spill] sm:$0xff] %v12984_v48  ;;  %4455 = vrot.lane.b32.xlu1 %v12976_v4, %s12015_s10  ;;  %v12988_v16 = vpop.f32.mrb[103].mxu0  ;;  %19282 = vst [vmem:[#allocation93_spill] sm:$0xff] %v12993_v62  ;;  %v13094_v61 = vmax.f32 %v12517_v49, %v12927_v28  ;;  %v11760_v28 = vld [vmem:[%s18800_s0 + $0x350] sm:$0xff]  }
 0x1a5   :  { %19280 = vst [vmem:[#allocation91_spill] sm:$0xff] %v12988_v16  ;;  %v12990_v37 = vpop.permute.xlu0 %3047  ;;  %19291 = vst [vmem:[#allocation102_spill] sm:$0xff] %v13038_v35 }
 0x1a6   :  { %19281 = vst [vmem:[#allocation92_spill] sm:$0xff] %v12990_v37  ;;  %v12995_v7 = vpop.permute.xlu1 %3049  ;;  %v11757_v37 = vld [vmem:[%s18800_s0 + $0x338] sm:$0xff]   ;;  %19297 = vst [vmem:[#allocation108_spill] sm:$0xff] %v13062_v1 }
 0x1a7   :  { %19283 = vst [vmem:[#allocation94_spill] sm:$0xff] %v12995_v7  ;;  %3135 = vrot.lane.b32.xlu0 %v12872_v21, %s12014_s11  ;;  %11418 = vmatmul.mubr.msk.bf16.gmra.mrb[204].mxu0 %vm1049_vm0, %v11757_v37  ;;  %v13046_v37 = vmax.f32 %v12484_v40, %v12890_v27  ;;  %v11758_v27 = vld [vmem:[%s18800_s0 + $0x340] sm:$0xff]   ;;  %19301 = vst [vmem:[#allocation112_spill] sm:$0xff] %v13094_v61 }
 0x1a8   :  { %4451 = vrot.lane.b32.xlu1 %v12993_v62, %s12015_s10  ;;  %11421 = vmatprep.mubr.msk.bf16.mxu0 %vm1049_vm0, %v11758_v27 }
 0x1a9   :  { %v13004_v25 = vpop.permute.xlu0 %3043  ;;  %v13006_v4 = vpop.f32.mrb[104].mxu0  ;;  %19293 = vst [vmem:[#allocation104_spill] sm:$0xff] %v13046_v37 }
 0x1aa   :  { %19285 = vst [vmem:[#allocation96_spill] sm:$0xff] %v13004_v25  ;;  %19286 = vst [vmem:[#allocation97_spill] sm:$0xff] %v13006_v4  ;;  %v13011_v52 = vpop.permute.xlu1 %3045  ;;  %v13013_v7 = vpop.f32.mrb[105].mxu0 }
 0x1ab   :  { %19287 = vst [vmem:[#allocation98_spill] sm:$0xff] %v13011_v52  ;;  %19288 = vst [vmem:[#allocation99_spill] sm:$0xff] %v13013_v7  ;;  %4453 = vrot.lane.b32.xlu0 %v13002_v34, %s12015_s10  ;;  %v13020_v17 = vpop.f32.mrb[106].mxu0 }
 0x1ac   :  { %19289 = vst [vmem:[#allocation100_spill] sm:$0xff] %v13020_v17  ;;  %3137 = vrot.lane.b32.xlu1 %v12878_v63, %s12014_s11  ;;  %v13025_v39 = vpop.f32.mrb[107].mxu0 }
 0x1ad   :  { %19290 = vst [vmem:[#allocation101_spill] sm:$0xff] %v13025_v39  ;;  %v13028_v52 = vpop.permute.xlu0 %3055 }
 0x1ae   :  { %v13030_v25 = vpop.permute.xlu1 %3057 }
 0x1af   :  { %3131 = vrot.lane.b32.xlu0 %v12874_v19, %s12014_s11  ;;  %v13071_v19 = vmax.f32 %v12486_v41, %v12903_v8  ;;  %v13086_v41 = vmax.f32 %v12508_v46, %v12922_v10  ;;  %v13110_v10 = vmax.f32 %v12510_v47, %v12942_v29 }
 0x1b0   :  { %3133 = vrot.lane.b32.xlu1 %v12885_v15, %s12014_s11 }
 0x1b1   :  { %v13040_v21 = vpop.permute.xlu0 %3051  ;;  %v13042_v63 = vpop.f32.mrb[108].mxu0  ;;  %19298 = vst [vmem:[#allocation109_spill] sm:$0xff] %v13071_v19  ;;  %19299 = vst [vmem:[#allocation110_spill] sm:$0xff] %v13086_v41 }
 0x1b2   :  { %19292 = vst [vmem:[#allocation103_spill] sm:$0xff] %v13042_v63  ;;  %v13048_v62 = vpop.permute.xlu1 %3053  ;;  %v13050_v34 = vpop.f32.mrb[109].mxu0  ;;  %19305 = vst [vmem:[#allocation116_spill] sm:$0xff] %v13110_v10 }
 0x1b3   :  { %19294 = vst [vmem:[#allocation105_spill] sm:$0xff] %v13050_v34  ;;  %4465 = vrot.lane.b32.xlu0 %v13038_v35, %s12015_s10  ;;  %v13054_v15 = vpop.f32.mrb[110].mxu0 }
 0x1b4   :  { %19295 = vst [vmem:[#allocation106_spill] sm:$0xff] %v13054_v15  ;;  %4463 = vrot.lane.b32.xlu1 %v13046_v37, %s12015_s10  ;;  %v13058_v43 = vpop.f32.mrb[111].mxu0  ;;  %v11759_v37 = vld [vmem:[%s18800_s0 + $0x348] sm:$0xff]  }
 0x1b5   :  { %19296 = vst [vmem:[#allocation107_spill] sm:$0xff] %v13058_v43  ;;  %v13064_v40 = vpop.permute.xlu0 %3063  ;;  %11422 = vmatmul.mubr.msk.bf16.gmra.mrb[208].mxu0 %vm1049_vm0, %v11759_v37 }
 0x1b6   :  { %v13073_v35 = vpop.permute.xlu1 %3065  ;;  %11425 = vmatprep.mubr.msk.bf16.mxu0 %vm1049_vm0, %v11760_v28 }
 0x1b7   :  { %4461 = vrot.lane.b32.xlu0 %v13062_v1, %s12015_s10 }
 0x1b8   :  { %4459 = vrot.lane.b32.xlu1 %v13071_v19, %s12015_s10 }
 0x1b9   :  { %v13088_v45 = vpop.permute.xlu0 %3059  ;;  %v13090_v8 = vpop.f32.mrb[112].mxu0 }
 0x1ba   :  { %19300 = vst [vmem:[#allocation111_spill] sm:$0xff] %v13090_v8  ;;  %v13096_v1 = vpop.permute.xlu1 %3061  ;;  %v13098_v27 = vpop.f32.mrb[113].mxu0 }
 0x1bb   :  { %19302 = vst [vmem:[#allocation113_spill] sm:$0xff] %v13098_v27  ;;  %4471 = vrot.lane.b32.xlu0 %v13086_v41, %s12015_s10  ;;  %v13102_v37 = vpop.f32.mrb[114].mxu0  ;;  %v11761_v41 = vld [vmem:[%s18800_s0 + $0x358] sm:$0xff]  }
 0x1bc   :  { %19303 = vst [vmem:[#allocation114_spill] sm:$0xff] %v13102_v37  ;;  %4473 = vrot.lane.b32.xlu1 %v13094_v61, %s12015_s10  ;;  %v13106_v46 = vpop.f32.mrb[115].mxu0  ;;  %v13134_v61 = vmax.f32 %v12524_v51, %v12947_v3  ;;  %v11762_v3 = vld [vmem:[%s18800_s0 + $0x360] sm:$0xff]  }
 0x1bd   :  { %19304 = vst [vmem:[#allocation115_spill] sm:$0xff] %v13106_v46  ;;  %v13112_v49 = vpop.permute.xlu0 %3071  ;;  %11426 = vmatmul.mubr.msk.bf16.gmra.mrb[212].mxu0 %vm1049_vm0, %v11761_v41 }
 0x1be   :  { %v13117_v27 = vpop.permute.xlu1 %3073  ;;  %19307 = vst [vmem:[#allocation118_spill] sm:$0xff] %v13134_v61  ;;  %11429 = vmatprep.mubr.msk.bf16.mxu0 %vm1049_vm0, %v11762_v3 }
 0x1bf   :  { %4467 = vrot.lane.b32.xlu0 %v13110_v10, %s12015_s10 }
 0x1c0   :  { %3151 = vrot.lane.b32.xlu1 %v12944_v57, %s12014_s11 }
 0x1c1   :  { %v13128_v47 = vpop.permute.xlu0 %3067  ;;  %v13130_v29 = vpop.f32.mrb[116].mxu0 }
 0x1c2   :  { %19306 = vst [vmem:[#allocation117_spill] sm:$0xff] %v13130_v29  ;;  %v13136_v8 = vpop.permute.xlu1 %3069  ;;  %v13138_v46 = vpop.f32.mrb[117].mxu0  ;;  %v13151_v29 = vld [vmem:[%s18801_s2] ss:$0 sm:$0xff] }
 0x1c3   :  { %19308 = vst [vmem:[#allocation119_spill] sm:$0xff] %v13138_v46  ;;  %3153 = vrot.lane.b32.xlu0 %v12954_v56, %s12014_s11  ;;  %v13142_v28 = vpop.f32.mrb[118].mxu0 }
 0x1c4   :  { %19309 = vst [vmem:[#allocation120_spill] sm:$0xff] %v13142_v28  ;;  %4469 = vrot.lane.b32.xlu1 %v13134_v61, %s12015_s10  ;;  %v13146_v41 = vpop.f32.mrb[119].mxu0  ;;  %v11763_v28 = vld [vmem:[%s18800_s0 + $0x368] sm:$0xff]  }
 0x1c5   :  { %19310 = vst [vmem:[#allocation121_spill] sm:$0xff] %v13146_v41  ;;  %v4402_v51 = vpop.permute.xlu0 %4401  ;;  %11430 = vmatmul.mubr.msk.bf16.gmra.mrb[216].mxu0 %vm1049_vm0, %v11763_v28 }
 0x1c6   :  { %v5262_v46 = vmax.f32 %v12653_v23, %v4402_v51  ;;  %v4400_v10 = vpop.permute.xlu1 %4399 }
 0x1c7   :  { %v5261_v61 = vmax.f32 %v12658_v14, %v4400_v10  ;;  %3149 = vrot.lane.b32.xlu0 %v12958_v9, %s12014_s11 }
 0x1c8   :  { %v5557_v41 = vadd.f32 %v13151_v29, %v5262_v46  ;;  %3147 = vrot.lane.b32.xlu1 %v12949_v2, %s12014_s11 }
 0x1c9   :  { %v5556_v23 = vadd.f32 %v13151_v29, %v5261_v61  ;;  %v13169_v51 = vpop.permute.xlu0 %3079  ;;  %v13171_v37 = vpop.f32.mrb[120].mxu0 }
 0x1ca   :  { %19311 = vst [vmem:[#allocation122_spill] sm:$0xff] %v13171_v37  ;;  %v5845_v19 = vmax.f32 %v5557_v41, 0.0  ;;  %v4396_v14 = vpop.permute.xlu1 %4395  ;;  %v13173_v10 = vpop.f32.mrb[121].mxu0 }
 0x1cb   :  { %19312 = vst [vmem:[#allocation123_spill] sm:$0xff] %v13173_v10  ;;  %v5844_v9 = vmax.f32 %v5556_v23, 0.0  ;;  %v5259_v3 = vmax.f32 %v12677_v30, %v4396_v14  ;;  %3161 = vrot.lane.b32.xlu0 %v12984_v48, %s12014_s11  ;;  %v13178_v46 = vpop.f32.mrb[122].mxu0  ;;  %v11764_v30 = vld [vmem:[%s18800_s0 + $0x370] sm:$0xff]  }
 0x1cc   :  { %19313 = vst [vmem:[#allocation124_spill] sm:$0xff] %v13178_v46  ;;  %3159 = vrot.lane.b32.xlu1 %v12973_v24, %s12014_s11  ;;  %v13182_v61 = vpop.f32.mrb[123].mxu0  ;;  %11433 = vmatprep.mubr.msk.bf16.mxu0 %vm1049_vm0, %v11764_v30 }
 0x1cd   :  { %19314 = vst [vmem:[#allocation125_spill] sm:$0xff] %v13182_v61  ;;  %v4398_v28 = vpop.permute.xlu0 %4397  ;;  %v6131_v2 = vpack.c.bf16 %v5845_v19, %v5844_v9  ;;  %v5554_v41 = vadd.f32 %v13151_v29, %v5259_v3 }
 0x1ce   :  { %v5260_v57 = vmax.f32 %v12686_v0, %v4398_v28  ;;  %v13186_v23 = vpop.permute.xlu1 %3081  ;;  %v11765_v0 = vld [vmem:[%s18800_s0 + $0x378] sm:$0xff]  }
 0x1cf   :  { %3157 = vrot.lane.b32.xlu0 %v12988_v16, %s12014_s11  ;;  %6276 = vst.msk [vmem:[#allocation2 + $0x18] sm:$0xff] %vm6274_vm1, %v6131_v2  ;;  %v5842_v3 = vmax.f32 %v5554_v41, 0.0  ;;  %11434 = vmatmul.mubr.msk.bf16.gmra.mrb[220].mxu0 %vm1049_vm0, %v11765_v0  ;;  %v11766_v0 = vld [vmem:[%s18800_s0 + $0x380] sm:$0xff]  }
 0x1d0   :  { %v5555_v14 = vadd.f32 %v13151_v29, %v5260_v57  ;;  %3155 = vrot.lane.b32.xlu1 %v12980_v33, %s12014_s11  ;;  %11437 = vmatprep.mubr.msk.bf16.mxu0 %vm1049_vm0, %v11766_v0 }
 0x1d1   :  { %v13200_v19 = vpop.permute.xlu0 %3075  ;;  %v13202_v9 = vpop.f32.mrb[124].mxu0 }
 0x1d2   :  { %19315 = vst [vmem:[#allocation126_spill] sm:$0xff] %v13202_v9  ;;  %v5843_v28 = vmax.f32 %v5555_v14, 0.0  ;;  %v13205_v16 = vpop.permute.xlu1 %3077  ;;  %v13207_v2 = vpop.f32.mrb[125].mxu0 }
 0x1d3   :  { %19316 = vst [vmem:[#allocation127_spill] sm:$0xff] %v13207_v2  ;;  %3169 = vrot.lane.b32.xlu0 %v13020_v17, %s12014_s11  ;;  %v13212_v57 = vpop.f32.mrb[126].mxu0 }
 0x1d4   :  { %19317 = vst [vmem:[#allocation128_spill] sm:$0xff] %v13212_v57  ;;  %3167 = vrot.lane.b32.xlu1 %v13006_v4, %s12014_s11  ;;  %v13216_v33 = vpop.f32.mrb[127].mxu0  ;;  %v6130_v24 = vpack.c.bf16 %v5843_v28, %v5842_v3 }
 0x1d5   :  { %19318 = vst [vmem:[#allocation129_spill] sm:$0xff] %v13216_v33  ;;  %v4410_v30 = vpop.permute.xlu0 %4409 }
 0x1d6   :  { %v5266_v41 = vmax.f32 %v12717_v11, %v4410_v30  ;;  %v4408_v14 = vpop.permute.xlu1 %4407  ;;  %6275 = vst.msk [vmem:[#allocation2] sm:$0xff] %vm6274_vm1, %v6130_v24  ;;  %v11767_v11 = vld [vmem:[%s18800_s0 + $0x388] sm:$0xff]   ;;  %v13234_v24 = vmax.f32 %v12589_v26, %v13030_v25  ;;  %v13244_v30 = vmax.f32 %v12580_v18, %v13028_v52 }
 0x1d7   :  { %v5265_v48 = vmax.f32 %v12724_v13, %v4408_v14  ;;  %3165 = vrot.lane.b32.xlu0 %v13025_v39, %s12014_s11  ;;  %11438 = vmatmul.mubr.msk.bf16.gmra.mrb[224].mxu0 %vm1049_vm0, %v11767_v11  ;;  %v13264_v11 = vmax.f32 %v12582_v20, %v13040_v21 }
 0x1d8   :  { %v5561_v4 = vadd.f32 %v13151_v29, %v5266_v41  ;;  %3163 = vrot.lane.b32.xlu1 %v13013_v7, %s12014_s11  ;;  %19321 = vst [vmem:[#allocation132_spill] sm:$0xff] %v13244_v30 }
 0x1d9   :  { %v5560_v13 = vadd.f32 %v13151_v29, %v5265_v48  ;;  %v13237_v3 = vpop.permute.xlu0 %3087  ;;  %v13239_v28 = vpop.f32.mrb[128].mxu0  ;;  %19326 = vst [vmem:[#allocation137_spill] sm:$0xff] %v13264_v11 }
 0x1da   :  { %19319 = vst [vmem:[#allocation130_spill] sm:$0xff] %v13237_v3  ;;  %19320 = vst [vmem:[#allocation131_spill] sm:$0xff] %v13239_v28  ;;  %v5849_v41 = vmax.f32 %v5561_v4, 0.0  ;;  %v4404_v14 = vpop.permute.xlu1 %4403  ;;  %v13246_v7 = vpop.f32.mrb[129].mxu0  ;;  %v13260_v4 = vmax.f32 %v12596_v32, %v13048_v62 }
 0x1db   :  { %19322 = vst [vmem:[#allocation133_spill] sm:$0xff] %v13246_v7  ;;  %v5848_v26 = vmax.f32 %v5560_v13, 0.0  ;;  %v5263_v25 = vmax.f32 %v12747_v60, %v4404_v14  ;;  %4497 = vrot.lane.b32.xlu0 %v13234_v24, %s12015_s10  ;;  %v13252_v48 = vpop.f32.mrb[130].mxu0 }
 0x1dc   :  { %19323 = vst [vmem:[#allocation134_spill] sm:$0xff] %v13252_v48  ;;  %4495 = vrot.lane.b32.xlu1 %v13244_v30, %s12015_s10  ;;  %v13256_v0 = vpop.f32.mrb[131].mxu0  ;;  %19325 = vst [vmem:[#allocation136_spill] sm:$0xff] %v13260_v4 }
 0x1dd   :  { %19324 = vst [vmem:[#allocation135_spill] sm:$0xff] %v13256_v0  ;;  %v4406_v18 = vpop.permute.xlu0 %4405  ;;  %v6133_v52 = vpack.c.bf16 %v5849_v41, %v5848_v26  ;;  %v5558_v60 = vadd.f32 %v13151_v29, %v5263_v25 }
 0x1de   :  { %v5264_v13 = vmax.f32 %v12758_v55, %v4406_v18  ;;  %v13268_v14 = vpop.permute.xlu1 %3089 }
 0x1df   :  { %19327 = vst [vmem:[#allocation138_spill] sm:$0xff] %v13268_v14  ;;  %4493 = vrot.lane.b32.xlu0 %v13260_v4, %s12015_s10  ;;  %6278 = vst.msk [vmem:[#allocation2 + $0x48] sm:$0xff] %vm6274_vm1, %v6133_v52  ;;  %v5846_v21 = vmax.f32 %v5558_v60, 0.0  ;;  %v11768_v60 = vld [vmem:[%s18800_s0 + $0x390] sm:$0xff]  }
 0x1e0   :  { %v5559_v32 = vadd.f32 %v13151_v29, %v5264_v13  ;;  %4491 = vrot.lane.b32.xlu1 %v13264_v11, %s12015_s10  ;;  %11441 = vmatprep.mubr.msk.bf16.mxu0 %vm1049_vm0, %v11768_v60  ;;  %v13341_v60 = vmax.f32 %v12606_v38, %v13088_v45  ;;  %v13359_v38 = vmax.f32 %v12628_v54, %v13112_v49 }
 0x1e1   :  { %v13276_v62 = vpop.permute.xlu0 %3083  ;;  %v13278_v20 = vpop.f32.mrb[132].mxu0  ;;  %v13381_v49 = vmax.f32 %v12630_v58, %v13128_v47  ;;  %v13397_v58 = vmax.f32 %v12655_v22, %v13169_v51 }
 0x1e2   :  { %19328 = vst [vmem:[#allocation139_spill] sm:$0xff] %v13276_v62  ;;  %19329 = vst [vmem:[#allocation140_spill] sm:$0xff] %v13278_v20  ;;  %v5847_v41 = vmax.f32 %v5559_v32, 0.0  ;;  %v13280_v26 = vpop.permute.xlu1 %3085  ;;  %v13282_v55 = vpop.f32.mrb[133].mxu0  ;;  %v11769_v32 = vld [vmem:[%s18800_s0 + $0x398] sm:$0xff]  }
 0x1e3   :  { %19330 = vst [vmem:[#allocation141_spill] sm:$0xff] %v13280_v26  ;;  %19331 = vst [vmem:[#allocation142_spill] sm:$0xff] %v13282_v55  ;;  %3175 = vrot.lane.b32.xlu0 %v13042_v63, %s12014_s11  ;;  %v13286_v25 = vpop.f32.mrb[134].mxu0  ;;  %11442 = vmatmul.mubr.msk.bf16.gmra.mrb[228].mxu0 %vm1049_vm0, %v11769_v32 }
 0x1e4   :  { %19332 = vst [vmem:[#allocation143_spill] sm:$0xff] %v13286_v25  ;;  %3177 = vrot.lane.b32.xlu1 %v13054_v15, %s12014_s11  ;;  %v13290_v18 = vpop.f32.mrb[135].mxu0  ;;  %v6132_v52 = vpack.c.bf16 %v5847_v41, %v5846_v21  ;;  %v13309_v21 = vmax.f32 %v12613_v44, %v13073_v35  ;;  %19345 = vst [vmem:[#allocation156_spill] sm:$0xff] %v13341_v60 }
 0x1e5   :  { %19333 = vst [vmem:[#allocation144_spill] sm:$0xff] %v13290_v18  ;;  %v13292_v13 = vpop.permute.xlu0 %3095  ;;  %19348 = vst [vmem:[#allocation159_spill] sm:$0xff] %v13359_v38 }
 0x1e6   :  { %19334 = vst [vmem:[#allocation145_spill] sm:$0xff] %v13292_v13  ;;  %v13294_v62 = vpop.permute.xlu1 %3097  ;;  %6277 = vst.msk [vmem:[#allocation2 + $0x30] sm:$0xff] %vm6274_vm1, %v6132_v52 }
 0x1e7   :  { %19335 = vst [vmem:[#allocation146_spill] sm:$0xff] %v13294_v62  ;;  %3171 = vrot.lane.b32.xlu0 %v13050_v34, %s12014_s11  ;;  %19336 = vst [vmem:[#allocation147_spill] sm:$0xff] %v13309_v21  ;;  %v13318_v62 = vmax.f32 %v12604_v36, %v13064_v40  ;;  %v13335_v36 = vmax.f32 %v12620_v50, %v13096_v1 }
 0x1e8   :  { %3173 = vrot.lane.b32.xlu1 %v13058_v43, %s12014_s11  ;;  %19353 = vst [vmem:[#allocation164_spill] sm:$0xff] %v13381_v49  ;;  %19354 = vst [vmem:[#allocation165_spill] sm:$0xff] %v13397_v58 }
 0x1e9   :  { %v13311_v41 = vpop.permute.xlu0 %3091  ;;  %v13313_v52 = vpop.f32.mrb[136].mxu0  ;;  %19339 = vst [vmem:[#allocation150_spill] sm:$0xff] %v13318_v62  ;;  %19344 = vst [vmem:[#allocation155_spill] sm:$0xff] %v13335_v36 }
 0x1ea   :  { %19337 = vst [vmem:[#allocation148_spill] sm:$0xff] %v13311_v41  ;;  %19338 = vst [vmem:[#allocation149_spill] sm:$0xff] %v13313_v52  ;;  %v13320_v13 = vpop.permute.xlu1 %3093  ;;  %v13322_v34 = vpop.f32.mrb[137].mxu0 }
 0x1eb   :  { %19340 = vst [vmem:[#allocation151_spill] sm:$0xff] %v13320_v13  ;;  %19341 = vst [vmem:[#allocation152_spill] sm:$0xff] %v13322_v34  ;;  %4505 = vrot.lane.b32.xlu0 %v13309_v21, %s12015_s10  ;;  %v13327_v44 = vpop.f32.mrb[138].mxu0  ;;  %v13351_v13 = vmax.f32 %v12637_v12, %v13117_v27  ;;  %v13375_v27 = vmax.f32 %v12644_v42, %v13136_v8  ;;  %v11771_v42 = vld [vmem:[%s18800_s0 + $0x3a8] sm:$0xff]  }
 0x1ec   :  { %19342 = vst [vmem:[#allocation153_spill] sm:$0xff] %v13327_v44  ;;  %4503 = vrot.lane.b32.xlu1 %v13318_v62, %s12015_s10  ;;  %v13331_v35 = vpop.f32.mrb[139].mxu0 }
 0x1ed   :  { %19343 = vst [vmem:[#allocation154_spill] sm:$0xff] %v13331_v35  ;;  %v13337_v40 = vpop.permute.xlu0 %3103  ;;  %19346 = vst [vmem:[#allocation157_spill] sm:$0xff] %v13351_v13 }
 0x1ee   :  { %v13343_v32 = vpop.permute.xlu1 %3105  ;;  %19352 = vst [vmem:[#allocation163_spill] sm:$0xff] %v13375_v27 }
 0x1ef   :  { %4501 = vrot.lane.b32.xlu0 %v13335_v36, %s12015_s10 }
 0x1f0   :  { %4499 = vrot.lane.b32.xlu1 %v13341_v60, %s12015_s10 }
 0x1f1   :  { %v13353_v50 = vpop.permute.xlu0 %3099  ;;  %v13355_v1 = vpop.f32.mrb[140].mxu0 }
 0x1f2   :  { %19347 = vst [vmem:[#allocation158_spill] sm:$0xff] %v13355_v1  ;;  %v13361_v45 = vpop.permute.xlu1 %3101  ;;  %v13363_v41 = vpop.f32.mrb[141].mxu0 }
 0x1f3   :  { %19349 = vst [vmem:[#allocation160_spill] sm:$0xff] %v13363_v41  ;;  %4513 = vrot.lane.b32.xlu0 %v13351_v13, %s12015_s10  ;;  %v13367_v43 = vpop.f32.mrb[142].mxu0 }
 0x1f4   :  { %19350 = vst [vmem:[#allocation161_spill] sm:$0xff] %v13367_v43  ;;  %4511 = vrot.lane.b32.xlu1 %v13359_v38, %s12015_s10  ;;  %v13371_v12 = vpop.f32.mrb[143].mxu0  ;;  %v11770_v43 = vld [vmem:[%s18800_s0 + $0x3a0] sm:$0xff]  }
 0x1f5   :  { %19351 = vst [vmem:[#allocation162_spill] sm:$0xff] %v13371_v12  ;;  %v13377_v54 = vpop.permute.xlu0 %3111  ;;  %11445 = vmatprep.mubr.msk.bf16.mxu0 %vm1049_vm0, %v11770_v43  ;;  %v19356_v12 = vld [vmem:[#allocation30_spill] sm:$0xff]  ;;  %v19361_v43 = vld [vmem:[#allocation29_spill] sm:$0xff] }
 0x1f6   :  { %v13383_v41 = vpop.permute.xlu1 %3113  ;;  %v13406_v1 = vmax.f32 %v19356_v12, %v13186_v23  ;;  %11446 = vmatmul.mubr.msk.bf16.gmra.mrb[232].mxu0 %vm1049_vm0, %v11771_v42  ;;  %v13423_v23 = vmax.f32 %v19361_v43, %v13200_v19 }
 0x1f7   :  { %4509 = vrot.lane.b32.xlu0 %v13375_v27, %s12015_s10 }
 0x1f8   :  { %4507 = vrot.lane.b32.xlu1 %v13381_v49, %s12015_s10  ;;  %19357 = vst [vmem:[#allocation30_spill] sm:$0xff] %v13406_v1  ;;  %19362 = vst [vmem:[#allocation29_spill] sm:$0xff] %v13423_v23 }
 0x1f9   :  { %v13399_v8 = vpop.permute.xlu0 %3107  ;;  %v13401_v47 = vpop.f32.mrb[144].mxu0 }
 0x1fa   :  { %19355 = vst [vmem:[#allocation166_spill] sm:$0xff] %v13401_v47  ;;  %v13408_v63 = vpop.permute.xlu1 %3109  ;;  %v13410_v15 = vpop.f32.mrb[145].mxu0 }
 0x1fb   :  { %19358 = vst [vmem:[#allocation167_spill] sm:$0xff] %v13410_v15  ;;  %4519 = vrot.lane.b32.xlu0 %v13397_v58, %s12015_s10  ;;  %v13415_v22 = vpop.f32.mrb[146].mxu0 }
 0x1fc   :  { %19359 = vst [vmem:[#allocation168_spill] sm:$0xff] %v13415_v22  ;;  %4521 = vrot.lane.b32.xlu1 %v13406_v1, %s12015_s10  ;;  %v13419_v51 = vpop.f32.mrb[147].mxu0  ;;  %v19364_v1 = vld [vmem:[#allocation31_spill] sm:$0xff] }
 0x1fd   :  { %19360 = vst [vmem:[#allocation169_spill] sm:$0xff] %v13419_v51  ;;  %v13425_v12 = vpop.permute.xlu0 %3119  ;;  %v13439_v3 = vmax.f32 %v19364_v1, %v13205_v16  ;;  %v11772_v16 = vld [vmem:[%s18800_s0 + $0x3b0] sm:$0xff]   ;;  %v11773_v1 = vld [vmem:[%s18800_s0 + $0x3b8] sm:$0xff]  }
 0x1fe   :  { %v13427_v26 = vpop.permute.xlu1 %3121  ;;  %11449 = vmatprep.mubr.msk.bf16.mxu0 %vm1049_vm0, %v11772_v16  ;;  %v11774_v16 = vld [vmem:[%s18800_s0 + $0x3c0] sm:$0xff]  }
 0x1ff   :  { %4515 = vrot.lane.b32.xlu0 %v13423_v23, %s12015_s10  ;;  %19365 = vst [vmem:[#allocation31_spill] sm:$0xff] %v13439_v3  ;;  %11450 = vmatmul.mubr.msk.bf16.gmra.mrb[236].mxu0 %vm1049_vm0, %v11773_v1  ;;  %v11775_v1 = vld [vmem:[%s18800_s0 + $0x3c8] sm:$0xff]  }
 0x200   :  { %3199 = vrot.lane.b32.xlu1 %v13171_v37, %s12014_s11  ;;  %11453 = vmatprep.mubr.msk.bf16.mxu0 %vm1049_vm0, %v11774_v16  ;;  %v19377_v16 = vld [vmem:[#allocation50_spill] sm:$0xff] }
 0x201   :  { %v13433_v42 = vpop.permute.xlu0 %3115  ;;  %v13435_v58 = vpop.f32.mrb[148].mxu0 }
 0x202   :  { %19363 = vst [vmem:[#allocation170_spill] sm:$0xff] %v13435_v58  ;;  %v13441_v19 = vpop.permute.xlu1 %3117  ;;  %v13443_v43 = vpop.f32.mrb[149].mxu0 }
 0x203   :  { %19366 = vst [vmem:[#allocation171_spill] sm:$0xff] %v13443_v43  ;;  %3201 = vrot.lane.b32.xlu0 %v13178_v46, %s12014_s11  ;;  %v13447_v14 = vpop.f32.mrb[150].mxu0 }
 0x204   :  { %19367 = vst [vmem:[#allocation172_spill] sm:$0xff] %v13447_v14  ;;  %4517 = vrot.lane.b32.xlu1 %v13439_v3, %s12015_s10  ;;  %v13451_v23 = vpop.f32.mrb[151].mxu0 }
 0x205   :  { %19368 = vst [vmem:[#allocation173_spill] sm:$0xff] %v13451_v23  ;;  %v13453_v49 = vpop.permute.xlu0 %4449 }
 0x206   :  { %v13455_v27 = vpop.permute.xlu1 %4447 }
 0x207   :  { %3197 = vrot.lane.b32.xlu0 %v13182_v61, %s12014_s11  ;;  %11454 = vmatmul.mubr.msk.bf16.gmra.mrb[240].mxu0 %vm1049_vm0, %v11775_v1  ;;  %v13527_v1 = vmax.f32 %v19377_v16, %v13343_v32  ;;  %v11776_v32 = vld [vmem:[%s18800_s0 + $0x3d0] sm:$0xff]  }
 0x208   :  { %3195 = vrot.lane.b32.xlu1 %v13173_v10, %s12014_s11  ;;  %11457 = vmatprep.mubr.msk.bf16.mxu0 %vm1049_vm0, %v11776_v32 }
 0x209   :  { %v13467_v3 = vpop.permute.xlu0 %3127  ;;  %v13469_v38 = vpop.f32.mrb[152].mxu0  ;;  %19378 = vst [vmem:[#allocation50_spill] sm:$0xff] %v13527_v1 }
 0x20a   :  { %19369 = vst [vmem:[#allocation174_spill] sm:$0xff] %v13469_v38  ;;  %v13472_v13 = vpop.permute.xlu1 %4443  ;;  %v13474_v39 = vpop.f32.mrb[153].mxu0 }
 0x20b   :  { %19370 = vst [vmem:[#allocation175_spill] sm:$0xff] %v13474_v39  ;;  %3209 = vrot.lane.b32.xlu0 %v13212_v57, %s12014_s11  ;;  %v13479_v17 = vpop.f32.mrb[154].mxu0 }
 0x20c   :  { %19371 = vst [vmem:[#allocation176_spill] sm:$0xff] %v13479_v17  ;;  %3207 = vrot.lane.b32.xlu1 %v13202_v9, %s12014_s11  ;;  %v13483_v10 = vpop.f32.mrb[155].mxu0 }
 0x20d   :  { %19372 = vst [vmem:[#allocation177_spill] sm:$0xff] %v13483_v10  ;;  %v13485_v61 = vpop.permute.xlu0 %4445 }
 0x20e   :  { %v13487_v37 = vpop.permute.xlu1 %3129 }
 0x20f   :  { %3205 = vrot.lane.b32.xlu0 %v13216_v33, %s12014_s11 }
 0x210   :  { %3203 = vrot.lane.b32.xlu1 %v13207_v2, %s12014_s11 }
 0x211   :  { %v13499_v9 = vpop.permute.xlu0 %3123  ;;  %v13501_v57 = vpop.f32.mrb[156].mxu0 }
 0x212   :  { %19373 = vst [vmem:[#allocation178_spill] sm:$0xff] %v13501_v57  ;;  %v13504_v46 = vpop.permute.xlu1 %3125  ;;  %v13506_v33 = vpop.f32.mrb[157].mxu0 }
 0x213   :  { %19374 = vst [vmem:[#allocation179_spill] sm:$0xff] %v13506_v33  ;;  %3217 = vrot.lane.b32.xlu0 %v13252_v48, %s12014_s11  ;;  %v13511_v2 = vpop.f32.mrb[158].mxu0 }
 0x214   :  { %19375 = vst [vmem:[#allocation180_spill] sm:$0xff] %v13511_v2  ;;  %3215 = vrot.lane.b32.xlu1 %v13239_v28, %s12014_s11  ;;  %v13515_v62 = vpop.f32.mrb[159].mxu0  ;;  %v19381_v28 = vld [vmem:[#allocation47_spill] sm:$0xff] }
 0x215   :  { %19376 = vst [vmem:[#allocation181_spill] sm:$0xff] %v13515_v62  ;;  %v13517_v21 = vpop.permute.xlu0 %4457  ;;  %v13535_v11 = vmax.f32 %v19381_v28, %v13337_v40  ;;  %v11777_v28 = vld [vmem:[%s18800_s0 + $0x3d8] sm:$0xff]  }
 0x216   :  { %v13519_v60 = vpop.permute.xlu1 %4455  ;;  %v19386_v40 = vld [vmem:[#allocation51_spill] sm:$0xff]  ;;  %11458 = vmatmul.mubr.msk.bf16.gmra.mrb[244].mxu0 %vm1049_vm0, %v11777_v28 }
 0x217   :  { %3213 = vrot.lane.b32.xlu0 %v13256_v0, %s12014_s11  ;;  %19382 = vst [vmem:[#allocation47_spill] sm:$0xff] %v13535_v11  ;;  %v19388_v0 = vld [vmem:[#allocation49_spill] sm:$0xff] }
 0x218   :  { %3211 = vrot.lane.b32.xlu1 %v13246_v7, %s12014_s11 }
 0x219   :  { %v13529_v48 = vpop.permute.xlu0 %3135  ;;  %v13531_v36 = vpop.f32.mrb[160].mxu0 }
 0x21a   :  { %19379 = vst [vmem:[#allocation182_spill] sm:$0xff] %v13529_v48  ;;  %19380 = vst [vmem:[#allocation183_spill] sm:$0xff] %v13531_v36  ;;  %v13537_v4 = vpop.permute.xlu1 %4451  ;;  %v13539_v30 = vpop.f32.mrb[161].mxu0  ;;  %v13557_v48 = vmax.f32 %v19386_v40, %v13361_v45 }
 0x21b   :  { %19383 = vst [vmem:[#allocation184_spill] sm:$0xff] %v13539_v30  ;;  %4545 = vrot.lane.b32.xlu0 %v13527_v1, %s12015_s10  ;;  %v13543_v7 = vpop.f32.mrb[162].mxu0 }
 0x21c   :  { %19384 = vst [vmem:[#allocation185_spill] sm:$0xff] %v13543_v7  ;;  %4543 = vrot.lane.b32.xlu1 %v13535_v11, %s12015_s10  ;;  %v13550_v16 = vpop.f32.mrb[163].mxu0  ;;  %19387 = vst [vmem:[#allocation51_spill] sm:$0xff] %v13557_v48  ;;  %v13564_v7 = vmax.f32 %v19388_v0, %v13353_v50 }
 0x21d   :  { %19385 = vst [vmem:[#allocation186_spill] sm:$0xff] %v13550_v16  ;;  %v13559_v1 = vpop.permute.xlu0 %4453 }
 0x21e   :  { %19389 = vst [vmem:[#allocation49_spill] sm:$0xff] %v13564_v7  ;;  %v13566_v36 = vpop.permute.xlu1 %3137 }
 0x21f   :  { %19390 = vst [vmem:[#allocation187_spill] sm:$0xff] %v13566_v36  ;;  %4541 = vrot.lane.b32.xlu0 %v13557_v48, %s12015_s10  ;;  %v13709_v48 = vmax.f32 %v12841_v6, %v13441_v19 }
 0x220   :  { %4539 = vrot.lane.b32.xlu1 %v13564_v7, %s12015_s10 }
 0x221   :  { %v13573_v45 = vpop.permute.xlu0 %3131  ;;  %v13575_v40 = vpop.f32.mrb[164].mxu0  ;;  %19428 = vst [vmem:[#allocation213_spill] sm:$0xff] %v13709_v48 }
 0x222   :  { %19391 = vst [vmem:[#allocation188_spill] sm:$0xff] %v13573_v45  ;;  %19392 = vst [vmem:[#allocation189_spill] sm:$0xff] %v13575_v40  ;;  %v13577_v11 = vpop.permute.xlu1 %3133  ;;  %v13579_v32 = vpop.f32.mrb[165].mxu0 }
 0x223   :  { %19393 = vst [vmem:[#allocation190_spill] sm:$0xff] %v13577_v11  ;;  %19394 = vst [vmem:[#allocation191_spill] sm:$0xff] %v13579_v32  ;;  %3225 = vrot.lane.b32.xlu0 %v13286_v25, %s12014_s11  ;;  %v13583_v0 = vpop.f32.mrb[166].mxu0  ;;  %v11778_v32 = vld [vmem:[%s18800_s0 + $0x3e0] sm:$0xff]  }
 0x224   :  { %19395 = vst [vmem:[#allocation192_spill] sm:$0xff] %v13583_v0  ;;  %3223 = vrot.lane.b32.xlu1 %v13278_v20, %s12014_s11  ;;  %v13587_v50 = vpop.f32.mrb[167].mxu0  ;;  %v11779_v0 = vld [vmem:[%s18800_s0 + $0x3e8] sm:$0xff]   ;;  %11461 = vmatprep.mubr.msk.bf16.mxu0 %vm1049_vm0, %v11778_v32  ;;  %v19407_v32 = vld [vmem:[#allocation59_spill] sm:$0xff] }
 0x225   :  { %19396 = vst [vmem:[#allocation193_spill] sm:$0xff] %v13587_v50  ;;  %v13589_v28 = vpop.permute.xlu0 %4465  ;;  %v19399_v50 = vld [vmem:[#allocation58_spill] sm:$0xff]  ;;  %11462 = vmatmul.mubr.msk.bf16.gmra.mrb[248].mxu0 %vm1049_vm0, %v11779_v0 }
 0x226   :  { %19397 = vst [vmem:[#allocation194_spill] sm:$0xff] %v13589_v28  ;;  %v13591_v36 = vpop.permute.xlu1 %4463  ;;  %v13605_v40 = vmax.f32 %v19399_v50, %v13383_v41 }
 0x227   :  { %19398 = vst [vmem:[#allocation195_spill] sm:$0xff] %v13591_v36  ;;  %3221 = vrot.lane.b32.xlu0 %v13290_v18, %s12014_s11  ;;  %v19403_v36 = vld [vmem:[#allocation55_spill] sm:$0xff] }
 0x228   :  { %3219 = vrot.lane.b32.xlu1 %v13282_v55, %s12014_s11  ;;  %19400 = vst [vmem:[#allocation58_spill] sm:$0xff] %v13605_v40  ;;  %v13614_v28 = vmax.f32 %v19403_v36, %v13377_v54  ;;  %v13631_v36 = vmax.f32 %v19407_v32, %v13408_v63 }
 0x229   :  { %v13607_v11 = vpop.permute.xlu0 %4461  ;;  %v13609_v45 = vpop.f32.mrb[168].mxu0 }
 0x22a   :  { %19401 = vst [vmem:[#allocation196_spill] sm:$0xff] %v13607_v11  ;;  %19402 = vst [vmem:[#allocation197_spill] sm:$0xff] %v13609_v45  ;;  %v13616_v18 = vpop.permute.xlu1 %4459  ;;  %v13618_v55 = vpop.f32.mrb[169].mxu0 }
 0x22b   :  { %19404 = vst [vmem:[#allocation55_spill] sm:$0xff] %v13614_v28  ;;  %19405 = vst [vmem:[#allocation198_spill] sm:$0xff] %v13616_v18  ;;  %4553 = vrot.lane.b32.xlu0 %v13605_v40, %s12015_s10  ;;  %v13623_v41 = vpop.f32.mrb[170].mxu0  ;;  %v19410_v18 = vld [vmem:[#allocation57_spill] sm:$0xff] }
 0x22c   :  { %19406 = vst [vmem:[#allocation199_spill] sm:$0xff] %v13623_v41  ;;  %4551 = vrot.lane.b32.xlu1 %v13614_v28, %s12015_s10  ;;  %v13627_v50 = vpop.f32.mrb[171].mxu0  ;;  %19408 = vst [vmem:[#allocation59_spill] sm:$0xff] %v13631_v36  ;;  %v13637_v11 = vmax.f32 %v19410_v18, %v13399_v8 }
 0x22d   :  { %v13633_v54 = vpop.permute.xlu0 %4471 }
 0x22e   :  { %19409 = vst [vmem:[#allocation200_spill] sm:$0xff] %v13633_v54  ;;  %19411 = vst [vmem:[#allocation57_spill] sm:$0xff] %v13637_v11  ;;  %v13639_v0 = vpop.permute.xlu1 %4473 }
 0x22f   :  { %19412 = vst [vmem:[#allocation201_spill] sm:$0xff] %v13639_v0  ;;  %4549 = vrot.lane.b32.xlu0 %v13631_v36, %s12015_s10 }
 0x230   :  { %4547 = vrot.lane.b32.xlu1 %v13637_v11, %s12015_s10 }
 0x231   :  { %v13645_v28 = vpop.permute.xlu0 %4467  ;;  %v13647_v40 = vpop.f32.mrb[172].mxu0 }
 0x232   :  { %19413 = vst [vmem:[#allocation202_spill] sm:$0xff] %v13645_v28  ;;  %19414 = vst [vmem:[#allocation203_spill] sm:$0xff] %v13647_v40  ;;  %v13649_v63 = vpop.permute.xlu1 %3151  ;;  %v13651_v32 = vpop.f32.mrb[173].mxu0  ;;  %v11780_v28 = vld [vmem:[%s18800_s0 + $0x3f0] sm:$0xff]  }
 0x233   :  { %19415 = vst [vmem:[#allocation204_spill] sm:$0xff] %v13651_v32  ;;  %3233 = vrot.lane.b32.xlu0 %v13327_v44, %s12014_s11  ;;  %v13655_v18 = vpop.f32.mrb[174].mxu0  ;;  %v13677_v44 = vmax.f32 %v12830_v5, %v13433_v42  ;;  %11465 = vmatprep.mubr.msk.bf16.mxu0 %vm1049_vm0, %v11780_v28  ;;  %v19426_v28 = vld [vmem:[#allocation65_spill] sm:$0xff] }
 0x234   :  { %19416 = vst [vmem:[#allocation205_spill] sm:$0xff] %v13655_v18  ;;  %3231 = vrot.lane.b32.xlu1 %v13313_v52, %s12014_s11  ;;  %v13659_v8 = vpop.f32.mrb[175].mxu0  ;;  %v11781_v52 = vld [vmem:[%s18800_s0 + $0x3f8] sm:$0xff]  }
 0x235   :  { %19417 = vst [vmem:[#allocation206_spill] sm:$0xff] %v13659_v8  ;;  %v13661_v0 = vpop.permute.xlu0 %3153  ;;  %19419 = vst [vmem:[#allocation208_spill] sm:$0xff] %v13677_v44  ;;  %11466 = vmatmul.mubr.msk.bf16.gmra.mrb[252].mxu0 %vm1049_vm0, %v11781_v52 }
 0x236   :  { %v13663_v54 = vpop.permute.xlu1 %4469 }
 0x237   :  { %19418 = vst [vmem:[#allocation207_spill] sm:$0xff] %v13663_v54  ;;  %3229 = vrot.lane.b32.xlu0 %v13331_v35, %s12014_s11  ;;  %v19421_v35 = vld [vmem:[#allocation63_spill] sm:$0xff] }
 0x238   :  { %3227 = vrot.lane.b32.xlu1 %v13322_v34, %s12014_s11  ;;  %v13686_v36 = vmax.f32 %v19421_v35, %v13425_v12  ;;  %v13703_v35 = vmax.f32 %v19426_v28, %v13427_v26  ;;  %v11783_v26 = vld [vmem:[%s18800_s0 + $0x408] sm:$0xff]   ;;  %v19429_v28 = vld [vmem:[#allocation66_spill] sm:$0xff] }
 0x239   :  { %v13679_v11 = vpop.permute.xlu0 %3149  ;;  %v13681_v54 = vpop.f32.mrb[176].mxu0  ;;  %v13725_v6 = vmax.f32 %v19429_v28, %v13467_v3 }
 0x23a   :  { %19420 = vst [vmem:[#allocation209_spill] sm:$0xff] %v13681_v54  ;;  %19422 = vst [vmem:[#allocation63_spill] sm:$0xff] %v13686_v36  ;;  %v13688_v7 = vpop.permute.xlu1 %3147  ;;  %v13690_v34 = vpop.f32.mrb[177].mxu0 }
 0x23b   :  { %19423 = vst [vmem:[#allocation210_spill] sm:$0xff] %v13690_v34  ;;  %4555 = vrot.lane.b32.xlu0 %v13677_v44, %s12015_s10  ;;  %v13695_v5 = vpop.f32.mrb[178].mxu0  ;;  %19427 = vst [vmem:[#allocation65_spill] sm:$0xff] %v13703_v35  ;;  %v11782_v44 = vld [vmem:[%s18800_s0 + $0x400] sm:$0xff]  }
 0x23c   :  { %19424 = vst [vmem:[#allocation211_spill] sm:$0xff] %v13695_v5  ;;  %4559 = vrot.lane.b32.xlu1 %v13686_v36, %s12015_s10  ;;  %v13699_v42 = vpop.f32.mrb[179].mxu0  ;;  %19430 = vst [vmem:[#allocation66_spill] sm:$0xff] %v13725_v6  ;;  %11469 = vmatprep.mubr.msk.bf16.mxu0 %vm1049_vm0, %v11782_v44  ;;  %v19438_v44 = vld [vmem:[#allocation72_spill] sm:$0xff] }
 0x23d   :  { %19425 = vst [vmem:[#allocation212_spill] sm:$0xff] %v13699_v42  ;;  %v13705_v12 = vpop.permute.xlu0 %3161  ;;  %11470 = vmatmul.mubr.msk.bf16.gmra.mrb[0].mxu0 %vm1049_vm0, %v11783_v26  ;;  %v5286_v20 = vmax.f32 %v19438_v44, %v13453_v49  ;;  %v19439_v26 = vld [vmem:[#allocation74_spill] sm:$0xff] }
 0x23e   :  { %v13711_v52 = vpop.permute.xlu1 %3159 }
 0x23f   :  { %4561 = vrot.lane.b32.xlu0 %v13703_v35, %s12015_s10  ;;  %v13734_v35 = vmax.f32 %v12854_v53, %v13499_v9  ;;  %v13751_v53 = vmax.f32 %v12865_v59, %v13504_v46  ;;  %v11784_v59 = vld [vmem:[%s18800_s0 + $0x410] sm:$0xff]   ;;  %v11785_v46 = vld [vmem:[%s18800_s0 + $0x418] sm:$0xff]  }
 0x240   :  { %4557 = vrot.lane.b32.xlu1 %v13709_v48, %s12015_s10  ;;  %11473 = vmatprep.mubr.msk.bf16.mxu0 %vm1049_vm0, %v11784_v59 }
 0x241   :  { %v13727_v19 = vpop.permute.xlu0 %3157  ;;  %v13729_v36 = vpop.f32.mrb[180].mxu0  ;;  %19432 = vst [vmem:[#allocation215_spill] sm:$0xff] %v13734_v35  ;;  %19436 = vst [vmem:[#allocation219_spill] sm:$0xff] %v13751_v53 }
 0x242   :  { %19431 = vst [vmem:[#allocation214_spill] sm:$0xff] %v13729_v36  ;;  %v13736_v25 = vpop.permute.xlu1 %3155  ;;  %v13738_v48 = vpop.f32.mrb[181].mxu0 }
 0x243   :  { %19433 = vst [vmem:[#allocation216_spill] sm:$0xff] %v13738_v48  ;;  %4567 = vrot.lane.b32.xlu0 %v13725_v6, %s12015_s10  ;;  %v13743_v3 = vpop.f32.mrb[182].mxu0  ;;  %v5285_v48 = vmax.f32 %v19439_v26, %v13455_v27  ;;  %v19440_v6 = vld [vmem:[#allocation67_spill] sm:$0xff]  ;;  %v5581_v26 = vadd.f32 %v13151_v29, %v5286_v20 }
 0x244   :  { %19434 = vst [vmem:[#allocation217_spill] sm:$0xff] %v13743_v3  ;;  %4563 = vrot.lane.b32.xlu1 %v13734_v35, %s12015_s10  ;;  %v13747_v28 = vpop.f32.mrb[183].mxu0  ;;  %v13761_v36 = vmax.f32 %v19440_v6, %v13487_v37  ;;  %v5290_v37 = vmax.f32 %v12969_v31, %v13517_v21  ;;  %v19443_v27 = vld [vmem:[#allocation87_spill] sm:$0xff]  ;;  %v19450_v21 = vld [vmem:[#allocation78_spill] sm:$0xff] }
 0x245   :  { %19435 = vst [vmem:[#allocation218_spill] sm:$0xff] %v13747_v28  ;;  %v13753_v9 = vpop.permute.xlu0 %3169  ;;  %v5289_v49 = vmax.f32 %v19443_v27, %v13519_v60  ;;  %v5580_v35 = vadd.f32 %v13151_v29, %v5285_v48  ;;  %11474 = vmatmul.mubr.msk.bf16.gmra.mrb[4].mxu0 %vm1049_vm0, %v11785_v46  ;;  %v5283_v60 = vmax.f32 %v19450_v21, %v13472_v13  ;;  %v5869_v59 = vmax.f32 %v5581_v26, 0.0  ;;  %v11786_v13 = vld [vmem:[%s18800_s0 + $0x420] sm:$0xff]  }
 0x246   :  { %19437 = vst [vmem:[#allocation220_spill] sm:$0xff] %v13753_v9  ;;  %19441 = vst [vmem:[#allocation72_spill] sm:$0xff] %v13761_v36  ;;  %v13763_v3 = vpop.permute.xlu1 %3167  ;;  %11477 = vmatprep.mubr.msk.bf16.mxu0 %vm1049_vm0, %v11786_v13 }
 0x247   :  { %19442 = vst [vmem:[#allocation74_spill] sm:$0xff] %v13763_v3  ;;  %4565 = vrot.lane.b32.xlu0 %v13751_v53, %s12015_s10  ;;  %v19446_v53 = vld [vmem:[#allocation79_spill] sm:$0xff]  ;;  %v5584_v20 = vadd.f32 %v13151_v29, %v5289_v49  ;;  %v5868_v46 = vmax.f32 %v5580_v35, 0.0  ;;  %v5578_v21 = vadd.f32 %v13151_v29, %v5283_v60  ;;  %v11787_v35 = vld [vmem:[%s18800_s0 + $0x428] sm:$0xff]  }
 0x248   :  { %4569 = vrot.lane.b32.xlu1 %v13761_v36, %s12015_s10  ;;  %v5284_v36 = vmax.f32 %v19446_v53, %v13485_v61  ;;  %v5585_v61 = vadd.f32 %v13151_v29, %v5290_v37  ;;  %v19452_v49 = vld [vmem:[#allocation95_spill] sm:$0xff] }
 0x249   :  { %v13779_v6 = vpop.permute.xlu0 %3165  ;;  %v13781_v44 = vpop.f32.mrb[184].mxu0  ;;  %v5288_v26 = vmax.f32 %v19452_v49, %v13559_v1  ;;  %v5866_v49 = vmax.f32 %v5578_v21, 0.0 }
 0x24a   :  { %19444 = vst [vmem:[#allocation67_spill] sm:$0xff] %v13779_v6  ;;  %19445 = vst [vmem:[#allocation87_spill] sm:$0xff] %v13781_v44  ;;  %v13788_v3 = vpop.permute.xlu1 %3163  ;;  %v13790_v9 = vpop.f32.mrb[185].mxu0  ;;  %v5579_v27 = vadd.f32 %v13151_v29, %v5284_v36  ;;  %v5873_v37 = vmax.f32 %v5585_v61, 0.0  ;;  %v5872_v36 = vmax.f32 %v5584_v20, 0.0  ;;  %v19455_v61 = vld [vmem:[#allocation93_spill] sm:$0xff] }
 0x24b   :  { %19447 = vst [vmem:[#allocation79_spill] sm:$0xff] %v13788_v3  ;;  %19448 = vst [vmem:[#allocation221_spill] sm:$0xff] %v13790_v9  ;;  %3249 = vrot.lane.b32.xlu0 %v13415_v22, %s12014_s11  ;;  %v13795_v31 = vpop.f32.mrb[186].mxu0  ;;  %v5287_v20 = vmax.f32 %v19455_v61, %v13537_v4 }
 0x24c   :  { %19449 = vst [vmem:[#allocation222_spill] sm:$0xff] %v13795_v31  ;;  %3247 = vrot.lane.b32.xlu1 %v13401_v47, %s12014_s11  ;;  %v13801_v48 = vpop.f32.mrb[187].mxu0  ;;  %v6143_v47 = vpack.c.bf16 %v5869_v59, %v5868_v46  ;;  %v5867_v60 = vmax.f32 %v5579_v27, 0.0  ;;  %v6145_v46 = vpack.c.bf16 %v5873_v37, %v5872_v36  ;;  %v5583_v27 = vadd.f32 %v13151_v29, %v5288_v26 }
 0x24d   :  { %19451 = vst [vmem:[#allocation78_spill] sm:$0xff] %v13801_v48  ;;  %v13805_v53 = vpop.permute.xlu0 %4497  ;;  %11478 = vmatmul.mubr.msk.bf16.gmra.mrb[8].mxu0 %vm1049_vm0, %v11787_v35  ;;  %v5582_v4 = vadd.f32 %v13151_v29, %v5287_v20 }
 0x24e   :  { %v13808_v3 = vpop.permute.xlu1 %4495  ;;  %v6142_v35 = vpack.c.bf16 %v5867_v60, %v5866_v49  ;;  %v5871_v21 = vmax.f32 %v5583_v27, 0.0  ;;  %v11788_v60 = vld [vmem:[%s18800_s0 + $0x430] sm:$0xff]   ;;  %v11789_v49 = vld [vmem:[%s18800_s0 + $0x438] sm:$0xff]  }
 0x24f   :  { %3245 = vrot.lane.b32.xlu0 %v13419_v51, %s12014_s11  ;;  %v5870_v36 = vmax.f32 %v5582_v4, 0.0  ;;  %11481 = vmatprep.mubr.msk.bf16.mxu0 %vm1049_vm0, %v11788_v60 }
 0x250   :  { %3243 = vrot.lane.b32.xlu1 %v13410_v15, %s12014_s11 }
 0x251   :  { %v13823_v6 = vpop.permute.xlu0 %4493  ;;  %v13825_v51 = vpop.f32.mrb[188].mxu0 }
 0x252   :  { %19453 = vst [vmem:[#allocation95_spill] sm:$0xff] %v13825_v51  ;;  %v13828_v22 = vpop.permute.xlu1 %4491  ;;  %v13830_v15 = vpop.f32.mrb[189].mxu0 }
 0x253   :  { %19454 = vst [vmem:[#allocation223_spill] sm:$0xff] %v13830_v15  ;;  %3257 = vrot.lane.b32.xlu0 %v13447_v14, %s12014_s11  ;;  %v13837_v1 = vpop.f32.mrb[190].mxu0 }
 0x254   :  { %19456 = vst [vmem:[#allocation93_spill] sm:$0xff] %v13837_v1  ;;  %6301 = vrot.lane.b32.xlu1 %v6143_v47, %s12016_s29  ;;  %v13840_v59 = vpop.f32.mrb[191].mxu0 }
 0x255   :  { %19457 = vst [vmem:[#allocation224_spill] sm:$0xff] %v13840_v59  ;;  %v13843_v13 = vpop.permute.xlu0 %3175  ;;  %11482 = vmatmul.mubr.msk.bf16.gmra.mrb[12].mxu0 %vm1049_vm0, %v11789_v49 }
 0x256   :  { %19458 = vst [vmem:[#allocation225_spill] sm:$0xff] %v13843_v13  ;;  %v13845_v15 = vpop.permute.xlu1 %3177  ;;  %v13913_v13 = vmax.f32 %v12954_v56, %v13661_v0  ;;  %v19468_v56 = vld [vmem:[#allocation82_spill] sm:$0xff] }
 0x257   :  { %19459 = vst [vmem:[#allocation226_spill] sm:$0xff] %v13845_v15  ;;  %6305 = vrot.lane.b32.xlu0 %v6145_v46, %s12016_s29  ;;  %v6144_v46 = vpack.c.bf16 %v5871_v21, %v5870_v36  ;;  %v13931_v0 = vmax.f32 %v19468_v56, %v13679_v11 }
 0x258   :  { %6299 = vrot.lane.b32.xlu1 %v6142_v35, %s12016_s29 }
 0x259   :  { %v13850_v61 = vpop.permute.xlu0 %3171  ;;  %v13852_v47 = vpop.f32.mrb[192].mxu0 }
 0x25a   :  { %19460 = vst [vmem:[#allocation227_spill] sm:$0xff] %v13850_v61  ;;  %19461 = vst [vmem:[#allocation228_spill] sm:$0xff] %v13852_v47  ;;  %v13854_v59 = vpop.permute.xlu1 %3173  ;;  %v13856_v37 = vpop.f32.mrb[193].mxu0  ;;  %v11790_v61 = vld [vmem:[%s18800_s0 + $0x440] sm:$0xff]  }
 0x25b   :  { %19462 = vst [vmem:[#allocation229_spill] sm:$0xff] %v13854_v59  ;;  %3253 = vrot.lane.b32.xlu0 %v13451_v23, %s12014_s11  ;;  %v13860_v26 = vpop.f32.mrb[194].mxu0  ;;  %v11791_v59 = vld [vmem:[%s18800_s0 + $0x448] sm:$0xff]   ;;  %11485 = vmatprep.mubr.msk.bf16.mxu0 %vm1049_vm0, %v11790_v61 }
 0x25c   :  { %3255 = vrot.lane.b32.xlu1 %v13435_v58, %s12014_s11  ;;  %v13867_v20 = vpop.f32.mrb[195].mxu0 }
 0x25d   :  { %v13872_v27 = vpop.permute.xlu0 %4505  ;;  %11486 = vmatmul.mubr.msk.bf16.gmra.mrb[16].mxu0 %vm1049_vm0, %v11791_v59 }
 0x25e   :  { %v13875_v35 = vpop.permute.xlu1 %4503 }
 0x25f   :  { %6303 = vrot.lane.b32.xlu0 %v6144_v46, %s12016_s29 }
 0x260   :  { %3251 = vrot.lane.b32.xlu1 %v13443_v43, %s12014_s11 }
 0x261   :  { %v13881_v4 = vpop.permute.xlu0 %4501  ;;  %v13883_v1 = vpop.f32.mrb[196].mxu0 }
 0x262   :  { %v13885_v51 = vpop.permute.xlu1 %4499  ;;  %v13887_v21 = vpop.f32.mrb[197].mxu0 }
 0x263   :  { %3265 = vrot.lane.b32.xlu0 %v13479_v17, %s12014_s11  ;;  %v13891_v36 = vpop.f32.mrb[198].mxu0 }
 0x264   :  { %3263 = vrot.lane.b32.xlu1 %v13469_v38, %s12014_s11  ;;  %v13895_v60 = vpop.f32.mrb[199].mxu0 }
 0x265   :  { %v13897_v49 = vpop.permute.xlu0 %4513 }
 0x266   :  { %19463 = vst [vmem:[#allocation230_spill] sm:$0xff] %v13897_v49  ;;  %v13899_v46 = vpop.permute.xlu1 %4511 }
 0x267   :  { %19464 = vst [vmem:[#allocation231_spill] sm:$0xff] %v13899_v46  ;;  %3261 = vrot.lane.b32.xlu0 %v13483_v10, %s12014_s11  ;;  %v19466_v46 = vld [vmem:[#allocation80_spill] sm:$0xff] }
 0x268   :  { %3259 = vrot.lane.b32.xlu1 %v13474_v39, %s12014_s11  ;;  %v13920_v49 = vmax.f32 %v19466_v46, %v13649_v63  ;;  %v19471_v63 = vld [vmem:[#allocation81_spill] sm:$0xff] }
 0x269   :  { %v13915_v15 = vpop.permute.xlu0 %4509  ;;  %v13935_v61 = vpop.f32.mrb[200].mxu0  ;;  %v13939_v46 = vmax.f32 %v19471_v63, %v13688_v7 }
 0x26a   :  { %19465 = vst [vmem:[#allocation232_spill] sm:$0xff] %v13915_v15  ;;  %v13922_v10 = vpop.permute.xlu1 %4507  ;;  %19470 = vst [vmem:[#allocation233_spill] sm:$0xff] %v13935_v61  ;;  %v13943_v59 = vpop.f32.mrb[201].mxu0 }
 0x26b   :  { %19467 = vst [vmem:[#allocation80_spill] sm:$0xff] %v13922_v10  ;;  %4593 = vrot.lane.b32.xlu0 %v13913_v13, %s12015_s10  ;;  %19473 = vst [vmem:[#allocation234_spill] sm:$0xff] %v13943_v59  ;;  %v13947_v39 = vpop.f32.mrb[202].mxu0 }
 0x26c   :  { %4591 = vrot.lane.b32.xlu1 %v13920_v49, %s12015_s10  ;;  %19474 = vst [vmem:[#allocation235_spill] sm:$0xff] %v13947_v39  ;;  %v13951_v11 = vpop.f32.mrb[203].mxu0 }
 0x26d   :  { %v13933_v15 = vpop.permute.xlu0 %4519  ;;  %19475 = vst [vmem:[#allocation236_spill] sm:$0xff] %v13951_v11 }
 0x26e   :  { %19469 = vst [vmem:[#allocation82_spill] sm:$0xff] %v13933_v15  ;;  %v13941_v10 = vpop.permute.xlu1 %4521 }
 0x26f   :  { %19472 = vst [vmem:[#allocation81_spill] sm:$0xff] %v13941_v10  ;;  %4589 = vrot.lane.b32.xlu0 %v13931_v0, %s12015_s10  ;;  %v11792_v10 = vld [vmem:[%s18800_s0 + $0x450] sm:$0xff]  }
 0x270   :  { %4587 = vrot.lane.b32.xlu1 %v13939_v46, %s12015_s10  ;;  %11489 = vmatprep.mubr.msk.bf16.mxu0 %vm1049_vm0, %v11792_v10  ;;  %v19481_v10 = vld [vmem:[#allocation89_spill] sm:$0xff] }
 0x271   :  { %v13953_v56 = vpop.permute.xlu0 %4515 }
 0x272   :  { %19476 = vst [vmem:[#allocation237_spill] sm:$0xff] %v13953_v56  ;;  %v13955_v15 = vpop.permute.xlu1 %3199  ;;  %v11793_v56 = vld [vmem:[%s18800_s0 + $0x458] sm:$0xff]  }
 0x273   :  { %3273 = vrot.lane.b32.xlu0 %v13511_v2, %s12014_s11  ;;  %11490 = vmatmul.mubr.msk.bf16.gmra.mrb[20].mxu0 %vm1049_vm0, %v11793_v56 }
 0x274   :  { %3271 = vrot.lane.b32.xlu1 %v13501_v57, %s12014_s11  ;;  %v19478_v57 = vld [vmem:[#allocation90_spill] sm:$0xff] }
 0x275   :  { %v13961_v7 = vpop.permute.xlu0 %3201  ;;  %v13977_v2 = vmax.f32 %v19478_v57, %v13705_v12  ;;  %v19480_v57 = vld [vmem:[#allocation91_spill] sm:$0xff] }
 0x276   :  { %v13963_v63 = vpop.permute.xlu1 %4517  ;;  %v13995_v12 = vmax.f32 %v19480_v57, %v13727_v19  ;;  %v5310_v19 = vmax.f32 %v13234_v24, %v13805_v53  ;;  %v19484_v57 = vld [vmem:[#allocation132_spill] sm:$0xff] }
 0x277   :  { %19477 = vst [vmem:[#allocation238_spill] sm:$0xff] %v13963_v63  ;;  %3269 = vrot.lane.b32.xlu0 %v13515_v62, %s12014_s11  ;;  %v19479_v63 = vld [vmem:[#allocation86_spill] sm:$0xff]  ;;  %v5309_v43 = vmax.f32 %v19484_v57, %v13808_v3  ;;  %v19488_v3 = vld [vmem:[#allocation136_spill] sm:$0xff] }
 0x278   :  { %3267 = vrot.lane.b32.xlu1 %v13506_v33, %s12014_s11  ;;  %v13984_v62 = vmax.f32 %v19479_v63, %v13711_v52  ;;  %v14001_v52 = vmax.f32 %v19481_v10, %v13736_v25  ;;  %v5308_v57 = vmax.f32 %v19488_v3, %v13823_v6 }
 0x279   :  { %v13979_v17 = vpop.permute.xlu0 %3197  ;;  %v5604_v24 = vadd.f32 %v13151_v29, %v5309_v43  ;;  %v11795_v43 = vld [vmem:[%s18800_s0 + $0x468] sm:$0xff]  }
 0x27a   :  { %v13986_v38 = vpop.permute.xlu1 %3195  ;;  %v14007_v56 = vpop.f32.mrb[204].mxu0 }
 0x27b   :  { %4601 = vrot.lane.b32.xlu0 %v13977_v2, %s12015_s10  ;;  %19482 = vst [vmem:[#allocation90_spill] sm:$0xff] %v14007_v56  ;;  %v14011_v23 = vpop.f32.mrb[205].mxu0  ;;  %v19487_v56 = vld [vmem:[#allocation183_spill] sm:$0xff] }
 0x27c   :  { %4599 = vrot.lane.b32.xlu1 %v13984_v62, %s12015_s10  ;;  %19483 = vst [vmem:[#allocation86_spill] sm:$0xff] %v14011_v23  ;;  %v14019_v10 = vpop.f32.mrb[206].mxu0  ;;  %v5605_v23 = vadd.f32 %v13151_v29, %v5310_v19  ;;  %v5892_v19 = vmax.f32 %v5604_v24, 0.0 }
 0x27d   :  { %v13997_v33 = vpop.permute.xlu0 %3209  ;;  %19485 = vst [vmem:[#allocation91_spill] sm:$0xff] %v14019_v10  ;;  %v14023_v58 = vpop.f32.mrb[207].mxu0  ;;  %v19489_v10 = vld [vmem:[#allocation137_spill] sm:$0xff] }
 0x27e   :  { %v14003_v63 = vpop.permute.xlu1 %3207  ;;  %19486 = vst [vmem:[#allocation89_spill] sm:$0xff] %v14023_v58  ;;  %v5307_v59 = vmax.f32 %v19489_v10, %v13828_v22  ;;  %v19490_v58 = vld [vmem:[#allocation185_spill] sm:$0xff]  ;;  %v5893_v6 = vmax.f32 %v5605_v23, 0.0  ;;  %v5603_v22 = vadd.f32 %v13151_v29, %v5308_v57 }
 0x27f   :  { %4597 = vrot.lane.b32.xlu0 %v13995_v12, %s12015_s10 }
 0x280   :  { %4595 = vrot.lane.b32.xlu1 %v14001_v52, %s12015_s10  ;;  %v5602_v10 = vadd.f32 %v13151_v29, %v5307_v59  ;;  %v6155_v23 = vpack.c.bf16 %v5893_v6, %v5892_v19  ;;  %v19495_v6 = vld [vmem:[#allocation155_spill] sm:$0xff] }
 0x281   :  { %v14017_v25 = vpop.permute.xlu0 %3205  ;;  %v5312_v19 = vmax.f32 %v19495_v6, %v13881_v4 }
 0x282   :  { %v14021_v14 = vpop.permute.xlu1 %3203 }
 0x283   :  { %3275 = vrot.lane.b32.xlu0 %v13539_v30, %s12014_s11  ;;  %v11794_v30 = vld [vmem:[%s18800_s0 + $0x460] sm:$0xff]   ;;  %v5607_v4 = vadd.f32 %v13151_v29, %v5312_v19 }
 0x284   :  { %3279 = vrot.lane.b32.xlu1 %v19487_v56, %s12014_s11  ;;  %11493 = vmatprep.mubr.msk.bf16.mxu0 %vm1049_vm0, %v11794_v30  ;;  %v5891_v30 = vmax.f32 %v5603_v22, 0.0 }
 0x285   :  { %v14031_v53 = vpop.permute.xlu0 %3217  ;;  %11494 = vmatmul.mubr.msk.bf16.gmra.mrb[24].mxu0 %vm1049_vm0, %v11795_v43  ;;  %v5895_v19 = vmax.f32 %v5607_v4, 0.0  ;;  %v11796_v4 = vld [vmem:[%s18802_s3 + $0x4] ss:$8 sps:$4 sm:$0xff]  }
 0x286   :  { %v14037_v11 = vpop.permute.xlu1 %3215  ;;  %7899 = vmatprep.subr.bf16.mxu1 %v11796_v4 }
 0x287   :  { %3281 = vrot.lane.b32.xlu0 %v19490_v58, %s12014_s11  ;;  %v5890_v58 = vmax.f32 %v5602_v10, 0.0 }
 0x288   :  { %3277 = vrot.lane.b32.xlu1 %v13550_v16, %s12014_s11  ;;  %v14063_v16 = vpop.f32.mrb[208].mxu0 }
 0x289   :  { %v14049_v3 = vpop.permute.xlu0 %3213  ;;  %19491 = vst [vmem:[#allocation132_spill] sm:$0xff] %v14063_v16  ;;  %v14067_v59 = vpop.f32.mrb[209].mxu0  ;;  %v19496_v16 = vld [vmem:[#allocation156_spill] sm:$0xff] }
 0x28a   :  { %v14054_v56 = vpop.permute.xlu1 %3211  ;;  %19492 = vst [vmem:[#allocation136_spill] sm:$0xff] %v14067_v59  ;;  %v14070_v43 = vpop.f32.mrb[210].mxu0  ;;  %v5311_v22 = vmax.f32 %v19496_v16, %v13885_v51  ;;  %v19497_v59 = vld [vmem:[#allocation147_spill] sm:$0xff] }
 0x28b   :  { %3297 = vrot.lane.b32.xlu0 %v13623_v41, %s12014_s11  ;;  %19493 = vst [vmem:[#allocation137_spill] sm:$0xff] %v14070_v43  ;;  %v14074_v41 = vpop.f32.mrb[211].mxu0  ;;  %v5314_v61 = vmax.f32 %v19497_v59, %v13872_v27 }
 0x28c   :  { %3295 = vrot.lane.b32.xlu1 %v13609_v45, %s12014_s11  ;;  %19494 = vst [vmem:[#allocation239_spill] sm:$0xff] %v14074_v41  ;;  %v6154_v45 = vpack.c.bf16 %v5891_v30, %v5890_v58  ;;  %v5606_v51 = vadd.f32 %v13151_v29, %v5311_v22 }
 0x28d   :  { %v14061_v24 = vpop.permute.xlu0 %4545  ;;  %v5609_v27 = vadd.f32 %v13151_v29, %v5314_v61 }
 0x28e   :  { %v14065_v57 = vpop.permute.xlu1 %4543  ;;  %v5894_v22 = vmax.f32 %v5606_v51, 0.0 }
 0x28f   :  { %6362 = vrot.lane.b32.xlu0 %v6155_v23, %s12015_s10  ;;  %v19498_v23 = vld [vmem:[#allocation150_spill] sm:$0xff]  ;;  %v5897_v61 = vmax.f32 %v5609_v27, 0.0 }
 0x290   :  { %3291 = vrot.lane.b32.xlu1 %v13618_v55, %s12014_s11  ;;  %v5313_v43 = vmax.f32 %v19498_v23, %v13875_v35  ;;  %v14095_v58 = vpop.f32.mrb[212].mxu0 }
 0x291   :  { %v14080_v10 = vpop.permute.xlu0 %4541  ;;  %19499 = vst [vmem:[#allocation155_spill] sm:$0xff] %v14095_v58  ;;  %v14101_v59 = vpop.f32.mrb[213].mxu0 }
 0x292   :  { %v14086_v39 = vpop.permute.xlu1 %4539  ;;  %v5608_v30 = vadd.f32 %v13151_v29, %v5313_v43  ;;  %19500 = vst [vmem:[#allocation156_spill] sm:$0xff] %v14101_v59 }
 0x293   :  { %3293 = vrot.lane.b32.xlu0 %v13627_v50, %s12014_s11 }
 0x294   :  { %6360 = vrot.lane.b32.xlu1 %v6154_v45, %s12015_s10  ;;  %v14105_v45 = vpop.f32.mrb[214].mxu0  ;;  %v5896_v29 = vmax.f32 %v5608_v30, 0.0 }
 0x295   :  { %v14093_v16 = vpop.permute.xlu0 %3225  ;;  %19501 = vst [vmem:[#allocation147_spill] sm:$0xff] %v14105_v45  ;;  %v14109_v6 = vpop.f32.mrb[215].mxu0  ;;  %v6156_v45 = vpack.c.bf16 %v5895_v19, %v5894_v22 }
 0x296   :  { %v14099_v35 = vpop.permute.xlu1 %3223  ;;  %19502 = vst [vmem:[#allocation150_spill] sm:$0xff] %v14109_v6  ;;  %v6157_v51 = vpack.c.bf16 %v5897_v61, %v5896_v29  ;;  %v11798_v6 = vld [vmem:[%s18802_s3] ss:$8 sps:$4 sm:$0xff]   ;;  %v11799_v61 = vld [vmem:[%s18802_s3 + $0x14] ss:$8 sps:$4 sm:$0xff]  }
 0x297   :  { %3305 = vrot.lane.b32.xlu0 %v13655_v18, %s12014_s11  ;;  %7900 = vmatpush1.bf16.msra.mxu1 %v11798_v6  ;;  %v11805_v18 = vld [vmem:[%s18802_s3 + $0x34] ss:$8 sps:$4 sm:$0xff]  }
 0x298   :  { %3303 = vrot.lane.b32.xlu1 %v13647_v40, %s12014_s11  ;;  %v14117_v59 = vpop.f32.mrb[216].mxu0  ;;  %7901 = vmatprep.subr.bf16.mxu1 %v11799_v61  ;;  %v11804_v61 = vld [vmem:[%s18802_s3 + $0x20] ss:$8 sps:$4 sm:$0xff]  }
 0x299   :  { %v14111_v23 = vpop.permute.xlu0 %3221  ;;  %19503 = vst [vmem:[#allocation240_spill] sm:$0xff] %v14117_v59  ;;  %v14128_v30 = vpop.f32.mrb[217].mxu0 }
 0x29a   :  { %v14113_v43 = vpop.permute.xlu1 %3219  ;;  %19504 = vst [vmem:[#allocation241_spill] sm:$0xff] %v14128_v30  ;;  %v14134_v41 = vpop.f32.mrb[218].mxu0 }
 0x29b   :  { %3301 = vrot.lane.b32.xlu0 %v13659_v8, %s12014_s11  ;;  %19505 = vst [vmem:[#allocation242_spill] sm:$0xff] %v14134_v41  ;;  %v14137_v19 = vpop.f32.mrb[219].mxu0 }
 0x29c   :  { %3299 = vrot.lane.b32.xlu1 %v13651_v32, %s12014_s11  ;;  %19506 = vst [vmem:[#allocation243_spill] sm:$0xff] %v14137_v19 }
 0x29d   :  { %v14121_v58 = vpop.permute.xlu0 %4553 }
 0x29e   :  { %v14126_v27 = vpop.permute.xlu1 %4551 }
 0x29f   :  { %6364 = vrot.lane.b32.xlu0 %v6156_v45, %s12015_s10  ;;  %v11801_v45 = vld [vmem:[%s18802_s3 + $0x10] ss:$8 sps:$4 sm:$0xff]  }
 0x2a0   :  { %6366 = vrot.lane.b32.xlu1 %v6157_v51, %s12015_s10  ;;  %7902 = vmatpush1.bf16.msra.mxu1 %v11801_v45  ;;  %v11802_v51 = vld [vmem:[%s18802_s3 + $0x24] ss:$8 sps:$4 sm:$0xff]  }
 0x2a1   :  { %v14139_v22 = vpop.permute.xlu0 %4549  ;;  %7903 = vmatprep.subr.bf16.mxu1 %v11802_v51  ;;  %v19516_v51 = vld [vmem:[#allocation122_spill] sm:$0xff] }
 0x2a2   :  { %v14144_v29 = vpop.permute.xlu1 %4547  ;;  %v14155_v4 = vpop.f32.mrb[220].mxu0 }
 0x2a3   :  { %3313 = vrot.lane.b32.xlu0 %v13695_v5, %s12014_s11  ;;  %19508 = vst [vmem:[#allocation245_spill] sm:$0xff] %v14155_v4  ;;  %v14162_v32 = vpop.f32.mrb[221].mxu0 }
 0x2a4   :  { %3311 = vrot.lane.b32.xlu1 %v13681_v54, %s12014_s11  ;;  %19510 = vst [vmem:[#allocation247_spill] sm:$0xff] %v14162_v32  ;;  %v14169_v45 = vpop.f32.mrb[222].mxu0  ;;  %7904 = vmatpush1.bf16.msra.mxu1 %v11804_v61  ;;  %v11807_v61 = vld [vmem:[%s18802_s3 + $0x30] ss:$8 sps:$4 sm:$0xff]  }
 0x2a5   :  { %v14153_v6 = vpop.permute.xlu0 %3233  ;;  %19511 = vst [vmem:[#allocation248_spill] sm:$0xff] %v14169_v45  ;;  %7905 = vmatprep.subr.bf16.mxu1 %v11805_v18 }
 0x2a6   :  { %19507 = vst [vmem:[#allocation244_spill] sm:$0xff] %v14153_v6  ;;  %v14160_v8 = vpop.permute.xlu1 %3231  ;;  %v14173_v6 = vpop.f32.mrb[223].mxu0 }
 0x2a7   :  { %19509 = vst [vmem:[#allocation246_spill] sm:$0xff] %v14160_v8  ;;  %3309 = vrot.lane.b32.xlu0 %v13699_v42, %s12014_s11  ;;  %19512 = vst [vmem:[#allocation249_spill] sm:$0xff] %v14173_v6  ;;  %v19513_v8 = vld [vmem:[#allocation124_spill] sm:$0xff]  ;;  %v14186_v42 = vmax.f32 %v19516_v51, %v13955_v15 }
 0x2a8   :  { %3307 = vrot.lane.b32.xlu1 %v13690_v34, %s12014_s11  ;;  %v14177_v5 = vmax.f32 %v19513_v8, %v13961_v7  ;;  %7906 = vmatpush1.bf16.msra.mxu1 %v11807_v61  ;;  %v19519_v8 = vld [vmem:[#allocation125_spill] sm:$0xff] }
 0x2a9   :  { %v14179_v54 = vpop.permute.xlu0 %3229  ;;  %19517 = vst [vmem:[#allocation122_spill] sm:$0xff] %v14186_v42  ;;  %v14199_v7 = vmax.f32 %v19519_v8, %v13979_v17  ;;  %v11810_v17 = vld [vmem:[%s18802_s3 + $0x40] ss:$8 sps:$4 sm:$0xff]   ;;  %v11811_v8 = vld [vmem:[%s18802_s3 + $0x54] ss:$8 sps:$4 sm:$0xff]  }
 0x2aa   :  { %19514 = vst [vmem:[#allocation124_spill] sm:$0xff] %v14177_v5  ;;  %19515 = vst [vmem:[#allocation250_spill] sm:$0xff] %v14179_v54  ;;  %v14188_v40 = vpop.permute.xlu1 %3227  ;;  %v14203_v51 = vpop.f32.mrb[224].mxu0  ;;  %v19523_v54 = vld [vmem:[#allocation123_spill] sm:$0xff] }
 0x2ab   :  { %19518 = vst [vmem:[#allocation251_spill] sm:$0xff] %v14188_v40  ;;  %4641 = vrot.lane.b32.xlu0 %v14177_v5, %s12015_s10  ;;  %19520 = vst [vmem:[#allocation125_spill] sm:$0xff] %v14199_v7  ;;  %v11808_v40 = vld [vmem:[%s18802_s3 + $0x44] ss:$8 sps:$4 sm:$0xff]   ;;  %v14210_v5 = vmax.f32 %v19523_v54, %v13986_v38 }
 0x2ac   :  { %4639 = vrot.lane.b32.xlu1 %v14186_v42, %s12015_s10  ;;  %19522 = vst [vmem:[#allocation253_spill] sm:$0xff] %v14203_v51  ;;  %v14214_v42 = vpop.f32.mrb[225].mxu0  ;;  %7907 = vmatprep.subr.bf16.mxu1 %v11808_v40  ;;  %v11813_v40 = vld [vmem:[%s18802_s3 + $0x50] ss:$8 sps:$4 sm:$0xff]  }
 0x2ad   :  { %v14201_v15 = vpop.permute.xlu0 %4555  ;;  %19524 = vst [vmem:[#allocation123_spill] sm:$0xff] %v14210_v5  ;;  %19526 = vst [vmem:[#allocation255_spill] sm:$0xff] %v14214_v42  ;;  %v14221_v61 = vpop.f32.mrb[226].mxu0  ;;  %7908 = vmatpush1.bf16.msra.mxu1 %v11810_v17  ;;  %v19532_v17 = vld [vmem:[#allocation214_spill] sm:$0xff] }
 0x2ae   :  { %19521 = vst [vmem:[#allocation252_spill] sm:$0xff] %v14201_v15  ;;  %v14212_v18 = vpop.permute.xlu1 %4559  ;;  %19527 = vst [vmem:[#allocation256_spill] sm:$0xff] %v14221_v61  ;;  %v14225_v38 = vpop.f32.mrb[227].mxu0  ;;  %7909 = vmatprep.subr.bf16.mxu1 %v11811_v8  ;;  %v19535_v8 = vld [vmem:[#allocation216_spill] sm:$0xff] }
 0x2af   :  { %19525 = vst [vmem:[#allocation254_spill] sm:$0xff] %v14212_v18  ;;  %4637 = vrot.lane.b32.xlu0 %v14199_v7, %s12015_s10  ;;  %19528 = vst [vmem:[#allocation257_spill] sm:$0xff] %v14225_v38  ;;  %v19531_v18 = vld [vmem:[#allocation217_spill] sm:$0xff] }
 0x2b0   :  { %4635 = vrot.lane.b32.xlu1 %v14210_v5, %s12015_s10 }
 0x2b1   :  { %v14227_v54 = vpop.permute.xlu0 %4561  ;;  %7910 = vmatpush1.bf16.msra.mxu1 %v11813_v40  ;;  %v19536_v40 = vld [vmem:[#allocation128_spill] sm:$0xff] }
 0x2b2   :  { %19529 = vst [vmem:[#allocation258_spill] sm:$0xff] %v14227_v54  ;;  %v14232_v15 = vpop.permute.xlu1 %4557  ;;  %v11814_v54 = vld [vmem:[%s18802_s3 + $0x64] ss:$8 sps:$4 sm:$0xff]  }
 0x2b3   :  { %19530 = vst [vmem:[#allocation259_spill] sm:$0xff] %v14232_v15  ;;  %3321 = vrot.lane.b32.xlu0 %v19531_v18, %s12014_s11  ;;  %v11816_v15 = vld [vmem:[%s18802_s3 + $0x60] ss:$8 sps:$4 sm:$0xff]   ;;  %7911 = vmatprep.subr.bf16.mxu1 %v11814_v54 }
 0x2b4   :  { %3319 = vrot.lane.b32.xlu1 %v19532_v17, %s12014_s11  ;;  %v19539_v17 = vld [vmem:[#allocation126_spill] sm:$0xff] }
 0x2b5   :  { %v14241_v5 = vpop.permute.xlu0 %4567  ;;  %7912 = vmatpush1.bf16.msra.mxu1 %v11816_v15  ;;  %v14266_v34 = vmax.f32 %v19539_v17, %v14003_v63  ;;  %v11819_v15 = vld [vmem:[%s18802_s3 + $0x70] ss:$8 sps:$4 sm:$0xff]  }
 0x2b6   :  { %19533 = vst [vmem:[#allocation260_spill] sm:$0xff] %v14241_v5  ;;  %v14246_v7 = vpop.permute.xlu1 %4563  ;;  %v14257_v5 = vmax.f32 %v19536_v40, %v13997_v33  ;;  %v19542_v33 = vld [vmem:[#allocation129_spill] sm:$0xff]  ;;  %v14283_v17 = vpop.f32.mrb[228].mxu0 }
 0x2b7   :  { %19534 = vst [vmem:[#allocation261_spill] sm:$0xff] %v14246_v7  ;;  %3317 = vrot.lane.b32.xlu0 %v13747_v28, %s12014_s11  ;;  %v11817_v7 = vld [vmem:[%s18802_s3 + $0x74] ss:$8 sps:$4 sm:$0xff]   ;;  %19540 = vst [vmem:[#allocation126_spill] sm:$0xff] %v14266_v34  ;;  %v14279_v54 = vmax.f32 %v19542_v33, %v14017_v25  ;;  %v11820_v40 = vld [vmem:[%s18802_s3 + $0x84] ss:$8 sps:$4 sm:$0xff]  }
 0x2b8   :  { %3315 = vrot.lane.b32.xlu1 %v19535_v8, %s12014_s11  ;;  %19537 = vst [vmem:[#allocation128_spill] sm:$0xff] %v14257_v5  ;;  %7913 = vmatprep.subr.bf16.mxu1 %v11817_v7  ;;  %19544 = vst [vmem:[#allocation264_spill] sm:$0xff] %v14283_v17  ;;  %v11822_v25 = vld [vmem:[%s18802_s3 + $0x80] ss:$8 sps:$4 sm:$0xff]   ;;  %v11823_v33 = vld [vmem:[%s18802_s3 + $0x94] ss:$8 sps:$4 sm:$0xff]  }
 0x2b9   :  { %v14259_v18 = vpop.permute.xlu0 %4565  ;;  %7914 = vmatpush1.bf16.msra.mxu1 %v11819_v15  ;;  %19543 = vst [vmem:[#allocation129_spill] sm:$0xff] %v14279_v54  ;;  %v11828_v8 = vld [vmem:[%s18802_s3 + $0xa0] ss:$8 sps:$4 sm:$0xff]  }
 0x2ba   :  { %19538 = vst [vmem:[#allocation262_spill] sm:$0xff] %v14259_v18  ;;  %v14268_v28 = vpop.permute.xlu1 %4569  ;;  %v19545_v18 = vld [vmem:[#allocation127_spill] sm:$0xff]  ;;  %7915 = vmatprep.subr.bf16.mxu1 %v11820_v40 }
 0x2bb   :  { %19541 = vst [vmem:[#allocation263_spill] sm:$0xff] %v14268_v28  ;;  %4649 = vrot.lane.b32.xlu0 %v14257_v5, %s12015_s10  ;;  %v14290_v28 = vmax.f32 %v19545_v18, %v14021_v14  ;;  %v11825_v40 = vld [vmem:[%s18802_s3 + $0x90] ss:$8 sps:$4 sm:$0xff]  }
 0x2bc   :  { %4647 = vrot.lane.b32.xlu1 %v14266_v34, %s12015_s10  ;;  %v14294_v34 = vpop.f32.mrb[229].mxu0 }
 0x2bd   :  { %v14281_v63 = vpop.permute.xlu0 %3249  ;;  %19546 = vst [vmem:[#allocation127_spill] sm:$0xff] %v14290_v28  ;;  %19547 = vst [vmem:[#allocation265_spill] sm:$0xff] %v14294_v34  ;;  %v14301_v15 = vpop.f32.mrb[230].mxu0  ;;  %7916 = vmatpush1.bf16.msra.mxu1 %v11822_v25 }
 0x2be   :  { %v14292_v7 = vpop.permute.xlu1 %3247  ;;  %19548 = vst [vmem:[#allocation266_spill] sm:$0xff] %v14301_v15  ;;  %v14305_v14 = vpop.f32.mrb[231].mxu0  ;;  %7917 = vmatprep.subr.bf16.mxu1 %v11823_v33  ;;  %v19550_v33 = vld [vmem:[#allocation134_spill] sm:$0xff] }
 0x2bf   :  { %4645 = vrot.lane.b32.xlu0 %v14279_v54, %s12015_s10  ;;  %19549 = vst [vmem:[#allocation267_spill] sm:$0xff] %v14305_v14  ;;  %v19552_v14 = vld [vmem:[#allocation131_spill] sm:$0xff] }
 0x2c0   :  { %4643 = vrot.lane.b32.xlu1 %v14290_v28, %s12015_s10  ;;  %v11826_v28 = vld [vmem:[%s18802_s3 + $0xa4] ss:$8 sps:$4 sm:$0xff]  }
 0x2c1   :  { %v14307_v18 = vpop.permute.xlu0 %3245  ;;  %7918 = vmatpush1.bf16.msra.mxu1 %v11825_v40  ;;  %v14336_v40 = vmax.f32 %v19550_v33, %v14031_v53  ;;  %v11832_v33 = vld [vmem:[%s18802_s3 + $0xc4] ss:$8 sps:$4 sm:$0xff]  }
 0x2c2   :  { %v14312_v5 = vpop.permute.xlu1 %3243  ;;  %7919 = vmatprep.subr.bf16.mxu1 %v11826_v28 }
 0x2c3   :  { %3327 = vrot.lane.b32.xlu0 %v13781_v44, %s12014_s11  ;;  %19551 = vst [vmem:[#allocation134_spill] sm:$0xff] %v14336_v40 }
 0x2c4   :  { %3329 = vrot.lane.b32.xlu1 %v13795_v31, %s12014_s11  ;;  %v11829_v31 = vld [vmem:[%s18802_s3 + $0xb4] ss:$8 sps:$4 sm:$0xff]  }
 0x2c5   :  { %v14321_v25 = vpop.permute.xlu0 %3257  ;;  %7920 = vmatpush1.bf16.msra.mxu1 %v11828_v8  ;;  %v11831_v8 = vld [vmem:[%s18802_s3 + $0xb0] ss:$8 sps:$4 sm:$0xff]  }
 0x2c6   :  { %v6302_v54 = vpop.permute.xlu1 %6301  ;;  %7921 = vmatprep.subr.bf16.mxu1 %v11829_v31 }
 0x2c7   :  { %6337 = vst.msk [vmem:[#allocation2 + $0x18] sm:$0xff] %vm6335_vm2, %v6302_v54  ;;  %3323 = vrot.lane.b32.xlu0 %v13790_v9, %s12014_s11  ;;  %v14343_v54 = vmax.f32 %v19552_v14, %v14037_v11  ;;  %v19554_v11 = vld [vmem:[#allocation135_spill] sm:$0xff] }
 0x2c8   :  { %3325 = vrot.lane.b32.xlu1 %v13801_v48, %s12014_s11  ;;  %v14356_v53 = vmax.f32 %v19554_v11, %v14049_v3  ;;  %v11834_v3 = vld [vmem:[%s18802_s3 + $0xc0] ss:$8 sps:$4 sm:$0xff]   ;;  %v19561_v11 = vld [vmem:[#allocation50_spill] sm:$0xff] }
 0x2c9   :  { %v6306_v44 = vpop.permute.xlu0 %6305  ;;  %19553 = vst [vmem:[#allocation131_spill] sm:$0xff] %v14343_v54  ;;  %7922 = vmatpush1.bf16.msra.mxu1 %v11831_v8  ;;  %v14360_v14 = vpop.f32.mrb[232].mxu0 }
 0x2ca   :  { %6339 = vst.msk [vmem:[#allocation2 + $0x48] sm:$0xff] %vm6335_vm2, %v6306_v44  ;;  %v6300_v28 = vpop.permute.xlu1 %6299  ;;  %19555 = vst [vmem:[#allocation135_spill] sm:$0xff] %v14356_v53  ;;  %v14371_v9 = vpop.f32.mrb[233].mxu0  ;;  %7923 = vmatprep.subr.bf16.mxu1 %v11832_v33  ;;  %v11835_v33 = vld [vmem:[%s18802_s3 + $0xd4] ss:$8 sps:$4 sm:$0xff]  }
 0x2cb   :  { %6336 = vst.msk [vmem:[#allocation2] sm:$0xff] %vm6335_vm2, %v6300_v28  ;;  %4657 = vrot.lane.b32.xlu0 %v14336_v40, %s12015_s10  ;;  %19556 = vst [vmem:[#allocation268_spill] sm:$0xff] %v14360_v14  ;;  %v19557_v28 = vld [vmem:[#allocation133_spill] sm:$0xff]  ;;  %v14378_v8 = vpop.f32.mrb[234].mxu0  ;;  %v19563_v40 = vld [vmem:[#allocation140_spill] sm:$0xff] }
 0x2cc   :  { %4655 = vrot.lane.b32.xlu1 %v14343_v54, %s12015_s10  ;;  %v14367_v48 = vmax.f32 %v19557_v28, %v14054_v56  ;;  %19559 = vst [vmem:[#allocation269_spill] sm:$0xff] %v14371_v9  ;;  %19560 = vst [vmem:[#allocation270_spill] sm:$0xff] %v14378_v8  ;;  %v5334_v54 = vmax.f32 %v19561_v11, %v14061_v24  ;;  %v19562_v56 = vld [vmem:[#allocation47_spill] sm:$0xff]  ;;  %v14388_v9 = vmax.f32 %v19563_v40, %v14099_v35  ;;  %v14410_v35 = vld [vmem:[%s18801_s2] ss:$0 sm:$0xff] }
 0x2cd   :  { %v14358_v44 = vpop.permute.xlu0 %3253  ;;  %7924 = vmatpush1.bf16.msra.mxu1 %v11834_v3  ;;  %v5333_v28 = vmax.f32 %v19562_v56, %v14065_v57  ;;  %v14400_v3 = vpop.f32.mrb[235].mxu0  ;;  %v11837_v57 = vld [vmem:[%s18802_s3 + $0xd0] ss:$8 sps:$4 sm:$0xff]   ;;  %v19569_v11 = vld [vmem:[#allocation49_spill] sm:$0xff] }
 0x2ce   :  { %19558 = vst [vmem:[#allocation133_spill] sm:$0xff] %v14367_v48  ;;  %v14369_v31 = vpop.permute.xlu1 %3255  ;;  %19564 = vst [vmem:[#allocation50_spill] sm:$0xff] %v14388_v9  ;;  %7925 = vmatprep.subr.bf16.mxu1 %v11835_v33  ;;  %v5331_v56 = vmax.f32 %v19569_v11, %v14086_v39  ;;  %v19570_v33 = vld [vmem:[#allocation142_spill] sm:$0xff] }
 0x2cf   :  { %4653 = vrot.lane.b32.xlu0 %v14356_v53, %s12015_s10  ;;  %v19565_v53 = vld [vmem:[#allocation143_spill] sm:$0xff]  ;;  %19567 = vst [vmem:[#allocation140_spill] sm:$0xff] %v14400_v3  ;;  %v5628_v40 = vadd.f32 %v14410_v35, %v5333_v28  ;;  %v11840_v28 = vld [vmem:[%s18802_s3 + $0xe0] ss:$8 sps:$4 sm:$0xff]  }
 0x2d0   :  { %4651 = vrot.lane.b32.xlu1 %v14367_v48, %s12015_s10  ;;  %v14395_v8 = vmax.f32 %v19565_v53, %v14093_v16  ;;  %v5629_v16 = vadd.f32 %v14410_v35, %v5334_v54  ;;  %v19568_v53 = vld [vmem:[#allocation51_spill] sm:$0xff]  ;;  %v11838_v54 = vld [vmem:[%s18802_s3 + $0xe4] ss:$8 sps:$4 sm:$0xff]  }
 0x2d1   :  { %v6304_v14 = vpop.permute.xlu0 %6303  ;;  %7926 = vmatpush1.bf16.msra.mxu1 %v11837_v57  ;;  %v5626_v57 = vadd.f32 %v14410_v35, %v5331_v56  ;;  %v11841_v11 = vld [vmem:[%s18802_s3 + $0xf4] ss:$8 sps:$4 sm:$0xff]  }
 0x2d2   :  { %19566 = vst [vmem:[#allocation47_spill] sm:$0xff] %v14395_v8  ;;  %6338 = vst.msk [vmem:[#allocation2 + $0x30] sm:$0xff] %vm6335_vm2, %v6304_v14  ;;  %v14398_v24 = vpop.permute.xlu1 %3251  ;;  %v5332_v14 = vmax.f32 %v19568_v53, %v14080_v10  ;;  %7927 = vmatprep.subr.bf16.mxu1 %v11838_v54  ;;  %v5917_v39 = vmax.f32 %v5629_v16, 0.0  ;;  %v5916_v10 = vmax.f32 %v5628_v40, 0.0  ;;  %v11843_v16 = vld [vmem:[%s18802_s3 + $0xf0] ss:$8 sps:$4 sm:$0xff]  }
 0x2d3   :  { %4663 = vrot.lane.b32.xlu0 %v14388_v9, %s12015_s10  ;;  %v14422_v9 = vmax.f32 %v19570_v33, %v14113_v43  ;;  %v19572_v33 = vld [vmem:[#allocation144_spill] sm:$0xff]  ;;  %v5914_v56 = vmax.f32 %v5626_v57, 0.0  ;;  %v19579_v57 = vld [vmem:[#allocation57_spill] sm:$0xff] }
 0x2d4   :  { %4665 = vrot.lane.b32.xlu1 %v14395_v8, %s12015_s10  ;;  %v5627_v43 = vadd.f32 %v14410_v35, %v5332_v14  ;;  %v6167_v40 = vpack.c.bf16 %v5917_v39, %v5916_v10 }
 0x2d5   :  { %19571 = vst [vmem:[#allocation143_spill] sm:$0xff] %v14422_v9  ;;  %v14424_v48 = vpop.permute.xlu0 %3265  ;;  %7928 = vmatpush1.bf16.msra.mxu1 %v11840_v28 }
 0x2d6   :  { %v14429_v8 = vpop.permute.xlu1 %3263  ;;  %7929 = vmatprep.subr.bf16.mxu1 %v11841_v11  ;;  %v5915_v14 = vmax.f32 %v5627_v43, 0.0  ;;  %v19578_v43 = vld [vmem:[#allocation59_spill] sm:$0xff] }
 0x2d7   :  { %4659 = vrot.lane.b32.xlu0 %v14422_v9, %s12015_s10  ;;  %v14447_v9 = vmax.f32 %v19572_v33, %v14111_v23  ;;  %v14458_v23 = vpop.f32.mrb[236].mxu0 }
 0x2d8   :  { %3343 = vrot.lane.b32.xlu1 %v13852_v47, %s12014_s11  ;;  %19574 = vst [vmem:[#allocation49_spill] sm:$0xff] %v14458_v23  ;;  %v14461_v3 = vpop.f32.mrb[237].mxu0  ;;  %v6166_v10 = vpack.c.bf16 %v5915_v14, %v5914_v56 }
 0x2d9   :  { %v14440_v53 = vpop.permute.xlu0 %3261  ;;  %19573 = vst [vmem:[#allocation51_spill] sm:$0xff] %v14447_v9  ;;  %7930 = vmatpush1.bf16.msra.mxu1 %v11843_v16  ;;  %19575 = vst [vmem:[#allocation142_spill] sm:$0xff] %v14461_v3  ;;  %v14465_v11 = vpop.f32.mrb[238].mxu0  ;;  %v5335_v16 = vmax.f32 %v19579_v57, %v14144_v29 }
 0x2da   :  { %v14449_v54 = vpop.permute.xlu1 %3259  ;;  %19576 = vst [vmem:[#allocation144_spill] sm:$0xff] %v14465_v11  ;;  %v14470_v39 = vpop.f32.mrb[239].mxu0 }
 0x2db   :  { %3345 = vrot.lane.b32.xlu0 %v13860_v26, %s12014_s11  ;;  %19577 = vst [vmem:[#allocation271_spill] sm:$0xff] %v14470_v39 }
 0x2dc   :  { %4661 = vrot.lane.b32.xlu1 %v14447_v9, %s12015_s10 }
 0x2dd   :  { %v4594_v28 = vpop.permute.xlu0 %4593 }
 0x2de   :  { %v5358_v33 = vmax.f32 %v13913_v13, %v4594_v28  ;;  %v4592_v47 = vpop.permute.xlu1 %4591  ;;  %v5336_v13 = vmax.f32 %v19578_v43, %v14139_v22 }
 0x2df   :  { %v5357_v34 = vmax.f32 %v13920_v49, %v4592_v47  ;;  %6423 = vrot.lane.b32.xlu0 %v6167_v40, %s12014_s11  ;;  %v19580_v40 = vld [vmem:[#allocation58_spill] sm:$0xff] }
 0x2e0   :  { %v5653_v9 = vadd.f32 %v14410_v35, %v5358_v33  ;;  %3339 = vrot.lane.b32.xlu1 %v13856_v37, %s12014_s11  ;;  %v5338_v28 = vmax.f32 %v19580_v40, %v14121_v58  ;;  %v19581_v33 = vld [vmem:[#allocation55_spill] sm:$0xff]  ;;  %v5630_v58 = vadd.f32 %v14410_v35, %v5335_v16 }
 0x2e1   :  { %v5652_v47 = vadd.f32 %v14410_v35, %v5357_v34  ;;  %v4590_v49 = vpop.permute.xlu0 %4589  ;;  %v5337_v11 = vmax.f32 %v19581_v33, %v14126_v27  ;;  %v5631_v34 = vadd.f32 %v14410_v35, %v5336_v13 }
 0x2e2   :  { %v5941_v3 = vmax.f32 %v5653_v9, 0.0  ;;  %v5356_v23 = vmax.f32 %v13931_v0, %v4590_v49  ;;  %v4588_v39 = vpop.permute.xlu1 %4587  ;;  %v14492_v0 = vpop.f32.mrb[240].mxu0 }
 0x2e3   :  { %v5940_v14 = vmax.f32 %v5652_v47, 0.0  ;;  %v5355_v56 = vmax.f32 %v13939_v46, %v4588_v39  ;;  %3341 = vrot.lane.b32.xlu0 %v13867_v20, %s12014_s11  ;;  %v5633_v46 = vadd.f32 %v14410_v35, %v5338_v28  ;;  %v5632_v39 = vadd.f32 %v14410_v35, %v5337_v11 }
 0x2e4   :  { %v5651_v22 = vadd.f32 %v14410_v35, %v5356_v23  ;;  %6421 = vrot.lane.b32.xlu1 %v6166_v10, %s12014_s11  ;;  %v14498_v23 = vpop.f32.mrb[241].mxu0  ;;  %v5919_v16 = vmax.f32 %v5631_v34, 0.0  ;;  %v5918_v11 = vmax.f32 %v5630_v58, 0.0 }
 0x2e5   :  { %v5650_v27 = vadd.f32 %v14410_v35, %v5355_v56  ;;  %v14490_v9 = vpop.permute.xlu0 %3273  ;;  %v6179_v29 = vpack.c.bf16 %v5941_v3, %v5940_v14  ;;  %v14502_v13 = vpop.f32.mrb[242].mxu0  ;;  %v5921_v40 = vmax.f32 %v5633_v46, 0.0  ;;  %v5920_v28 = vmax.f32 %v5632_v39, 0.0 }
 0x2e6   :  { %v5939_v43 = vmax.f32 %v5651_v22, 0.0  ;;  %v14496_v57 = vpop.permute.xlu1 %3271  ;;  %v14507_v3 = vpop.f32.mrb[243].mxu0  ;;  %v6168_v14 = vpack.c.bf16 %v5919_v16, %v5918_v11 }
 0x2e7   :  { %v5938_v10 = vmax.f32 %v5650_v27, 0.0  ;;  %3353 = vrot.lane.b32.xlu0 %v13891_v36, %s12014_s11  ;;  %6471 = vst.msk [vmem:[#allocation2 + $0x20] sm:$0xff] %vm6274_vm1, %v6179_v29  ;;  %v6169_v22 = vpack.c.bf16 %v5921_v40, %v5920_v28  ;;  %v19582_v40 = vld [vmem:[#allocation235_spill] sm:$0xff] }
 0x2e8   :  { %3351 = vrot.lane.b32.xlu1 %v13883_v1, %s12014_s11 }
 0x2e9   :  { %v14509_v47 = vpop.permute.xlu0 %3269  ;;  %v6178_v49 = vpack.c.bf16 %v5939_v43, %v5938_v10  ;;  %v14524_v43 = vpop.f32.mrb[244].mxu0 }
 0x2ea   :  { %v14511_v33 = vpop.permute.xlu1 %3267 }
 0x2eb   :  { %3349 = vrot.lane.b32.xlu0 %v13895_v60, %s12014_s11  ;;  %6470 = vst.msk [vmem:[#allocation2 + $0x8] sm:$0xff] %vm6274_vm1, %v6178_v49  ;;  %v14527_v49 = vpop.f32.mrb[245].mxu0 }
 0x2ec   :  { %3347 = vrot.lane.b32.xlu1 %v13887_v21, %s12014_s11  ;;  %v14532_v28 = vpop.f32.mrb[246].mxu0 }
 0x2ed   :  { %v4602_v56 = vpop.permute.xlu0 %4601 }
 0x2ee   :  { %v5362_v34 = vmax.f32 %v13977_v2, %v4602_v56  ;;  %v4600_v58 = vpop.permute.xlu1 %4599  ;;  %v19583_v56 = vld [vmem:[#allocation233_spill] sm:$0xff] }
 0x2ef   :  { %v5361_v27 = vmax.f32 %v13984_v62, %v4600_v58  ;;  %6425 = vrot.lane.b32.xlu0 %v6168_v14, %s12014_s11 }
 0x2f0   :  { %v5657_v29 = vadd.f32 %v14410_v35, %v5362_v34  ;;  %6427 = vrot.lane.b32.xlu1 %v6169_v22, %s12014_s11  ;;  %v14537_v22 = vpop.f32.mrb[247].mxu0 }
 0x2f1   :  { %v5656_v46 = vadd.f32 %v14410_v35, %v5361_v27  ;;  %v4598_v39 = vpop.permute.xlu0 %4597 }
 0x2f2   :  { %v5945_v10 = vmax.f32 %v5657_v29, 0.0  ;;  %v5360_v16 = vmax.f32 %v13995_v12, %v4598_v39  ;;  %v4596_v11 = vpop.permute.xlu1 %4595  ;;  %v19587_v39 = vld [vmem:[#allocation234_spill] sm:$0xff] }
 0x2f3   :  { %v5944_v2 = vmax.f32 %v5656_v46, 0.0  ;;  %v5359_v62 = vmax.f32 %v14001_v52, %v4596_v11  ;;  %3361 = vrot.lane.b32.xlu0 %v19582_v40, %s12014_s11  ;;  %v19586_v46 = vld [vmem:[#allocation236_spill] sm:$0xff]  ;;  %v19605_v40 = vld [vmem:[#allocation171_spill] sm:$0xff] }
 0x2f4   :  { %v5655_v14 = vadd.f32 %v14410_v35, %v5360_v16  ;;  %3359 = vrot.lane.b32.xlu1 %v19583_v56, %s12014_s11  ;;  %v19588_v16 = vld [vmem:[#allocation168_spill] sm:$0xff]  ;;  %v19602_v56 = vld [vmem:[#allocation86_spill] sm:$0xff] }
 0x2f5   :  { %v5654_v12 = vadd.f32 %v14410_v35, %v5359_v62  ;;  %v14540_v34 = vpop.permute.xlu0 %3275  ;;  %v6181_v58 = vpack.c.bf16 %v5945_v10, %v5944_v2  ;;  %v14551_v11 = vmax.f32 %v19588_v16, %v14281_v63  ;;  %v19591_v10 = vld [vmem:[#allocation166_spill] sm:$0xff]  ;;  %v19594_v63 = vld [vmem:[#allocation169_spill] sm:$0xff] }
 0x2f6   :  { %19584 = vst [vmem:[#allocation59_spill] sm:$0xff] %v14540_v34  ;;  %v5943_v27 = vmax.f32 %v5655_v14, 0.0  ;;  %v14542_v29 = vpop.permute.xlu1 %3279  ;;  %v14557_v2 = vmax.f32 %v19591_v10, %v14292_v7  ;;  %v19596_v7 = vld [vmem:[#allocation167_spill] sm:$0xff] }
 0x2f7   :  { %19585 = vst [vmem:[#allocation57_spill] sm:$0xff] %v14542_v29  ;;  %v5942_v52 = vmax.f32 %v5654_v12, 0.0  ;;  %3357 = vrot.lane.b32.xlu0 %v19586_v46, %s12014_s11  ;;  %6473 = vst.msk [vmem:[#allocation2 + $0x50] sm:$0xff] %vm6274_vm1, %v6181_v58  ;;  %v14568_v12 = vmax.f32 %v19594_v63, %v14307_v18 }
 0x2f8   :  { %3355 = vrot.lane.b32.xlu1 %v19587_v39, %s12014_s11  ;;  %19589 = vst [vmem:[#allocation58_spill] sm:$0xff] %v14551_v11  ;;  %19592 = vst [vmem:[#allocation168_spill] sm:$0xff] %v14557_v2 }
 0x2f9   :  { %v14553_v62 = vpop.permute.xlu0 %3281  ;;  %v6180_v34 = vpack.c.bf16 %v5943_v27, %v5942_v52  ;;  %19595 = vst [vmem:[#allocation169_spill] sm:$0xff] %v14568_v12  ;;  %v14572_v27 = vpop.f32.mrb[248].mxu0  ;;  %v14576_v52 = vmax.f32 %v19596_v7, %v14312_v5  ;;  %v19598_v7 = vld [vmem:[#allocation90_spill] sm:$0xff] }
 0x2fa   :  { %19590 = vst [vmem:[#allocation55_spill] sm:$0xff] %v14553_v62  ;;  %v14559_v14 = vpop.permute.xlu1 %3277  ;;  %v14580_v10 = vpop.f32.mrb[249].mxu0  ;;  %v19600_v62 = vld [vmem:[#allocation170_spill] sm:$0xff] }
 0x2fb   :  { %19593 = vst [vmem:[#allocation166_spill] sm:$0xff] %v14559_v14  ;;  %4689 = vrot.lane.b32.xlu0 %v14551_v11, %s12015_s10  ;;  %6472 = vst.msk [vmem:[#allocation2 + $0x38] sm:$0xff] %vm6274_vm1, %v6180_v34  ;;  %v14584_v34 = vpop.f32.mrb[250].mxu0  ;;  %v19599_v14 = vld [vmem:[#allocation91_spill] sm:$0xff]  ;;  %v14601_v39 = vmax.f32 %v19600_v62, %v14369_v31 }
 0x2fc   :  { %4687 = vrot.lane.b32.xlu1 %v14557_v2, %s12015_s10  ;;  %19597 = vst [vmem:[#allocation167_spill] sm:$0xff] %v14576_v52  ;;  %v14588_v18 = vpop.f32.mrb[251].mxu0 }
 0x2fd   :  { %v14570_v58 = vpop.permute.xlu0 %3297  ;;  %19601 = vst [vmem:[#allocation170_spill] sm:$0xff] %v14601_v39 }
 0x2fe   :  { %v14578_v16 = vpop.permute.xlu1 %3295 }
 0x2ff   :  { %4685 = vrot.lane.b32.xlu0 %v14568_v12, %s12015_s10 }
 0x300   :  { %4683 = vrot.lane.b32.xlu1 %v14576_v52, %s12015_s10  ;;  %v14616_v52 = vmax.f32 %v19605_v40, %v14398_v24 }
 0x301   :  { %v6363_v63 = vpop.permute.xlu0 %6362 }
 0x302   :  { %6398 = vst.msk [vmem:[#allocation2 + $0x18] sm:$0xff] %vm6396_vm3, %v6363_v63  ;;  %v14591_v5 = vpop.permute.xlu1 %3291  ;;  %v19603_v63 = vld [vmem:[#allocation172_spill] sm:$0xff]  ;;  %19606 = vst [vmem:[#allocation171_spill] sm:$0xff] %v14616_v52 }
 0x303   :  { %3367 = vrot.lane.b32.xlu0 %v19598_v7, %s12014_s11  ;;  %v14610_v7 = vmax.f32 %v19603_v63, %v14321_v25 }
 0x304   :  { %3369 = vrot.lane.b32.xlu1 %v19599_v14, %s12014_s11 }
 0x305   :  { %v14597_v29 = vpop.permute.xlu0 %3293  ;;  %19604 = vst [vmem:[#allocation172_spill] sm:$0xff] %v14610_v7 }
 0x306   :  { %v6361_v46 = vpop.permute.xlu1 %6360 }
 0x307   :  { %6397 = vst.msk [vmem:[#allocation2] sm:$0xff] %vm6396_vm3, %v6361_v46  ;;  %3363 = vrot.lane.b32.xlu0 %v19602_v56, %s12014_s11  ;;  %v19607_v46 = vld [vmem:[#allocation173_spill] sm:$0xff]  ;;  %v19609_v56 = vld [vmem:[#allocation174_spill] sm:$0xff] }
 0x308   :  { %4695 = vrot.lane.b32.xlu1 %v14601_v39, %s12015_s10  ;;  %v14626_v62 = vmax.f32 %v19607_v46, %v14358_v44  ;;  %v14630_v63 = vpop.f32.mrb[252].mxu0  ;;  %v14634_v24 = vmax.f32 %v19609_v56, %v14429_v8  ;;  %v19612_v46 = vld [vmem:[#allocation176_spill] sm:$0xff]  ;;  %v19614_v56 = vld [vmem:[#allocation175_spill] sm:$0xff] }
 0x309   :  { %v14612_v14 = vpop.permute.xlu0 %3305  ;;  %v14638_v39 = vpop.f32.mrb[253].mxu0  ;;  %v14654_v12 = vmax.f32 %v19614_v56, %v14449_v54  ;;  %v19619_v54 = vld [vmem:[#allocation180_spill] sm:$0xff] }
 0x30a   :  { %v14618_v31 = vpop.permute.xlu1 %3303  ;;  %19608 = vst [vmem:[#allocation173_spill] sm:$0xff] %v14626_v62  ;;  %19610 = vst [vmem:[#allocation174_spill] sm:$0xff] %v14634_v24 }
 0x30b   :  { %4697 = vrot.lane.b32.xlu0 %v14610_v7, %s12015_s10  ;;  %19611 = vst [vmem:[#allocation272_spill] sm:$0xff] %v14638_v39  ;;  %v14650_v7 = vmax.f32 %v19612_v46, %v14424_v48  ;;  %19615 = vst [vmem:[#allocation175_spill] sm:$0xff] %v14654_v12 }
 0x30c   :  { %4691 = vrot.lane.b32.xlu1 %v14616_v52, %s12015_s10  ;;  %v14642_v52 = vpop.f32.mrb[254].mxu0 }
 0x30d   :  { %v14628_v25 = vpop.permute.xlu0 %3301  ;;  %v14646_v44 = vpop.f32.mrb[255].mxu0  ;;  %19613 = vst [vmem:[#allocation176_spill] sm:$0xff] %v14650_v7 }
 0x30e   :  { %v14636_v40 = vpop.permute.xlu1 %3299 }
 0x30f   :  { %4693 = vrot.lane.b32.xlu0 %v14626_v62, %s12015_s10 }
 0x310   :  { %4703 = vrot.lane.b32.xlu1 %v14634_v24, %s12015_s10  ;;  %v19616_v24 = vld [vmem:[#allocation177_spill] sm:$0xff]  ;;  %v14668_v62 = vpop.f32.mrb[0].mxu0 }
 0x311   :  { %v6365_v8 = vpop.permute.xlu0 %6364  ;;  %v14664_v48 = vmax.f32 %v19616_v24, %v14440_v53  ;;  %19618 = vst [vmem:[#allocation273_spill] sm:$0xff] %v14668_v62  ;;  %v19624_v24 = vld [vmem:[#allocation178_spill] sm:$0xff] }
 0x312   :  { %6399 = vst.msk [vmem:[#allocation2 + $0x30] sm:$0xff] %vm6396_vm3, %v6365_v8  ;;  %v6367_v2 = vpop.permute.xlu1 %6366  ;;  %v14672_v8 = vmax.f32 %v19619_v54, %v14490_v9 }
 0x313   :  { %6400 = vst.msk [vmem:[#allocation2 + $0x48] sm:$0xff] %vm6396_vm3, %v6367_v2  ;;  %4705 = vrot.lane.b32.xlu0 %v14650_v7, %s12015_s10  ;;  %19617 = vst [vmem:[#allocation177_spill] sm:$0xff] %v14664_v48  ;;  %v14676_v2 = vpop.f32.mrb[1].mxu0  ;;  %v14688_v7 = vmax.f32 %v19624_v24, %v14496_v57  ;;  %v19629_v57 = vld [vmem:[#allocation181_spill] sm:$0xff] }
 0x314   :  { %4699 = vrot.lane.b32.xlu1 %v14654_v12, %s12015_s10  ;;  %19620 = vst [vmem:[#allocation180_spill] sm:$0xff] %v14672_v8  ;;  %19621 = vst [vmem:[#allocation274_spill] sm:$0xff] %v14676_v2  ;;  %v14680_v12 = vpop.f32.mrb[2].mxu0  ;;  %v14708_v24 = vmax.f32 %v19629_v57, %v14509_v47 }
 0x315   :  { %v14666_v46 = vpop.permute.xlu0 %3313  ;;  %19622 = vst [vmem:[#allocation275_spill] sm:$0xff] %v14680_v12  ;;  %v14684_v53 = vpop.f32.mrb[3].mxu0  ;;  %19625 = vst [vmem:[#allocation178_spill] sm:$0xff] %v14688_v7 }
 0x316   :  { %v14674_v56 = vpop.permute.xlu1 %3311  ;;  %19623 = vst [vmem:[#allocation276_spill] sm:$0xff] %v14684_v53  ;;  %19630 = vst [vmem:[#allocation181_spill] sm:$0xff] %v14708_v24 }
 0x317   :  { %4701 = vrot.lane.b32.xlu0 %v14664_v48, %s12015_s10  ;;  %v19626_v48 = vld [vmem:[#allocation179_spill] sm:$0xff] }
 0x318   :  { %4713 = vrot.lane.b32.xlu1 %v14672_v8, %s12015_s10  ;;  %v14700_v2 = vmax.f32 %v19626_v48, %v14511_v33  ;;  %v14704_v53 = vpop.f32.mrb[4].mxu0 }
 0x319   :  { %v14690_v9 = vpop.permute.xlu0 %3309  ;;  %19628 = vst [vmem:[#allocation277_spill] sm:$0xff] %v14704_v53  ;;  %v14712_v11 = vpop.f32.mrb[5].mxu0 }
 0x31a   :  { %v14692_v54 = vpop.permute.xlu1 %3307  ;;  %19627 = vst [vmem:[#allocation179_spill] sm:$0xff] %v14700_v2  ;;  %19631 = vst [vmem:[#allocation278_spill] sm:$0xff] %v14712_v11 }
 0x31b   :  { %4711 = vrot.lane.b32.xlu0 %v14688_v7, %s12015_s10  ;;  %v14716_v7 = vpop.f32.mrb[6].mxu0 }
 0x31c   :  { %3391 = vrot.lane.b32.xlu1 %v14117_v59, %s12014_s11  ;;  %19632 = vst [vmem:[#allocation279_spill] sm:$0xff] %v14716_v7  ;;  %v14720_v33 = vpop.f32.mrb[7].mxu0 }
 0x31d   :  { %v14702_v8 = vpop.permute.xlu0 %4641  ;;  %19633 = vst [vmem:[#allocation280_spill] sm:$0xff] %v14720_v33 }
 0x31e   :  { %v14710_v62 = vpop.permute.xlu1 %4639 }
 0x31f   :  { %4707 = vrot.lane.b32.xlu0 %v14700_v2, %s12015_s10 }
 0x320   :  { %4709 = vrot.lane.b32.xlu1 %v14708_v24, %s12015_s10  ;;  %v14732_v57 = vpop.f32.mrb[8].mxu0 }
 0x321   :  { %v14722_v48 = vpop.permute.xlu0 %4637  ;;  %v14736_v11 = vpop.f32.mrb[9].mxu0 }
 0x322   :  { %v14724_v53 = vpop.permute.xlu1 %4635  ;;  %19634 = vst [vmem:[#allocation281_spill] sm:$0xff] %v14736_v11  ;;  %v14740_v33 = vpop.f32.mrb[10].mxu0 }
 0x323   :  { %3393 = vrot.lane.b32.xlu0 %v14134_v41, %s12014_s11  ;;  %19635 = vst [vmem:[#allocation282_spill] sm:$0xff] %v14740_v33  ;;  %v14744_v24 = vpop.f32.mrb[11].mxu0 }
 0x324   :  { %3387 = vrot.lane.b32.xlu1 %v14128_v30, %s12014_s11  ;;  %19636 = vst [vmem:[#allocation283_spill] sm:$0xff] %v14744_v24 }
 0x325   :  { %v14730_v47 = vpop.permute.xlu0 %3321 }
 0x326   :  { %v14734_v7 = vpop.permute.xlu1 %3319 }
 0x327   :  { %3389 = vrot.lane.b32.xlu0 %v14137_v19, %s12014_s11 }
 0x328   :  { %3399 = vrot.lane.b32.xlu1 %v14155_v4, %s12014_s11  ;;  %v14764_v59 = vpop.f32.mrb[12].mxu0 }
 0x329   :  { %v14746_v2 = vpop.permute.xlu0 %3317  ;;  %19637 = vst [vmem:[#allocation284_spill] sm:$0xff] %v14764_v59 }
 0x32a   :  { %v14748_v30 = vpop.permute.xlu1 %3315 }
 0x32b   :  { %3401 = vrot.lane.b32.xlu0 %v14169_v45, %s12014_s11  ;;  %v14768_v45 = vpop.f32.mrb[13].mxu0 }
 0x32c   :  { %3395 = vrot.lane.b32.xlu1 %v14162_v32, %s12014_s11  ;;  %19638 = vst [vmem:[#allocation285_spill] sm:$0xff] %v14768_v45  ;;  %v14772_v32 = vpop.f32.mrb[14].mxu0 }
 0x32d   :  { %v14754_v41 = vpop.permute.xlu0 %4649 }
 0x32e   :  { %v14756_v19 = vpop.permute.xlu1 %4647 }
 0x32f   :  { %3397 = vrot.lane.b32.xlu0 %v14173_v6, %s12014_s11  ;;  %v14776_v6 = vpop.f32.mrb[15].mxu0 }
 0x330   :  { %3407 = vrot.lane.b32.xlu1 %v14203_v51, %s12014_s11  ;;  %v19640_v51 = vld [vmem:[#allocation197_spill] sm:$0xff] }
 0x331   :  { %v14762_v4 = vpop.permute.xlu0 %4645  ;;  %v14782_v33 = vmax.f32 %v19640_v51, %v14578_v16  ;;  %v14808_v16 = vmax.f32 %v13627_v50, %v14597_v29 }
 0x332   :  { %v14766_v24 = vpop.permute.xlu1 %4643 }
 0x333   :  { %3409 = vrot.lane.b32.xlu0 %v14221_v61, %s12014_s11  ;;  %19641 = vst [vmem:[#allocation197_spill] sm:$0xff] %v14782_v33  ;;  %v19643_v61 = vld [vmem:[#allocation199_spill] sm:$0xff]  ;;  %19648 = vst [vmem:[#allocation291_spill] sm:$0xff] %v14808_v16 }
 0x334   :  { %3403 = vrot.lane.b32.xlu1 %v14214_v42, %s12014_s11  ;;  %v14792_v45 = vmax.f32 %v19643_v61, %v14570_v58  ;;  %v14812_v58 = vpop.f32.mrb[16].mxu0 }
 0x335   :  { %v14778_v11 = vpop.permute.xlu0 %3327 }
 0x336   :  { %19639 = vst [vmem:[#allocation286_spill] sm:$0xff] %v14778_v11  ;;  %v14784_v59 = vpop.permute.xlu1 %3329  ;;  %19644 = vst [vmem:[#allocation199_spill] sm:$0xff] %v14792_v45  ;;  %v14798_v11 = vmax.f32 %v13618_v55, %v14591_v5  ;;  %v14816_v55 = vpop.f32.mrb[17].mxu0 }
 0x337   :  { %19642 = vst [vmem:[#allocation287_spill] sm:$0xff] %v14784_v59  ;;  %3405 = vrot.lane.b32.xlu0 %v14225_v38, %s12014_s11  ;;  %v14820_v5 = vpop.f32.mrb[18].mxu0  ;;  %v19655_v59 = vld [vmem:[#allocation265_spill] sm:$0xff] }
 0x338   :  { %4735 = vrot.lane.b32.xlu1 %v14782_v33, %s12015_s10  ;;  %19646 = vst [vmem:[#allocation289_spill] sm:$0xff] %v14798_v11  ;;  %19651 = vst [vmem:[#allocation294_spill] sm:$0xff] %v14820_v5  ;;  %v19678_v33 = vld [vmem:[#allocation269_spill] sm:$0xff] }
 0x339   :  { %v14794_v42 = vpop.permute.xlu0 %3323 }
 0x33a   :  { %19645 = vst [vmem:[#allocation288_spill] sm:$0xff] %v14794_v42  ;;  %v14800_v51 = vpop.permute.xlu1 %3325 }
 0x33b   :  { %19647 = vst [vmem:[#allocation290_spill] sm:$0xff] %v14800_v51  ;;  %4737 = vrot.lane.b32.xlu0 %v14792_v45, %s12015_s10  ;;  %v14824_v51 = vpop.f32.mrb[19].mxu0 }
 0x33c   :  { %4731 = vrot.lane.b32.xlu1 %v14798_v11, %s12015_s10  ;;  %19652 = vst [vmem:[#allocation295_spill] sm:$0xff] %v14824_v51 }
 0x33d   :  { %v14810_v61 = vpop.permute.xlu0 %4657 }
 0x33e   :  { %19649 = vst [vmem:[#allocation292_spill] sm:$0xff] %v14810_v61  ;;  %v14814_v42 = vpop.permute.xlu1 %4655  ;;  %v19657_v61 = vld [vmem:[#allocation203_spill] sm:$0xff] }
 0x33f   :  { %19650 = vst [vmem:[#allocation293_spill] sm:$0xff] %v14814_v42  ;;  %4733 = vrot.lane.b32.xlu0 %v14808_v16, %s12015_s10  ;;  %v14838_v38 = vmax.f32 %v19657_v61, %v14618_v31  ;;  %v19666_v61 = vld [vmem:[#allocation206_spill] sm:$0xff] }
 0x340   :  { %3415 = vrot.lane.b32.xlu1 %v14283_v17, %s12014_s11  ;;  %v19660_v17 = vld [vmem:[#allocation267_spill] sm:$0xff] }
 0x341   :  { %v14826_v50 = vpop.permute.xlu0 %4653  ;;  %19658 = vst [vmem:[#allocation203_spill] sm:$0xff] %v14838_v38 }
 0x342   :  { %19653 = vst [vmem:[#allocation296_spill] sm:$0xff] %v14826_v50  ;;  %v14828_v29 = vpop.permute.xlu1 %4651 }
 0x343   :  { %19654 = vst [vmem:[#allocation297_spill] sm:$0xff] %v14828_v29  ;;  %3417 = vrot.lane.b32.xlu0 %v14301_v15, %s12014_s11  ;;  %v19661_v29 = vld [vmem:[#allocation205_spill] sm:$0xff] }
 0x344   :  { %3411 = vrot.lane.b32.xlu1 %v19655_v59, %s12014_s11  ;;  %v14848_v50 = vmax.f32 %v19661_v29, %v14612_v14 }
 0x345   :  { %v14834_v42 = vpop.permute.xlu0 %4663 }
 0x346   :  { %19656 = vst [vmem:[#allocation298_spill] sm:$0xff] %v14834_v42  ;;  %v14840_v11 = vpop.permute.xlu1 %4665  ;;  %19662 = vst [vmem:[#allocation205_spill] sm:$0xff] %v14848_v50  ;;  %v19664_v42 = vld [vmem:[#allocation204_spill] sm:$0xff]  ;;  %v14868_v29 = vpop.f32.mrb[20].mxu0 }
 0x347   :  { %19659 = vst [vmem:[#allocation299_spill] sm:$0xff] %v14840_v11  ;;  %3413 = vrot.lane.b32.xlu0 %v19660_v17, %s12014_s11  ;;  %v14854_v59 = vmax.f32 %v19664_v42, %v14636_v40  ;;  %v14864_v11 = vmax.f32 %v19666_v61, %v14628_v25  ;;  %19668 = vst [vmem:[#allocation301_spill] sm:$0xff] %v14868_v29  ;;  %v14872_v42 = vpop.f32.mrb[21].mxu0  ;;  %v19672_v17 = vld [vmem:[#allocation270_spill] sm:$0xff]  ;;  %v19698_v29 = vld [vmem:[#allocation217_spill] sm:$0xff] }
 0x348   :  { %4743 = vrot.lane.b32.xlu1 %v14838_v38, %s12015_s10  ;;  %19670 = vst [vmem:[#allocation303_spill] sm:$0xff] %v14872_v42  ;;  %v14876_v40 = vpop.f32.mrb[22].mxu0  ;;  %v19675_v38 = vld [vmem:[#allocation140_spill] sm:$0xff] }
 0x349   :  { %v14850_v15 = vpop.permute.xlu0 %4659  ;;  %19665 = vst [vmem:[#allocation204_spill] sm:$0xff] %v14854_v59  ;;  %19667 = vst [vmem:[#allocation206_spill] sm:$0xff] %v14864_v11 }
 0x34a   :  { %19663 = vst [vmem:[#allocation300_spill] sm:$0xff] %v14850_v15  ;;  %v14856_v31 = vpop.permute.xlu1 %3343  ;;  %19671 = vst [vmem:[#allocation304_spill] sm:$0xff] %v14876_v40 }
 0x34b   :  { %4745 = vrot.lane.b32.xlu0 %v14848_v50, %s12015_s10  ;;  %v19676_v50 = vld [vmem:[#allocation209_spill] sm:$0xff] }
 0x34c   :  { %4739 = vrot.lane.b32.xlu1 %v14854_v59, %s12015_s10  ;;  %v14880_v59 = vpop.f32.mrb[23].mxu0  ;;  %v14893_v16 = vmax.f32 %v19676_v50, %v14674_v56  ;;  %v19682_v56 = vld [vmem:[#allocation212_spill] sm:$0xff] }
 0x34d   :  { %v14866_v14 = vpop.permute.xlu0 %3345  ;;  %19673 = vst [vmem:[#allocation305_spill] sm:$0xff] %v14880_v59  ;;  %v14910_v50 = vmax.f32 %v19682_v56, %v14690_v9  ;;  %v19687_v9 = vld [vmem:[#allocation216_spill] sm:$0xff] }
 0x34e   :  { %v14870_v15 = vpop.permute.xlu1 %4661  ;;  %19677 = vst [vmem:[#allocation209_spill] sm:$0xff] %v14893_v16  ;;  %v14929_v56 = vmax.f32 %v19687_v9, %v14748_v30  ;;  %v19693_v9 = vld [vmem:[#allocation122_spill] sm:$0xff] }
 0x34f   :  { %19669 = vst [vmem:[#allocation302_spill] sm:$0xff] %v14870_v15  ;;  %4741 = vrot.lane.b32.xlu0 %v14864_v11, %s12015_s10  ;;  %v19674_v15 = vld [vmem:[#allocation268_spill] sm:$0xff]  ;;  %19683 = vst [vmem:[#allocation212_spill] sm:$0xff] %v14910_v50 }
 0x350   :  { %3425 = vrot.lane.b32.xlu1 %v19672_v17, %s12014_s11  ;;  %19688 = vst [vmem:[#allocation216_spill] sm:$0xff] %v14929_v56 }
 0x351   :  { %v6424_v25 = vpop.permute.xlu0 %6423 }
 0x352   :  { %6459 = vst.msk [vmem:[#allocation2 + $0x18] sm:$0xff] %vm6457_vm4, %v6424_v25  ;;  %v14883_v61 = vpop.permute.xlu1 %3339  ;;  %v19679_v25 = vld [vmem:[#allocation210_spill] sm:$0xff] }
 0x353   :  { %3423 = vrot.lane.b32.xlu0 %v19674_v15, %s12014_s11  ;;  %v14902_v15 = vmax.f32 %v19679_v25, %v14692_v54  ;;  %v19684_v54 = vld [vmem:[#allocation211_spill] sm:$0xff] }
 0x354   :  { %3421 = vrot.lane.b32.xlu1 %v19675_v38, %s12014_s11  ;;  %v14921_v25 = vmax.f32 %v19684_v54, %v14666_v46  ;;  %v19692_v54 = vld [vmem:[#allocation124_spill] sm:$0xff] }
 0x355   :  { %v14889_v11 = vpop.permute.xlu0 %3341  ;;  %19680 = vst [vmem:[#allocation210_spill] sm:$0xff] %v14902_v15  ;;  %v5382_v30 = vmax.f32 %v19692_v54, %v14702_v8 }
 0x356   :  { %v6422_v17 = vpop.permute.xlu1 %6421  ;;  %19685 = vst [vmem:[#allocation211_spill] sm:$0xff] %v14921_v25 }
 0x357   :  { %6458 = vst.msk [vmem:[#allocation2] sm:$0xff] %vm6457_vm4, %v6422_v17  ;;  %3419 = vrot.lane.b32.xlu0 %v19678_v33, %s12014_s11 }
 0x358   :  { %4751 = vrot.lane.b32.xlu1 %v14893_v16, %s12015_s10  ;;  %v14925_v16 = vpop.f32.mrb[24].mxu0 }
 0x359   :  { %v14904_v38 = vpop.permute.xlu0 %3353  ;;  %v14906_v45 = vld [vmem:[#allocation2 + $0x18] sm:$0xff]  ;;  %19686 = vst [vmem:[#allocation307_spill] sm:$0xff] %v14925_v16  ;;  %v19694_v16 = vld [vmem:[#allocation214_spill] sm:$0xff] }
 0x35a   :  { %19681 = vst [vmem:[#allocation306_spill] sm:$0xff] %v14906_v45  ;;  %7931 = vmatprep.mubr.bf16.mxu1 %v14906_v45  ;;  %v14913_v17 = vpop.permute.xlu1 %3351  ;;  %v14950_v42 = vmax.f32 %v19694_v16, %v14734_v7 }
 0x35b   :  { %4747 = vrot.lane.b32.xlu0 %v14902_v15, %s12015_s10  ;;  %v14935_v15 = vpop.f32.mrb[25].mxu0 }
 0x35c   :  { %4749 = vrot.lane.b32.xlu1 %v14910_v50, %s12015_s10  ;;  %19690 = vst [vmem:[#allocation309_spill] sm:$0xff] %v14935_v15  ;;  %v14940_v46 = vpop.f32.mrb[26].mxu0  ;;  %v5381_v50 = vmax.f32 %v19693_v9, %v14710_v62  ;;  %19695 = vst [vmem:[#allocation124_spill] sm:$0xff] %v14950_v42  ;;  %v19701_v62 = vld [vmem:[#allocation218_spill] sm:$0xff] }
 0x35d   :  { %v14923_v33 = vpop.permute.xlu0 %3349  ;;  %19691 = vst [vmem:[#allocation310_spill] sm:$0xff] %v14940_v46  ;;  %v14961_v54 = vpop.f32.mrb[27].mxu0 }
 0x35e   :  { %v14931_v45 = vpop.permute.xlu1 %3347  ;;  %v14933_v59 = vld [vmem:[#allocation2] sm:$0xff]  ;;  %19700 = vst [vmem:[#allocation214_spill] sm:$0xff] %v14961_v54  ;;  %v5676_v7 = vadd.f32 %v14410_v35, %v5381_v50 }
 0x35f   :  { %19689 = vst [vmem:[#allocation308_spill] sm:$0xff] %v14933_v59  ;;  %7932 = vmatmul.mubr.bf16.vlgmr.msra.gmra.mrb[0].mxu1 %v14933_v59  ;;  %4753 = vrot.lane.b32.xlu0 %v14921_v25, %s12015_s10  ;;  %v19696_v59 = vld [vmem:[#allocation125_spill] sm:$0xff]  ;;  %v19697_v25 = vld [vmem:[#allocation123_spill] sm:$0xff] }
 0x360   :  { %4755 = vrot.lane.b32.xlu1 %v14929_v56, %s12015_s10  ;;  %v5380_v40 = vmax.f32 %v19696_v59, %v14722_v48  ;;  %v5379_v46 = vmax.f32 %v19697_v25, %v14724_v53  ;;  %v14958_v56 = vmax.f32 %v19698_v29, %v14730_v47  ;;  %v5677_v59 = vadd.f32 %v14410_v35, %v5382_v30 }
 0x361   :  { %v6426_v15 = vpop.permute.xlu0 %6425  ;;  %v14972_v53 = vmax.f32 %v19701_v62, %v14746_v2  ;;  %v5964_v50 = vmax.f32 %v5676_v7, 0.0  ;;  %v19707_v62 = vld [vmem:[#allocation128_spill] sm:$0xff]  ;;  %v19708_v7 = vld [vmem:[#allocation126_spill] sm:$0xff] }
 0x362   :  { %19699 = vst [vmem:[#allocation122_spill] sm:$0xff] %v14958_v56  ;;  %6460 = vst.msk [vmem:[#allocation2 + $0x30] sm:$0xff] %vm6457_vm4, %v6426_v15  ;;  %v6428_v8 = vpop.permute.xlu1 %6427  ;;  %v5675_v48 = vadd.f32 %v14410_v35, %v5380_v40  ;;  %v5674_v47 = vadd.f32 %v14410_v35, %v5379_v46  ;;  %v5965_v29 = vmax.f32 %v5677_v59, 0.0  ;;  %v5386_v59 = vmax.f32 %v19707_v62, %v14754_v41 }
 0x363   :  { %6461 = vst.msk [vmem:[#allocation2 + $0x48] sm:$0xff] %vm6457_vm4, %v6428_v8  ;;  %4759 = vrot.lane.b32.xlu0 %v14950_v42, %s12015_s10  ;;  %19702 = vst [vmem:[#allocation125_spill] sm:$0xff] %v14972_v53 }
 0x364   :  { %4761 = vrot.lane.b32.xlu1 %v14958_v56, %s12015_s10  ;;  %v5963_v2 = vmax.f32 %v5675_v48, 0.0  ;;  %v5962_v30 = vmax.f32 %v5674_v47, 0.0  ;;  %v6191_v40 = vpack.c.bf16 %v5965_v29, %v5964_v50  ;;  %v19709_v47 = vld [vmem:[#allocation129_spill] sm:$0xff]  ;;  %v19710_v29 = vld [vmem:[#allocation127_spill] sm:$0xff] }
 0x365   :  { %v14974_v15 = vpop.permute.xlu0 %3361  ;;  %v5384_v56 = vmax.f32 %v19709_v47, %v14762_v4  ;;  %v5383_v50 = vmax.f32 %v19710_v29, %v14766_v24 }
 0x366   :  { %19703 = vst [vmem:[#allocation123_spill] sm:$0xff] %v14974_v15  ;;  %v14978_v16 = vpop.permute.xlu1 %3359  ;;  %v6190_v8 = vpack.c.bf16 %v5963_v2, %v5962_v30  ;;  %v5681_v2 = vadd.f32 %v14410_v35, %v5386_v59  ;;  %v19727_v15 = vld [vmem:[#allocation273_spill] sm:$0xff] }
 0x367   :  { %19704 = vst [vmem:[#allocation217_spill] sm:$0xff] %v14978_v16  ;;  %4757 = vrot.lane.b32.xlu0 %v14972_v53, %s12015_s10  ;;  %v5385_v53 = vmax.f32 %v19708_v7, %v14756_v19  ;;  %v5679_v19 = vadd.f32 %v14410_v35, %v5384_v56  ;;  %v5678_v4 = vadd.f32 %v14410_v35, %v5383_v50 }
 0x368   :  { %3439 = vrot.lane.b32.xlu1 %v14492_v0, %s12014_s11  ;;  %v5969_v24 = vmax.f32 %v5681_v2, 0.0 }
 0x369   :  { %v14984_v25 = vpop.permute.xlu0 %3357  ;;  %v5680_v41 = vadd.f32 %v14410_v35, %v5385_v53  ;;  %v5967_v53 = vmax.f32 %v5679_v19, 0.0  ;;  %v5966_v59 = vmax.f32 %v5678_v4, 0.0 }
 0x36a   :  { %19705 = vst [vmem:[#allocation218_spill] sm:$0xff] %v14984_v25  ;;  %v14986_v9 = vpop.permute.xlu1 %3355 }
 0x36b   :  { %19706 = vst [vmem:[#allocation311_spill] sm:$0xff] %v14986_v9  ;;  %3441 = vrot.lane.b32.xlu0 %v14502_v13, %s12014_s11  ;;  %v6192_v29 = vpack.c.bf16 %v5967_v53, %v5966_v59  ;;  %v15062_v59 = vmax.f32 %v13860_v26, %v14866_v14  ;;  %v19726_v9 = vld [vmem:[#allocation167_spill] sm:$0xff] }
 0x36c   :  { %3435 = vrot.lane.b32.xlu1 %v14498_v23, %s12014_s11 }
 0x36d   :  { %v14992_v46 = vpop.permute.xlu0 %4689 }
 0x36e   :  { %v14998_v48 = vpop.permute.xlu1 %4687 }
 0x36f   :  { %6496 = vrot.lane.b32.xlu0 %v6191_v40, %s12016_s29 }
 0x370   :  { %6494 = vrot.lane.b32.xlu1 %v6190_v8, %s12016_s29  ;;  %v5968_v8 = vmax.f32 %v5680_v41, 0.0 }
 0x371   :  { %v15006_v42 = vpop.permute.xlu0 %4685 }
 0x372   :  { %v15010_v30 = vpop.permute.xlu1 %4683  ;;  %v6193_v47 = vpack.c.bf16 %v5969_v24, %v5968_v8  ;;  %v19716_v24 = vld [vmem:[#allocation228_spill] sm:$0xff] }
 0x373   :  { %3437 = vrot.lane.b32.xlu0 %v14507_v3, %s12014_s11  ;;  %v15052_v8 = vmax.f32 %v19716_v24, %v14856_v31  ;;  %v15078_v24 = vmax.f32 %v13867_v20, %v14889_v11  ;;  %v15100_v11 = vmax.f32 %v13891_v36, %v14904_v38  ;;  %v15126_v38 = vmax.f32 %v13887_v21, %v14931_v45  ;;  %v19725_v21 = vld [vmem:[#allocation169_spill] sm:$0xff] }
 0x374   :  { %3447 = vrot.lane.b32.xlu1 %v14524_v43, %s12014_s11  ;;  %v5404_v45 = vmax.f32 %v19725_v21, %v15006_v42  ;;  %v5403_v25 = vmax.f32 %v19726_v9, %v15010_v30  ;;  %v19729_v9 = vld [vmem:[#allocation274_spill] sm:$0xff] }
 0x375   :  { %v15018_v40 = vpop.permute.xlu0 %3367 }
 0x376   :  { %19711 = vst [vmem:[#allocation128_spill] sm:$0xff] %v15018_v40  ;;  %v15020_v62 = vpop.permute.xlu1 %3369  ;;  %v15110_v40 = vmax.f32 %v13883_v1, %v14913_v17  ;;  %v5698_v42 = vadd.f32 %v14410_v35, %v5403_v25  ;;  %v19731_v25 = vld [vmem:[#allocation281_spill] sm:$0xff] }
 0x377   :  { %19712 = vst [vmem:[#allocation126_spill] sm:$0xff] %v15020_v62  ;;  %3449 = vrot.lane.b32.xlu0 %v14532_v28, %s12014_s11 }
 0x378   :  { %3443 = vrot.lane.b32.xlu1 %v14527_v49, %s12014_s11 }
 0x379   :  { %v15026_v7 = vpop.permute.xlu0 %3363 }
 0x37a   :  { %19713 = vst [vmem:[#allocation129_spill] sm:$0xff] %v15026_v7  ;;  %v15028_v56 = vpop.permute.xlu1 %4695 }
 0x37b   :  { %3445 = vrot.lane.b32.xlu0 %v14537_v22, %s12014_s11 }
 0x37c   :  { %6500 = vrot.lane.b32.xlu1 %v6193_v47, %s12016_s29 }
 0x37d   :  { %v15033_v50 = vpop.permute.xlu0 %4697 }
 0x37e   :  { %v15035_v2 = vpop.permute.xlu1 %4691 }
 0x37f   :  { %6498 = vrot.lane.b32.xlu0 %v6192_v29, %s12016_s29  ;;  %v15068_v29 = vmax.f32 %v13856_v37, %v14883_v61 }
 0x380   :  { %3455 = vrot.lane.b32.xlu1 %v14572_v27, %s12014_s11 }
 0x381   :  { %v15040_v41 = vpop.permute.xlu0 %4693 }
 0x382   :  { %v15042_v19 = vpop.permute.xlu1 %4703 }
 0x383   :  { %19714 = vst [vmem:[#allocation127_spill] sm:$0xff] %v15042_v19  ;;  %3457 = vrot.lane.b32.xlu0 %v14584_v34, %s12014_s11 }
 0x384   :  { %3451 = vrot.lane.b32.xlu1 %v14580_v10, %s12014_s11 }
 0x385   :  { %v15048_v4 = vpop.permute.xlu0 %4705 }
 0x386   :  { %19715 = vst [vmem:[#allocation312_spill] sm:$0xff] %v15048_v4  ;;  %v15054_v53 = vpop.permute.xlu1 %4699  ;;  %v19732_v4 = vld [vmem:[#allocation172_spill] sm:$0xff] }
 0x387   :  { %19717 = vst [vmem:[#allocation228_spill] sm:$0xff] %v15054_v53  ;;  %3453 = vrot.lane.b32.xlu0 %v14588_v18, %s12014_s11 }
 0x388   :  { %4783 = vrot.lane.b32.xlu1 %v15052_v8, %s12015_s10 }
 0x389   :  { %v15064_v47 = vpop.permute.xlu0 %4701 }
 0x38a   :  { %19718 = vst [vmem:[#allocation313_spill] sm:$0xff] %v15064_v47  ;;  %v15070_v31 = vpop.permute.xlu1 %4713 }
 0x38b   :  { %19719 = vst [vmem:[#allocation314_spill] sm:$0xff] %v15070_v31  ;;  %4785 = vrot.lane.b32.xlu0 %v15062_v59, %s12015_s10 }
 0x38c   :  { %4779 = vrot.lane.b32.xlu1 %v15068_v29, %s12015_s10 }
 0x38d   :  { %v15080_v26 = vpop.permute.xlu0 %4711 }
 0x38e   :  { %19720 = vst [vmem:[#allocation315_spill] sm:$0xff] %v15080_v26  ;;  %v15082_v14 = vpop.permute.xlu1 %3391 }
 0x38f   :  { %4781 = vrot.lane.b32.xlu0 %v15078_v24, %s12015_s10 }
 0x390   :  { %3463 = vrot.lane.b32.xlu1 %v14630_v63, %s12014_s11 }
 0x391   :  { %v15088_v37 = vpop.permute.xlu0 %4707 }
 0x392   :  { %19721 = vst [vmem:[#allocation316_spill] sm:$0xff] %v15088_v37  ;;  %v15090_v61 = vpop.permute.xlu1 %4709  ;;  %v19724_v37 = vld [vmem:[#allocation168_spill] sm:$0xff] }
 0x393   :  { %19722 = vst [vmem:[#allocation317_spill] sm:$0xff] %v15090_v61  ;;  %3465 = vrot.lane.b32.xlu0 %v14642_v52, %s12014_s11  ;;  %v15116_v61 = vmax.f32 %v13895_v60, %v14923_v33  ;;  %v19723_v60 = vld [vmem:[#allocation58_spill] sm:$0xff]  ;;  %v5405_v31 = vmax.f32 %v19724_v37, %v14998_v48 }
 0x394   :  { %3459 = vrot.lane.b32.xlu1 %v14638_v39, %s12014_s11  ;;  %v5406_v33 = vmax.f32 %v19723_v60, %v14992_v46  ;;  %v5699_v60 = vadd.f32 %v14410_v35, %v5404_v45  ;;  %v19730_v45 = vld [vmem:[#allocation282_spill] sm:$0xff] }
 0x395   :  { %v15096_v20 = vpop.permute.xlu0 %3393  ;;  %v5700_v48 = vadd.f32 %v14410_v35, %v5405_v31  ;;  %v5986_v31 = vmax.f32 %v5698_v42, 0.0 }
 0x396   :  { %v15102_v7 = vpop.permute.xlu1 %3387  ;;  %v5701_v46 = vadd.f32 %v14410_v35, %v5406_v33  ;;  %v5987_v33 = vmax.f32 %v5699_v60, 0.0  ;;  %v19733_v60 = vld [vmem:[#allocation170_spill] sm:$0xff] }
 0x397   :  { %3461 = vrot.lane.b32.xlu0 %v14646_v44, %s12014_s11  ;;  %v5409_v42 = vmax.f32 %v19733_v60, %v15028_v56  ;;  %v19737_v56 = vld [vmem:[#allocation284_spill] sm:$0xff]  ;;  %v19738_v60 = vld [vmem:[#allocation285_spill] sm:$0xff] }
 0x398   :  { %4793 = vrot.lane.b32.xlu1 %v15100_v11, %s12015_s10  ;;  %v5989_v30 = vmax.f32 %v5701_v46, 0.0  ;;  %v5410_v46 = vmax.f32 %v19732_v4, %v15033_v50  ;;  %v19735_v50 = vld [vmem:[#allocation171_spill] sm:$0xff] }
 0x399   :  { %v15112_v62 = vpop.permute.xlu0 %3389  ;;  %v5407_v4 = vmax.f32 %v19735_v50, %v15035_v2 }
 0x39a   :  { %v15118_v36 = vpop.permute.xlu1 %3399 }
 0x39b   :  { %4791 = vrot.lane.b32.xlu0 %v15110_v40, %s12015_s10 }
 0x39c   :  { %4789 = vrot.lane.b32.xlu1 %v15116_v61, %s12015_s10 }
 0x39d   :  { %v15128_v1 = vpop.permute.xlu0 %3401 }
 0x39e   :  { %v15130_v17 = vpop.permute.xlu1 %3395 }
 0x39f   :  { %4787 = vrot.lane.b32.xlu0 %v15126_v38, %s12015_s10 }
 0x3a0   :  { %3473 = vrot.lane.b32.xlu1 %v14680_v12, %s12014_s11  ;;  %v19728_v12 = vld [vmem:[#allocation276_spill] sm:$0xff] }
 0x3a1   :  { %v15140_v26 = vpop.permute.xlu0 %3397 }
 0x3a2   :  { %v15146_v16 = vpop.permute.xlu1 %3407 }
 0x3a3   :  { %3471 = vrot.lane.b32.xlu0 %v19727_v15, %s12014_s11 }
 0x3a4   :  { %3469 = vrot.lane.b32.xlu1 %v19728_v12, %s12014_s11  ;;  %v5988_v12 = vmax.f32 %v5700_v48, 0.0 }
 0x3a5   :  { %v15154_v37 = vpop.permute.xlu0 %3409 }
 0x3a6   :  { %v15158_v21 = vpop.permute.xlu1 %3403  ;;  %v6203_v47 = vpack.c.bf16 %v5989_v30, %v5988_v12  ;;  %v5705_v12 = vadd.f32 %v14410_v35, %v5410_v46  ;;  %v5702_v46 = vadd.f32 %v14410_v35, %v5407_v4 }
 0x3a7   :  { %3467 = vrot.lane.b32.xlu0 %v19729_v9, %s12014_s11  ;;  %v6202_v9 = vpack.c.bf16 %v5987_v33, %v5986_v31  ;;  %v19736_v33 = vld [vmem:[#allocation283_spill] sm:$0xff] }
 0x3a8   :  { %3487 = vrot.lane.b32.xlu1 %v14732_v57, %s12014_s11  ;;  %v5993_v31 = vmax.f32 %v5705_v12, 0.0 }
 0x3a9   :  { %v15164_v15 = vpop.permute.xlu0 %3405 }
 0x3aa   :  { %v15166_v53 = vpop.permute.xlu1 %4735 }
 0x3ab   :  { %3489 = vrot.lane.b32.xlu0 %v19730_v45, %s12014_s11  ;;  %v19734_v45 = vld [vmem:[#allocation173_spill] sm:$0xff] }
 0x3ac   :  { %3483 = vrot.lane.b32.xlu1 %v19731_v25, %s12014_s11  ;;  %v5408_v39 = vmax.f32 %v19734_v45, %v15040_v41 }
 0x3ad   :  { %v15172_v19 = vpop.permute.xlu0 %4737 }
 0x3ae   :  { %v15176_v48 = vpop.permute.xlu1 %4731 }
 0x3af   :  { %6556 = vrot.lane.b32.xlu0 %v6203_v47, %s12015_s10  ;;  %v5704_v47 = vadd.f32 %v14410_v35, %v5409_v42 }
 0x3b0   :  { %6554 = vrot.lane.b32.xlu1 %v6202_v9, %s12015_s10  ;;  %v5703_v9 = vadd.f32 %v14410_v35, %v5408_v39  ;;  %v5990_v39 = vmax.f32 %v5702_v46, 0.0 }
 0x3b1   :  { %v15184_v25 = vpop.permute.xlu0 %4733  ;;  %v5992_v2 = vmax.f32 %v5704_v47, 0.0 }
 0x3b2   :  { %v15187_v30 = vpop.permute.xlu1 %3415  ;;  %v5991_v42 = vmax.f32 %v5703_v9, 0.0 }
 0x3b3   :  { %3485 = vrot.lane.b32.xlu0 %v19736_v33, %s12014_s11  ;;  %v6205_v33 = vpack.c.bf16 %v5993_v31, %v5992_v2  ;;  %v19741_v31 = vld [vmem:[#allocation240_spill] sm:$0xff] }
 0x3b4   :  { %3495 = vrot.lane.b32.xlu1 %v19737_v56, %s12014_s11  ;;  %v6204_v35 = vpack.c.bf16 %v5991_v42, %v5990_v39  ;;  %v15232_v46 = vmax.f32 %v19741_v31, %v15082_v14  ;;  %v19743_v42 = vld [vmem:[#allocation242_spill] sm:$0xff]  ;;  %v19748_v31 = vld [vmem:[#allocation243_spill] sm:$0xff] }
 0x3b5   :  { %v15197_v41 = vpop.permute.xlu0 %3417  ;;  %v15242_v39 = vmax.f32 %v19743_v42, %v15096_v20 }
 0x3b6   :  { %v15199_v45 = vpop.permute.xlu1 %3411 }
 0x3b7   :  { %3497 = vrot.lane.b32.xlu0 %v14772_v32, %s12014_s11 }
 0x3b8   :  { %3491 = vrot.lane.b32.xlu1 %v19738_v60, %s12014_s11 }
 0x3b9   :  { %v15206_v50 = vpop.permute.xlu0 %3413 }
 0x3ba   :  { %v15208_v56 = vpop.permute.xlu1 %4743 }
 0x3bb   :  { %3493 = vrot.lane.b32.xlu0 %v14776_v6, %s12014_s11 }
 0x3bc   :  { %6560 = vrot.lane.b32.xlu1 %v6205_v33, %s12015_s10 }
 0x3bd   :  { %v15213_v12 = vpop.permute.xlu0 %4745 }
 0x3be   :  { %v15215_v4 = vpop.permute.xlu1 %4739 }
 0x3bf   :  { %6558 = vrot.lane.b32.xlu0 %v6204_v35, %s12015_s10 }
 0x3c0   :  { %3503 = vrot.lane.b32.xlu1 %v14812_v58, %s12014_s11 }
 0x3c1   :  { %v15220_v47 = vpop.permute.xlu0 %4741 }
 0x3c2   :  { %v15222_v9 = vpop.permute.xlu1 %3425 }
 0x3c3   :  { %19739 = vst [vmem:[#allocation58_spill] sm:$0xff] %v15222_v9  ;;  %3505 = vrot.lane.b32.xlu0 %v14820_v5, %s12014_s11 }
 0x3c4   :  { %3499 = vrot.lane.b32.xlu1 %v14816_v55, %s12014_s11 }
 0x3c5   :  { %v15228_v33 = vpop.permute.xlu0 %3423 }
 0x3c6   :  { %19740 = vst [vmem:[#allocation168_spill] sm:$0xff] %v15228_v33  ;;  %v15234_v2 = vpop.permute.xlu1 %3421  ;;  %v19745_v33 = vld [vmem:[#allocation241_spill] sm:$0xff] }
 0x3c7   :  { %19742 = vst [vmem:[#allocation169_spill] sm:$0xff] %v15234_v2  ;;  %3501 = vrot.lane.b32.xlu0 %v14824_v51, %s12014_s11  ;;  %v15248_v9 = vmax.f32 %v19745_v33, %v15102_v7  ;;  %v15258_v2 = vmax.f32 %v19748_v31, %v15112_v62  ;;  %v19752_v7 = vld [vmem:[#allocation301_spill] sm:$0xff]  ;;  %v19756_v62 = vld [vmem:[#allocation303_spill] sm:$0xff] }
 0x3c8   :  { %4831 = vrot.lane.b32.xlu1 %v15232_v46, %s12015_s10 }
 0x3c9   :  { %v15244_v35 = vpop.permute.xlu0 %3419  ;;  %19746 = vst [vmem:[#allocation172_spill] sm:$0xff] %v15248_v9  ;;  %19749 = vst [vmem:[#allocation173_spill] sm:$0xff] %v15258_v2 }
 0x3ca   :  { %19744 = vst [vmem:[#allocation167_spill] sm:$0xff] %v15244_v35  ;;  %v15250_v14 = vpop.permute.xlu1 %4751 }
 0x3cb   :  { %19747 = vst [vmem:[#allocation170_spill] sm:$0xff] %v15250_v14  ;;  %4833 = vrot.lane.b32.xlu0 %v15242_v39, %s12015_s10  ;;  %v19755_v14 = vld [vmem:[#allocation304_spill] sm:$0xff] }
 0x3cc   :  { %4827 = vrot.lane.b32.xlu1 %v15248_v9, %s12015_s10 }
 0x3cd   :  { %v15260_v20 = vpop.permute.xlu0 %4747 }
 0x3ce   :  { %19750 = vst [vmem:[#allocation171_spill] sm:$0xff] %v15260_v20  ;;  %v15262_v42 = vpop.permute.xlu1 %4749 }
 0x3cf   :  { %19751 = vst [vmem:[#allocation285_spill] sm:$0xff] %v15262_v42  ;;  %4829 = vrot.lane.b32.xlu0 %v15258_v2, %s12015_s10  ;;  %v19758_v42 = vld [vmem:[#allocation245_spill] sm:$0xff] }
 0x3d0   :  { %3511 = vrot.lane.b32.xlu1 %v19752_v7, %s12014_s11  ;;  %v15280_v20 = vmax.f32 %v19758_v42, %v15118_v36  ;;  %v19761_v7 = vld [vmem:[#allocation305_spill] sm:$0xff] }
 0x3d1   :  { %v15268_v33 = vpop.permute.xlu0 %4753  ;;  %v19767_v42 = vld [vmem:[#allocation249_spill] sm:$0xff] }
 0x3d2   :  { %19753 = vst [vmem:[#allocation240_spill] sm:$0xff] %v15268_v33  ;;  %v15270_v35 = vpop.permute.xlu1 %4755  ;;  %19759 = vst [vmem:[#allocation243_spill] sm:$0xff] %v15280_v20 }
 0x3d3   :  { %19754 = vst [vmem:[#allocation242_spill] sm:$0xff] %v15270_v35  ;;  %3513 = vrot.lane.b32.xlu0 %v19755_v14, %s12014_s11  ;;  %v19762_v35 = vld [vmem:[#allocation248_spill] sm:$0xff] }
 0x3d4   :  { %3507 = vrot.lane.b32.xlu1 %v19756_v62, %s12014_s11  ;;  %v15290_v33 = vmax.f32 %v19762_v35, %v15128_v1 }
 0x3d5   :  { %v15276_v31 = vpop.permute.xlu0 %4759 }
 0x3d6   :  { %19757 = vst [vmem:[#allocation241_spill] sm:$0xff] %v15276_v31  ;;  %v15282_v51 = vpop.permute.xlu1 %4761  ;;  %19763 = vst [vmem:[#allocation248_spill] sm:$0xff] %v15290_v33  ;;  %v19765_v31 = vld [vmem:[#allocation247_spill] sm:$0xff] }
 0x3d7   :  { %19760 = vst [vmem:[#allocation245_spill] sm:$0xff] %v15282_v51  ;;  %3509 = vrot.lane.b32.xlu0 %v19761_v7, %s12014_s11  ;;  %v15296_v62 = vmax.f32 %v19765_v31, %v15130_v17  ;;  %v15306_v51 = vmax.f32 %v19767_v42, %v15140_v26  ;;  %v19769_v17 = vld [vmem:[#allocation310_spill] sm:$0xff]  ;;  %v19771_v26 = vld [vmem:[#allocation199_spill] sm:$0xff] }
 0x3d8   :  { %4839 = vrot.lane.b32.xlu1 %v15280_v20, %s12015_s10  ;;  %v5430_v42 = vmax.f32 %v19771_v26, %v15172_v19  ;;  %v19778_v26 = vld [vmem:[#allocation291_spill] sm:$0xff] }
 0x3d9   :  { %v15292_v9 = vpop.permute.xlu0 %4757  ;;  %19766 = vst [vmem:[#allocation247_spill] sm:$0xff] %v15296_v62  ;;  %19768 = vst [vmem:[#allocation249_spill] sm:$0xff] %v15306_v51 }
 0x3da   :  { %19764 = vst [vmem:[#allocation318_spill] sm:$0xff] %v15292_v9  ;;  %v15298_v36 = vpop.permute.xlu1 %3439 }
 0x3db   :  { %4841 = vrot.lane.b32.xlu0 %v15290_v33, %s12015_s10  ;;  %v19775_v33 = vld [vmem:[#allocation309_spill] sm:$0xff] }
 0x3dc   :  { %4835 = vrot.lane.b32.xlu1 %v15296_v62, %s12015_s10  ;;  %v19770_v62 = vld [vmem:[#allocation307_spill] sm:$0xff] }
 0x3dd   :  { %v15308_v1 = vpop.permute.xlu0 %3441 }
 0x3de   :  { %v15310_v35 = vpop.permute.xlu1 %3435 }
 0x3df   :  { %4837 = vrot.lane.b32.xlu0 %v15306_v51, %s12015_s10  ;;  %v19772_v51 = vld [vmem:[#allocation253_spill] sm:$0xff] }
 0x3e0   :  { %3521 = vrot.lane.b32.xlu1 %v19769_v17, %s12014_s11  ;;  %v15328_v17 = vmax.f32 %v19772_v51, %v15146_v16  ;;  %v15345_v51 = vld [vmem:[%s18801_s2] ss:$0 sm:$0xff] }
 0x3e1   :  { %v6497_v31 = vpop.permute.xlu0 %6496  ;;  %v5725_v16 = vadd.f32 %v15345_v51, %v5430_v42 }
 0x3e2   :  { %6531 = vst.msk [vmem:[#allocation2 + $0x20] sm:$0xff] %vm6335_vm2, %v6497_v31  ;;  %v6495_v9 = vpop.permute.xlu1 %6494  ;;  %19773 = vst [vmem:[#allocation199_spill] sm:$0xff] %v15328_v17  ;;  %v19774_v31 = vld [vmem:[#allocation197_spill] sm:$0xff] }
 0x3e3   :  { %6530 = vst.msk [vmem:[#allocation2 + $0x8] sm:$0xff] %vm6335_vm2, %v6495_v9  ;;  %3519 = vrot.lane.b32.xlu0 %v19770_v62, %s12014_s11  ;;  %v5429_v9 = vmax.f32 %v19774_v31, %v15166_v53  ;;  %v5428_v53 = vmax.f32 %v19778_v26, %v15184_v25  ;;  %v19782_v25 = vld [vmem:[#allocation257_spill] sm:$0xff]  ;;  %v6013_v26 = vmax.f32 %v5725_v16, 0.0 }
 0x3e4   :  { %3517 = vrot.lane.b32.xlu1 %v14961_v54, %s12014_s11  ;;  %v19776_v54 = vld [vmem:[#allocation256_spill] sm:$0xff]  ;;  %v15367_v42 = vmax.f32 %v19782_v25, %v15164_v15  ;;  %v19785_v15 = vld [vmem:[#allocation203_spill] sm:$0xff]  ;;  %v19786_v16 = vld [vmem:[#allocation89_spill] sm:$0xff] }
 0x3e5   :  { %v15324_v20 = vpop.permute.xlu0 %3437  ;;  %v15340_v19 = vmax.f32 %v19776_v54, %v15154_v37  ;;  %v5724_v54 = vadd.f32 %v15345_v51, %v5429_v9  ;;  %v19781_v37 = vld [vmem:[#allocation289_spill] sm:$0xff]  ;;  %v5433_v25 = vmax.f32 %v19785_v15, %v15208_v56 }
 0x3e6   :  { %v15330_v7 = vpop.permute.xlu1 %3447  ;;  %v5427_v14 = vmax.f32 %v19781_v37, %v15176_v48  ;;  %19783 = vst [vmem:[#allocation256_spill] sm:$0xff] %v15367_v42  ;;  %v19784_v9 = vld [vmem:[#allocation205_spill] sm:$0xff] }
 0x3e7   :  { %3515 = vrot.lane.b32.xlu0 %v19775_v33, %s12014_s11  ;;  %19777 = vst [vmem:[#allocation253_spill] sm:$0xff] %v15340_v19  ;;  %v19779_v33 = vld [vmem:[#allocation255_spill] sm:$0xff]  ;;  %v5434_v2 = vmax.f32 %v19784_v9, %v15213_v12  ;;  %v6012_v48 = vmax.f32 %v5724_v54, 0.0  ;;  %v19787_v12 = vld [vmem:[#allocation266_spill] sm:$0xff]  ;;  %v19791_v15 = vld [vmem:[#allocation37_spill] sm:$0xff] }
 0x3e8   :  { %4847 = vrot.lane.b32.xlu1 %v15328_v17, %s12015_s10  ;;  %v15354_v62 = vmax.f32 %v19779_v33, %v15158_v21  ;;  %v5723_v21 = vadd.f32 %v15345_v51, %v5428_v53  ;;  %v5722_v37 = vadd.f32 %v15345_v51, %v5427_v14  ;;  %v15384_v9 = vmax.f32 %v19787_v12, %v15197_v41 }
 0x3e9   :  { %v15350_v31 = vpop.permute.xlu0 %3449  ;;  %v6215_v53 = vpack.c.bf16 %v6013_v26, %v6012_v48  ;;  %v5729_v14 = vadd.f32 %v15345_v51, %v5434_v2  ;;  %v5728_v26 = vadd.f32 %v15345_v51, %v5433_v25 }
 0x3ea   :  { %19780 = vst [vmem:[#allocation197_spill] sm:$0xff] %v15354_v62  ;;  %v15356_v17 = vpop.permute.xlu1 %3443  ;;  %19788 = vst [vmem:[#allocation291_spill] sm:$0xff] %v15384_v9  ;;  %v6010_v56 = vmax.f32 %v5722_v37, 0.0 }
 0x3eb   :  { %4849 = vrot.lane.b32.xlu0 %v15340_v19, %s12015_s10  ;;  %v6016_v25 = vmax.f32 %v5728_v26, 0.0 }
 0x3ec   :  { %4843 = vrot.lane.b32.xlu1 %v15354_v62, %s12015_s10  ;;  %v6011_v62 = vmax.f32 %v5723_v21, 0.0  ;;  %v19790_v21 = vld [vmem:[#allocation204_spill] sm:$0xff] }
 0x3ed   :  { %v15370_v33 = vpop.permute.xlu0 %3445  ;;  %v5431_v48 = vmax.f32 %v19790_v21, %v15215_v4 }
 0x3ee   :  { %v6501_v5 = vpop.permute.xlu1 %6500  ;;  %v6214_v41 = vpack.c.bf16 %v6011_v62, %v6010_v56 }
 0x3ef   :  { %6533 = vst.msk [vmem:[#allocation2 + $0x50] sm:$0xff] %vm6335_vm2, %v6501_v5  ;;  %4845 = vrot.lane.b32.xlu0 %v15367_v42, %s12015_s10  ;;  %v19789_v5 = vld [vmem:[#allocation206_spill] sm:$0xff]  ;;  %v5726_v4 = vadd.f32 %v15345_v51, %v5431_v48 }
 0x3f0   :  { %3365 = vrot.lane.b32.xlu1 %v19786_v16, %s12014_s11  ;;  %v5432_v54 = vmax.f32 %v19789_v5, %v15220_v47  ;;  %v19792_v47 = vld [vmem:[#allocation7_spill] sm:$0xff] }
 0x3f1   :  { %v6499_v19 = vpop.permute.xlu0 %6498  ;;  %v15402_v12 = vmax.f32 %v19792_v47, %v19791_v15 }
 0x3f2   :  { %6532 = vst.msk [vmem:[#allocation2 + $0x38] sm:$0xff] %vm6335_vm2, %v6499_v19  ;;  %v15390_v42 = vpop.permute.xlu1 %3455  ;;  %v6017_v19 = vmax.f32 %v5729_v14, 0.0  ;;  %v5727_v37 = vadd.f32 %v15345_v51, %v5432_v54  ;;  %v19793_v14 = vld [vmem:[#allocation306_spill] sm:$0xff]  ;;  %v6014_v54 = vmax.f32 %v5726_v4, 0.0  ;;  %v15430_v4 = vmax.f32 %v14492_v0, %v15298_v36  ;;  %v19797_v0 = vld [vmem:[#allocation36_spill] sm:$0xff]  ;;  %v19798_v36 = vld [vmem:[#allocation5_spill] sm:$0xff] }
 0x3f3   :  { %6616 = vrot.lane.b32.xlu0 %v6215_v53, %s12014_s11 }
 0x3f4   :  { %4857 = vrot.lane.b32.xlu1 %v15384_v9, %s12015_s10  ;;  %v6217_v53 = vpack.c.bf16 %v6017_v19, %v6016_v25  ;;  %v6015_v56 = vmax.f32 %v5727_v37, 0.0  ;;  %v19794_v19 = vld [vmem:[#allocation308_spill] sm:$0xff] }
 0x3f5   :  { %v15398_v2 = vpop.permute.xlu0 %3457  ;;  %v19795_v37 = vld [vmem:[#allocation264_spill] sm:$0xff] }
 0x3f6   :  { %v15405_v5 = vpop.permute.xlu1 %3451  ;;  %v6216_v26 = vpack.c.bf16 %v6015_v56, %v6014_v54  ;;  %v15426_v25 = vmax.f32 %v19795_v37, %v15187_v30 }
 0x3f7   :  { %6614 = vrot.lane.b32.xlu0 %v6214_v41, %s12014_s11 }
 0x3f8   :  { %4417 = vrot.lane.b32.xlu1 %v15402_v12, %s12015_s10  ;;  %19796 = vst [vmem:[#allocation255_spill] sm:$0xff] %v15426_v25 }
 0x3f9   :  { %v15411_v62 = vpop.permute.xlu0 %3453 }
 0x3fa   :  { %v4784_v21 = vpop.permute.xlu1 %4783 }
 0x3fb   :  { %v5453_v15 = vmax.f32 %v15052_v8, %v4784_v21  ;;  %6878 = vrot.lane.b32.xlu0 %v19793_v14, %s12015_s10  ;;  %v15443_v14 = vmax.f32 %v19798_v36, %v19797_v0 }
 0x3fc   :  { %6620 = vrot.lane.b32.xlu1 %v6217_v53, %s12014_s11 }
 0x3fd   :  { %v4786_v41 = vpop.permute.xlu0 %4785  ;;  %v5748_v48 = vadd.f32 %v15345_v51, %v5453_v15 }
 0x3fe   :  { %v5454_v47 = vmax.f32 %v15062_v59, %v4786_v41  ;;  %v4780_v9 = vpop.permute.xlu1 %4779 }
 0x3ff   :  { %v5451_v16 = vmax.f32 %v15068_v29, %v4780_v9  ;;  %6866 = vrot.lane.b32.xlu0 %v19794_v19, %s12015_s10  ;;  %v6036_v59 = vmax.f32 %v5748_v48, 0.0 }
 0x400   :  { %v5749_v8 = vadd.f32 %v15345_v51, %v5454_v47  ;;  %6618 = vrot.lane.b32.xlu1 %v6216_v26, %s12014_s11  ;;  %v15460_v47 = vmax.f32 %v14502_v13, %v15308_v1  ;;  %v15476_v13 = vmax.f32 %v14507_v3, %v15324_v20  ;;  %v15492_v3 = vmax.f32 %v14532_v28, %v15350_v31 }
 0x401   :  { %v4782_v53 = vpop.permute.xlu0 %4781  ;;  %v5746_v29 = vadd.f32 %v15345_v51, %v5451_v16 }
 0x402   :  { %v6037_v56 = vmax.f32 %v5749_v8, 0.0  ;;  %v5452_v9 = vmax.f32 %v15078_v24, %v4782_v53  ;;  %v15434_v21 = vpop.permute.xlu1 %3463  ;;  %v15449_v24 = vmax.f32 %v14498_v23, %v15310_v35  ;;  %v15466_v23 = vmax.f32 %v14524_v43, %v15330_v7 }
 0x403   :  { %4855 = vrot.lane.b32.xlu0 %v15426_v25, %s12015_s10  ;;  %v6034_v16 = vmax.f32 %v5746_v29, 0.0  ;;  %v15480_v43 = vmax.f32 %v14527_v49, %v15356_v17  ;;  %v15496_v49 = vmax.f32 %v14572_v27, %v15390_v42  ;;  %v15509_v27 = vmax.f32 %v14537_v22, %v15370_v33 }
 0x404   :  { %v5747_v15 = vadd.f32 %v15345_v51, %v5452_v9  ;;  %4879 = vrot.lane.b32.xlu1 %v15430_v4, %s12015_s10  ;;  %v6227_v30 = vpack.c.bf16 %v6037_v56, %v6036_v59  ;;  %v15526_v33 = vmax.f32 %v14584_v34, %v15398_v2  ;;  %v19805_v2 = vld [vmem:[#allocation267_spill] sm:$0xff] }
 0x405   :  { %v15445_v54 = vpop.permute.xlu0 %3465 }
 0x406   :  { %v6035_v41 = vmax.f32 %v5747_v15, 0.0  ;;  %v15451_v26 = vpop.permute.xlu1 %3459  ;;  %6663 = vst.msk [vmem:[#allocation2 + $0x28] sm:$0xff] %vm6274_vm1, %v6227_v30 }
 0x407   :  { %4415 = vrot.lane.b32.xlu0 %v15443_v14, %s12015_s10 }
 0x408   :  { %4875 = vrot.lane.b32.xlu1 %v15449_v24, %s12015_s10  ;;  %v6226_v48 = vpack.c.bf16 %v6035_v41, %v6034_v16  ;;  %v15541_v41 = vmax.f32 %v14588_v18, %v15411_v62  ;;  %v15557_v18 = vmax.f32 %v14642_v52, %v15445_v54  ;;  %v19810_v62 = vld [vmem:[#allocation265_spill] sm:$0xff] }
 0x409   :  { %v15462_v19 = vpop.permute.xlu0 %3461 }
 0x40a   :  { %v4794_v35 = vpop.permute.xlu1 %4793  ;;  %6662 = vst.msk [vmem:[#allocation2 + $0x10] sm:$0xff] %vm6274_vm1, %v6226_v48  ;;  %v15545_v48 = vmax.f32 %v19805_v2, %v15206_v50  ;;  %19809 = vst [vmem:[#allocation206_spill] sm:$0xff] %v15557_v18 }
 0x40b   :  { %v5458_v8 = vmax.f32 %v15100_v11, %v4794_v35  ;;  %4881 = vrot.lane.b32.xlu0 %v15460_v47, %s12015_s10 }
 0x40c   :  { %4887 = vrot.lane.b32.xlu1 %v15466_v23, %s12015_s10  ;;  %19806 = vst [vmem:[#allocation266_spill] sm:$0xff] %v15545_v48 }
 0x40d   :  { %v4792_v1 = vpop.permute.xlu0 %4791  ;;  %v5753_v7 = vadd.f32 %v15345_v51, %v5458_v8  ;;  %v19807_v8 = vld [vmem:[#allocation74_spill] sm:$0xff] }
 0x40e   :  { %v5457_v37 = vmax.f32 %v15110_v40, %v4792_v1  ;;  %v4790_v11 = vpop.permute.xlu1 %4789  ;;  %v19808_v1 = vld [vmem:[#allocation97_spill] sm:$0xff] }
 0x40f   :  { %v5456_v53 = vmax.f32 %v15116_v61, %v4790_v11  ;;  %4877 = vrot.lane.b32.xlu0 %v15476_v13, %s12015_s10  ;;  %v6041_v20 = vmax.f32 %v5753_v7, 0.0  ;;  %v15553_v7 = vmax.f32 %v19808_v1, %v19807_v8  ;;  %v15567_v11 = vmax.f32 %v19810_v62, %v15199_v45  ;;  %v19816_v45 = vld [vmem:[#allocation101_spill] sm:$0xff] }
 0x410   :  { %v5752_v59 = vadd.f32 %v15345_v51, %v5457_v37  ;;  %4883 = vrot.lane.b32.xlu1 %v15480_v43, %s12015_s10  ;;  %v19824_v62 = vld [vmem:[#allocation281_spill] sm:$0xff] }
 0x411   :  { %v4788_v40 = vpop.permute.xlu0 %4787  ;;  %v5751_v61 = vadd.f32 %v15345_v51, %v5456_v53  ;;  %19811 = vst [vmem:[#allocation204_spill] sm:$0xff] %v15567_v11 }
 0x412   :  { %v6040_v17 = vmax.f32 %v5752_v59, 0.0  ;;  %v5455_v56 = vmax.f32 %v15126_v38, %v4788_v40  ;;  %v15500_v29 = vpop.permute.xlu1 %3473  ;;  %v15515_v38 = vmax.f32 %v14580_v10, %v15405_v5  ;;  %v19803_v10 = vld [vmem:[#allocation220_spill] sm:$0xff] }
 0x413   :  { %19799 = vst [vmem:[#allocation289_spill] sm:$0xff] %v15500_v29  ;;  %4889 = vrot.lane.b32.xlu0 %v15492_v3, %s12015_s10  ;;  %v6039_v42 = vmax.f32 %v5751_v61, 0.0  ;;  %v19804_v5 = vld [vmem:[#allocation100_spill] sm:$0xff]  ;;  %v19815_v61 = vld [vmem:[#allocation67_spill] sm:$0xff] }
 0x414   :  { %v5750_v9 = vadd.f32 %v15345_v51, %v5455_v56  ;;  %4895 = vrot.lane.b32.xlu1 %v15496_v49, %s12015_s10  ;;  %v6229_v28 = vpack.c.bf16 %v6041_v20, %v6040_v17  ;;  %v15532_v36 = vmax.f32 %v19804_v5, %v19803_v10  ;;  %v19812_v59 = vld [vmem:[#allocation40_spill] sm:$0xff]  ;;  %v15579_v20 = vmax.f32 %v14630_v63, %v15434_v21  ;;  %v19820_v10 = vld [vmem:[#allocation79_spill] sm:$0xff] }
 0x415   :  { %v15511_v31 = vpop.permute.xlu0 %3471  ;;  %v19813_v40 = vld [vmem:[#allocation8_spill] sm:$0xff]  ;;  %v15583_v56 = vmax.f32 %v19816_v45, %v19815_v61  ;;  %v15595_v63 = vmax.f32 %v14646_v44, %v15462_v19  ;;  %v19821_v5 = vld [vmem:[#allocation99_spill] sm:$0xff] }
 0x416   :  { %19800 = vst [vmem:[#allocation257_spill] sm:$0xff] %v15511_v31  ;;  %v6038_v15 = vmax.f32 %v5750_v9, 0.0  ;;  %v15517_v30 = vpop.permute.xlu1 %3469  ;;  %6665 = vst.msk [vmem:[#allocation2 + $0x58] sm:$0xff] %vm6274_vm1, %v6229_v28  ;;  %v15571_v52 = vmax.f32 %v19813_v40, %v19812_v59  ;;  %v19817_v28 = vld [vmem:[#allocation38_spill] sm:$0xff]  ;;  %v15604_v2 = vmax.f32 %v19821_v5, %v19820_v10  ;;  %v19822_v19 = vld [vmem:[#allocation272_spill] sm:$0xff] }
 0x417   :  { %19801 = vst [vmem:[#allocation205_spill] sm:$0xff] %v15517_v30  ;;  %4885 = vrot.lane.b32.xlu0 %v15509_v27, %s12015_s10  ;;  %19814 = vst [vmem:[#allocation37_spill] sm:$0xff] %v15579_v20  ;;  %v19826_v45 = vld [vmem:[#allocation284_spill] sm:$0xff]  ;;  %v19861_v31 = vld [vmem:[#allocation198_spill] sm:$0xff] }
 0x418   :  { %4891 = vrot.lane.b32.xlu1 %v15515_v38, %s12015_s10  ;;  %v6228_v22 = vpack.c.bf16 %v6039_v42, %v6038_v15  ;;  %v19818_v42 = vld [vmem:[#allocation6_spill] sm:$0xff]  ;;  %19819 = vst [vmem:[#allocation7_spill] sm:$0xff] %v15595_v63 }
 0x419   :  { %v15528_v0 = vpop.permute.xlu0 %3467  ;;  %v15591_v15 = vmax.f32 %v19818_v42, %v19817_v28 }
 0x41a   :  { %19802 = vst [vmem:[#allocation203_spill] sm:$0xff] %v15528_v0  ;;  %v3488_v16 = vpop.permute.xlu1 %3487  ;;  %6664 = vst.msk [vmem:[#allocation2 + $0x40] sm:$0xff] %vm6274_vm1, %v6228_v22 }
 0x41b   :  { %4897 = vrot.lane.b32.xlu0 %v15526_v33, %s12015_s10  ;;  %v15607_v1 = vmax.f32 %v14732_v57, %v3488_v16  ;;  %v19825_v57 = vld [vmem:[#allocation282_spill] sm:$0xff] }
 0x41c   :  { %4609 = vrot.lane.b32.xlu1 %v15532_v36, %s12015_s10 }
 0x41d   :  { %v3490_v34 = vpop.permute.xlu0 %3489 }
 0x41e   :  { %v3484_v35 = vpop.permute.xlu1 %3483  ;;  %v15626_v16 = vmax.f32 %v19825_v57, %v3490_v34 }
 0x41f   :  { %4893 = vrot.lane.b32.xlu0 %v15541_v41, %s12015_s10  ;;  %v15619_v59 = vmax.f32 %v19824_v62, %v3484_v35  ;;  %v19827_v35 = vld [vmem:[#allocation283_spill] sm:$0xff] }
 0x420   :  { %4853 = vrot.lane.b32.xlu1 %v15545_v48, %s12015_s10 }
 0x421   :  { %v6557_v37 = vpop.permute.xlu0 %6556 }
 0x422   :  { %6591 = vst.msk [vmem:[#allocation2 + $0x20] sm:$0xff] %vm6396_vm3, %v6557_v37  ;;  %v6555_v50 = vpop.permute.xlu1 %6554  ;;  %v15616_v37 = vmax.f32 %v19822_v19, %v15451_v26 }
 0x423   :  { %6590 = vst.msk [vmem:[#allocation2 + $0x8] sm:$0xff] %vm6396_vm3, %v6555_v50  ;;  %4607 = vrot.lane.b32.xlu0 %v15553_v7, %s12015_s10 }
 0x424   :  { %4905 = vrot.lane.b32.xlu1 %v15557_v18, %s12015_s10  ;;  %19823 = vst [vmem:[#allocation306_spill] sm:$0xff] %v15616_v37  ;;  %v19836_v18 = vld [vmem:[#allocation172_spill] sm:$0xff] }
 0x425   :  { %v3486_v53 = vpop.permute.xlu0 %3485 }
 0x426   :  { %v3496_v54 = vpop.permute.xlu1 %3495  ;;  %v15636_v42 = vmax.f32 %v19827_v35, %v3486_v53  ;;  %v19833_v35 = vld [vmem:[#allocation131_spill] sm:$0xff] }
 0x427   :  { %4851 = vrot.lane.b32.xlu0 %v15567_v11, %s12015_s10  ;;  %v15629_v28 = vmax.f32 %v19826_v45, %v3496_v54 }
 0x428   :  { %4413 = vrot.lane.b32.xlu1 %v15571_v52, %s12015_s10 }
 0x429   :  { %v3498_v17 = vpop.permute.xlu0 %3497 }
 0x42a   :  { %v3492_v9 = vpop.permute.xlu1 %3491  ;;  %v15646_v54 = vmax.f32 %v14772_v32, %v3498_v17 }
 0x42b   :  { %4903 = vrot.lane.b32.xlu0 %v15579_v20, %s12015_s10  ;;  %v15639_v10 = vmax.f32 %v19738_v60, %v3492_v9 }
 0x42c   :  { %4605 = vrot.lane.b32.xlu1 %v15583_v56, %s12015_s10 }
 0x42d   :  { %v3494_v22 = vpop.permute.xlu0 %3493 }
 0x42e   :  { %v6561_v21 = vpop.permute.xlu1 %6560  ;;  %v15658_v9 = vmax.f32 %v14776_v6, %v3494_v22  ;;  %v19829_v6 = vld [vmem:[#allocation173_spill] sm:$0xff] }
 0x42f   :  { %6593 = vst.msk [vmem:[#allocation2 + $0x50] sm:$0xff] %vm6396_vm3, %v6561_v21  ;;  %4411 = vrot.lane.b32.xlu0 %v15591_v15, %s12015_s10 }
 0x430   :  { %4901 = vrot.lane.b32.xlu1 %v15595_v63, %s12015_s10  ;;  %v19834_v63 = vld [vmem:[#allocation304_spill] sm:$0xff] }
 0x431   :  { %v6559_v8 = vpop.permute.xlu0 %6558 }
 0x432   :  { %6592 = vst.msk [vmem:[#allocation2 + $0x38] sm:$0xff] %vm6396_vm3, %v6559_v8  ;;  %v3504_v44 = vpop.permute.xlu1 %3503 }
 0x433   :  { %4603 = vrot.lane.b32.xlu0 %v15604_v2, %s12015_s10  ;;  %v15649_v8 = vmax.f32 %v14812_v58, %v3504_v44 }
 0x434   :  { %4927 = vrot.lane.b32.xlu1 %v15607_v1, %s12015_s10 }
 0x435   :  { %v3506_v50 = vpop.permute.xlu0 %3505 }
 0x436   :  { %v3500_v40 = vpop.permute.xlu1 %3499 }
 0x437   :  { %4899 = vrot.lane.b32.xlu0 %v15616_v37, %s12015_s10  ;;  %v15661_v17 = vmax.f32 %v14816_v55, %v3500_v40  ;;  %v19830_v55 = vld [vmem:[#allocation292_spill] sm:$0xff]  ;;  %v19831_v40 = vld [vmem:[#allocation134_spill] sm:$0xff] }
 0x438   :  { %4923 = vrot.lane.b32.xlu1 %v15619_v59, %s12015_s10  ;;  %v5390_v45 = vmax.f32 %v19831_v40, %v19830_v55  ;;  %v19839_v55 = vld [vmem:[#allocation231_spill] sm:$0xff] }
 0x439   :  { %v3502_v61 = vpop.permute.xlu0 %3501  ;;  %v19840_v40 = vld [vmem:[#allocation159_spill] sm:$0xff] }
 0x43a   :  { %v4832_v26 = vpop.permute.xlu1 %4831 }
 0x43b   :  { %4929 = vrot.lane.b32.xlu0 %v15626_v16, %s12015_s10  ;;  %v5477_v60 = vmax.f32 %v15232_v46, %v4832_v26  ;;  %v19828_v46 = vld [vmem:[#allocation294_spill] sm:$0xff]  ;;  %v19832_v26 = vld [vmem:[#allocation293_spill] sm:$0xff] }
 0x43c   :  { %4935 = vrot.lane.b32.xlu1 %v15629_v28, %s12015_s10  ;;  %v15672_v62 = vmax.f32 %v19828_v46, %v3506_v50  ;;  %v19837_v50 = vld [vmem:[#allocation230_spill] sm:$0xff]  ;;  %v19838_v46 = vld [vmem:[#allocation157_spill] sm:$0xff] }
 0x43d   :  { %v4834_v21 = vpop.permute.xlu0 %4833 }
 0x43e   :  { %v4828_v34 = vpop.permute.xlu1 %4827  ;;  %v5478_v53 = vmax.f32 %v15242_v39, %v4834_v21  ;;  %v5772_v39 = vadd.f32 %v15345_v51, %v5477_v60  ;;  %v5389_v21 = vmax.f32 %v19833_v35, %v19832_v26  ;;  %v5317_v26 = vmax.f32 %v19840_v40, %v19839_v55 }
 0x43f   :  { %4925 = vrot.lane.b32.xlu0 %v15636_v42, %s12015_s10  ;;  %v5475_v48 = vmax.f32 %v19836_v18, %v4828_v34  ;;  %v5685_v18 = vadd.f32 %v15345_v51, %v5390_v45  ;;  %v19844_v45 = vld [vmem:[#allocation248_spill] sm:$0xff] }
 0x440   :  { %4931 = vrot.lane.b32.xlu1 %v15639_v10, %s12015_s10  ;;  %v5773_v58 = vadd.f32 %v15345_v51, %v5478_v53  ;;  %v5684_v34 = vadd.f32 %v15345_v51, %v5389_v21 }
 0x441   :  { %v4830_v5 = vpop.permute.xlu0 %4829 }
 0x442   :  { %v3512_v19 = vpop.permute.xlu1 %3511  ;;  %v5476_v22 = vmax.f32 %v19829_v6, %v4830_v5  ;;  %v6061_v53 = vmax.f32 %v5773_v58, 0.0  ;;  %v5318_v5 = vmax.f32 %v19838_v46, %v19837_v50  ;;  %v6060_v6 = vmax.f32 %v5772_v39, 0.0  ;;  %v19841_v58 = vld [vmem:[#allocation295_spill] sm:$0xff] }
 0x443   :  { %4937 = vrot.lane.b32.xlu0 %v15646_v54, %s12015_s10  ;;  %v15692_v35 = vmax.f32 %v19841_v58, %v3502_v61  ;;  %v5770_v39 = vadd.f32 %v15345_v51, %v5475_v48  ;;  %v5612_v61 = vadd.f32 %v15345_v51, %v5317_v26  ;;  %v19845_v58 = vld [vmem:[#allocation305_spill] sm:$0xff]  ;;  %v19851_v26 = vld [vmem:[#allocation102_spill] sm:$0xff] }
 0x444   :  { %4943 = vrot.lane.b32.xlu1 %v15649_v8, %s12015_s10  ;;  %v6239_v20 = vpack.c.bf16 %v6061_v53, %v6060_v6  ;;  %v5613_v50 = vadd.f32 %v15345_v51, %v5318_v5  ;;  %v5973_v53 = vmax.f32 %v5685_v18, 0.0  ;;  %v5972_v6 = vmax.f32 %v5684_v34, 0.0  ;;  %v19854_v18 = vld [vmem:[#allocation104_spill] sm:$0xff] }
 0x445   :  { %v3514_v32 = vpop.permute.xlu0 %3513  ;;  %v6058_v5 = vmax.f32 %v5770_v39, 0.0 }
 0x446   :  { %v15664_v44 = vpop.permute.xlu1 %3507  ;;  %v15680_v37 = vmax.f32 %v19834_v63, %v3514_v32  ;;  %v5771_v63 = vadd.f32 %v15345_v51, %v5476_v22  ;;  %v19842_v22 = vld [vmem:[#allocation301_spill] sm:$0xff] }
 0x447   :  { %4933 = vrot.lane.b32.xlu0 %v15658_v9, %s12015_s10  ;;  %v15704_v55 = vmax.f32 %v19842_v22, %v3512_v19  ;;  %v19850_v19 = vld [vmem:[#allocation194_spill] sm:$0xff] }
 0x448   :  { %4939 = vrot.lane.b32.xlu1 %v15661_v17, %s12015_s10  ;;  %19835 = vst [vmem:[#allocation308_spill] sm:$0xff] %v15680_v37  ;;  %v6059_v46 = vmax.f32 %v5771_v63, 0.0  ;;  %v5294_v63 = vmax.f32 %v19851_v26, %v19850_v19  ;;  %v19859_v26 = vld [vmem:[#allocation196_spill] sm:$0xff] }
 0x449   :  { %v3510_v57 = vpop.permute.xlu0 %3509  ;;  %19843 = vst [vmem:[#allocation264_spill] sm:$0xff] %v15704_v55 }
 0x44a   :  { %v4840_v60 = vpop.permute.xlu1 %4839  ;;  %v15708_v48 = vmax.f32 %v19845_v58, %v3510_v57  ;;  %v19853_v57 = vld [vmem:[#allocation195_spill] sm:$0xff]  ;;  %v6195_v58 = vpack.c.bf16 %v5973_v53, %v5972_v6  ;;  %v19864_v53 = vld [vmem:[#allocation174_spill] sm:$0xff] }
 0x44b   :  { %4945 = vrot.lane.b32.xlu0 %v15672_v62, %s12015_s10  ;;  %v5293_v34 = vmax.f32 %v19854_v18, %v19853_v57  ;;  %v19862_v57 = vld [vmem:[#allocation109_spill] sm:$0xff] }
 0x44c   :  { %4953 = vrot.lane.b32.xlu1 %v15680_v37, %s12015_s10  ;;  %19846 = vst [vmem:[#allocation36_spill] sm:$0xff] %v15708_v48  ;;  %v19847_v37 = vld [vmem:[#allocation249_spill] sm:$0xff] }
 0x44d   :  { %v4842_v32 = vpop.permute.xlu0 %4841 }
 0x44e   :  { %v4836_v11 = vpop.permute.xlu1 %4835  ;;  %v5482_v40 = vmax.f32 %v19844_v45, %v4842_v32  ;;  %v19852_v32 = vld [vmem:[#allocation247_spill] sm:$0xff]  ;;  %v6238_v45 = vpack.c.bf16 %v6059_v46, %v6058_v5 }
 0x44f   :  { %4941 = vrot.lane.b32.xlu0 %v15692_v35, %s12015_s10  ;;  %v5479_v22 = vmax.f32 %v19852_v32, %v4836_v11  ;;  %v19860_v32 = vld [vmem:[#allocation108_spill] sm:$0xff]  ;;  %v19865_v5 = vld [vmem:[#allocation303_spill] sm:$0xff] }
 0x450   :  { %6688 = vrot.lane.b32.xlu1 %v6239_v20, %s12016_s29  ;;  %v19849_v20 = vld [vmem:[#allocation243_spill] sm:$0xff]  ;;  %v5777_v39 = vadd.f32 %v15345_v51, %v5482_v40  ;;  %v15745_v18 = vmax.f32 %v19865_v5, %v15664_v44 }
 0x451   :  { %v4838_v21 = vpop.permute.xlu0 %4837  ;;  %v5481_v30 = vmax.f32 %v19849_v20, %v4840_v60  ;;  %v5900_v60 = vmax.f32 %v5612_v61, 0.0  ;;  %v19856_v20 = vld [vmem:[#allocation312_spill] sm:$0xff]  ;;  %v5589_v61 = vadd.f32 %v15345_v51, %v5294_v63  ;;  %v19863_v40 = vld [vmem:[#allocation127_spill] sm:$0xff] }
 0x452   :  { %v5480_v25 = vmax.f32 %v19847_v37, %v4838_v21  ;;  %v15711_v0 = vpop.permute.xlu1 %3521  ;;  %v5901_v37 = vmax.f32 %v5613_v50, 0.0  ;;  %v5291_v50 = vmax.f32 %v19862_v57, %v19861_v31  ;;  %v5413_v6 = vmax.f32 %v19864_v53, %v19863_v40  ;;  %19866 = vst [vmem:[#allocation267_spill] sm:$0xff] %v15745_v18  ;;  %v19871_v53 = vld [vmem:[#allocation63_spill] sm:$0xff] }
 0x453   :  { %19848 = vst [vmem:[#allocation5_spill] sm:$0xff] %v15711_v0  ;;  %4951 = vrot.lane.b32.xlu0 %v15704_v55, %s12015_s10  ;;  %v19857_v55 = vld [vmem:[#allocation176_spill] sm:$0xff]  ;;  %v5776_v46 = vadd.f32 %v15345_v51, %v5481_v30  ;;  %v6065_v31 = vmax.f32 %v5777_v39, 0.0  ;;  %v5877_v44 = vmax.f32 %v5589_v61, 0.0  ;;  %v19870_v39 = vld [vmem:[#allocation254_spill] sm:$0xff] }
 0x454   :  { %4949 = vrot.lane.b32.xlu1 %v15708_v48, %s12015_s10  ;;  %v5414_v0 = vmax.f32 %v19857_v55, %v19856_v20  ;;  %v5775_v19 = vadd.f32 %v15345_v51, %v5480_v25  ;;  %v5292_v48 = vmax.f32 %v19860_v32, %v19859_v26  ;;  %v5774_v55 = vadd.f32 %v15345_v51, %v5479_v22  ;;  %v19869_v26 = vld [vmem:[#allocation65_spill] sm:$0xff] }
 0x455   :  { %v15724_v21 = vpop.permute.xlu0 %3519  ;;  %v5588_v25 = vadd.f32 %v15345_v51, %v5293_v34  ;;  %v6159_v30 = vpack.c.bf16 %v5901_v37, %v5900_v60  ;;  %v5586_v34 = vadd.f32 %v15345_v51, %v5291_v50  ;;  %v5341_v37 = vmax.f32 %v19871_v53, %v19870_v39  ;;  %v19877_v39 = vld [vmem:[#allocation211_spill] sm:$0xff] }
 0x456   :  { %19855 = vst [vmem:[#allocation220_spill] sm:$0xff] %v15724_v21  ;;  %v15729_v11 = vpop.permute.xlu1 %3517  ;;  %v5709_v32 = vadd.f32 %v15345_v51, %v5414_v0  ;;  %v6063_v57 = vmax.f32 %v5775_v19, 0.0  ;;  %v5587_v22 = vadd.f32 %v15345_v51, %v5292_v48  ;;  %v5708_v60 = vadd.f32 %v15345_v51, %v5413_v6  ;;  %v19872_v19 = vld [vmem:[#allocation296_spill] sm:$0xff]  ;;  %v19874_v48 = vld [vmem:[#allocation297_spill] sm:$0xff] }
 0x457   :  { %19858 = vst [vmem:[#allocation100_spill] sm:$0xff] %v15729_v11  ;;  %6686 = vrot.lane.b32.xlu0 %v6238_v45, %s12016_s29  ;;  %v19868_v45 = vld [vmem:[#allocation258_spill] sm:$0xff]  ;;  %v6062_v5 = vmax.f32 %v5774_v55, 0.0  ;;  %v5876_v0 = vmax.f32 %v5588_v25, 0.0  ;;  %v19876_v21 = vld [vmem:[#allocation240_spill] sm:$0xff]  ;;  %v5874_v25 = vmax.f32 %v5586_v34, 0.0 }
 0x458   :  { %6504 = vrot.lane.b32.xlu1 %v6195_v58, %s12016_s29  ;;  %v5342_v63 = vmax.f32 %v19869_v26, %v19868_v45  ;;  %v6064_v58 = vmax.f32 %v5776_v46, 0.0  ;;  %v19873_v45 = vld [vmem:[#allocation135_spill] sm:$0xff]  ;;  %v5438_v53 = vmax.f32 %v19877_v39, %v19876_v21  ;;  %v19882_v21 = vld [vmem:[#allocation80_spill] sm:$0xff] }
 0x459   :  { %v15747_v20 = vpop.permute.xlu0 %3515  ;;  %v5388_v26 = vmax.f32 %v19873_v45, %v19872_v19  ;;  %v6240_v6 = vpack.c.bf16 %v6063_v57, %v6062_v5  ;;  %v19878_v19 = vld [vmem:[#allocation232_spill] sm:$0xff]  ;;  %v19879_v45 = vld [vmem:[#allocation163_spill] sm:$0xff] }
 0x45a   :  { %19867 = vst [vmem:[#allocation74_spill] sm:$0xff] %v15747_v20  ;;  %v15752_v40 = vpop.permute.xlu1 %4847  ;;  %v19875_v20 = vld [vmem:[#allocation133_spill] sm:$0xff]  ;;  %v6241_v46 = vpack.c.bf16 %v6065_v31, %v6064_v58  ;;  %v5637_v61 = vadd.f32 %v15345_v51, %v5342_v63  ;;  %v5316_v29 = vmax.f32 %v19879_v45, %v19878_v19  ;;  %v5636_v31 = vadd.f32 %v15345_v51, %v5341_v37  ;;  %v19880_v58 = vld [vmem:[#allocation170_spill] sm:$0xff]  ;;  %v19883_v57 = vld [vmem:[#allocation164_spill] sm:$0xff] }
 0x45b   :  { %4947 = vrot.lane.b32.xlu0 %v15745_v18, %s12015_s10  ;;  %v5387_v50 = vmax.f32 %v19875_v20, %v19874_v48  ;;  %v5997_v18 = vmax.f32 %v5709_v32, 0.0  ;;  %v5996_v20 = vmax.f32 %v5708_v60, 0.0  ;;  %v19881_v48 = vld [vmem:[#allocation209_spill] sm:$0xff]  ;;  %v6147_v32 = vpack.c.bf16 %v5877_v44, %v5876_v0 }
 0x45c   :  { %6370 = vrot.lane.b32.xlu1 %v6159_v30, %s12015_s10  ;;  %v5875_v30 = vmax.f32 %v5587_v22, 0.0  ;;  %v5437_v63 = vmax.f32 %v19881_v48, %v19880_v58  ;;  %v5315_v5 = vmax.f32 %v19883_v57, %v19882_v21  ;;  %v5683_v22 = vadd.f32 %v15345_v51, %v5388_v26 }
 0x45d   :  { %v15766_v11 = vpop.permute.xlu0 %4849  ;;  %v5682_v34 = vadd.f32 %v15345_v51, %v5387_v50  ;;  %v5925_v39 = vmax.f32 %v5637_v61, 0.0  ;;  %v6207_v19 = vpack.c.bf16 %v5997_v18, %v5996_v20  ;;  %v5733_v37 = vadd.f32 %v15345_v51, %v5438_v53  ;;  %v19884_v61 = vld [vmem:[#allocation313_spill] sm:$0xff] }
 0x45e   :  { %v15771_v55 = vpop.permute.xlu1 %4843  ;;  %v6146_v45 = vpack.c.bf16 %v5875_v30, %v5874_v25  ;;  %v5611_v44 = vadd.f32 %v15345_v51, %v5316_v29  ;;  %v5924_v0 = vmax.f32 %v5636_v31, 0.0  ;;  %v5610_v26 = vadd.f32 %v15345_v51, %v5315_v5  ;;  %v19885_v18 = vld [vmem:[#allocation177_spill] sm:$0xff]  ;;  %v19887_v29 = vld [vmem:[#allocation228_spill] sm:$0xff]  ;;  %v19888_v25 = vld [vmem:[#allocation175_spill] sm:$0xff] }
 0x45f   :  { %6692 = vrot.lane.b32.xlu0 %v6241_v46, %s12016_s29  ;;  %v5971_v50 = vmax.f32 %v5683_v22, 0.0  ;;  %v5970_v58 = vmax.f32 %v5682_v34, 0.0  ;;  %v5412_v20 = vmax.f32 %v19885_v18, %v19884_v61  ;;  %v6021_v21 = vmax.f32 %v5733_v37, 0.0  ;;  %v19889_v5 = vld [vmem:[#allocation259_spill] sm:$0xff]  ;;  %v19890_v22 = vld [vmem:[#allocation213_spill] sm:$0xff]  ;;  %v19892_v61 = vld [vmem:[#allocation210_spill] sm:$0xff] }
 0x460   :  { %6690 = vrot.lane.b32.xlu1 %v6240_v6, %s12016_s29  ;;  %v5732_v6 = vadd.f32 %v15345_v51, %v5437_v63  ;;  %v6171_v48 = vpack.c.bf16 %v5925_v39, %v5924_v0  ;;  %v5411_v31 = vmax.f32 %v19888_v25, %v19887_v29  ;;  %v5899_v63 = vmax.f32 %v5611_v44, 0.0  ;;  %v19891_v0 = vld [vmem:[#allocation171_spill] sm:$0xff]  ;;  %v19895_v44 = vld [vmem:[#allocation252_spill] sm:$0xff] }
 0x461   :  { %v15784_v46 = vpop.permute.xlu0 %4845  ;;  %v5898_v57 = vmax.f32 %v5610_v26, 0.0  ;;  %v5340_v34 = vmax.f32 %v19890_v22, %v19889_v5  ;;  %v5707_v39 = vadd.f32 %v15345_v51, %v5412_v20  ;;  %v5435_v18 = vmax.f32 %v19892_v61, %v19891_v0 }
 0x462   :  { %v15787_v60 = vpop.permute.xlu1 %3365 }
 0x463   :  { %6309 = vrot.lane.b32.xlu0 %v6147_v32, %s12016_s29  ;;  %v6020_v32 = vmax.f32 %v5732_v6, 0.0  ;;  %v19896_v6 = vld [vmem:[#allocation208_spill] sm:$0xff]  ;;  %v5995_v20 = vmax.f32 %v5707_v39, 0.0 }
 0x464   :  { %6564 = vrot.lane.b32.xlu1 %v6207_v19, %s12015_s10  ;;  %v6194_v19 = vpack.c.bf16 %v5971_v50, %v5970_v58  ;;  %v5339_v26 = vmax.f32 %v19896_v6, %v19895_v44  ;;  %v6158_v50 = vpack.c.bf16 %v5899_v63, %v5898_v57  ;;  %v5635_v58 = vadd.f32 %v15345_v51, %v5340_v34 }
 0x465   :  { %v6617_v53 = vpop.permute.xlu0 %6616  ;;  %v6219_v25 = vpack.c.bf16 %v6021_v21, %v6020_v32  ;;  %v5730_v21 = vadd.f32 %v15345_v51, %v5435_v18 }
 0x466   :  { %6651 = vst.msk [vmem:[#allocation2 + $0x20] sm:$0xff] %vm6457_vm4, %v6617_v53  ;;  %v15797_v30 = vpop.permute.xlu1 %4857  ;;  %v19893_v53 = vld [vmem:[#allocation285_spill] sm:$0xff]  ;;  %v5634_v22 = vadd.f32 %v15345_v51, %v5339_v26  ;;  %v5923_v63 = vmax.f32 %v5635_v58, 0.0  ;;  %v19898_v58 = vld [vmem:[#allocation235_spill] sm:$0xff] }
 0x467   :  { %19886 = vst [vmem:[#allocation97_spill] sm:$0xff] %v15797_v30  ;;  %6307 = vrot.lane.b32.xlu0 %v6146_v45, %s12016_s29  ;;  %v19894_v30 = vld [vmem:[#allocation212_spill] sm:$0xff] }
 0x468   :  { %6431 = vrot.lane.b32.xlu1 %v6171_v48, %s12014_s11  ;;  %v5436_v29 = vmax.f32 %v19894_v30, %v19893_v53  ;;  %v5706_v48 = vadd.f32 %v15345_v51, %v5411_v31  ;;  %v5922_v61 = vmax.f32 %v5634_v22, 0.0 }
 0x469   :  { %v6615_v37 = vpop.permute.xlu0 %6614 }
 0x46a   :  { %6650 = vst.msk [vmem:[#allocation2 + $0x8] sm:$0xff] %vm6457_vm4, %v6615_v37  ;;  %v4418_v45 = vpop.permute.xlu1 %4417  ;;  %v5731_v30 = vadd.f32 %v15345_v51, %v5436_v29  ;;  %v5994_v37 = vmax.f32 %v5706_v48, 0.0  ;;  %v6170_v53 = vpack.c.bf16 %v5923_v63, %v5922_v61  ;;  %v19900_v61 = vld [vmem:[#allocation233_spill] sm:$0xff] }
 0x46b   :  { %6502 = vrot.lane.b32.xlu0 %v6194_v19, %s12016_s29  ;;  %v6018_v19 = vmax.f32 %v5730_v21, 0.0  ;;  %v5270_v29 = vmax.f32 %v15402_v12, %v4418_v45 }
 0x46c   :  { %6624 = vrot.lane.b32.xlu1 %v6219_v25, %s12014_s11  ;;  %v6206_v57 = vpack.c.bf16 %v5995_v20, %v5994_v37  ;;  %v6019_v39 = vmax.f32 %v5731_v30, 0.0 }
 0x46d   :  { %v15817_v5 = vpop.permute.xlu0 %6878  ;;  %v15824_v31 = vld [vmem:[#allocation2 + $0x20] sm:$0xff]  ;;  %v5565_v26 = vadd.f32 %v15345_v51, %v5270_v29 }
 0x46e   :  { %v6621_v32 = vpop.permute.xlu1 %6620  ;;  %v6218_v44 = vpack.c.bf16 %v6019_v39, %v6018_v19 }
 0x46f   :  { %6653 = vst.msk [vmem:[#allocation2 + $0x50] sm:$0xff] %vm6457_vm4, %v6621_v32  ;;  %6368 = vrot.lane.b32.xlu0 %v6158_v50, %s12015_s10  ;;  %v19897_v50 = vld [vmem:[#allocation123_spill] sm:$0xff]  ;;  %v5853_v32 = vmax.f32 %v5565_v26, 0.0 }
 0x470   :  { %6880 = vrot.lane.b32.xlu1 %v15824_v31, %s12015_s10  ;;  %v15844_v20 = vmax.f32 %v19898_v58, %v19897_v50 }
 0x471   :  { %v15828_v34 = vpop.permute.xlu0 %6866  ;;  %v15832_v18 = vld [vmem:[#allocation2 + $0x8] sm:$0xff] }
 0x472   :  { %v6619_v0 = vpop.permute.xlu1 %6618 }
 0x473   :  { %6652 = vst.msk [vmem:[#allocation2 + $0x38] sm:$0xff] %vm6457_vm4, %v6619_v0  ;;  %6562 = vrot.lane.b32.xlu0 %v6206_v57, %s12015_s10  ;;  %v19899_v0 = vld [vmem:[#allocation217_spill] sm:$0xff] }
 0x474   :  { %6868 = vrot.lane.b32.xlu1 %v15832_v18, %s12015_s10 }
 0x475   :  { %v15837_v25 = vpop.permute.xlu0 %4855 }
 0x476   :  { %v4880_v6 = vpop.permute.xlu1 %4879 }
 0x477   :  { %6429 = vrot.lane.b32.xlu0 %v6170_v53, %s12014_s11  ;;  %v5501_v21 = vmax.f32 %v15430_v4, %v4880_v6  ;;  %v15861_v53 = vmax.f32 %v19900_v61, %v19899_v0  ;;  %v19904_v0 = vld [vmem:[#allocation234_spill] sm:$0xff] }
 0x478   :  { %6622 = vrot.lane.b32.xlu1 %v6218_v44, %s12014_s11 }
 0x479   :  { %v4416_v48 = vpop.permute.xlu0 %4415  ;;  %v5796_v37 = vadd.f32 %v15345_v51, %v5501_v21 }
 0x47a   :  { %v5269_v30 = vmax.f32 %v15443_v14, %v4416_v48  ;;  %v4876_v12 = vpop.permute.xlu1 %4875 }
 0x47b   :  { %6930 = vrot.lane.b32.xlu0 %v15824_v31, %s12015_s10  ;;  %v5499_v57 = vmax.f32 %v15449_v24, %v4876_v12  ;;  %v6084_v44 = vmax.f32 %v5796_v37, 0.0 }
 0x47c   :  { %v5564_v45 = vadd.f32 %v15345_v51, %v5269_v30  ;;  %4801 = vrot.lane.b32.xlu1 %v15844_v20, %s12015_s10 }
 0x47d   :  { %v4882_v22 = vpop.permute.xlu0 %4881  ;;  %v5794_v6 = vadd.f32 %v15345_v51, %v5499_v57 }
 0x47e   :  { %v5852_v63 = vmax.f32 %v5564_v45, 0.0  ;;  %v5502_v4 = vmax.f32 %v15460_v47, %v4882_v22  ;;  %v4888_v19 = vpop.permute.xlu1 %4887  ;;  %v19902_v22 = vld [vmem:[#allocation236_spill] sm:$0xff] }
 0x47f   :  { %6919 = vrot.lane.b32.xlu0 %v15832_v18, %s12015_s10  ;;  %v6082_v21 = vmax.f32 %v5794_v6, 0.0  ;;  %v5505_v30 = vmax.f32 %v15466_v23, %v4888_v19  ;;  %v19903_v19 = vld [vmem:[#allocation311_spill] sm:$0xff] }
 0x480   :  { %v5797_v14 = vadd.f32 %v15345_v51, %v5502_v4  ;;  %v6135_v39 = vpack.c.bf16 %v5853_v32, %v5852_v63  ;;  %v15889_v61 = vmax.f32 %v19904_v0, %v19903_v19 }
 0x481   :  { %v4878_v29 = vpop.permute.xlu0 %4877 }
 0x482   :  { %v6085_v26 = vmax.f32 %v5797_v14, 0.0  ;;  %v5500_v24 = vmax.f32 %v15476_v13, %v4878_v29  ;;  %v4884_v48 = vpop.permute.xlu1 %4883  ;;  %6280 = vst.msk [vmem:[#allocation2 + $0x78] sm:$0xff] %vm6274_vm1, %v6135_v39  ;;  %v19901_v13 = vld [vmem:[#allocation218_spill] sm:$0xff]  ;;  %v5800_v14 = vadd.f32 %v15345_v51, %v5505_v30  ;;  %v19906_v30 = vld [vmem:[#allocation115_spill] sm:$0xff] }
 0x483   :  { %4799 = vrot.lane.b32.xlu0 %v15861_v53, %s12015_s10  ;;  %v15876_v37 = vmax.f32 %v19902_v22, %v19901_v13  ;;  %v5503_v39 = vmax.f32 %v15480_v43, %v4884_v48 }
 0x484   :  { %v6251_v47 = vpack.c.bf16 %v6085_v26, %v6084_v44  ;;  %v5795_v50 = vadd.f32 %v15345_v51, %v5500_v24  ;;  %v6088_v26 = vmax.f32 %v5800_v14, 0.0  ;;  %v19909_v14 = vld [vmem:[#allocation23_spill] sm:$0xff] }
 0x485   :  { %v4890_v58 = vpop.permute.xlu0 %4889  ;;  %v5798_v43 = vadd.f32 %v15345_v51, %v5503_v39 }
 0x486   :  { %v6083_v12 = vmax.f32 %v5795_v50, 0.0  ;;  %v5506_v45 = vmax.f32 %v15492_v3, %v4890_v58  ;;  %6748 = vrot.lane.b32.xlu1 %v6251_v47, %s12015_s10  ;;  %v15872_v32 = vpop.permute.xlu1 %4895 }
 0x487   :  { %v6086_v58 = vmax.f32 %v5798_v43, 0.0  ;;  %v19912_v43 = vld [vmem:[#allocation21_spill] sm:$0xff] }
 0x488   :  { %v6250_v63 = vpack.c.bf16 %v6083_v12, %v6082_v21  ;;  %v5801_v57 = vadd.f32 %v15345_v51, %v5506_v45 }
 0x489   :  { %v4886_v4 = vpop.permute.xlu0 %4885 }
 0x48a   :  { %v5504_v23 = vmax.f32 %v15509_v27, %v4886_v4  ;;  %4797 = vrot.lane.b32.xlu1 %v15876_v37, %s12015_s10  ;;  %6746 = vrot.lane.b32.xlu0 %v6250_v63, %s12015_s10  ;;  %v15885_v3 = vpop.permute.xlu1 %4891  ;;  %v6089_v29 = vmax.f32 %v5801_v57, 0.0  ;;  %v19905_v27 = vld [vmem:[#allocation114_spill] sm:$0xff]  ;;  %v19907_v57 = vld [vmem:[#allocation111_spill] sm:$0xff] }
 0x48c   :  { %v5799_v44 = vadd.f32 %v15345_v51, %v5504_v23  ;;  %v6253_v48 = vpack.c.bf16 %v6089_v29, %v6088_v26  ;;  %v19911_v26 = vld [vmem:[#allocation83_spill] sm:$0xff] }
 0x48d   :  { %v15892_v6 = vpop.permute.xlu0 %4897 }
 0x48e   :  { %3185 = vrot.lane.b32.xlu1 %v19905_v27, %s12014_s11  ;;  %4795 = vrot.lane.b32.xlu0 %v15889_v61, %s12015_s10  ;;  %v4610_v24 = vpop.permute.xlu1 %4609  ;;  %v6087_v47 = vmax.f32 %v5799_v44, 0.0  ;;  %v19910_v44 = vld [vmem:[#allocation113_spill] sm:$0xff] }
 0x48f   :  { %v5366_v21 = vmax.f32 %v15532_v36, %v4610_v24  ;;  %v19908_v36 = vld [vmem:[#allocation84_spill] sm:$0xff]  ;;  %v15927_v24 = vmax.f32 %v19912_v43, %v19911_v26  ;;  %v19919_v26 = vld [vmem:[#allocation149_spill] sm:$0xff] }
 0x490   :  { %v6252_v45 = vpack.c.bf16 %v6087_v47, %v6086_v58  ;;  %v15916_v39 = vmax.f32 %v19909_v14, %v19908_v36  ;;  %v19914_v47 = vld [vmem:[#allocation153_spill] sm:$0xff]  ;;  %v19916_v36 = vld [vmem:[#allocation24_spill] sm:$0xff] }
 0x491   :  { %v15899_v50 = vpop.permute.xlu0 %4893  ;;  %v5661_v22 = vadd.f32 %v15345_v51, %v5366_v21 }
 0x492   :  { %3181 = vrot.lane.b32.xlu1 %v19906_v30, %s12014_s11  ;;  %6752 = vrot.lane.b32.xlu0 %v6253_v48, %s12015_s10  ;;  %v15905_v12 = vpop.permute.xlu1 %4853  ;;  %v19913_v48 = vld [vmem:[#allocation244_spill] sm:$0xff] }
 0x493   :  { %v5949_v0 = vmax.f32 %v5661_v22, 0.0  ;;  %v15931_v58 = vmax.f32 %v19914_v47, %v19913_v48  ;;  %v19920_v47 = vld [vmem:[#allocation85_spill] sm:$0xff] }
 0x495   :  { %v4608_v13 = vpop.permute.xlu0 %4607 }
 0x496   :  { %v5365_v63 = vmax.f32 %v15553_v7, %v4608_v13  ;;  %3183 = vrot.lane.b32.xlu0 %v19907_v57, %s12014_s11  ;;  %6750 = vrot.lane.b32.xlu1 %v6252_v45, %s12015_s10  ;;  %v15912_v4 = vpop.permute.xlu1 %4905 }
 0x498   :  { %v5660_v23 = vadd.f32 %v15345_v51, %v5365_v63  ;;  %v19915_v63 = vld [vmem:[#allocation88_spill] sm:$0xff] }
 0x499   :  { %v15919_v19 = vpop.permute.xlu0 %4851  ;;  %v15943_v14 = vmax.f32 %v19916_v36, %v19915_v63  ;;  %v19923_v36 = vld [vmem:[#allocation138_spill] sm:$0xff] }
 0x49a   :  { %v5948_v29 = vmax.f32 %v5660_v23, 0.0  ;;  %3179 = vrot.lane.b32.xlu0 %v19910_v44, %s12014_s11  ;;  %4481 = vrot.lane.b32.xlu1 %v15916_v39, %s12015_s10  ;;  %v4414_v7 = vpop.permute.xlu1 %4413  ;;  %v19918_v23 = vld [vmem:[#allocation246_spill] sm:$0xff]  ;;  %v19927_v44 = vld [vmem:[#allocation32_spill] sm:$0xff] }
 0x49b   :  { %v5268_v13 = vmax.f32 %v15571_v52, %v4414_v7  ;;  %19917 = vst [vmem:[#allocation265_spill] sm:$0xff] %v15943_v14 }
 0x49c   :  { %v6183_v21 = vpack.c.bf16 %v5949_v0, %v5948_v29  ;;  %v15947_v0 = vmax.f32 %v19919_v26, %v19918_v23  ;;  %v19924_v23 = vld [vmem:[#allocation34_spill] sm:$0xff] }
 0x49d   :  { %v15933_v45 = vpop.permute.xlu0 %4903  ;;  %v5563_v52 = vadd.f32 %v15345_v51, %v5268_v13  ;;  %v15964_v26 = vmax.f32 %v19924_v23, %v19923_v36  ;;  %v19928_v23 = vld [vmem:[#allocation250_spill] sm:$0xff] }
 0x49e   :  { %4479 = vrot.lane.b32.xlu0 %v15927_v24, %s12015_s10  ;;  %4673 = vrot.lane.b32.xlu1 %v15931_v58, %s12015_s10  ;;  %v4606_v22 = vpop.permute.xlu1 %4605  ;;  %6475 = vst.msk [vmem:[#allocation2 + $0x80] sm:$0xff] %vm6274_vm1, %v6183_v21  ;;  %v19921_v21 = vld [vmem:[#allocation22_spill] sm:$0xff] }
 0x49f   :  { %v5364_v7 = vmax.f32 %v15583_v56, %v4606_v22  ;;  %v15960_v63 = vmax.f32 %v19921_v21, %v19920_v47  ;;  %19925 = vst [vmem:[#allocation8_spill] sm:$0xff] %v15964_v26  ;;  %v19926_v21 = vld [vmem:[#allocation130_spill] sm:$0xff] }
 0x4a0   :  { %v15975_v36 = vmax.f32 %v19927_v44, %v19926_v21  ;;  %v19931_v21 = vld [vmem:[#allocation251_spill] sm:$0xff] }
 0x4a1   :  { %v4412_v29 = vpop.permute.xlu0 %4411  ;;  %19922 = vst [vmem:[#allocation40_spill] sm:$0xff] %v15960_v63  ;;  %v5659_v22 = vadd.f32 %v15345_v51, %v5364_v7 }
 0x4a2   :  { %v5267_v43 = vmax.f32 %v15591_v15, %v4412_v29  ;;  %4671 = vrot.lane.b32.xlu0 %v15947_v0, %s12015_s10  ;;  %4477 = vrot.lane.b32.xlu1 %v15943_v14, %s12015_s10  ;;  %v15956_v48 = vpop.permute.xlu1 %4901  ;;  %v5851_v15 = vmax.f32 %v5563_v52, 0.0 }
 0x4a4   :  { %v5562_v56 = vadd.f32 %v15345_v51, %v5267_v43  ;;  %v19929_v43 = vld [vmem:[#allocation154_spill] sm:$0xff] }
 0x4a5   :  { %v4604_v13 = vpop.permute.xlu0 %4603  ;;  %v15979_v14 = vmax.f32 %v19929_v43, %v19928_v23  ;;  %v19932_v23 = vld [vmem:[#allocation152_spill] sm:$0xff] }
 0x4a6   :  { %v5850_v29 = vmax.f32 %v5562_v56, 0.0  ;;  %v5363_v30 = vmax.f32 %v15604_v2, %v4604_v13  ;;  %4475 = vrot.lane.b32.xlu0 %v15960_v63, %s12015_s10  ;;  %4529 = vrot.lane.b32.xlu1 %v15964_v26, %s12015_s10  ;;  %v4928_v47 = vpop.permute.xlu1 %4927  ;;  %v5947_v2 = vmax.f32 %v5659_v22, 0.0  ;;  %v15992_v43 = vmax.f32 %v19932_v23, %v19931_v21  ;;  %v19936_v21 = vld [vmem:[#allocation141_spill] sm:$0xff]  ;;  %v19937_v23 = vld [vmem:[#allocation35_spill] sm:$0xff] }
 0x4a7   :  { %19930 = vst [vmem:[#allocation67_spill] sm:$0xff] %v15979_v14  ;;  %v5525_v63 = vmax.f32 %v15607_v1, %v4928_v47 }
 0x4a8   :  { %v5658_v52 = vadd.f32 %v15345_v51, %v5363_v30  ;;  %v6134_v7 = vpack.c.bf16 %v5851_v15, %v5850_v29  ;;  %v19933_v30 = vld [vmem:[#allocation55_spill] sm:$0xff]  ;;  %v19934_v15 = vld [vmem:[#allocation185_spill] sm:$0xff] }
 0x4a9   :  { %v15982_v56 = vpop.permute.xlu0 %4899  ;;  %v15996_v29 = vmax.f32 %v19934_v15, %v19933_v30  ;;  %v5820_v1 = vadd.f32 %v15345_v51, %v5525_v63  ;;  %v16008_v30 = vmax.f32 %v19937_v23, %v19936_v21  ;;  %v19941_v21 = vld [vmem:[#allocation139_spill] sm:$0xff]  ;;  %v19942_v23 = vld [vmem:[#allocation33_spill] sm:$0xff] }
 0x4aa   :  { %v5946_v13 = vmax.f32 %v5658_v52, 0.0  ;;  %4527 = vrot.lane.b32.xlu0 %v15975_v36, %s12015_s10  ;;  %4669 = vrot.lane.b32.xlu1 %v15979_v14, %s12015_s10  ;;  %v4924_v44 = vpop.permute.xlu1 %4923  ;;  %6279 = vst.msk [vmem:[#allocation2 + $0x60] sm:$0xff] %vm6274_vm1, %v6134_v7 }
 0x4ab   :  { %19935 = vst [vmem:[#allocation101_spill] sm:$0xff] %v15996_v29  ;;  %v5523_v47 = vmax.f32 %v15619_v59, %v4924_v44  ;;  %19938 = vst [vmem:[#allocation38_spill] sm:$0xff] %v16008_v30  ;;  %v6108_v44 = vmax.f32 %v5820_v1, 0.0 }
 0x4ac   :  { %v6182_v22 = vpack.c.bf16 %v5947_v2, %v5946_v13  ;;  %v19939_v2 = vld [vmem:[#allocation57_spill] sm:$0xff]  ;;  %v19940_v13 = vld [vmem:[#allocation183_spill] sm:$0xff] }
 0x4ad   :  { %v4930_v52 = vpop.permute.xlu0 %4929  ;;  %v16012_v63 = vmax.f32 %v19940_v13, %v19939_v2  ;;  %v5818_v15 = vadd.f32 %v15345_v51, %v5523_v47  ;;  %v16023_v2 = vmax.f32 %v19942_v23, %v19941_v21  ;;  %v19945_v21 = vld [vmem:[#allocation70_spill] sm:$0xff] }
 0x4ae   :  { %v5526_v26 = vmax.f32 %v15626_v16, %v4930_v52  ;;  %4667 = vrot.lane.b32.xlu0 %v15992_v43, %s12015_s10  ;;  %4721 = vrot.lane.b32.xlu1 %v15996_v29, %s12015_s10  ;;  %v4936_v7 = vpop.permute.xlu1 %4935  ;;  %6474 = vst.msk [vmem:[#allocation2 + $0x68] sm:$0xff] %vm6274_vm1, %v6182_v22 }
 0x4af   :  { %19943 = vst [vmem:[#allocation6_spill] sm:$0xff] %v16023_v2  ;;  %v6106_v1 = vmax.f32 %v5818_v15, 0.0  ;;  %v5529_v47 = vmax.f32 %v15629_v28, %v4936_v7 }
 0x4b0   :  { %v5821_v59 = vadd.f32 %v15345_v51, %v5526_v26  ;;  %v16028_v26 = vld [vmem:[%s18801_s2] ss:$0 sm:$0xff] }
 0x4b1   :  { %v4926_v16 = vpop.permute.xlu0 %4925  ;;  %v5824_v28 = vadd.f32 %v16028_v26, %v5529_v47 }
 0x4b2   :  { %v6109_v52 = vmax.f32 %v5821_v59, 0.0  ;;  %v5524_v29 = vmax.f32 %v15636_v42, %v4926_v16  ;;  %4719 = vrot.lane.b32.xlu0 %v16012_v63, %s12015_s10  ;;  %4525 = vrot.lane.b32.xlu1 %v16008_v30, %s12015_s10  ;;  %v4932_v22 = vpop.permute.xlu1 %4931 }
 0x4b3   :  { %v5527_v7 = vmax.f32 %v15639_v10, %v4932_v22 }
 0x4b4   :  { %v6263_v13 = vpack.c.bf16 %v6109_v52, %v6108_v44  ;;  %v5819_v51 = vadd.f32 %v16028_v26, %v5524_v29  ;;  %v19944_v52 = vld [vmem:[#allocation187_spill] sm:$0xff] }
 0x4b5   :  { %v4938_v42 = vpop.permute.xlu0 %4937  ;;  %v16040_v23 = vmax.f32 %v19945_v21, %v19944_v52  ;;  %v5822_v21 = vadd.f32 %v16028_v26, %v5527_v7  ;;  %v19957_v7 = vld [vmem:[#allocation199_spill] sm:$0xff] }
 0x4b6   :  { %v6107_v59 = vmax.f32 %v5819_v51, 0.0  ;;  %v5530_v16 = vmax.f32 %v15646_v54, %v4938_v42  ;;  %4523 = vrot.lane.b32.xlu0 %v16023_v2, %s12015_s10  ;;  %6808 = vrot.lane.b32.xlu1 %v6263_v13, %s12014_s11  ;;  %v16036_v44 = vpop.permute.xlu1 %4943  ;;  %v19947_v51 = vld [vmem:[#allocation182_spill] sm:$0xff]  ;;  %v19948_v42 = vld [vmem:[#allocation68_spill] sm:$0xff] }
 0x4b7   :  { %19946 = vst [vmem:[#allocation79_spill] sm:$0xff] %v16040_v23  ;;  %v16053_v52 = vmax.f32 %v19948_v42, %v19947_v51  ;;  %v19954_v51 = vld [vmem:[#allocation222_spill] sm:$0xff]  ;;  %v6110_v2 = vmax.f32 %v5822_v21, 0.0 }
 0x4b8   :  { %v6262_v30 = vpack.c.bf16 %v6107_v59, %v6106_v1  ;;  %v5825_v29 = vadd.f32 %v16028_v26, %v5530_v16  ;;  %v19950_v1 = vld [vmem:[#allocation166_spill] sm:$0xff] }
 0x4b9   :  { %v4934_v15 = vpop.permute.xlu0 %4933  ;;  %19949 = vst [vmem:[#allocation99_spill] sm:$0xff] %v16053_v52  ;;  %v19951_v59 = vld [vmem:[#allocation186_spill] sm:$0xff] }
 0x4ba   :  { %v5528_v54 = vmax.f32 %v15658_v9, %v4934_v15  ;;  %4577 = vrot.lane.b32.xlu1 %v16040_v23, %s12015_s10  ;;  %6806 = vrot.lane.b32.xlu0 %v6262_v30, %s12014_s11  ;;  %v16049_v13 = vpop.permute.xlu1 %4939  ;;  %v16057_v16 = vmax.f32 %v19951_v59, %v19950_v1  ;;  %v6113_v47 = vmax.f32 %v5825_v29, 0.0  ;;  %v6112_v9 = vmax.f32 %v5824_v28, 0.0  ;;  %v19953_v15 = vld [vmem:[#allocation287_spill] sm:$0xff]  ;;  %v19956_v29 = vld [vmem:[#allocation253_spill] sm:$0xff] }
 0x4bb   :  { %v16071_v42 = vmax.f32 %v19954_v51, %v19953_v15  ;;  %v5485_v23 = vmax.f32 %v19957_v7, %v15752_v40  ;;  %v19959_v51 = vld [vmem:[#allocation59_spill] sm:$0xff]  ;;  %v19962_v40 = vld [vmem:[#allocation197_spill] sm:$0xff] }
 0x4bc   :  { %19952 = vst [vmem:[#allocation272_spill] sm:$0xff] %v16057_v16  ;;  %v5823_v10 = vadd.f32 %v16028_v26, %v5528_v54  ;;  %v5486_v54 = vmax.f32 %v19956_v29, %v15766_v11  ;;  %v6265_v1 = vpack.c.bf16 %v6113_v47, %v6112_v9  ;;  %v19960_v11 = vld [vmem:[#allocation184_spill] sm:$0xff]  ;;  %v5483_v21 = vmax.f32 %v19962_v40, %v15771_v55  ;;  %v19964_v7 = vld [vmem:[#allocation69_spill] sm:$0xff] }
 0x4bd   :  { %v16060_v22 = vpop.permute.xlu0 %4945  ;;  %19955 = vst [vmem:[#allocation281_spill] sm:$0xff] %v16071_v42  ;;  %v16085_v47 = vmax.f32 %v19960_v11, %v19959_v51 }
 0x4be   :  { %4717 = vrot.lane.b32.xlu1 %v16057_v16, %s12015_s10  ;;  %4575 = vrot.lane.b32.xlu0 %v16053_v52, %s12015_s10  ;;  %v16067_v30 = vpop.permute.xlu1 %4953  ;;  %v6111_v59 = vmax.f32 %v5823_v10, 0.0  ;;  %v19958_v52 = vld [vmem:[#allocation256_spill] sm:$0xff]  ;;  %v5781_v10 = vadd.f32 %v16028_v26, %v5486_v54  ;;  %v5778_v11 = vadd.f32 %v16028_v26, %v5483_v21 }
 0x4bf   :  { %v5484_v15 = vmax.f32 %v19958_v52, %v15784_v46  ;;  %19961 = vst [vmem:[#allocation282_spill] sm:$0xff] %v16085_v47 }
 0x4c0   :  { %v6264_v9 = vpack.c.bf16 %v6111_v59, %v6110_v2  ;;  %v19966_v2 = vld [vmem:[#allocation286_spill] sm:$0xff]  ;;  %v19967_v59 = vld [vmem:[#allocation87_spill] sm:$0xff]  ;;  %v6069_v51 = vmax.f32 %v5781_v10, 0.0  ;;  %v19969_v10 = vld [vmem:[#allocation288_spill] sm:$0xff] }
 0x4c1   :  { %v4942_v28 = vpop.permute.xlu0 %4941  ;;  %v5779_v52 = vadd.f32 %v16028_v26, %v5484_v15  ;;  %v16105_v55 = vmax.f32 %v19967_v59, %v19966_v2  ;;  %v5509_v59 = vmax.f32 %v15496_v49, %v15872_v32  ;;  %v5534_v49 = vmax.f32 %v15672_v62, %v16060_v22  ;;  %v19975_v62 = vld [vmem:[#allocation290_spill] sm:$0xff] }
 0x4c2   :  { %4769 = vrot.lane.b32.xlu1 %v16071_v42, %s12015_s10  ;;  %6812 = vrot.lane.b32.xlu0 %v6265_v1, %s12014_s11  ;;  %v6689_v16 = vpop.permute.xlu1 %6688  ;;  %v5780_v1 = vadd.f32 %v16028_v26, %v5485_v23  ;;  %v5508_v23 = vmax.f32 %v15541_v41, %v15899_v50  ;;  %v5507_v42 = vmax.f32 %v15515_v38, %v15885_v3  ;;  %v19976_v22 = vld [vmem:[#allocation78_spill] sm:$0xff] }
 0x4c3   :  { %6723 = vst.msk [vmem:[#allocation2 + $0x28] sm:$0xff] %vm6335_vm2, %v6689_v16  ;;  %v19963_v16 = vld [vmem:[#allocation188_spill] sm:$0xff]  ;;  %19968 = vst [vmem:[#allocation283_spill] sm:$0xff] %v16105_v55  ;;  %v6067_v41 = vmax.f32 %v5779_v52, 0.0  ;;  %v5510_v38 = vmax.f32 %v15526_v33, %v15892_v6  ;;  %v5532_v21 = vmax.f32 %v15692_v35, %v4942_v28  ;;  %v5531_v52 = vmax.f32 %v15661_v17, %v16049_v13  ;;  %v19972_v6 = vld [vmem:[#allocation190_spill] sm:$0xff] }
 0x4c4   :  { %v16101_v54 = vmax.f32 %v19964_v7, %v19963_v16  ;;  %v19970_v16 = vld [vmem:[#allocation221_spill] sm:$0xff]  ;;  %v5803_v3 = vadd.f32 %v16028_v26, %v5508_v23  ;;  %v5804_v13 = vadd.f32 %v16028_v26, %v5509_v59 }
 0x4c5   :  { %v16090_v29 = vpop.permute.xlu0 %4951  ;;  %v16119_v7 = vmax.f32 %v19970_v16, %v19969_v10  ;;  %v5805_v23 = vadd.f32 %v16028_v26, %v5510_v38  ;;  %v5827_v32 = vadd.f32 %v16028_v26, %v5532_v21  ;;  %v16154_v16 = vmax.f32 %v19976_v22, %v19975_v62 }
 0x4c6   :  { %4715 = vrot.lane.b32.xlu0 %v16085_v47, %s12015_s10  ;;  %6810 = vrot.lane.b32.xlu1 %v6264_v9, %s12014_s11  ;;  %v16096_v46 = vpop.permute.xlu1 %4949  ;;  %19965 = vst [vmem:[#allocation284_spill] sm:$0xff] %v16101_v54  ;;  %v6068_v9 = vmax.f32 %v5780_v1, 0.0  ;;  %v6066_v1 = vmax.f32 %v5778_v11, 0.0  ;;  %v6091_v11 = vmax.f32 %v5803_v3, 0.0  ;;  %v6092_v3 = vmax.f32 %v5804_v13, 0.0 }
 0x4c7   :  { %19971 = vst [vmem:[#allocation294_spill] sm:$0xff] %v16119_v7  ;;  %19977 = vst [vmem:[#allocation292_spill] sm:$0xff] %v16154_v16 }
 0x4c8   :  { %v6243_v50 = vpack.c.bf16 %v6069_v51, %v6068_v9  ;;  %v19973_v51 = vld [vmem:[#allocation71_spill] sm:$0xff]  ;;  %v6242_v28 = vpack.c.bf16 %v6067_v41, %v6066_v1  ;;  %v5533_v9 = vmax.f32 %v15649_v8, %v16036_v44  ;;  %v6093_v41 = vmax.f32 %v5805_v23, 0.0 }
 0x4c9   :  { %v6687_v40 = vpop.permute.xlu0 %6686  ;;  %v16138_v35 = vmax.f32 %v19973_v51, %v19972_v6  ;;  %v5829_v8 = vadd.f32 %v16028_v26, %v5534_v49  ;;  %v6115_v44 = vmax.f32 %v5827_v32, 0.0 }
 0x4ca   :  { %6722 = vst.msk [vmem:[#allocation2 + $0x10] sm:$0xff] %vm6335_vm2, %v6687_v40  ;;  %4767 = vrot.lane.b32.xlu0 %v16105_v55, %s12015_s10  ;;  %4571 = vrot.lane.b32.xlu1 %v16101_v54, %s12015_s10  ;;  %v6505_v15 = vpop.permute.xlu1 %6504  ;;  %v5802_v40 = vadd.f32 %v16028_v26, %v5507_v42  ;;  %v5828_v21 = vadd.f32 %v16028_v26, %v5533_v9  ;;  %v19979_v9 = vld [vmem:[#allocation132_spill] sm:$0xff] }
 0x4cb   :  { %6535 = vst.msk [vmem:[#allocation2 + $0x80] sm:$0xff] %vm6335_vm2, %v6505_v15  ;;  %19974 = vst [vmem:[#allocation173_spill] sm:$0xff] %v16138_v35  ;;  %v5826_v15 = vadd.f32 %v16028_v26, %v5531_v52  ;;  %v6117_v52 = vmax.f32 %v5829_v8, 0.0  ;;  %v20071_v55 = vld [vmem:[#allocation300_spill] sm:$0xff] }
 0x4cc   :  { %v6090_v42 = vmax.f32 %v5802_v40, 0.0  ;;  %v6255_v40 = vpack.c.bf16 %v6093_v41, %v6092_v3  ;;  %v16189_v41 = vld [vmem:[#allocation2 + $0x50] sm:$0xff]  ;;  %v16199_v3 = vld [vmem:[#allocation2 + $0x38] sm:$0xff] }
 0x4cd   :  { %v16126_v2 = vpop.permute.xlu0 %4947  ;;  %v6114_v1 = vmax.f32 %v5826_v15, 0.0  ;;  %v19980_v15 = vld [vmem:[#allocation239_spill] sm:$0xff] }
 0x4ce   :  { %6696 = vrot.lane.b32.xlu0 %v6243_v50, %s12016_s29  ;;  %4763 = vrot.lane.b32.xlu1 %v16119_v7, %s12015_s10  ;;  %v6371_v33 = vpop.permute.xlu1 %6370  ;;  %v6254_v50 = vpack.c.bf16 %v6091_v11, %v6090_v42  ;;  %v11844_v11 = vld [vmem:[%s18800_s0 + $0x470] sm:$0xff]  }
 0x4cf   :  { %v6266_v6 = vpack.c.bf16 %v6115_v44, %v6114_v1  ;;  %11497 = vmatprep.mubr.msk.bf16.mxu0 %vm1049_vm0, %v11844_v11  ;;  %v19982_v1 = vld [vmem:[#allocation58_spill] sm:$0xff]  ;;  %v19990_v11 = vld [vmem:[#allocation268_spill] sm:$0xff] }
 0x4d1   :  { %v6693_v17 = vpop.permute.xlu0 %6692 }
 0x4d2   :  { %6725 = vst.msk [vmem:[#allocation2 + $0x58] sm:$0xff] %vm6335_vm2, %v6693_v17  ;;  %4573 = vrot.lane.b32.xlu0 %v16138_v35, %s12015_s10  ;;  %6694 = vrot.lane.b32.xlu1 %v6242_v28, %s12016_s29  ;;  %v6691_v10 = vpop.permute.xlu1 %6690  ;;  %v6116_v28 = vmax.f32 %v5828_v21, 0.0  ;;  %v19978_v17 = vld [vmem:[#allocation137_spill] sm:$0xff] }
 0x4d3   :  { %6724 = vst.msk [vmem:[#allocation2 + $0x40] sm:$0xff] %vm6335_vm2, %v6691_v10 }
 0x4d4   :  { %v6267_v49 = vpack.c.bf16 %v6117_v52, %v6116_v28 }
 0x4d5   :  { %v6310_v38 = vpop.permute.xlu0 %6309 }
 0x4d6   :  { %6341 = vst.msk [vmem:[#allocation2 + $0x78] sm:$0xff] %vm6335_vm2, %v6310_v38  ;;  %4765 = vrot.lane.b32.xlu0 %v16154_v16, %s12015_s10  ;;  %6754 = vrot.lane.b32.xlu1 %v6254_v50, %s12015_s10  ;;  %v6565_v59 = vpop.permute.xlu1 %6564  ;;  %v19981_v50 = vld [vmem:[#allocation136_spill] sm:$0xff] }
 0x4d7   :  { %6402 = vst.msk [vmem:[#allocation2 + $0x78] sm:$0xff] %vm6396_vm3, %v6371_v33  ;;  %6595 = vst.msk [vmem:[#allocation2 + $0x80] sm:$0xff] %vm6396_vm3, %v6565_v59  ;;  %v11845_v33 = vld [vmem:[%s18800_s0 + $0x478] sm:$0xff]   ;;  %v19983_v59 = vld [vmem:[#allocation270_spill] sm:$0xff] }
 0x4d8   :  { %11498 = vmatmul.mubr.msk.bf16.gmra.mrb[28].mxu0 %vm1049_vm0, %v11845_v33 }
 0x4d9   :  { %v6308_v51 = vpop.permute.xlu0 %6307 }
 0x4da   :  { %6340 = vst.msk [vmem:[#allocation2 + $0x60] sm:$0xff] %vm6335_vm2, %v6308_v51  ;;  %6756 = vrot.lane.b32.xlu0 %v6255_v40, %s12015_s10  ;;  %6814 = vrot.lane.b32.xlu1 %v6266_v6, %s12014_s11  ;;  %v6432_v23 = vpop.permute.xlu1 %6431  ;;  %v19986_v6 = vld [vmem:[#allocation45_spill] sm:$0xff]  ;;  %v19987_v51 = vld [vmem:[#allocation11_spill] sm:$0xff] }
 0x4db   :  { %6463 = vst.msk [vmem:[#allocation2 + $0x78] sm:$0xff] %vm6457_vm4, %v6432_v23  ;;  %v16217_v28 = vmax.f32 %v19987_v51, %v19986_v6  ;;  %v19989_v23 = vld [vmem:[#allocation168_spill] sm:$0xff] }
 0x4dc   :  { %v16221_v33 = vmax.f32 %v19990_v11, %v19989_v23  ;;  %v20005_v23 = vld [vmem:[#allocation167_spill] sm:$0xff]  ;;  %v20006_v11 = vld [vmem:[#allocation269_spill] sm:$0xff] }
 0x4dd   :  { %v6503_v32 = vpop.permute.xlu0 %6502  ;;  %19988 = vst [vmem:[#allocation131_spill] sm:$0xff] %v16217_v28 }
 0x4de   :  { %6534 = vst.msk [vmem:[#allocation2 + $0x68] sm:$0xff] %vm6335_vm2, %v6503_v32  ;;  %6816 = vrot.lane.b32.xlu0 %v6267_v49, %s12014_s11  ;;  %3377 = vrot.lane.b32.xlu1 %v19978_v17, %s12014_s11  ;;  %v6625_v13 = vpop.permute.xlu1 %6624  ;;  %19991 = vst [vmem:[#allocation304_spill] sm:$0xff] %v16221_v33 }
 0x4df   :  { %6655 = vst.msk [vmem:[#allocation2 + $0x80] sm:$0xff] %vm6457_vm4, %v6625_v13  ;;  %v19993_v13 = vld [vmem:[#allocation44_spill] sm:$0xff] }
 0x4e1   :  { %v6369_v42 = vpop.permute.xlu0 %6368 }
 0x4e2   :  { %6401 = vst.msk [vmem:[#allocation2 + $0x60] sm:$0xff] %vm6396_vm3, %v6369_v42  ;;  %3375 = vrot.lane.b32.xlu0 %v19979_v9, %s12014_s11  ;;  %3373 = vrot.lane.b32.xlu1 %v19980_v15, %s12014_s11  ;;  %v6881_v10 = vpop.permute.xlu1 %6880  ;;  %v19994_v42 = vld [vmem:[#allocation9_spill] sm:$0xff]  ;;  %v20032_v15 = vld [vmem:[#allocation276_spill] sm:$0xff] }
 0x4e3   :  { %v6882_v62 = vsel %vm6870_vm5, %v15817_v5, %v6881_v10  ;;  %v6986_v5 = vld [vmem:[#allocation2 + $0x48] sm:$0xff]  ;;  %v16233_v10 = vmax.f32 %v19994_v42, %v19993_v13  ;;  %v20009_v42 = vld [vmem:[#allocation275_spill] sm:$0xff] }
 0x4e4   :  { %7941 = vmatprep.mubr.bf16.mxu1 %v6882_v62  ;;  %v19996_v62 = vld [vmem:[#allocation226_spill] sm:$0xff]  ;;  %v20008_v13 = vld [vmem:[#allocation289_spill] sm:$0xff] }
 0x4e5   :  { %v6563_v22 = vpop.permute.xlu0 %6562  ;;  %19995 = vst [vmem:[#allocation230_spill] sm:$0xff] %v16233_v10 }
 0x4e6   :  { %6594 = vst.msk [vmem:[#allocation2 + $0x68] sm:$0xff] %vm6396_vm3, %v6563_v22  ;;  %3371 = vrot.lane.b32.xlu0 %v19981_v50, %s12014_s11  ;;  %6992 = vrot.lane.b32.xlu1 %v16189_v41, %s12015_s10  ;;  %v6869_v8 = vpop.permute.xlu1 %6868  ;;  %v19997_v22 = vld [vmem:[#allocation106_spill] sm:$0xff] }
 0x4e7   :  { %v6871_v44 = vsel %vm6870_vm5, %v15828_v34, %v6869_v8  ;;  %v16208_v34 = vmax.f32 %v19983_v59, %v19982_v1  ;;  %v16237_v8 = vmax.f32 %v19997_v22, %v19996_v62  ;;  %v20002_v1 = vld [vmem:[#allocation169_spill] sm:$0xff]  ;;  %v20003_v59 = vld [vmem:[#allocation140_spill] sm:$0xff]  ;;  %v16265_v62 = vmax.f32 %v20009_v42, %v20008_v13  ;;  %v20017_v13 = vld [vmem:[#allocation46_spill] sm:$0xff] }
 0x4e8   :  { %7942 = vmatmul.mubr.bf16.gmra.mrb[4].mxu1 %v6871_v44  ;;  %v20018_v42 = vld [vmem:[#allocation10_spill] sm:$0xff] }
 0x4e9   :  { %v6430_v38 = vpop.permute.xlu0 %6429  ;;  %7951 = vmatprep.mubr.bf16.mxu1 %v15824_v31  ;;  %19984 = vst [vmem:[#allocation134_spill] sm:$0xff] %v16208_v34  ;;  %v6975_v31 = vld [vmem:[#allocation2 + $0x30] sm:$0xff]  ;;  %19998 = vst [vmem:[#allocation157_spill] sm:$0xff] %v16237_v8 }
 0x4ea   :  { %6462 = vst.msk [vmem:[#allocation2 + $0x60] sm:$0xff] %vm6457_vm4, %v6430_v38  ;;  %6990 = vrot.lane.b32.xlu0 %v6986_v5, %s12015_s10  ;;  %6981 = vrot.lane.b32.xlu1 %v16199_v3, %s12015_s10  ;;  %v6623_v21 = vpop.permute.xlu1 %6622  ;;  %v20000_v5 = vld [vmem:[#allocation103_spill] sm:$0xff]  ;;  %20010 = vst [vmem:[#allocation301_spill] sm:$0xff] %v16265_v62 }
 0x4eb   :  { %6654 = vst.msk [vmem:[#allocation2 + $0x68] sm:$0xff] %vm6457_vm4, %v6623_v21 }
 0x4ed   :  { %v16210_v40 = vpop.permute.xlu0 %6930 }
 0x4ee   :  { %19985 = vst [vmem:[#allocation293_spill] sm:$0xff] %v16210_v40  ;;  %6979 = vrot.lane.b32.xlu0 %v6975_v31, %s12015_s10  ;;  %4865 = vrot.lane.b32.xlu1 %v16208_v34, %s12015_s10  ;;  %v4802_v52 = vpop.permute.xlu1 %4801  ;;  %v16251_v31 = vmax.f32 %v20003_v59, %v20002_v1  ;;  %v20014_v59 = vld [vmem:[#allocation257_spill] sm:$0xff]  ;;  %v20030_v40 = vld [vmem:[#allocation47_spill] sm:$0xff] }
 0x4ef   :  { %v5462_v32 = vmax.f32 %v15844_v20, %v4802_v52  ;;  %v19999_v20 = vld [vmem:[#allocation225_spill] sm:$0xff] }
 0x4f0   :  { %7952 = vmatmul.mubr.bf16.gmra.mrb[8].mxu1 %v15832_v18  ;;  %v16247_v21 = vmax.f32 %v20000_v5, %v19999_v20  ;;  %20004 = vst [vmem:[#allocation159_spill] sm:$0xff] %v16251_v31  ;;  %v20011_v20 = vld [vmem:[#allocation48_spill] sm:$0xff] }
 0x4f1   :  { %v16224_v49 = vpop.permute.xlu0 %6919  ;;  %v5757_v18 = vadd.f32 %v16028_v26, %v5462_v32  ;;  %v16261_v32 = vmax.f32 %v20006_v11, %v20005_v23  ;;  %v20012_v5 = vld [vmem:[#allocation12_spill] sm:$0xff] }
 0x4f2   :  { %19992 = vst [vmem:[#allocation172_spill] sm:$0xff] %v16224_v49  ;;  %4863 = vrot.lane.b32.xlu0 %v16221_v33, %s12015_s10  ;;  %4425 = vrot.lane.b32.xlu1 %v16217_v28, %s12015_s10  ;;  %20001 = vst [vmem:[#allocation231_spill] sm:$0xff] %v16247_v21  ;;  %v16276_v1 = vmax.f32 %v20012_v5, %v20011_v20  ;;  %v20029_v49 = vld [vmem:[#allocation299_spill] sm:$0xff]  ;;  %v20084_v28 = vld [vmem:[#allocation181_spill] sm:$0xff] }
 0x4f3   :  { %20007 = vst [vmem:[#allocation295_spill] sm:$0xff] %v16261_v32  ;;  %v20052_v33 = vld [vmem:[#allocation315_spill] sm:$0xff] }
 0x4f4   :  { %20013 = vst [vmem:[#allocation248_spill] sm:$0xff] %v16276_v1 }
 0x4f5   :  { %v4800_v44 = vpop.permute.xlu0 %4799 }
 0x4f6   :  { %v5461_v38 = vmax.f32 %v15861_v53, %v4800_v44  ;;  %4423 = vrot.lane.b32.xlu0 %v16233_v10, %s12015_s10  ;;  %4617 = vrot.lane.b32.xlu1 %v16237_v8, %s12015_s10  ;;  %v6045_v53 = vmax.f32 %v5757_v18, 0.0  ;;  %v20077_v10 = vld [vmem:[#allocation245_spill] sm:$0xff] }
 0x4f8   :  { %v5756_v52 = vadd.f32 %v16028_v26, %v5461_v38  ;;  %v6749_v6 = vpop.permute.xlu1 %6748 }
 0x4f9   :  { %6783 = vst.msk [vmem:[#allocation2 + $0x28] sm:$0xff] %vm6396_vm3, %v6749_v6 }
 0x4fa   :  { %v6044_v51 = vmax.f32 %v5756_v52, 0.0  ;;  %4615 = vrot.lane.b32.xlu0 %v16247_v21, %s12015_s10  ;;  %4861 = vrot.lane.b32.xlu1 %v16251_v31, %s12015_s10  ;;  %v20015_v52 = vld [vmem:[#allocation273_spill] sm:$0xff] }
 0x4fb   :  { %v16280_v6 = vmax.f32 %v20015_v52, %v20014_v59  ;;  %v20024_v52 = vld [vmem:[#allocation298_spill] sm:$0xff] }
 0x4fc   :  { %v6747_v22 = vpop.permute.xlu0 %6746  ;;  %v4798_v44 = vpop.permute.xlu1 %4797  ;;  %v6231_v38 = vpack.c.bf16 %v6045_v53, %v6044_v51 }
 0x4fd   :  { %6782 = vst.msk [vmem:[#allocation2 + $0x10] sm:$0xff] %vm6396_vm3, %v6747_v22  ;;  %v5460_v18 = vmax.f32 %v15876_v37, %v4798_v44  ;;  %20016 = vst [vmem:[#allocation305_spill] sm:$0xff] %v16280_v6  ;;  %v16293_v22 = vmax.f32 %v20018_v42, %v20017_v13  ;;  %v20020_v44 = vld [vmem:[#allocation229_spill] sm:$0xff]  ;;  %v20026_v42 = vld [vmem:[#allocation227_spill] sm:$0xff] }
 0x4fe   :  { %4859 = vrot.lane.b32.xlu0 %v16261_v32, %s12015_s10  ;;  %4913 = vrot.lane.b32.xlu1 %v16265_v62, %s12015_s10  ;;  %6667 = vst.msk [vmem:[#allocation2 + $0x88] sm:$0xff] %vm6274_vm1, %v6231_v38  ;;  %v20021_v38 = vld [vmem:[#allocation107_spill] sm:$0xff]  ;;  %v20041_v62 = vld [vmem:[#allocation30_spill] sm:$0xff] }
 0x4ff   :  { %v5755_v37 = vadd.f32 %v16028_v26, %v5460_v18  ;;  %20019 = vst [vmem:[#allocation249_spill] sm:$0xff] %v16293_v22  ;;  %v16297_v20 = vmax.f32 %v20021_v38, %v20020_v44  ;;  %v20027_v44 = vld [vmem:[#allocation105_spill] sm:$0xff] }
 0x500   :  { %v4796_v53 = vpop.permute.xlu0 %4795  ;;  %v16282_v51 = vpop.permute.xlu1 %3185  ;;  %v16310_v38 = vmax.f32 %v20027_v44, %v20026_v42  ;;  %v20037_v42 = vld [vmem:[#allocation112_spill] sm:$0xff] }
 0x501   :  { %v5459_v23 = vmax.f32 %v15889_v61, %v4796_v53  ;;  %20022 = vst [vmem:[#allocation243_spill] sm:$0xff] %v16297_v20  ;;  %v6043_v61 = vmax.f32 %v5755_v37, 0.0  ;;  %v20025_v53 = vld [vmem:[#allocation50_spill] sm:$0xff]  ;;  %v5394_v37 = vmax.f32 %v20030_v40, %v20029_v49  ;;  %v20039_v40 = vld [vmem:[#allocation165_spill] sm:$0xff] }
 0x502   :  { %4911 = vrot.lane.b32.xlu0 %v16280_v6, %s12015_s10  ;;  %4421 = vrot.lane.b32.xlu1 %v16276_v1, %s12015_s10  ;;  %20028 = vst [vmem:[#allocation102_spill] sm:$0xff] %v16310_v38 }
 0x503   :  { %v5754_v11 = vadd.f32 %v16028_v26, %v5459_v23  ;;  %v5393_v23 = vmax.f32 %v20025_v53, %v20024_v52  ;;  %v20034_v52 = vld [vmem:[#allocation200_spill] sm:$0xff]  ;;  %v20036_v53 = vld [vmem:[#allocation201_spill] sm:$0xff]  ;;  %v5689_v31 = vadd.f32 %v16028_v26, %v5394_v37  ;;  %v20050_v37 = vld [vmem:[#allocation202_spill] sm:$0xff] }
 0x504   :  { %v6753_v5 = vpop.permute.xlu0 %6752  ;;  %v16299_v18 = vpop.permute.xlu1 %3181  ;;  %v5298_v44 = vmax.f32 %v20037_v42, %v20036_v53  ;;  %v20045_v53 = vld [vmem:[#allocation5_spill] sm:$0xff]  ;;  %v20046_v42 = vld [vmem:[#allocation310_spill] sm:$0xff] }
 0x505   :  { %20023 = vst [vmem:[#allocation194_spill] sm:$0xff] %v16299_v18  ;;  %v6042_v59 = vmax.f32 %v5754_v11, 0.0  ;;  %6785 = vst.msk [vmem:[#allocation2 + $0x58] sm:$0xff] %vm6396_vm3, %v6753_v5  ;;  %v20031_v11 = vld [vmem:[#allocation205_spill] sm:$0xff]  ;;  %v16342_v9 = vmax.f32 %v20046_v42, %v20045_v53  ;;  %v20088_v18 = vld [vmem:[#allocation216_spill] sm:$0xff] }
 0x506   :  { %4419 = vrot.lane.b32.xlu0 %v16293_v22, %s12015_s10  ;;  %4613 = vrot.lane.b32.xlu1 %v16297_v20, %s12015_s10  ;;  %v16316_v5 = vmax.f32 %v20032_v15, %v20031_v11  ;;  %v20038_v15 = vld [vmem:[#allocation82_spill] sm:$0xff]  ;;  %v20040_v11 = vld [vmem:[#allocation81_spill] sm:$0xff]  ;;  %v20054_v20 = vld [vmem:[#allocation220_spill] sm:$0xff] }
 0x507   :  { %v6230_v13 = vpack.c.bf16 %v6043_v61, %v6042_v59  ;;  %v20035_v61 = vld [vmem:[#allocation110_spill] sm:$0xff]  ;;  %v5321_v49 = vmax.f32 %v20039_v40, %v20038_v15  ;;  %20047 = vst [vmem:[#allocation104_spill] sm:$0xff] %v16342_v9  ;;  %v20048_v40 = vld [vmem:[#allocation207_spill] sm:$0xff] }
 0x508   :  { %20033 = vst [vmem:[#allocation247_spill] sm:$0xff] %v16316_v5  ;;  %v16318_v50 = vpop.permute.xlu0 %3183  ;;  %v6751_v17 = vpop.permute.xlu1 %6750  ;;  %v5297_v59 = vmax.f32 %v20035_v61, %v20034_v52  ;;  %v20042_v52 = vld [vmem:[#allocation203_spill] sm:$0xff]  ;;  %v20043_v61 = vld [vmem:[#allocation274_spill] sm:$0xff] }
 0x509   :  { %6784 = vst.msk [vmem:[#allocation2 + $0x40] sm:$0xff] %vm6396_vm3, %v6751_v17  ;;  %v5322_v17 = vmax.f32 %v20041_v62, %v20040_v11  ;;  %v16338_v6 = vmax.f32 %v20043_v61, %v20042_v52  ;;  %v5593_v62 = vadd.f32 %v16028_v26, %v5298_v44  ;;  %v20051_v52 = vld [vmem:[#allocation116_spill] sm:$0xff]  ;;  %v5616_v53 = vadd.f32 %v16028_v26, %v5321_v49  ;;  %v20053_v44 = vld [vmem:[#allocation178_spill] sm:$0xff] }
 0x50a   :  { %6666 = vst.msk [vmem:[#allocation2 + $0x70] sm:$0xff] %vm6274_vm1, %v6230_v13  ;;  %4611 = vrot.lane.b32.xlu0 %v16310_v38, %s12015_s10  ;;  %4909 = vrot.lane.b32.xlu1 %v16316_v5, %s12015_s10  ;;  %v5688_v13 = vadd.f32 %v16028_v26, %v5393_v23  ;;  %v5592_v15 = vadd.f32 %v16028_v26, %v5297_v59  ;;  %v20049_v23 = vld [vmem:[#allocation118_spill] sm:$0xff]  ;;  %v5977_v59 = vmax.f32 %v5689_v31, 0.0 }
 0x50b   :  { %20044 = vst [vmem:[#allocation195_spill] sm:$0xff] %v16338_v6  ;;  %v5296_v11 = vmax.f32 %v20049_v23, %v20048_v40  ;;  %v5295_v61 = vmax.f32 %v20051_v52, %v20050_v37  ;;  %v5617_v42 = vadd.f32 %v16028_v26, %v5322_v17  ;;  %v5417_v38 = vmax.f32 %v20053_v44, %v20052_v33  ;;  %v20055_v40 = vld [vmem:[#allocation307_spill] sm:$0xff]  ;;  %v20058_v22 = vld [vmem:[#allocation214_spill] sm:$0xff] }
 0x50c   :  { %v16344_v32 = vpop.permute.xlu0 %3179  ;;  %v16346_v5 = vpop.permute.xlu1 %4481  ;;  %v5976_v34 = vmax.f32 %v5688_v13, 0.0  ;;  %v16364_v23 = vmax.f32 %v20055_v40, %v20054_v20  ;;  %v5880_v49 = vmax.f32 %v5592_v15, 0.0  ;;  %v5881_v52 = vmax.f32 %v5593_v62, 0.0  ;;  %v20060_v31 = vld [vmem:[#allocation314_spill] sm:$0xff]  ;;  %v20061_v13 = vld [vmem:[#allocation180_spill] sm:$0xff]  ;;  %v20065_v15 = vld [vmem:[#allocation51_spill] sm:$0xff] }
 0x50d   :  { %v5591_v17 = vadd.f32 %v16028_v26, %v5296_v11  ;;  %v5418_v7 = vmax.f32 %v20061_v13, %v20060_v31  ;;  %v5590_v33 = vadd.f32 %v16028_v26, %v5295_v61  ;;  %v20063_v20 = vld [vmem:[#allocation72_spill] sm:$0xff]  ;;  %v20064_v40 = vld [vmem:[#allocation302_spill] sm:$0xff]  ;;  %v5905_v16 = vmax.f32 %v5617_v42, 0.0  ;;  %v20067_v13 = vld [vmem:[#allocation309_spill] sm:$0xff] }
 0x50e   :  { %4907 = vrot.lane.b32.xlu0 %v16338_v6, %s12015_s10  ;;  %4961 = vrot.lane.b32.xlu1 %v16342_v9, %s12015_s10  ;;  %20056 = vst [vmem:[#allocation312_spill] sm:$0xff] %v16364_v23  ;;  %v20057_v6 = vld [vmem:[#allocation100_spill] sm:$0xff]  ;;  %v5392_v62 = vmax.f32 %v20065_v15, %v20064_v40  ;;  %v6197_v11 = vpack.c.bf16 %v5977_v59, %v5976_v34  ;;  %v20066_v31 = vld [vmem:[#allocation74_spill] sm:$0xff]  ;;  %v20074_v42 = vld [vmem:[#allocation31_spill] sm:$0xff] }
 0x50f   :  { %v16368_v1 = vmax.f32 %v20058_v22, %v20057_v6  ;;  %v5904_v6 = vmax.f32 %v5616_v53, 0.0  ;;  %v20062_v22 = vld [vmem:[#allocation263_spill] sm:$0xff]  ;;  %v5712_v54 = vadd.f32 %v16028_v26, %v5417_v38  ;;  %v16389_v21 = vmax.f32 %v20067_v13, %v20066_v31  ;;  %v20069_v61 = vld [vmem:[#allocation260_spill] sm:$0xff]  ;;  %v20070_v53 = vld [vmem:[#allocation66_spill] sm:$0xff] }
 0x510   :  { %v16370_v9 = vpop.permute.xlu0 %4479  ;;  %v16372_v37 = vpop.permute.xlu1 %4673  ;;  %v5346_v44 = vmax.f32 %v20063_v20, %v20062_v22  ;;  %v5345_v35 = vmax.f32 %v20070_v53, %v20069_v61  ;;  %v20072_v22 = vld [vmem:[#allocation143_spill] sm:$0xff]  ;;  %v5879_v8 = vmax.f32 %v5591_v17, 0.0  ;;  %v20073_v40 = vld [vmem:[#allocation238_spill] sm:$0xff]  ;;  %v5713_v38 = vadd.f32 %v16028_v26, %v5418_v7  ;;  %v20076_v17 = vld [vmem:[#allocation124_spill] sm:$0xff] }
 0x511   :  { %20059 = vst [vmem:[#allocation176_spill] sm:$0xff] %v16368_v1  ;;  %20068 = vst [vmem:[#allocation196_spill] sm:$0xff] %v16389_v21  ;;  %v5391_v20 = vmax.f32 %v20072_v22, %v20071_v55  ;;  %v5320_v34 = vmax.f32 %v20074_v42, %v20073_v40  ;;  %v6149_v59 = vpack.c.bf16 %v5881_v52, %v5880_v49  ;;  %v5878_v15 = vmax.f32 %v5590_v33, 0.0  ;;  %v20075_v55 = vld [vmem:[#allocation241_spill] sm:$0xff]  ;;  %v20078_v40 = vld [vmem:[#allocation122_spill] sm:$0xff] }
 0x512   :  { %4959 = vrot.lane.b32.xlu0 %v16364_v23, %s12015_s10  ;;  %4957 = vrot.lane.b32.xlu1 %v16368_v1, %s12015_s10  ;;  %v5641_v31 = vadd.f32 %v16028_v26, %v5346_v44  ;;  %v5687_v13 = vadd.f32 %v16028_v26, %v5392_v62  ;;  %v6161_v61 = vpack.c.bf16 %v5905_v16, %v5904_v6  ;;  %v6000_v53 = vmax.f32 %v5712_v54, 0.0  ;;  %v20081_v62 = vld [vmem:[#allocation316_spill] sm:$0xff] }
 0x513   :  { %v5441_v22 = vmax.f32 %v20076_v17, %v20075_v55  ;;  %v5442_v42 = vmax.f32 %v20078_v40, %v20077_v10  ;;  %v5640_v52 = vadd.f32 %v16028_v26, %v5345_v35  ;;  %v5686_v33 = vadd.f32 %v16028_v26, %v5391_v20  ;;  %v20082_v55 = vld [vmem:[#allocation179_spill] sm:$0xff]  ;;  %v20083_v40 = vld [vmem:[#allocation317_spill] sm:$0xff]  ;;  %v20085_v20 = vld [vmem:[#allocation318_spill] sm:$0xff] }
 0x514   :  { %v16391_v23 = vpop.permute.xlu0 %4671  ;;  %v16393_v1 = vpop.permute.xlu1 %4477  ;;  %v6148_v44 = vpack.c.bf16 %v5879_v8, %v5878_v15  ;;  %v5615_v54 = vadd.f32 %v16028_v26, %v5320_v34  ;;  %v6001_v16 = vmax.f32 %v5713_v38, 0.0  ;;  %v5929_v10 = vmax.f32 %v5641_v31, 0.0  ;;  %v20086_v34 = vld [vmem:[#allocation125_spill] sm:$0xff] }
 0x515   :  { %v5975_v6 = vmax.f32 %v5687_v13, 0.0  ;;  %v5415_v17 = vmax.f32 %v20082_v55, %v20081_v62  ;;  %v5736_v35 = vadd.f32 %v16028_v26, %v5441_v22  ;;  %v5737_v8 = vadd.f32 %v16028_v26, %v5442_v42  ;;  %v20087_v55 = vld [vmem:[#allocation242_spill] sm:$0xff]  ;;  %v20090_v22 = vld [vmem:[#allocation219_spill] sm:$0xff] }
 0x516   :  { %4955 = vrot.lane.b32.xlu0 %v16389_v21, %s12015_s10  ;;  %6508 = vrot.lane.b32.xlu1 %v6197_v11, %s12016_s29  ;;  %v20079_v21 = vld [vmem:[#allocation237_spill] sm:$0xff]  ;;  %v5440_v38 = vmax.f32 %v20086_v34, %v20085_v20  ;;  %v5928_v13 = vmax.f32 %v5640_v52, 0.0  ;;  %v5903_v62 = vmax.f32 %v5615_v54, 0.0 }
 0x517   :  { %v20080_v11 = vld [vmem:[#allocation29_spill] sm:$0xff]  ;;  %v5710_v20 = vadd.f32 %v16028_v26, %v5415_v17  ;;  %v6025_v52 = vmax.f32 %v5737_v8, 0.0 }
 0x518   :  { %v16411_v7 = vpop.permute.xlu0 %4475  ;;  %v16413_v47 = vpop.permute.xlu1 %4529  ;;  %v5319_v49 = vmax.f32 %v20080_v11, %v20079_v21  ;;  %v5416_v21 = vmax.f32 %v20084_v28, %v20083_v40  ;;  %v6209_v11 = vpack.c.bf16 %v6001_v16, %v6000_v53  ;;  %v5439_v28 = vmax.f32 %v20088_v18, %v20087_v55  ;;  %v20089_v53 = vld [vmem:[#allocation262_spill] sm:$0xff]  ;;  %v20091_v55 = vld [vmem:[#allocation261_spill] sm:$0xff] }
 0x519   :  { %v5344_v42 = vmax.f32 %v20090_v22, %v20089_v53  ;;  %v6173_v16 = vpack.c.bf16 %v5929_v10, %v5928_v13  ;;  %v5998_v17 = vmax.f32 %v5710_v20, 0.0 }
 0x51a   :  { %6313 = vrot.lane.b32.xlu0 %v6149_v59, %s12016_s29  ;;  %6374 = vrot.lane.b32.xlu1 %v6161_v61, %s12015_s10  ;;  %v5614_v31 = vadd.f32 %v16028_v26, %v5319_v49  ;;  %v5974_v61 = vmax.f32 %v5686_v33, 0.0  ;;  %v5711_v34 = vadd.f32 %v16028_v26, %v5416_v21  ;;  %v6024_v49 = vmax.f32 %v5736_v35, 0.0 }
 0x51b   :  { %v5735_v33 = vadd.f32 %v16028_v26, %v5440_v38  ;;  %v5734_v53 = vadd.f32 %v16028_v26, %v5439_v28 }
 0x51c   :  { %v16430_v15 = vpop.permute.xlu0 %4527  ;;  %v16432_v59 = vpop.permute.xlu1 %4669  ;;  %v6196_v40 = vpack.c.bf16 %v5975_v6, %v5974_v61  ;;  %v5639_v6 = vadd.f32 %v16028_v26, %v5344_v42  ;;  %v5999_v21 = vmax.f32 %v5711_v34, 0.0  ;;  %v6221_v35 = vpack.c.bf16 %v6025_v52, %v6024_v49  ;;  %v20094_v34 = vld [vmem:[#allocation91_spill] sm:$0xff] }
 0x51d   :  { %v6023_v8 = vmax.f32 %v5735_v33, 0.0  ;;  %v6022_v61 = vmax.f32 %v5734_v53, 0.0 }
 0x51e   :  { %6311 = vrot.lane.b32.xlu0 %v6148_v44, %s12016_s29  ;;  %6568 = vrot.lane.b32.xlu1 %v6209_v11, %s12015_s10  ;;  %v5902_v44 = vmax.f32 %v5614_v31, 0.0  ;;  %v20092_v11 = vld [vmem:[#allocation215_spill] sm:$0xff]  ;;  %v5927_v28 = vmax.f32 %v5639_v6, 0.0  ;;  %v6208_v22 = vpack.c.bf16 %v5999_v21, %v5998_v17 }
 0x51f   :  { %v5343_v14 = vmax.f32 %v20092_v11, %v20091_v55 }
 0x520   :  { %v16444_v54 = vpop.permute.xlu0 %4667  ;;  %v16446_v18 = vpop.permute.xlu1 %4721  ;;  %v6160_v10 = vpack.c.bf16 %v5903_v62, %v5902_v44  ;;  %v6220_v62 = vpack.c.bf16 %v6023_v8, %v6022_v61  ;;  %v20095_v44 = vld [vmem:[#allocation89_spill] sm:$0xff]  ;;  %v20098_v8 = vld [vmem:[#allocation291_spill] sm:$0xff] }
 0x521   :  { %v5638_v31 = vadd.f32 %v16028_v26, %v5343_v14  ;;  %v20093_v14 = vld [vmem:[#allocation126_spill] sm:$0xff]  ;;  %v16478_v55 = vmax.f32 %v20095_v44, %v15787_v60 }
 0x522   :  { %6506 = vrot.lane.b32.xlu0 %v6196_v40, %s12016_s29  ;;  %6435 = vrot.lane.b32.xlu1 %v6173_v16, %s12014_s11  ;;  %v16468_v49 = vmax.f32 %v20094_v34, %v20093_v14  ;;  %v20103_v34 = vld [vmem:[#allocation266_spill] sm:$0xff] }
 0x523   :  { %v5926_v40 = vmax.f32 %v5638_v31, 0.0 }
 0x524   :  { %v16454_v38 = vpop.permute.xlu0 %4719  ;;  %v16456_v13 = vpop.permute.xlu1 %4525 }
 0x525   :  { %v6172_v20 = vpack.c.bf16 %v5927_v28, %v5926_v40  ;;  %v20100_v28 = vld [vmem:[#allocation128_spill] sm:$0xff] }
 0x526   :  { %6372 = vrot.lane.b32.xlu0 %v6160_v10, %s12015_s10  ;;  %6628 = vrot.lane.b32.xlu1 %v6221_v35, %s12014_s11  ;;  %v20096_v10 = vld [vmem:[#allocation255_spill] sm:$0xff]  ;;  %v20097_v35 = vld [vmem:[#allocation97_spill] sm:$0xff] }
 0x527   :  { %v5489_v6 = vmax.f32 %v20096_v10, %v15837_v25  ;;  %v5490_v60 = vmax.f32 %v20098_v8, %v20097_v35  ;;  %v20099_v25 = vld [vmem:[#allocation204_spill] sm:$0xff]  ;;  %v20107_v35 = vld [vmem:[#allocation86_spill] sm:$0xff] }
 0x528   :  { %v16461_v16 = vpop.permute.xlu0 %4523  ;;  %v6809_v42 = vpop.permute.xlu1 %6808  ;;  %v5487_v61 = vmax.f32 %v20099_v25, %v15919_v19  ;;  %v20105_v19 = vld [vmem:[#allocation206_spill] sm:$0xff] }
 0x529   :  { %6843 = vst.msk [vmem:[#allocation2 + $0x28] sm:$0xff] %vm6457_vm4, %v6809_v42  ;;  %v20102_v42 = vld [vmem:[#allocation37_spill] sm:$0xff]  ;;  %v5514_v10 = vmax.f32 %v20105_v19, %v15912_v4  ;;  %v20109_v4 = vld [vmem:[#allocation264_spill] sm:$0xff]  ;;  %v20111_v19 = vld [vmem:[#allocation7_spill] sm:$0xff] }
 0x52a   :  { %6566 = vrot.lane.b32.xlu0 %v6208_v22, %s12015_s10  ;;  %6626 = vrot.lane.b32.xlu1 %v6220_v62, %s12014_s11  ;;  %v20101_v22 = vld [vmem:[#allocation90_spill] sm:$0xff]  ;;  %v5513_v40 = vmax.f32 %v20102_v42, %v15933_v45 }
 0x52b   :  { %v16506_v62 = vmax.f32 %v20101_v22, %v20100_v28  ;;  %v5537_v28 = vmax.f32 %v20109_v4, %v16090_v29 }
 0x52c   :  { %v6807_v52 = vpop.permute.xlu0 %6806  ;;  %v16470_v33 = vpop.permute.xlu1 %4577 }
 0x52d   :  { %6842 = vst.msk [vmem:[#allocation2 + $0x10] sm:$0xff] %vm6457_vm4, %v6807_v52  ;;  %v5488_v52 = vmax.f32 %v20103_v34, %v15905_v12  ;;  %v5808_v12 = vadd.f32 %v16028_v26, %v5513_v40  ;;  %v5809_v34 = vadd.f32 %v16028_v26, %v5514_v10  ;;  %v5512_v40 = vmax.f32 %v20111_v19, %v15956_v48  ;;  %v20113_v10 = vld [vmem:[#allocation267_spill] sm:$0xff] }
 0x52e   :  { %6433 = vrot.lane.b32.xlu0 %v6172_v20, %s12014_s11  ;;  %4809 = vrot.lane.b32.xlu1 %v16468_v49, %s12015_s10  ;;  %v5535_v4 = vmax.f32 %v20113_v10, %v16126_v2 }
 0x530   :  { %v16480_v11 = vpop.permute.xlu0 %4575  ;;  %v16482_v53 = vpop.permute.xlu1 %4717  ;;  %v16495_v31 = vld [vmem:[#allocation2 + $0x28] sm:$0xff] }
 0x532   :  { %7042 = vrot.lane.b32.xlu0 %v16189_v41, %s12015_s10  ;;  %4805 = vrot.lane.b32.xlu1 %v16478_v55, %s12015_s10  ;;  %v5784_v41 = vadd.f32 %v16028_v26, %v5489_v6  ;;  %v5782_v6 = vadd.f32 %v16028_v26, %v5487_v61  ;;  %v5783_v61 = vadd.f32 %v16028_v26, %v5488_v52 }
 0x533   :  { %v5832_v52 = vadd.f32 %v16028_v26, %v5537_v28 }
 0x534   :  { %v6813_v17 = vpop.permute.xlu0 %6812  ;;  %v16490_v21 = vpop.permute.xlu1 %4769  ;;  %v16516_v44 = vld [vmem:[#allocation2 + $0x10] sm:$0xff]  ;;  %v6072_v45 = vmax.f32 %v5784_v41, 0.0 }
 0x535   :  { %6845 = vst.msk [vmem:[#allocation2 + $0x58] sm:$0xff] %vm6457_vm4, %v6813_v17  ;;  %20104 = vst [vmem:[#allocation108_spill] sm:$0xff] %v16516_v44  ;;  %v20106_v17 = vld [vmem:[#allocation129_spill] sm:$0xff]  ;;  %v6120_v10 = vmax.f32 %v5832_v52, 0.0 }
 0x536   :  { %7031 = vrot.lane.b32.xlu0 %v16199_v3, %s12015_s10  ;;  %6932 = vrot.lane.b32.xlu1 %v16495_v31, %s12015_s10  ;;  %v5785_v3 = vadd.f32 %v16028_v26, %v5490_v60  ;;  %v16527_v8 = vmax.f32 %v20107_v35, %v20106_v17  ;;  %v20108_v60 = vld [vmem:[#allocation306_spill] sm:$0xff]  ;;  %v20112_v17 = vld [vmem:[#allocation308_spill] sm:$0xff]  ;;  %v6070_v35 = vmax.f32 %v5782_v6, 0.0 }
 0x537   :  { %v5511_v25 = vmax.f32 %v20108_v60, %v15982_v56  ;;  %v5538_v56 = vmax.f32 %v20112_v17, %v16067_v30  ;;  %v6096_v60 = vmax.f32 %v5808_v12, 0.0  ;;  %v6071_v17 = vmax.f32 %v5783_v61, 0.0  ;;  %v20115_v12 = vld [vmem:[#allocation36_spill] sm:$0xff] }
 0x538   :  { %v16510_v20 = vpop.permute.xlu0 %4715  ;;  %v6811_v14 = vpop.permute.xlu1 %6810  ;;  %v6073_v41 = vmax.f32 %v5785_v3, 0.0  ;;  %v5830_v61 = vadd.f32 %v16028_v26, %v5535_v4 }
 0x539   :  { %6844 = vst.msk [vmem:[#allocation2 + $0x40] sm:$0xff] %vm6457_vm4, %v6811_v14  ;;  %v5806_v3 = vadd.f32 %v16028_v26, %v5511_v25  ;;  %v5833_v6 = vadd.f32 %v16028_v26, %v5538_v56  ;;  %v5536_v25 = vmax.f32 %v20115_v12, %v16096_v46  ;;  %v6244_v2 = vpack.c.bf16 %v6071_v17, %v6070_v35 }
 0x53a   :  { %4807 = vrot.lane.b32.xlu0 %v16506_v62, %s12015_s10  ;;  %6921 = vrot.lane.b32.xlu1 %v16516_v44, %s12015_s10  ;;  %v6245_v29 = vpack.c.bf16 %v6073_v41, %v6072_v45  ;;  %v6097_v44 = vmax.f32 %v5809_v34, 0.0  ;;  %v5807_v45 = vadd.f32 %v16028_v26, %v5512_v40 }
 0x53b   :  { %v6094_v41 = vmax.f32 %v5806_v3, 0.0  ;;  %v6121_v56 = vmax.f32 %v5833_v6, 0.0  ;;  %v5831_v46 = vadd.f32 %v16028_v26, %v5536_v25  ;;  %v16580_v6 = vld [vmem:[#allocation2 + $0x78] sm:$0xff] }
 0x53c   :  { %v16534_v22 = vpop.permute.xlu0 %4767  ;;  %v16536_v42 = vpop.permute.xlu1 %4571  ;;  %v16538_v14 = vld [vmem:[#allocation2 + $0x58] sm:$0xff]  ;;  %v6257_v28 = vpack.c.bf16 %v6097_v44, %v6096_v60  ;;  %v6095_v40 = vmax.f32 %v5807_v45, 0.0  ;;  %v6118_v44 = vmax.f32 %v5830_v61, 0.0  ;;  %20116 = vst [vmem:[#allocation127_spill] sm:$0xff] %v16580_v6 }
 0x53d   :  { %20110 = vst [vmem:[#allocation198_spill] sm:$0xff] %v16538_v14  ;;  %v6269_v35 = vpack.c.bf16 %v6121_v56, %v6120_v10  ;;  %v6119_v52 = vmax.f32 %v5831_v46, 0.0  ;;  %v20119_v10 = vld [vmem:[#allocation13_spill] sm:$0xff] }
 0x53e   :  { %4803 = vrot.lane.b32.xlu0 %v16527_v8, %s12015_s10  ;;  %7044 = vrot.lane.b32.xlu1 %v16538_v14, %s12015_s10  ;;  %v16604_v56 = vld [vmem:[#allocation2 + $0x68] sm:$0xff] }
 0x53f   :  { %v6268_v4 = vpack.c.bf16 %v6119_v52, %v6118_v44  ;;  %v20120_v46 = vld [vmem:[#allocation53_spill] sm:$0xff]  ;;  %v16616_v44 = vmax.f32 %v19907_v57, %v16318_v50  ;;  %v20122_v57 = vld [vmem:[#allocation54_spill] sm:$0xff] }
 0x540   :  { %v6697_v48 = vpop.permute.xlu0 %6696  ;;  %v16554_v19 = vpop.permute.xlu1 %4763  ;;  %v16556_v30 = vld [vmem:[#allocation2 + $0x40] sm:$0xff]  ;;  %v20123_v50 = vld [vmem:[#allocation14_spill] sm:$0xff] }
 0x541   :  { %20114 = vst [vmem:[#allocation109_spill] sm:$0xff] %v16556_v30  ;;  %6727 = vst.msk [vmem:[#allocation2 + $0x88] sm:$0xff] %vm6335_vm2, %v6697_v48 }
 0x542   :  { %6700 = vrot.lane.b32.xlu0 %v6245_v29, %s12016_s29  ;;  %7033 = vrot.lane.b32.xlu1 %v16556_v30, %s12015_s10  ;;  %v6256_v29 = vpack.c.bf16 %v6095_v40, %v6094_v41  ;;  %v20118_v41 = vld [vmem:[#allocation52_spill] sm:$0xff] }
 0x543   :  { %v16598_v61 = vmax.f32 %v20119_v10, %v20118_v41 }
 0x544   :  { %v16567_v48 = vpop.permute.xlu0 %4573  ;;  %v6695_v34 = vpop.permute.xlu1 %6694 }
 0x545   :  { %6726 = vst.msk [vmem:[#allocation2 + $0x70] sm:$0xff] %vm6335_vm2, %v6695_v34 }
 0x546   :  { %6760 = vrot.lane.b32.xlu0 %v6257_v28, %s12015_s10  ;;  %6698 = vrot.lane.b32.xlu1 %v6244_v2, %s12016_s29  ;;  %v16588_v2 = vld [vmem:[#allocation2 + $0x60] sm:$0xff] }
 0x547   :  { %20117 = vst [vmem:[#allocation174_spill] sm:$0xff] %v16588_v2  ;;  %v16590_v28 = vld [vmem:[#allocation2 + $0x80] sm:$0xff] }
 0x548   :  { %v16573_v60 = vpop.permute.xlu0 %4765  ;;  %v6755_v3 = vpop.permute.xlu1 %6754 }
 0x549   :  { %6786 = vst.msk [vmem:[#allocation2 + $0x70] sm:$0xff] %vm6396_vm3, %v6755_v3  ;;  %v5301_v3 = vmax.f32 %v15927_v24, %v16370_v9  ;;  %v16638_v24 = vmax.f32 %v19905_v27, %v16282_v51  ;;  %v5325_v51 = vmax.f32 %v15975_v36, %v16430_v15 }
 0x54a   :  { %6820 = vrot.lane.b32.xlu0 %v6269_v35, %s12014_s11  ;;  %6758 = vrot.lane.b32.xlu1 %v6256_v29, %s12015_s10  ;;  %v20121_v29 = vld [vmem:[#allocation15_spill] sm:$0xff] }
 0x54b   :  { %v16612_v35 = vmax.f32 %v20121_v29, %v20120_v46  ;;  %v5596_v9 = vadd.f32 %v16028_v26, %v5301_v3  ;;  %v20125_v46 = vld [vmem:[#allocation265_spill] sm:$0xff] }
 0x54c   :  { %v6757_v17 = vpop.permute.xlu0 %6756  ;;  %v6815_v45 = vpop.permute.xlu1 %6814  ;;  %v5300_v29 = vmax.f32 %v20125_v46, %v16393_v1  ;;  %v20129_v1 = vld [vmem:[#allocation113_spill] sm:$0xff] }
 0x54d   :  { %6787 = vst.msk [vmem:[#allocation2 + $0x88] sm:$0xff] %vm6396_vm3, %v6757_v17  ;;  %v5302_v17 = vmax.f32 %v15916_v39, %v16346_v5  ;;  %v5398_v39 = vmax.f32 %v15931_v58, %v16372_v37  ;;  %v5395_v58 = vmax.f32 %v15992_v43, %v16444_v54  ;;  %v20126_v37 = vld [vmem:[#allocation56_spill] sm:$0xff]  ;;  %v5421_v43 = vmax.f32 %v16012_v63, %v16454_v38 }
 0x54e   :  { %6846 = vst.msk [vmem:[#allocation2 + $0x70] sm:$0xff] %vm6457_vm4, %v6815_v45  ;;  %7102 = vrot.lane.b32.xlu0 %v16580_v6, %s12015_s10  ;;  %6818 = vrot.lane.b32.xlu1 %v6268_v4, %s12014_s11  ;;  %v5397_v45 = vmax.f32 %v15947_v0, %v16391_v23  ;;  %v20124_v0 = vld [vmem:[#allocation40_spill] sm:$0xff]  ;;  %v5884_v15 = vmax.f32 %v5596_v9, 0.0  ;;  %v5620_v63 = vadd.f32 %v16028_v26, %v5325_v51  ;;  %v20133_v9 = vld [vmem:[#allocation38_spill] sm:$0xff] }
 0x54f   :  { %v5299_v5 = vmax.f32 %v20124_v0, %v16411_v7  ;;  %v5597_v10 = vadd.f32 %v16028_v26, %v5302_v17  ;;  %v20127_v7 = vld [vmem:[#allocation16_spill] sm:$0xff]  ;;  %v16667_v17 = vmax.f32 %v20129_v1, %v16344_v32  ;;  %v5693_v54 = vadd.f32 %v16028_v26, %v5398_v39 }
 0x550   :  { %v6817_v12 = vpop.permute.xlu0 %6816  ;;  %v16585_v25 = vpop.permute.xlu1 %3377  ;;  %v5692_v27 = vadd.f32 %v16028_v26, %v5397_v45  ;;  %v16663_v3 = vmax.f32 %v20127_v7, %v20126_v37  ;;  %v20130_v45 = vld [vmem:[#allocation8_spill] sm:$0xff]  ;;  %v5595_v7 = vadd.f32 %v16028_v26, %v5300_v29  ;;  %v5690_v38 = vadd.f32 %v16028_v26, %v5395_v58 }
 0x551   :  { %6847 = vst.msk [vmem:[#allocation2 + $0x88] sm:$0xff] %vm6457_vm4, %v6817_v12  ;;  %v16634_v12 = vmax.f32 %v20123_v50, %v20122_v57  ;;  %v5326_v36 = vmax.f32 %v20130_v45, %v16413_v47  ;;  %v5594_v57 = vadd.f32 %v16028_v26, %v5299_v5  ;;  %v20131_v50 = vld [vmem:[#allocation67_spill] sm:$0xff]  ;;  %v5885_v32 = vmax.f32 %v5597_v10, 0.0  ;;  %v20132_v47 = vld [vmem:[#allocation101_spill] sm:$0xff] }
 0x552   :  { %7091 = vrot.lane.b32.xlu0 %v16588_v2, %s12015_s10  ;;  %7104 = vrot.lane.b32.xlu1 %v16590_v28, %s12015_s10  ;;  %20128 = vst [vmem:[#allocation303_spill] sm:$0xff] %v16663_v3  ;;  %v5396_v0 = vmax.f32 %v20131_v50, %v16432_v59  ;;  %v5422_v1 = vmax.f32 %v20132_v47, %v16446_v18  ;;  %v5980_v45 = vmax.f32 %v5692_v27, 0.0  ;;  %v20134_v59 = vld [vmem:[#allocation194_spill] sm:$0xff]  ;;  %v20135_v5 = vld [vmem:[#allocation115_spill] sm:$0xff]  ;;  %v5981_v50 = vmax.f32 %v5693_v54, 0.0 }
 0x553   :  { %v5324_v39 = vmax.f32 %v20133_v9, %v16456_v13  ;;  %v16694_v10 = vmax.f32 %v20135_v5, %v20134_v59  ;;  %v5621_v18 = vadd.f32 %v16028_v26, %v5326_v36  ;;  %v5716_v29 = vadd.f32 %v16028_v26, %v5421_v43  ;;  %v20137_v27 = vld [vmem:[#allocation6_spill] sm:$0xff]  ;;  %v20138_v59 = vld [vmem:[#allocation131_spill] sm:$0xff]  ;;  %v16712_v54 = vld [vmem:[%s18801_s2] ss:$0 sm:$0xff] }
 0x554   :  { %v16600_v34 = vpop.permute.xlu0 %3375  ;;  %v16602_v40 = vpop.permute.xlu1 %3373  ;;  %v5323_v51 = vmax.f32 %v20137_v27, %v16461_v16  ;;  %v6151_v58 = vpack.c.bf16 %v5885_v32, %v5884_v15  ;;  %v5882_v13 = vmax.f32 %v5594_v57, 0.0  ;;  %v5691_v47 = vadd.f32 %v16028_v26, %v5396_v0  ;;  %v20142_v27 = vld [vmem:[#allocation230_spill] sm:$0xff] }
 0x555   :  { %20136 = vst [vmem:[#allocation258_spill] sm:$0xff] %v16694_v10  ;;  %v5883_v6 = vmax.f32 %v5595_v7, 0.0  ;;  %v5717_v30 = vadd.f32 %v16028_v26, %v5422_v1  ;;  %v6199_v14 = vpack.c.bf16 %v5981_v50, %v5980_v45  ;;  %v5908_v36 = vmax.f32 %v5620_v63, 0.0  ;;  %v20141_v45 = vld [vmem:[#allocation282_spill] sm:$0xff]  ;;  %v20143_v50 = vld [vmem:[#allocation157_spill] sm:$0xff] }
 0x556   :  { %4431 = vrot.lane.b32.xlu0 %v16598_v61, %s12015_s10  ;;  %7093 = vrot.lane.b32.xlu1 %v16604_v56, %s12015_s10  ;;  %v5619_v43 = vadd.f32 %v16028_v26, %v5324_v39  ;;  %v5909_v16 = vmax.f32 %v5621_v18, 0.0  ;;  %v6004_v15 = vmax.f32 %v5716_v29, 0.0  ;;  %v5618_v57 = vadd.f32 %v16712_v54, %v5323_v51  ;;  %v20140_v26 = vld [vmem:[#allocation79_spill] sm:$0xff] }
 0x557   :  { %v6150_v32 = vpack.c.bf16 %v5883_v6, %v5882_v13  ;;  %v5979_v7 = vmax.f32 %v5691_v47, 0.0  ;;  %v5350_v1 = vmax.f32 %v20140_v26, %v16470_v33  ;;  %v5419_v63 = vmax.f32 %v20141_v45, %v16510_v20  ;;  %v20144_v6 = vld [vmem:[#allocation272_spill] sm:$0xff] }
 0x558   :  { %v16620_v52 = vpop.permute.xlu0 %3371  ;;  %v16622_v4 = vpop.permute.xlu1 %6992  ;;  %v6005_v18 = vmax.f32 %v5717_v30, 0.0  ;;  %v5420_v13 = vmax.f32 %v20144_v6, %v16482_v53  ;;  %v5906_v20 = vmax.f32 %v5618_v57, 0.0 }
 0x55a   :  { %4623 = vrot.lane.b32.xlu0 %v16616_v44, %s12015_s10  ;;  %4433 = vrot.lane.b32.xlu1 %v16612_v35, %s12015_s10  ;;  %v6211_v33 = vpack.c.bf16 %v6005_v18, %v6004_v15  ;;  %v5715_v26 = vadd.f32 %v16712_v54, %v5420_v13 }
 0x55c   :  { %v16645_v23 = vpop.permute.xlu0 %6990  ;;  %v16647_v41 = vpop.permute.xlu1 %6981 }
 0x55e   :  { %4427 = vrot.lane.b32.xlu0 %v16634_v12, %s12015_s10  ;;  %4625 = vrot.lane.b32.xlu1 %v16638_v24, %s12015_s10 }
 0x560   :  { %v16677_v46 = vpop.permute.xlu0 %6979  ;;  %v16679_v37 = vpop.permute.xlu1 %4865 }
 0x562   :  { %4619 = vrot.lane.b32.xlu0 %v16667_v17, %s12015_s10  ;;  %4429 = vrot.lane.b32.xlu1 %v16663_v3, %s12015_s10  ;;  %v5978_v3 = vmax.f32 %v5690_v38, 0.0 }
 0x564   :  { %v16701_v9 = vpop.permute.xlu0 %4863  ;;  %v4426_v2 = vpop.permute.xlu1 %4425 }
 0x565   :  { %v5274_v5 = vmax.f32 %v20138_v59, %v4426_v2  ;;  %v20139_v2 = vld [vmem:[#allocation99_spill] sm:$0xff]  ;;  %v6163_v59 = vpack.c.bf16 %v5909_v16, %v5908_v36 }
 0x566   :  { %6317 = vrot.lane.b32.xlu0 %v6151_v58, %s12016_s29  ;;  %4621 = vrot.lane.b32.xlu1 %v16694_v10, %s12015_s10  ;;  %v5349_v0 = vmax.f32 %v20139_v2, %v16480_v11  ;;  %v6198_v10 = vpack.c.bf16 %v5979_v7, %v5978_v3  ;;  %v5907_v11 = vmax.f32 %v5619_v43, 0.0  ;;  %v5714_v2 = vadd.f32 %v16712_v54, %v5419_v63  ;;  %v20145_v3 = vld [vmem:[#allocation283_spill] sm:$0xff]  ;;  %v20146_v43 = vld [vmem:[#allocation173_spill] sm:$0xff]  ;;  %v20149_v63 = vld [vmem:[#allocation284_spill] sm:$0xff] }
 0x567   :  { %v5569_v29 = vadd.f32 %v16712_v54, %v5274_v5  ;;  %v5645_v5 = vadd.f32 %v16712_v54, %v5350_v1  ;;  %v5445_v36 = vmax.f32 %v20145_v3, %v16534_v22  ;;  %v5348_v53 = vmax.f32 %v20146_v43, %v16567_v48  ;;  %v20148_v1 = vld [vmem:[#allocation281_spill] sm:$0xff] }
 0x568   :  { %v4424_v38 = vpop.permute.xlu0 %4423  ;;  %v4618_v39 = vpop.permute.xlu1 %4617  ;;  %v5644_v30 = vadd.f32 %v16712_v54, %v5349_v0  ;;  %v20147_v0 = vld [vmem:[#allocation231_spill] sm:$0xff]  ;;  %v5446_v45 = vmax.f32 %v20148_v1, %v16490_v21  ;;  %v5347_v22 = vmax.f32 %v20149_v63, %v16536_v42  ;;  %v6162_v48 = vpack.c.bf16 %v5907_v11, %v5906_v20 }
 0x569   :  { %v5273_v58 = vmax.f32 %v20142_v27, %v4424_v38  ;;  %v5370_v51 = vmax.f32 %v20143_v50, %v4618_v39  ;;  %v5740_v27 = vadd.f32 %v16712_v54, %v5445_v36  ;;  %v20150_v50 = vld [vmem:[#allocation292_spill] sm:$0xff]  ;;  %v6003_v11 = vmax.f32 %v5715_v26, 0.0 }
 0x56a   :  { %6315 = vrot.lane.b32.xlu0 %v6150_v32, %s12016_s29  ;;  %6512 = vrot.lane.b32.xlu1 %v6199_v14, %s12016_s29  ;;  %v5857_v14 = vmax.f32 %v5569_v29, 0.0  ;;  %v5932_v38 = vmax.f32 %v5644_v30, 0.0  ;;  %v6002_v29 = vmax.f32 %v5714_v2, 0.0  ;;  %v5444_v21 = vmax.f32 %v20150_v50, %v16573_v60  ;;  %v20151_v30 = vld [vmem:[#allocation294_spill] sm:$0xff] }
 0x56b   :  { %v5568_v47 = vadd.f32 %v16712_v54, %v5273_v58  ;;  %v5665_v57 = vadd.f32 %v16712_v54, %v5370_v51  ;;  %v5643_v58 = vadd.f32 %v16712_v54, %v5348_v53  ;;  %v5741_v13 = vadd.f32 %v16712_v54, %v5446_v45 }
 0x56c   :  { %v4616_v16 = vpop.permute.xlu0 %4615  ;;  %v16736_v32 = vpop.permute.xlu1 %4861  ;;  %v5642_v20 = vadd.f32 %v16712_v54, %v5347_v22  ;;  %v6210_v3 = vpack.c.bf16 %v6003_v11, %v6002_v29  ;;  %v5739_v43 = vadd.f32 %v16712_v54, %v5444_v21  ;;  %v20153_v22 = vld [vmem:[#allocation249_spill] sm:$0xff] }
 0x56d   :  { %v5856_v15 = vmax.f32 %v5568_v47, 0.0  ;;  %v5369_v7 = vmax.f32 %v20147_v0, %v4616_v16  ;;  %v5953_v6 = vmax.f32 %v5665_v57, 0.0  ;;  %v5443_v47 = vmax.f32 %v20151_v30, %v16554_v19 }
 0x56e   :  { %6510 = vrot.lane.b32.xlu0 %v6198_v10, %s12016_s29  ;;  %6378 = vrot.lane.b32.xlu1 %v6163_v59, %s12015_s10  ;;  %v5933_v10 = vmax.f32 %v5645_v5, 0.0  ;;  %v6028_v5 = vmax.f32 %v5740_v27, 0.0  ;;  %v5931_v36 = vmax.f32 %v5643_v58, 0.0  ;;  %v6029_v57 = vmax.f32 %v5741_v13, 0.0  ;;  %v20156_v13 = vld [vmem:[#allocation304_spill] sm:$0xff] }
 0x56f   :  { %v5664_v39 = vadd.f32 %v16712_v54, %v5369_v7  ;;  %v6137_v18 = vpack.c.bf16 %v5857_v14, %v5856_v15  ;;  %v20152_v14 = vld [vmem:[#allocation248_spill] sm:$0xff]  ;;  %v5930_v0 = vmax.f32 %v5642_v20, 0.0  ;;  %v5738_v19 = vadd.f32 %v16712_v54, %v5443_v47 }
 0x570   :  { %v16752_v51 = vpop.permute.xlu0 %4859  ;;  %v16754_v42 = vpop.permute.xlu1 %4913  ;;  %v6175_v60 = vpack.c.bf16 %v5933_v10, %v5932_v38  ;;  %v6027_v26 = vmax.f32 %v5739_v43, 0.0  ;;  %v20154_v38 = vld [vmem:[#allocation243_spill] sm:$0xff]  ;;  %v5493_v20 = vmax.f32 %v20156_v13, %v16701_v9 }
 0x571   :  { %v5952_v59 = vmax.f32 %v5664_v39, 0.0  ;;  %6282 = vst.msk [vmem:[#allocation2 + $0xa8] sm:$0xff] %vm6274_vm1, %v6137_v18  ;;  %v6174_v7 = vpack.c.bf16 %v5931_v36, %v5930_v0  ;;  %v6026_v18 = vmax.f32 %v5738_v19, 0.0  ;;  %v20160_v19 = vld [vmem:[#allocation305_spill] sm:$0xff]  ;;  %v20167_v13 = vld [vmem:[#allocation247_spill] sm:$0xff] }
 0x572   :  { %6376 = vrot.lane.b32.xlu0 %v6162_v48, %s12015_s10  ;;  %6572 = vrot.lane.b32.xlu1 %v6211_v33, %s12015_s10  ;;  %v6223_v33 = vpack.c.bf16 %v6029_v57, %v6028_v5  ;;  %v5788_v9 = vadd.f32 %v16712_v54, %v5493_v20 }
 0x573   :  { %v6185_v2 = vpack.c.bf16 %v5953_v6, %v5952_v59  ;;  %v6222_v27 = vpack.c.bf16 %v6027_v26, %v6026_v18  ;;  %v20155_v59 = vld [vmem:[#allocation102_spill] sm:$0xff] }
 0x574   :  { %v4912_v53 = vpop.permute.xlu0 %4911  ;;  %v4422_v16 = vpop.permute.xlu1 %4421 }
 0x575   :  { %v5272_v15 = vmax.f32 %v20152_v14, %v4422_v16  ;;  %6477 = vst.msk [vmem:[#allocation2 + $0xb0] sm:$0xff] %vm6274_vm1, %v6185_v2  ;;  %v16787_v16 = vld [vmem:[#allocation2 + $0x88] sm:$0xff]  ;;  %v20158_v14 = vld [vmem:[#allocation295_spill] sm:$0xff] }
 0x576   :  { %6570 = vrot.lane.b32.xlu0 %v6210_v3, %s12015_s10  ;;  %6439 = vrot.lane.b32.xlu1 %v6175_v60, %s12014_s11  ;;  %v20157_v3 = vld [vmem:[#allocation134_spill] sm:$0xff] }
 0x577   :  { %v5567_v63 = vadd.f32 %v16712_v54, %v5272_v15  ;;  %v5494_v5 = vmax.f32 %v20157_v3, %v16679_v37  ;;  %v5491_v15 = vmax.f32 %v20158_v14, %v16752_v51  ;;  %v20159_v37 = vld [vmem:[#allocation132_spill] sm:$0xff]  ;;  %v20162_v51 = vld [vmem:[#allocation301_spill] sm:$0xff] }
 0x578   :  { %v4420_v1 = vpop.permute.xlu0 %4419  ;;  %v4614_v45 = vpop.permute.xlu1 %4613  ;;  %v16799_v0 = vmax.f32 %v20159_v37, %v16600_v34  ;;  %v20163_v34 = vld [vmem:[#allocation137_spill] sm:$0xff] }
 0x579   :  { %v5271_v48 = vmax.f32 %v20153_v22, %v4420_v1  ;;  %v5368_v39 = vmax.f32 %v20154_v38, %v4614_v45  ;;  %v5855_v21 = vmax.f32 %v5567_v63, 0.0  ;;  %v5789_v1 = vadd.f32 %v16712_v54, %v5494_v5  ;;  %v20161_v45 = vld [vmem:[#allocation159_spill] sm:$0xff]  ;;  %v16805_v22 = vld [vmem:[#allocation2 + $0x70] sm:$0xff] }
 0x57a   :  { %6632 = vrot.lane.b32.xlu1 %v6223_v33, %s12014_s11  ;;  %6437 = vrot.lane.b32.xlu0 %v6174_v7, %s12014_s11  ;;  %v5517_v33 = vmax.f32 %v20160_v19, %v4912_v53  ;;  %v5492_v63 = vmax.f32 %v20161_v45, %v16736_v32  ;;  %v16816_v53 = vmax.f32 %v20163_v34, %v16585_v25  ;;  %v6076_v38 = vmax.f32 %v5788_v9, 0.0 }
 0x57b   :  { %v5566_v29 = vadd.f32 %v16712_v54, %v5271_v48  ;;  %v5663_v6 = vadd.f32 %v16712_v54, %v5368_v39  ;;  %v5518_v48 = vmax.f32 %v20162_v51, %v16754_v42  ;;  %v5786_v32 = vadd.f32 %v16712_v54, %v5491_v15  ;;  %v20164_v39 = vld [vmem:[#allocation136_spill] sm:$0xff]  ;;  %v20165_v42 = vld [vmem:[#allocation195_spill] sm:$0xff] }
 0x57c   :  { %v4612_v58 = vpop.permute.xlu0 %4611  ;;  %v16775_v50 = vpop.permute.xlu1 %4909  ;;  %v16821_v18 = vmax.f32 %v20164_v39, %v16620_v52  ;;  %v20168_v52 = vld [vmem:[#allocation104_spill] sm:$0xff] }
 0x57d   :  { %v5854_v10 = vmax.f32 %v5566_v29, 0.0  ;;  %v5367_v11 = vmax.f32 %v20155_v59, %v4612_v58  ;;  %v5951_v36 = vmax.f32 %v5663_v6, 0.0  ;;  %v5812_v29 = vadd.f32 %v16712_v54, %v5517_v33  ;;  %v20166_v58 = vld [vmem:[#allocation312_spill] sm:$0xff] }
 0x57e   :  { %7154 = vrot.lane.b32.xlu0 %v16590_v28, %s12015_s10  ;;  %6630 = vrot.lane.b32.xlu1 %v6222_v27, %s12014_s11  ;;  %v6077_v59 = vmax.f32 %v5789_v1, 0.0  ;;  %v5813_v25 = vadd.f32 %v16712_v54, %v5518_v48  ;;  %v5516_v20 = vmax.f32 %v20167_v13, %v16775_v50  ;;  %v6074_v5 = vmax.f32 %v5786_v32, 0.0  ;;  %v20170_v50 = vld [vmem:[#allocation196_spill] sm:$0xff] }
 0x57f   :  { %v5662_v30 = vadd.f32 %v16712_v54, %v5367_v11  ;;  %v6136_v47 = vpack.c.bf16 %v5855_v21, %v5854_v10  ;;  %v5787_v11 = vadd.f32 %v16712_v54, %v5492_v63  ;;  %v20171_v33 = vld [vmem:[#allocation176_spill] sm:$0xff] }
 0x580   :  { %v4908_v60 = vpop.permute.xlu0 %4907  ;;  %v4962_v2 = vpop.permute.xlu1 %4961  ;;  %v6247_v3 = vpack.c.bf16 %v6077_v59, %v6076_v38  ;;  %v6101_v37 = vmax.f32 %v5813_v25, 0.0  ;;  %v5811_v19 = vadd.f32 %v16712_v54, %v5516_v20 }
 0x581   :  { %v5950_v43 = vmax.f32 %v5662_v30, 0.0  ;;  %6281 = vst.msk [vmem:[#allocation2 + $0x90] sm:$0xff] %vm6274_vm1, %v6136_v47  ;;  %v5515_v27 = vmax.f32 %v20165_v42, %v4908_v60  ;;  %v5542_v30 = vmax.f32 %v20168_v52, %v4962_v2  ;;  %v20169_v47 = vld [vmem:[#allocation239_spill] sm:$0xff] }
 0x582   :  { %7143 = vrot.lane.b32.xlu0 %v16604_v56, %s12015_s10  ;;  %7156 = vrot.lane.b32.xlu1 %v16787_v16, %s12015_s10  ;;  %v16838_v60 = vmax.f32 %v20169_v47, %v16602_v40 }
 0x583   :  { %v6184_v57 = vpack.c.bf16 %v5951_v36, %v5950_v43  ;;  %v6100_v36 = vmax.f32 %v5812_v29, 0.0  ;;  %v5810_v43 = vadd.f32 %v16712_v54, %v5515_v27  ;;  %v5837_v40 = vadd.f32 %v16712_v54, %v5542_v30 }
 0x584   :  { %v4960_v7 = vpop.permute.xlu0 %4959  ;;  %v4958_v26 = vpop.permute.xlu1 %4957 }
 0x585   :  { %6476 = vst.msk [vmem:[#allocation2 + $0x98] sm:$0xff] %vm6274_vm1, %v6184_v57  ;;  %v5541_v21 = vmax.f32 %v20166_v58, %v4960_v7  ;;  %v6075_v57 = vmax.f32 %v5787_v11, 0.0  ;;  %v5540_v7 = vmax.f32 %v20171_v33, %v4958_v26  ;;  %v6259_v45 = vpack.c.bf16 %v6101_v37, %v6100_v36 }
 0x586   :  { %4815 = vrot.lane.b32.xlu0 %v16799_v0, %s12015_s10  ;;  %7145 = vrot.lane.b32.xlu1 %v16805_v22, %s12015_s10  ;;  %v6098_v63 = vmax.f32 %v5810_v43, 0.0  ;;  %v6099_v26 = vmax.f32 %v5811_v19, 0.0  ;;  %v6125_v32 = vmax.f32 %v5837_v40, 0.0 }
 0x587   :  { %v5836_v9 = vadd.f32 %v16712_v54, %v5541_v21  ;;  %v6246_v1 = vpack.c.bf16 %v6075_v57, %v6074_v5  ;;  %v5835_v39 = vadd.f32 %v16712_v54, %v5540_v7  ;;  %v20173_v7 = vld [vmem:[#allocation172_spill] sm:$0xff] }
 0x588   :  { %v4956_v10 = vpop.permute.xlu0 %4955  ;;  %v6509_v6 = vpop.permute.xlu1 %6508  ;;  %v6258_v29 = vpack.c.bf16 %v6099_v26, %v6098_v63 }
 0x589   :  { %6537 = vst.msk [vmem:[#allocation2 + $0xb0] sm:$0xff] %vm6335_vm2, %v6509_v6  ;;  %v5539_v14 = vmax.f32 %v20170_v50, %v4956_v10  ;;  %v6124_v51 = vmax.f32 %v5836_v9, 0.0  ;;  %v6123_v10 = vmax.f32 %v5835_v39, 0.0 }
 0x58a   :  { %4811 = vrot.lane.b32.xlu0 %v16821_v18, %s12015_s10  ;;  %4817 = vrot.lane.b32.xlu1 %v16816_v53, %s12015_s10 }
 0x58b   :  { %v5834_v48 = vadd.f32 %v16712_v54, %v5539_v14  ;;  %v6271_v42 = vpack.c.bf16 %v6125_v32, %v6124_v51 }
 0x58c   :  { %v6314_v2 = vpop.permute.xlu0 %6313  ;;  %v6375_v15 = vpop.permute.xlu1 %6374 }
 0x58d   :  { %6343 = vst.msk [vmem:[#allocation2 + $0xa8] sm:$0xff] %vm6335_vm2, %v6314_v2  ;;  %v6122_v27 = vmax.f32 %v5834_v48, 0.0  ;;  %v20172_v2 = vld [vmem:[#allocation293_spill] sm:$0xff] }
 0x58e   :  { %6404 = vst.msk [vmem:[#allocation2 + $0xa8] sm:$0xff] %vm6396_vm3, %v6375_v15  ;;  %4813 = vrot.lane.b32.xlu1 %v16838_v60, %s12015_s10  ;;  %6704 = vrot.lane.b32.xlu0 %v6247_v3, %s12016_s29 }
 0x58f   :  { %v6270_v6 = vpack.c.bf16 %v6123_v10, %v6122_v27 }
 0x590   :  { %v6312_v34 = vpop.permute.xlu0 %6311  ;;  %v6569_v38 = vpop.permute.xlu1 %6568 }
 0x591   :  { %6342 = vst.msk [vmem:[#allocation2 + $0x90] sm:$0xff] %vm6335_vm2, %v6312_v34 }
 0x592   :  { %6597 = vst.msk [vmem:[#allocation2 + $0xb0] sm:$0xff] %vm6396_vm3, %v6569_v38  ;;  %6702 = vrot.lane.b32.xlu1 %v6246_v1, %s12016_s29  ;;  %6764 = vrot.lane.b32.xlu0 %v6259_v45, %s12015_s10 }
 0x594   :  { %v6507_v58 = vpop.permute.xlu0 %6506  ;;  %v6436_v21 = vpop.permute.xlu1 %6435 }
 0x595   :  { %6536 = vst.msk [vmem:[#allocation2 + $0x98] sm:$0xff] %vm6335_vm2, %v6507_v58  ;;  %v12006_v58 = vld [vmem:[#allocation2 + $0x48] sm:$0xff] }
 0x596   :  { %6465 = vst.msk [vmem:[#allocation2 + $0xa8] sm:$0xff] %vm6457_vm4, %v6436_v21  ;;  %6762 = vrot.lane.b32.xlu1 %v6258_v29, %s12015_s10  ;;  %6824 = vrot.lane.b32.xlu0 %v6271_v42, %s12014_s11 }
 0x598   :  { %v6373_v59 = vpop.permute.xlu0 %6372  ;;  %v6629_v11 = vpop.permute.xlu1 %6628 }
 0x599   :  { %6403 = vst.msk [vmem:[#allocation2 + $0x90] sm:$0xff] %vm6396_vm3, %v6373_v59 }
 0x59a   :  { %6657 = vst.msk [vmem:[#allocation2 + $0xb0] sm:$0xff] %vm6457_vm4, %v6629_v11  ;;  %6822 = vrot.lane.b32.xlu1 %v6270_v6, %s12014_s11 }
 0x59c   :  { %v6567_v25 = vpop.permute.xlu0 %6566  ;;  %v6627_v13 = vpop.permute.xlu1 %6626 }
 0x59d   :  { %v16864_v20 = vld [vmem:[#allocation2 + $0xa8] sm:$0xff]  ;;  %6596 = vst.msk [vmem:[#allocation2 + $0x98] sm:$0xff] %vm6396_vm3, %v6567_v25 }
 0x59e   :  { %7214 = vrot.lane.b32.xlu0 %v16864_v20, %s12015_s10  ;;  %6656 = vst.msk [vmem:[#allocation2 + $0x98] sm:$0xff] %vm6457_vm4, %v6627_v13  ;;  %v12007_v13 = vld [vmem:[#allocation2 + $0x30] sm:$0xff] }
 0x5a0   :  { %v6434_v52 = vpop.permute.xlu0 %6433  ;;  %v4810_v30 = vpop.permute.xlu1 %4809 }
 0x5a1   :  { %v16870_v47 = vld [vmem:[#allocation2 + $0xb0] sm:$0xff]  ;;  %6464 = vst.msk [vmem:[#allocation2 + $0x90] sm:$0xff] %vm6457_vm4, %v6434_v52  ;;  %v5466_v14 = vmax.f32 %v16468_v49, %v4810_v30  ;;  %v6994_v52 = vsel %vm6870_vm5, %v16645_v23, %v16622_v4 }
 0x5a2   :  { %7216 = vrot.lane.b32.xlu1 %v16870_v47, %s12015_s10  ;;  %v12008_v4 = vld [vmem:[#allocation2 + $0x50] sm:$0xff] }
 0x5a3   :  { %v5761_v19 = vadd.f32 %v16712_v54, %v5466_v14 }
 0x5a4   :  { %v16875_v3 = vpop.permute.xlu0 %7042  ;;  %v4806_v5 = vpop.permute.xlu1 %4805 }
 0x5a5   :  { %v16877_v36 = vld [vmem:[#allocation2 + $0x98] sm:$0xff]  ;;  %v5464_v40 = vmax.f32 %v16478_v55, %v4806_v5  ;;  %v6049_v51 = vmax.f32 %v5761_v19, 0.0 }
 0x5a6   :  { %7205 = vrot.lane.b32.xlu1 %v16877_v36, %s12015_s10 }
 0x5a7   :  { %v5759_v48 = vadd.f32 %v16712_v54, %v5464_v40 }
 0x5a8   :  { %v16881_v43 = vpop.permute.xlu0 %7031  ;;  %v6933_v9 = vpop.permute.xlu1 %6932  ;;  %v16883_v50 = vld [vmem:[#allocation2 + $0x90] sm:$0xff] }
 0x5a9   :  { %7203 = vrot.lane.b32.xlu0 %v16883_v50, %s12015_s10  ;;  %v6934_v15 = vsel %vm6870_vm5, %v20172_v2, %v6933_v9  ;;  %v6047_v42 = vmax.f32 %v5759_v48, 0.0 }
 0x5aa   :  { %7961 = vmatprep.mubr.bf16.mxu1 %v6934_v15  ;;  %v6983_v15 = vsel %vm6870_vm5, %v16677_v46, %v16647_v41  ;;  %v12009_v46 = vld [vmem:[#allocation2 + $0x38] sm:$0xff] }
 0x5ac   :  { %v4808_v57 = vpop.permute.xlu0 %4807  ;;  %v6922_v37 = vpop.permute.xlu1 %6921 }
 0x5ad   :  { %v5465_v33 = vmax.f32 %v16506_v62, %v4808_v57  ;;  %7266 = vrot.lane.b32.xlu0 %v16870_v47, %s12015_s10  ;;  %v6923_v49 = vsel %vm6870_vm5, %v20173_v7, %v6922_v37  ;;  %v16903_v62 = vpop.f32.mrb[28].mxu0 }
 0x5ae   :  { %7962 = vmatmul.mubr.bf16.gmra.mrb[12].mxu1 %v6923_v49  ;;  %v16905_v38 = vpop.f32.mrb[29].mxu0 }
 0x5af   :  { %v5760_v1 = vadd.f32 %v16712_v54, %v5465_v33  ;;  %7971 = vmatprep.mubr.bf16.mxu1 %v16495_v31  ;;  %v16908_v39 = vpop.f32.mrb[30].mxu0 }
 0x5b0   :  { %v4804_v45 = vpop.permute.xlu0 %4803  ;;  %v7045_v63 = vpop.permute.xlu1 %7044 }
 0x5b1   :  { %v6048_v34 = vmax.f32 %v5760_v1, 0.0  ;;  %v5463_v55 = vmax.f32 %v16527_v8, %v4804_v45  ;;  %7255 = vrot.lane.b32.xlu0 %v16877_v36, %s12015_s10  ;;  %v20174_v8 = vld [vmem:[#allocation108_spill] sm:$0xff]  ;;  %v16913_v10 = vpop.f32.mrb[31].mxu0  ;;  %v7046_v1 = vsel %vm6870_vm5, %v16875_v3, %v7045_v63 }
 0x5b3   :  { %v5758_v26 = vadd.f32 %v16712_v54, %v5463_v55  ;;  %v6233_v32 = vpack.c.bf16 %v6049_v51, %v6048_v34 }
 0x5b4   :  { %v6701_v31 = vpop.permute.xlu0 %6700  ;;  %v7034_v29 = vpop.permute.xlu1 %7033 }
 0x5b5   :  { %v6046_v27 = vmax.f32 %v5758_v26, 0.0  ;;  %6669 = vst.msk [vmem:[#allocation2 + $0xb8] sm:$0xff] %vm6274_vm1, %v6233_v32  ;;  %v7035_v3 = vsel %vm6870_vm5, %v16881_v43, %v7034_v29 }
 0x5b6   :  { %6729 = vst.msk [vmem:[#allocation2 + $0xb8] sm:$0xff] %vm6335_vm2, %v6701_v31  ;;  %7972 = vmatmul.mubr.bf16.gmra.mrb[16].mxu1 %v20174_v8 }
 0x5b7   :  { %7981 = vmatprep.mubr.bf16.mxu1 %v12006_v58  ;;  %v6232_v21 = vpack.c.bf16 %v6047_v42, %v6046_v27 }
 0x5b8   :  { %v6761_v6 = vpop.permute.xlu0 %6760  ;;  %v6699_v59 = vpop.permute.xlu1 %6698 }
 0x5b9   :  { %6789 = vst.msk [vmem:[#allocation2 + $0xb8] sm:$0xff] %vm6396_vm3, %v6761_v6 }
 0x5ba   :  { %6668 = vst.msk [vmem:[#allocation2 + $0xa0] sm:$0xff] %vm6274_vm1, %v6232_v21  ;;  %v20175_v21 = vld [vmem:[#allocation303_spill] sm:$0xff] }
 0x5bb   :  { %6728 = vst.msk [vmem:[#allocation2 + $0xa0] sm:$0xff] %vm6335_vm2, %v6699_v59 }
 0x5bc   :  { %v6821_v11 = vpop.permute.xlu0 %6820  ;;  %v6759_v25 = vpop.permute.xlu1 %6758 }
 0x5bd   :  { %6849 = vst.msk [vmem:[#allocation2 + $0xb8] sm:$0xff] %vm6457_vm4, %v6821_v11 }
 0x5be   :  { %6788 = vst.msk [vmem:[#allocation2 + $0xa0] sm:$0xff] %vm6396_vm3, %v6759_v25  ;;  %7982 = vmatmul.mubr.bf16.gmra.mrb[20].mxu1 %v12007_v13 }
 0x5bf   :  { %7991 = vmatprep.mubr.bf16.mxu1 %v6994_v52  ;;  %v20177_v52 = vld [vmem:[#allocation258_spill] sm:$0xff] }
 0x5c0   :  { %v16923_v30 = vpop.permute.xlu0 %7102  ;;  %v6819_v5 = vpop.permute.xlu1 %6818 }
 0x5c1   :  { %6848 = vst.msk [vmem:[#allocation2 + $0xa0] sm:$0xff] %vm6457_vm4, %v6819_v5 }
 0x5c4   :  { %v16926_v9 = vpop.permute.xlu0 %7091  ;;  %v16928_v14 = vpop.permute.xlu1 %7104  ;;  %v16930_v2 = vld [vmem:[#allocation2 + $0xb8] sm:$0xff] }
 0x5c5   :  { %7268 = vrot.lane.b32.xlu1 %v16930_v2, %s12015_s10 }
 0x5c6   :  { %7992 = vmatmul.mubr.bf16.gmra.mrb[24].mxu1 %v6983_v15 }
 0x5c7   :  { %8001 = vmatprep.mubr.bf16.mxu1 %v12008_v4 }
 0x5c8   :  { %v4432_v23 = vpop.permute.xlu0 %4431  ;;  %v16937_v57 = vpop.permute.xlu1 %7093  ;;  %v16939_v37 = vld [vmem:[#allocation2 + $0xa0] sm:$0xff] }
 0x5c9   :  { %v5277_v19 = vmax.f32 %v16598_v61, %v4432_v23  ;;  %7257 = vrot.lane.b32.xlu1 %v16939_v37, %s12015_s10 }
 0x5cb   :  { %v5572_v7 = vadd.f32 %v16712_v54, %v5277_v19 }
 0x5cc   :  { %v4624_v40 = vpop.permute.xlu0 %4623  ;;  %v4434_v33 = vpop.permute.xlu1 %4433 }
 0x5cd   :  { %v5373_v49 = vmax.f32 %v16616_v44, %v4624_v40  ;;  %v5278_v41 = vmax.f32 %v16612_v35, %v4434_v33  ;;  %v5860_v34 = vmax.f32 %v5572_v7, 0.0  ;;  %v20178_v33 = vld [vmem:[#allocation109_spill] sm:$0xff]  ;;  %v20179_v7 = vld [vmem:[#allocation127_spill] sm:$0xff] }
 0x5ce   :  { %8002 = vmatmul.mubr.bf16.gmra.mrb[28].mxu1 %v12009_v46 }
 0x5cf   :  { %v5573_v45 = vadd.f32 %v16712_v54, %v5278_v41  ;;  %8011 = vmatprep.mubr.bf16.mxu1 %v7046_v1  ;;  %v5668_v61 = vadd.f32 %v16712_v54, %v5373_v49  ;;  %v11846_v1 = vld [vmem:[%s18802_s3 + $0x100] ss:$8 sps:$4 sm:$0xff]  }
 0x5d0   :  { %v4428_v51 = vpop.permute.xlu0 %4427  ;;  %v4626_v48 = vpop.permute.xlu1 %4625 }
 0x5d1   :  { %v5861_v55 = vmax.f32 %v5573_v45, 0.0  ;;  %v5275_v26 = vmax.f32 %v16634_v12, %v4428_v51  ;;  %v5374_v44 = vmax.f32 %v16638_v24, %v4626_v48  ;;  %v5956_v31 = vmax.f32 %v5668_v61, 0.0  ;;  %v20176_v24 = vld [vmem:[#allocation198_spill] sm:$0xff]  ;;  %v11848_v45 = vld [vmem:[%s18802_s3 + $0x104] ss:$8 sps:$4 sm:$0xff]  }
 0x5d2   :  { %8182 = vmatprep.subr.bf16.mxu1 %v11848_v45  ;;  %v20180_v48 = vld [vmem:[#allocation174_spill] sm:$0xff] }
 0x5d3   :  { %v5669_v35 = vadd.f32 %v16712_v54, %v5374_v44  ;;  %v6139_v32 = vpack.c.bf16 %v5861_v55, %v5860_v34  ;;  %v5570_v63 = vadd.f32 %v16712_v54, %v5275_v26  ;;  %v7106_v34 = vsel %vm6870_vm5, %v16923_v30, %v16928_v14  ;;  %8183 = vmatpush1.bf16.msra.mxu1 %v11846_v1  ;;  %v11851_v44 = vld [vmem:[%s18802_s3 + $0x114] ss:$8 sps:$4 sm:$0xff]   ;;  %v11854_v14 = vld [vmem:[%s18802_s3 + $0x124] ss:$8 sps:$4 sm:$0xff]  }
 0x5d4   :  { %v4620_v42 = vpop.permute.xlu0 %4619  ;;  %v4430_v27 = vpop.permute.xlu1 %4429  ;;  %8184 = vmatprep.subr.bf16.mxu1 %v11851_v44  ;;  %v11870_v44 = vld [vmem:[%s18802_s3 + $0x180] ss:$8 sps:$4 sm:$0xff]  }
 0x5d5   :  { %v5957_v8 = vmax.f32 %v5669_v35, 0.0  ;;  %v5371_v58 = vmax.f32 %v16667_v17, %v4620_v42  ;;  %v5276_v6 = vmax.f32 %v20175_v21, %v4430_v27  ;;  %6284 = vst.msk [vmem:[#allocation2 + $0xd8] sm:$0xff] %vm6274_vm1, %v6139_v32  ;;  %v5858_v13 = vmax.f32 %v5570_v63, 0.0  ;;  %v11849_v35 = vld [vmem:[%s18802_s3 + $0x110] ss:$8 sps:$4 sm:$0xff]  }
 0x5d6   :  { %8012 = vmatmul.mubr.bf16.gmra.mrb[32].mxu1 %v7035_v3  ;;  %v11852_v42 = vld [vmem:[%s18802_s3 + $0x120] ss:$8 sps:$4 sm:$0xff]  }
 0x5d7   :  { %v5571_v12 = vadd.f32 %v16712_v54, %v5276_v6  ;;  %8021 = vmatprep.mubr.bf16.mxu1 %v20176_v24  ;;  %v6187_v59 = vpack.c.bf16 %v5957_v8, %v5956_v31  ;;  %v5666_v43 = vadd.f32 %v16712_v54, %v5371_v58  ;;  %8185 = vmatpush1.bf16.msra.mxu1 %v11849_v35  ;;  %v11855_v8 = vld [vmem:[%s18802_s3 + $0x130] ss:$8 sps:$4 sm:$0xff]   ;;  %v11860_v6 = vld [vmem:[%s18802_s3 + $0x144] ss:$8 sps:$4 sm:$0xff]   ;;  %v11858_v24 = vld [vmem:[%s18802_s3 + $0x140] ss:$8 sps:$4 sm:$0xff]  }
 0x5d8   :  { %v6318_v11 = vpop.permute.xlu0 %6317  ;;  %v4622_v25 = vpop.permute.xlu1 %4621  ;;  %v7095_v31 = vsel %vm6870_vm5, %v16926_v9, %v16937_v57  ;;  %8186 = vmatprep.subr.bf16.mxu1 %v11854_v14  ;;  %v11857_v9 = vld [vmem:[%s18802_s3 + $0x134] ss:$8 sps:$4 sm:$0xff]  }
 0x5d9   :  { %v5859_v29 = vmax.f32 %v5571_v12, 0.0  ;;  %6345 = vst.msk [vmem:[#allocation2 + $0xd8] sm:$0xff] %vm6335_vm2, %v6318_v11  ;;  %v5372_v17 = vmax.f32 %v20177_v52, %v4622_v25  ;;  %v5954_v19 = vmax.f32 %v5666_v43, 0.0  ;;  %v11863_v43 = vld [vmem:[%s18802_s3 + $0x154] ss:$8 sps:$4 sm:$0xff]  }
 0x5da   :  { %6479 = vst.msk [vmem:[#allocation2 + $0xe0] sm:$0xff] %vm6274_vm1, %v6187_v59  ;;  %v20181_v52 = vld [vmem:[#allocation158_spill] sm:$0xff] }
 0x5db   :  { %v5667_v5 = vadd.f32 %v16712_v54, %v5372_v17  ;;  %v6138_v15 = vpack.c.bf16 %v5859_v29, %v5858_v13  ;;  %8187 = vmatpush1.bf16.msra.mxu1 %v11852_v42  ;;  %v11861_v13 = vld [vmem:[%s18802_s3 + $0x150] ss:$8 sps:$4 sm:$0xff]  }
 0x5dc   :  { %v6316_v4 = vpop.permute.xlu0 %6315  ;;  %v6513_v23 = vpop.permute.xlu1 %6512  ;;  %8188 = vmatprep.subr.bf16.mxu1 %v11857_v9  ;;  %v11876_v9 = vld [vmem:[%s18802_s3 + $0x1a0] ss:$8 sps:$4 sm:$0xff]  }
 0x5dd   :  { %v5955_v40 = vmax.f32 %v5667_v5, 0.0  ;;  %6283 = vst.msk [vmem:[#allocation2 + $0xc0] sm:$0xff] %vm6274_vm1, %v6138_v15  ;;  %v11864_v15 = vld [vmem:[%s18802_s3 + $0x160] ss:$8 sps:$4 sm:$0xff]  }
 0x5de   :  { %6539 = vst.msk [vmem:[#allocation2 + $0xe0] sm:$0xff] %vm6335_vm2, %v6513_v23  ;;  %6344 = vst.msk [vmem:[#allocation2 + $0xc0] sm:$0xff] %vm6335_vm2, %v6316_v4  ;;  %8022 = vmatmul.mubr.bf16.gmra.mrb[36].mxu1 %v20178_v33  ;;  %v20183_v33 = vld [vmem:[#allocation161_spill] sm:$0xff] }
 0x5df   :  { %8031 = vmatprep.mubr.bf16.mxu1 %v20179_v7  ;;  %v6186_v49 = vpack.c.bf16 %v5955_v40, %v5954_v19  ;;  %8189 = vmatpush1.bf16.msra.mxu1 %v11855_v8  ;;  %v20182_v40 = vld [vmem:[#allocation160_spill] sm:$0xff] }
 0x5e0   :  { %v6511_v41 = vpop.permute.xlu0 %6510  ;;  %v6379_v46 = vpop.permute.xlu1 %6378  ;;  %8190 = vmatprep.subr.bf16.mxu1 %v11860_v6  ;;  %v20191_v6 = vld [vmem:[#allocation193_spill] sm:$0xff] }
 0x5e1   :  { %6478 = vst.msk [vmem:[#allocation2 + $0xc8] sm:$0xff] %vm6274_vm1, %v6186_v49 }
 0x5e2   :  { %6406 = vst.msk [vmem:[#allocation2 + $0xd8] sm:$0xff] %vm6396_vm3, %v6379_v46 }
 0x5e3   :  { %6538 = vst.msk [vmem:[#allocation2 + $0xc8] sm:$0xff] %vm6335_vm2, %v6511_v41  ;;  %8191 = vmatpush1.bf16.msra.mxu1 %v11858_v24  ;;  %v20192_v24 = vld [vmem:[#allocation75_spill] sm:$0xff] }
 0x5e4   :  { %v6377_v61 = vpop.permute.xlu0 %6376  ;;  %v6573_v51 = vpop.permute.xlu1 %6572  ;;  %8192 = vmatprep.subr.bf16.mxu1 %v11863_v43 }
 0x5e5   :  { %6405 = vst.msk [vmem:[#allocation2 + $0xc0] sm:$0xff] %vm6396_vm3, %v6377_v61  ;;  %6599 = vst.msk [vmem:[#allocation2 + $0xe0] sm:$0xff] %vm6396_vm3, %v6573_v51  ;;  %v20184_v51 = vld [vmem:[#allocation189_spill] sm:$0xff] }
 0x5e6   :  { %8032 = vmatmul.mubr.bf16.gmra.mrb[40].mxu1 %v20180_v48 }
 0x5e7   :  { %8041 = vmatprep.mubr.bf16.mxu1 %v7106_v34  ;;  %8193 = vmatpush1.bf16.msra.mxu1 %v11861_v13 }
 0x5e8   :  { %v6571_v55 = vpop.permute.xlu0 %6570  ;;  %v6440_v26 = vpop.permute.xlu1 %6439 }
 0x5e9   :  { %6598 = vst.msk [vmem:[#allocation2 + $0xc8] sm:$0xff] %vm6396_vm3, %v6571_v55 }
 0x5ea   :  { %6467 = vst.msk [vmem:[#allocation2 + $0xd8] sm:$0xff] %vm6457_vm4, %v6440_v26 }
 0x5ec   :  { %v6438_v32 = vpop.permute.xlu0 %6437  ;;  %v6633_v30 = vpop.permute.xlu1 %6632 }
 0x5ed   :  { %6466 = vst.msk [vmem:[#allocation2 + $0xc0] sm:$0xff] %vm6457_vm4, %v6438_v32  ;;  %6659 = vst.msk [vmem:[#allocation2 + $0xe0] sm:$0xff] %vm6457_vm4, %v6633_v30  ;;  %v20186_v30 = vld [vmem:[#allocation73_spill] sm:$0xff] }
 0x5ee   :  { %8042 = vmatmul.mubr.bf16.gmra.mrb[44].mxu1 %v7095_v31 }
 0x5ef   :  { %8051 = vmatprep.mubr.bf16.mxu1 %v16590_v28 }
 0x5f0   :  { %v7155_v27 = vpop.permute.xlu0 %7154  ;;  %v6631_v3 = vpop.permute.xlu1 %6630 }
 0x5f1   :  { %v17007_v63 = vld [vmem:[#allocation2 + $0xd8] sm:$0xff]  ;;  %6658 = vst.msk [vmem:[#allocation2 + $0xc8] sm:$0xff] %vm6457_vm4, %v6631_v3 }
 0x5f2   :  { %7326 = vrot.lane.b32.xlu0 %v17007_v63, %s12015_s10  ;;  %v11875_v3 = vld [vmem:[%s18802_s3 + $0x194] ss:$8 sps:$4 sm:$0xff]  }
 0x5f4   :  { %v7144_v28 = vpop.permute.xlu0 %7143  ;;  %v7157_v57 = vpop.permute.xlu1 %7156  ;;  %v17018_v58 = vld [vmem:[#allocation2 + $0xc0] sm:$0xff] }
 0x5f5   :  { %v17020_v21 = vld [vmem:[#allocation2 + $0xe0] sm:$0xff]  ;;  %v7158_v12 = vsel %vm6870_vm5, %v7155_v27, %v7157_v57  ;;  %v11873_v27 = vld [vmem:[%s18802_s3 + $0x190] ss:$8 sps:$4 sm:$0xff]  }
 0x5f6   :  { %7315 = vrot.lane.b32.xlu0 %v17018_v58, %s12015_s10  ;;  %7328 = vrot.lane.b32.xlu1 %v17020_v21, %s12015_s10  ;;  %v20190_v57 = vld [vmem:[#allocation95_spill] sm:$0xff] }
 0x5f7   :  { %8052 = vmatmul.mubr.bf16.gmra.mrb[48].mxu1 %v16604_v56 }
 0x5f8   :  { %8061 = vmatprep.mubr.bf16.mxu1 %v7158_v12  ;;  %v4816_v59 = vpop.permute.xlu0 %4815  ;;  %v7146_v11 = vpop.permute.xlu1 %7145  ;;  %v17034_v25 = vld [vmem:[#allocation2 + $0xc8] sm:$0xff]  ;;  %v11881_v12 = vld [vmem:[%s18802_s3 + $0x1b4] ss:$8 sps:$4 sm:$0xff]  }
 0x5f9   :  { %v5469_v29 = vmax.f32 %v16799_v0, %v4816_v59  ;;  %v7147_v5 = vsel %vm6870_vm5, %v7144_v28, %v7146_v11  ;;  %v11866_v0 = vld [vmem:[%s18802_s3 + $0x164] ss:$8 sps:$4 sm:$0xff]   ;;  %v11879_v11 = vld [vmem:[%s18802_s3 + $0x1b0] ss:$8 sps:$4 sm:$0xff]  }
 0x5fa   :  { %3239 = vrot.lane.b32.xlu0 %v20181_v52, %s12014_s11  ;;  %7317 = vrot.lane.b32.xlu1 %v17034_v25, %s12015_s10  ;;  %v11878_v28 = vld [vmem:[%s18802_s3 + $0x1a4] ss:$8 sps:$4 sm:$0xff]  }
 0x5fb   :  { %v5764_v4 = vadd.f32 %v16712_v54, %v5469_v29  ;;  %8194 = vmatprep.subr.bf16.mxu1 %v11866_v0  ;;  %v20193_v59 = vld [vmem:[#allocation93_spill] sm:$0xff]  ;;  %v11887_v0 = vld [vmem:[%s18802_s3 + $0x1d4] ss:$8 sps:$4 sm:$0xff]  }
 0x5fc   :  { %v4812_v56 = vpop.permute.xlu0 %4811  ;;  %v4818_v17 = vpop.permute.xlu1 %4817  ;;  %8195 = vmatpush1.bf16.msra.mxu1 %v11864_v15  ;;  %v11884_v29 = vld [vmem:[%s18802_s3 + $0x1c4] ss:$8 sps:$4 sm:$0xff]   ;;  %v11885_v15 = vld [vmem:[%s18802_s3 + $0x1d0] ss:$8 sps:$4 sm:$0xff]  }
 0x5fd   :  { %v5467_v23 = vmax.f32 %v16821_v18, %v4812_v56  ;;  %v5470_v19 = vmax.f32 %v16816_v53, %v4818_v17  ;;  %v11867_v18 = vld [vmem:[%s18802_s3 + $0x170] ss:$8 sps:$4 sm:$0xff]   ;;  %v11869_v53 = vld [vmem:[%s18802_s3 + $0x174] ss:$8 sps:$4 sm:$0xff]   ;;  %v6052_v46 = vmax.f32 %v5764_v4, 0.0  ;;  %v20195_v17 = vld [vmem:[#allocation77_spill] sm:$0xff] }
 0x5fe   :  { %3235 = vrot.lane.b32.xlu0 %v20182_v40, %s12014_s11  ;;  %3241 = vrot.lane.b32.xlu1 %v20183_v33, %s12014_s11  ;;  %v20194_v56 = vld [vmem:[#allocation223_spill] sm:$0xff]  ;;  %v20196_v4 = vld [vmem:[#allocation224_spill] sm:$0xff] }
 0x5ff   :  { %8062 = vmatmul.mubr.bf16.gmra.mrb[52].mxu1 %v7147_v5  ;;  %v5765_v7 = vadd.f32 %v16712_v54, %v5470_v19  ;;  %v5762_v1 = vadd.f32 %v16712_v54, %v5467_v23  ;;  %8196 = vmatprep.subr.bf16.mxu1 %v11869_v53  ;;  %v11882_v5 = vld [vmem:[%s18802_s3 + $0x1c0] ss:$8 sps:$4 sm:$0xff]  }
 0x600   :  { %8071 = vmatprep.mubr.bf16.mxu1 %v16787_v16  ;;  %v6705_v49 = vpop.permute.xlu0 %6704  ;;  %v4814_v41 = vpop.permute.xlu1 %4813  ;;  %v20185_v16 = vld [vmem:[#allocation162_spill] sm:$0xff]  ;;  %8197 = vmatpush1.bf16.msra.mxu1 %v11867_v18  ;;  %v11888_v18 = vld [vmem:[%s18802_s3 + $0x1e0] ss:$8 sps:$4 sm:$0xff]  }
 0x601   :  { %v6053_v45 = vmax.f32 %v5765_v7, 0.0  ;;  %v5468_v61 = vmax.f32 %v16838_v60, %v4814_v41  ;;  %v11872_v60 = vld [vmem:[%s18802_s3 + $0x184] ss:$8 sps:$4 sm:$0xff]   ;;  %v6050_v35 = vmax.f32 %v5762_v1, 0.0  ;;  %v11893_v1 = vld [vmem:[%s18802_s3 + $0x1f4] ss:$8 sps:$4 sm:$0xff]  }
 0x602   :  { %3287 = vrot.lane.b32.xlu0 %v20184_v51, %s12014_s11  ;;  %3237 = vrot.lane.b32.xlu1 %v20185_v16, %s12014_s11  ;;  %v11890_v41 = vld [vmem:[%s18802_s3 + $0x1e4] ss:$8 sps:$4 sm:$0xff]  }
 0x603   :  { %v6235_v48 = vpack.c.bf16 %v6053_v45, %v6052_v46  ;;  %v5763_v34 = vadd.f32 %v16712_v54, %v5468_v61  ;;  %v20187_v54 = vld [vmem:[#allocation192_spill] sm:$0xff]  ;;  %8198 = vmatprep.subr.bf16.mxu1 %v11872_v60  ;;  %v11891_v46 = vld [vmem:[%s18802_s3 + $0x1f0] ss:$8 sps:$4 sm:$0xff]   ;;  %v20197_v45 = vld [vmem:[#allocation49_spill] sm:$0xff] }
 0x604   :  { %v6765_v55 = vpop.permute.xlu0 %6764  ;;  %v6703_v26 = vpop.permute.xlu1 %6702  ;;  %8199 = vmatpush1.bf16.msra.mxu1 %v11870_v44  ;;  %v20199_v61 = vld [vmem:[#allocation144_spill] sm:$0xff] }
 0x605   :  { %6671 = vst.msk [vmem:[#allocation2 + $0xe8] sm:$0xff] %vm6274_vm1, %v6235_v48  ;;  %v6051_v32 = vmax.f32 %v5763_v34, 0.0  ;;  %8200 = vmatprep.subr.bf16.mxu1 %v11875_v3  ;;  %v20200_v48 = vld [vmem:[#allocation277_spill] sm:$0xff]  ;;  %v20201_v34 = vld [vmem:[#allocation271_spill] sm:$0xff]  ;;  %v20204_v44 = vld [vmem:[#allocation280_spill] sm:$0xff] }
 0x606   :  { %3143 = vrot.lane.b32.xlu0 %v20186_v30, %s12014_s11  ;;  %3289 = vrot.lane.b32.xlu1 %v20187_v54, %s12014_s11  ;;  %6731 = vst.msk [vmem:[#allocation2 + $0xe8] sm:$0xff] %vm6335_vm2, %v6705_v49  ;;  %v17207_v3 = vld [vmem:[#allocation2 + $0x50] sm:$0xff] }
 0x607   :  { %8072 = vmatmul.mubr.bf16.gmra.mrb[56].mxu1 %v16805_v22  ;;  %6791 = vst.msk [vmem:[#allocation2 + $0xe8] sm:$0xff] %vm6396_vm3, %v6765_v55  ;;  %v6234_v14 = vpack.c.bf16 %v6051_v32, %v6050_v35  ;;  %v20188_v22 = vld [vmem:[#allocation191_spill] sm:$0xff]  ;;  %v20202_v55 = vld [vmem:[#allocation278_spill] sm:$0xff]  ;;  %v17196_v32 = vld [vmem:[#allocation2 + $0x48] sm:$0xff] }
 0x608   :  { %8081 = vmatprep.mubr.bf16.mxu1 %v16864_v20  ;;  %v6825_v31 = vpop.permute.xlu0 %6824  ;;  %v6763_v42 = vpop.permute.xlu1 %6762  ;;  %v20189_v20 = vld [vmem:[#allocation76_spill] sm:$0xff]  ;;  %8201 = vmatpush1.bf16.msra.mxu1 %v11873_v27  ;;  %v17203_v27 = vld [vmem:[#allocation2 + $0x30] sm:$0xff] }
 0x609   :  { %6670 = vst.msk [vmem:[#allocation2 + $0xd0] sm:$0xff] %vm6274_vm1, %v6234_v14  ;;  %8202 = vmatprep.subr.bf16.mxu1 %v11878_v28  ;;  %v12010_v28 = vld [vmem:[#allocation2 + $0x40] sm:$0xff] }
 0x60a   :  { %6851 = vst.msk [vmem:[#allocation2 + $0xe8] sm:$0xff] %vm6457_vm4, %v6825_v31  ;;  %3283 = vrot.lane.b32.xlu0 %v20188_v22, %s12014_s11  ;;  %3145 = vrot.lane.b32.xlu1 %v20189_v20, %s12014_s11 }
 0x60b   :  { %6730 = vst.msk [vmem:[#allocation2 + $0xd0] sm:$0xff] %vm6335_vm2, %v6703_v26  ;;  %v20203_v26 = vld [vmem:[#allocation279_spill] sm:$0xff] }
 0x60c   :  { %6790 = vst.msk [vmem:[#allocation2 + $0xd0] sm:$0xff] %vm6396_vm3, %v6763_v42  ;;  %v6823_v8 = vpop.permute.xlu1 %6822  ;;  %8203 = vmatpush1.bf16.msra.mxu1 %v11876_v9  ;;  %v17221_v9 = vld [vmem:[#allocation2 + $0x58] sm:$0xff] }
 0x60d   :  { %6850 = vst.msk [vmem:[#allocation2 + $0xd0] sm:$0xff] %vm6457_vm4, %v6823_v8  ;;  %8204 = vmatprep.subr.bf16.mxu1 %v11881_v12  ;;  %v17214_v8 = vld [vmem:[#allocation2 + $0x38] sm:$0xff]  ;;  %v20207_v12 = vld [vmem:[#allocation120_spill] sm:$0xff] }
 0x60e   :  { %3335 = vrot.lane.b32.xlu0 %v20190_v57, %s12014_s11  ;;  %3285 = vrot.lane.b32.xlu1 %v20191_v6, %s12014_s11 }
 0x60f   :  { %8082 = vmatmul.mubr.bf16.gmra.mrb[60].mxu1 %v16883_v50 }
 0x610   :  { %v7215_v13 = vpop.permute.xlu0 %7214  ;;  %8205 = vmatpush1.bf16.msra.mxu1 %v11879_v11  ;;  %v20208_v11 = vld [vmem:[#allocation92_spill] sm:$0xff] }
 0x611   :  { %8206 = vmatprep.subr.bf16.mxu1 %v11884_v29  ;;  %v17148_v7 = vld [vmem:[#allocation2 + $0xe8] sm:$0xff]  ;;  %v20212_v29 = vld [vmem:[#allocation27_spill] sm:$0xff] }
 0x612   :  { %3139 = vrot.lane.b32.xlu0 %v20192_v24, %s12014_s11  ;;  %3337 = vrot.lane.b32.xlu1 %v20193_v59, %s12014_s11 }
 0x614   :  { %v7217_v43 = vpop.permute.xlu1 %7216  ;;  %8207 = vmatpush1.bf16.msra.mxu1 %v11882_v5  ;;  %v17162_v53 = vld [vmem:[#allocation2 + $0xd0] sm:$0xff] }
 0x615   :  { %v7218_v50 = vsel %vm6870_vm5, %v7215_v13, %v7217_v43  ;;  %8208 = vmatprep.subr.bf16.mxu1 %v11887_v0  ;;  %v20209_v13 = vld [vmem:[#allocation25_spill] sm:$0xff] }
 0x616   :  { %3331 = vrot.lane.b32.xlu0 %v20194_v56, %s12014_s11  ;;  %3141 = vrot.lane.b32.xlu1 %v20195_v17, %s12014_s11  ;;  %v17236_v43 = vmax.f32 %v20209_v13, %v20208_v11  ;;  %v20217_v11 = vld [vmem:[#allocation145_spill] sm:$0xff]  ;;  %v20218_v13 = vld [vmem:[#allocation39_spill] sm:$0xff] }
 0x617   :  { %8091 = vmatprep.mubr.bf16.mxu1 %v7218_v50  ;;  %v20211_v50 = vld [vmem:[#allocation94_spill] sm:$0xff] }
 0x618   :  { %v7206_v23 = vpop.permute.xlu1 %7205  ;;  %8209 = vmatpush1.bf16.msra.mxu1 %v11885_v15  ;;  %v17244_v5 = vmax.f32 %v20212_v29, %v20211_v50  ;;  %v17273_v50 = vmax.f32 %v20218_v13, %v20217_v11 }
 0x619   :  { %8210 = vmatprep.subr.bf16.mxu1 %v11890_v41 }
 0x61a   :  { %7378 = vrot.lane.b32.xlu0 %v17020_v21, %s12015_s10  ;;  %3333 = vrot.lane.b32.xlu1 %v20196_v4, %s12014_s11 }
 0x61b   :  { %v7204_v19 = vpop.permute.xlu0 %7203 }
 0x61c   :  { %v7207_v49 = vsel %vm6870_vm5, %v7204_v19, %v7206_v23  ;;  %8211 = vmatpush1.bf16.msra.mxu1 %v11888_v18 }
 0x61d   :  { %8092 = vmatmul.mubr.bf16.gmra.mrb[64].mxu1 %v7207_v49  ;;  %8212 = vmatprep.subr.bf16.mxu1 %v11893_v1 }
 0x61e   :  { %7367 = vrot.lane.b32.xlu0 %v17034_v25, %s12015_s10  ;;  %7380 = vrot.lane.b32.xlu1 %v17148_v7, %s12015_s10 }
 0x61f   :  { %8101 = vmatprep.mubr.bf16.mxu1 %v16870_v47  ;;  %v20198_v47 = vld [vmem:[#allocation142_spill] sm:$0xff]  ;;  %v7267_v60 = vpop.permute.xlu0 %7266 }
 0x620   :  { %8213 = vmatpush1.bf16.msra.mxu1 %v11891_v46 }
 0x622   :  { %3431 = vrot.lane.b32.xlu0 %v20197_v45, %s12014_s11  ;;  %7369 = vrot.lane.b32.xlu1 %v17162_v53, %s12015_s10 }
 0x623   :  { %v7256_v14 = vpop.permute.xlu0 %7255 }
 0x625   :  { %8102 = vmatmul.mubr.bf16.gmra.mrb[68].mxu1 %v16877_v36 }
 0x626   :  { %3427 = vrot.lane.b32.xlu0 %v20198_v47, %s12014_s11  ;;  %3433 = vrot.lane.b32.xlu1 %v20199_v61, %s12014_s11 }
 0x62a   :  { %3479 = vrot.lane.b32.xlu0 %v20200_v48, %s12014_s11  ;;  %3429 = vrot.lane.b32.xlu1 %v20201_v34, %s12014_s11 }
 0x62e   :  { %3475 = vrot.lane.b32.xlu0 %v20202_v55, %s12014_s11  ;;  %3481 = vrot.lane.b32.xlu1 %v20203_v26, %s12014_s11 }
 0x632   :  { %3477 = vrot.lane.b32.xlu1 %v20204_v44, %s12014_s11  ;;  %3527 = vrot.lane.b32.xlu0 %v16903_v62, %s12014_s11 }
 0x636   :  { %3523 = vrot.lane.b32.xlu0 %v16905_v38, %s12014_s11  ;;  %3529 = vrot.lane.b32.xlu1 %v16908_v39, %s12014_s11 }
 0x637   :  { %v7269_v36 = vpop.permute.xlu1 %7268 }
 0x638   :  { %v7270_v35 = vsel %vm6870_vm5, %v7267_v60, %v7269_v36  ;;  %v20213_v60 = vld [vmem:[#allocation96_spill] sm:$0xff]  ;;  %v20214_v36 = vld [vmem:[#allocation26_spill] sm:$0xff] }
 0x639   :  { %8111 = vmatprep.mubr.bf16.mxu1 %v7270_v35  ;;  %v17258_v35 = vmax.f32 %v20214_v36, %v20213_v60  ;;  %v20222_v60 = vld [vmem:[#allocation41_spill] sm:$0xff] }
 0x63a   :  { %6900 = vrot.lane.b32.xlu0 %v17196_v32, %s12015_s10  ;;  %3525 = vrot.lane.b32.xlu1 %v16913_v10, %s12014_s11 }
 0x63b   :  { %v7258_v31 = vpop.permute.xlu1 %7257 }
 0x63c   :  { %v7259_v42 = vsel %vm6870_vm5, %v7256_v14, %v7258_v31  ;;  %v20215_v31 = vld [vmem:[#allocation98_spill] sm:$0xff] }
 0x63d   :  { %8112 = vmatmul.mubr.bf16.gmra.mrb[72].mxu1 %v7259_v42  ;;  %v20216_v42 = vld [vmem:[#allocation28_spill] sm:$0xff] }
 0x63e   :  { %6889 = vrot.lane.b32.xlu0 %v17203_v27, %s12015_s10  ;;  %6902 = vrot.lane.b32.xlu1 %v17207_v3, %s12015_s10 }
 0x63f   :  { %8121 = vmatprep.mubr.bf16.mxu1 %v16930_v2  ;;  %v20205_v2 = vld [vmem:[#allocation117_spill] sm:$0xff] }
 0x642   :  { %6952 = vrot.lane.b32.xlu0 %v17207_v3, %s12015_s10  ;;  %6891 = vrot.lane.b32.xlu1 %v17214_v8, %s12015_s10 }
 0x645   :  { %8122 = vmatmul.mubr.bf16.gmra.mrb[76].mxu1 %v16939_v37  ;;  %v20206_v37 = vld [vmem:[#allocation119_spill] sm:$0xff] }
 0x646   :  { %6941 = vrot.lane.b32.xlu0 %v17214_v8, %s12015_s10  ;;  %6954 = vrot.lane.b32.xlu1 %v17221_v9, %s12015_s10 }
 0x647   :  { %8131 = vmatprep.mubr.bf16.mxu1 %v17007_v63  ;;  %v20210_v63 = vld [vmem:[#allocation121_spill] sm:$0xff] }
 0x64a   :  { %3191 = vrot.lane.b32.xlu0 %v20205_v2, %s12014_s11  ;;  %6943 = vrot.lane.b32.xlu1 %v12010_v28, %s12015_s10  ;;  %v17269_v28 = vmax.f32 %v20216_v42, %v20215_v31 }
 0x64d   :  { %8132 = vmatmul.mubr.bf16.gmra.mrb[80].mxu1 %v17018_v58 }
 0x64e   :  { %3187 = vrot.lane.b32.xlu0 %v20206_v37, %s12014_s11  ;;  %3193 = vrot.lane.b32.xlu1 %v20207_v12, %s12014_s11 }
 0x652   :  { %4487 = vrot.lane.b32.xlu0 %v17236_v43, %s12015_s10  ;;  %3189 = vrot.lane.b32.xlu1 %v20210_v63, %s12014_s11 }
 0x656   :  { %4489 = vrot.lane.b32.xlu1 %v17244_v5, %s12015_s10 }
 0x664   :  { %v7327_v58 = vpop.permute.xlu0 %7326 }
 0x668   :  { %v7316_v15 = vpop.permute.xlu0 %7315  ;;  %v7329_v0 = vpop.permute.xlu1 %7328 }
 0x669   :  { %v7330_v23 = vsel %vm6870_vm5, %v7327_v58, %v7329_v0  ;;  %v20219_v58 = vld [vmem:[#allocation146_spill] sm:$0xff] }
 0x66a   :  { %8141 = vmatprep.mubr.bf16.mxu1 %v7330_v23 }
 0x66c   :  { %v3240_v19 = vpop.permute.xlu0 %3239  ;;  %v7318_v49 = vpop.permute.xlu1 %7317 }
 0x66d   :  { %v17250_v41 = vmax.f32 %v20181_v52, %v3240_v19  ;;  %v7319_v18 = vsel %vm6870_vm5, %v7316_v15, %v7318_v49  ;;  %v20220_v15 = vld [vmem:[#allocation42_spill] sm:$0xff] }
 0x66e   :  { %8142 = vmatmul.mubr.bf16.gmra.mrb[84].mxu1 %v7319_v18  ;;  %v17282_v0 = vmax.f32 %v20220_v15, %v20219_v58 }
 0x66f   :  { %8151 = vmatprep.mubr.bf16.mxu1 %v17020_v21  ;;  %4679 = vrot.lane.b32.xlu0 %v17250_v41, %s12015_s10 }
 0x670   :  { %v3236_v46 = vpop.permute.xlu0 %3235  ;;  %v3242_v1 = vpop.permute.xlu1 %3241 }
 0x671   :  { %v17261_v14 = vmax.f32 %v20183_v33, %v3242_v1  ;;  %v17285_v23 = vmax.f32 %v20182_v40, %v3236_v46  ;;  %v20221_v1 = vld [vmem:[#allocation148_spill] sm:$0xff] }
 0x672   :  { %v17303_v36 = vmax.f32 %v20222_v60, %v20221_v1 }
 0x673   :  { %4483 = vrot.lane.b32.xlu0 %v17258_v35, %s12015_s10  ;;  %4681 = vrot.lane.b32.xlu1 %v17261_v14, %s12015_s10 }
 0x674   :  { %v3288_v52 = vpop.permute.xlu0 %3287  ;;  %v3238_v21 = vpop.permute.xlu1 %3237 }
 0x675   :  { %v17292_v49 = vmax.f32 %v20184_v51, %v3288_v52  ;;  %v17295_v18 = vmax.f32 %v20185_v16, %v3238_v21  ;;  %v20223_v52 = vld [vmem:[#allocation151_spill] sm:$0xff] }
 0x676   :  { %8152 = vmatmul.mubr.bf16.gmra.mrb[88].mxu1 %v17034_v25  ;;  %v20224_v21 = vld [vmem:[#allocation43_spill] sm:$0xff] }
 0x677   :  { %4535 = vrot.lane.b32.xlu0 %v17273_v50, %s12015_s10  ;;  %4485 = vrot.lane.b32.xlu1 %v17269_v28, %s12015_s10  ;;  %v17314_v42 = vmax.f32 %v20224_v21, %v20223_v52  ;;  %v20227_v21 = vld [vmem:[#allocation147_spill] sm:$0xff] }
 0x678   :  { %v3144_v33 = vpop.permute.xlu0 %3143  ;;  %v3290_v29 = vpop.permute.xlu1 %3289 }
 0x679   :  { %v17306_v31 = vmax.f32 %v20187_v54, %v3290_v29  ;;  %v17317_v11 = vmax.f32 %v20186_v30, %v3144_v33 }
 0x67b   :  { %4675 = vrot.lane.b32.xlu0 %v17285_v23, %s12015_s10  ;;  %4537 = vrot.lane.b32.xlu1 %v17282_v0, %s12015_s10 }
 0x67c   :  { %v3284_v25 = vpop.permute.xlu0 %3283  ;;  %v3146_v19 = vpop.permute.xlu1 %3145 }
 0x67d   :  { %v17324_v29 = vmax.f32 %v20188_v22, %v3284_v25  ;;  %v17327_v58 = vmax.f32 %v20189_v20, %v3146_v19 }
 0x67f   :  { %4727 = vrot.lane.b32.xlu0 %v17292_v49, %s12015_s10  ;;  %4677 = vrot.lane.b32.xlu1 %v17295_v18, %s12015_s10 }
 0x680   :  { %v3336_v40 = vpop.permute.xlu0 %3335  ;;  %v3286_v46 = vpop.permute.xlu1 %3285 }
 0x681   :  { %v17334_v15 = vmax.f32 %v20190_v57, %v3336_v40  ;;  %v17337_v1 = vmax.f32 %v20191_v6, %v3286_v46 }
 0x683   :  { %4531 = vrot.lane.b32.xlu0 %v17303_v36, %s12015_s10  ;;  %4729 = vrot.lane.b32.xlu1 %v17306_v31, %s12015_s10 }
 0x684   :  { %v3140_v51 = vpop.permute.xlu0 %3139  ;;  %v3338_v16 = vpop.permute.xlu1 %3337 }
 0x685   :  { %v17344_v25 = vmax.f32 %v20192_v24, %v3140_v51  ;;  %v17347_v19 = vmax.f32 %v20193_v59, %v3338_v16 }
 0x687   :  { %4583 = vrot.lane.b32.xlu0 %v17317_v11, %s12015_s10  ;;  %4533 = vrot.lane.b32.xlu1 %v17314_v42, %s12015_s10 }
 0x688   :  { %v3332_v54 = vpop.permute.xlu0 %3331  ;;  %v3142_v13 = vpop.permute.xlu1 %3141 }
 0x689   :  { %v17355_v46 = vmax.f32 %v20194_v56, %v3332_v54  ;;  %v17359_v60 = vmax.f32 %v20195_v17, %v3142_v13  ;;  %v20225_v56 = vld [vmem:[#allocation155_spill] sm:$0xff] }
 0x68a   :  { %v17379_v13 = vld [vmem:[#allocation2 + $0x78] sm:$0xff] }
 0x68b   :  { %4723 = vrot.lane.b32.xlu0 %v17324_v29, %s12015_s10  ;;  %4585 = vrot.lane.b32.xlu1 %v17327_v58, %s12015_s10 }
 0x68c   :  { %v7379_v30 = vpop.permute.xlu0 %7378  ;;  %v3334_v33 = vpop.permute.xlu1 %3333 }
 0x68d   :  { %v17367_v16 = vmax.f32 %v20196_v4, %v3334_v33 }
 0x68f   :  { %4775 = vrot.lane.b32.xlu0 %v17334_v15, %s12015_s10  ;;  %4725 = vrot.lane.b32.xlu1 %v17337_v1, %s12015_s10 }
 0x690   :  { %v7368_v22 = vpop.permute.xlu0 %7367  ;;  %v7381_v20 = vpop.permute.xlu1 %7380 }
 0x691   :  { %v7382_v57 = vsel %vm6870_vm5, %v7379_v30, %v7381_v20  ;;  %v20228_v30 = vld [vmem:[#allocation150_spill] sm:$0xff] }
 0x692   :  { %8161 = vmatprep.mubr.bf16.mxu1 %v7382_v57 }
 0x693   :  { %4579 = vrot.lane.b32.xlu0 %v17344_v25, %s12015_s10  ;;  %4777 = vrot.lane.b32.xlu1 %v17347_v19, %s12015_s10 }
 0x694   :  { %v3432_v6 = vpop.permute.xlu0 %3431  ;;  %v7370_v40 = vpop.permute.xlu1 %7369 }
 0x695   :  { %v7371_v24 = vsel %vm6870_vm5, %v7368_v22, %v7370_v40  ;;  %v17390_v22 = vld [vmem:[#allocation2 + $0x80] sm:$0xff]  ;;  %v17395_v57 = vmax.f32 %v20197_v45, %v3432_v6 }
 0x696   :  { %8162 = vmatmul.mubr.bf16.gmra.mrb[92].mxu1 %v7371_v24  ;;  %v17399_v24 = vld [vmem:[#allocation2 + $0x68] sm:$0xff] }
 0x697   :  { %8171 = vmatprep.mubr.bf16.mxu1 %v17148_v7  ;;  %4771 = vrot.lane.b32.xlu0 %v17355_v46, %s12015_s10  ;;  %v20226_v7 = vld [vmem:[#allocation156_spill] sm:$0xff]  ;;  %20229 = vst [vmem:[#allocation65_spill] sm:$0xff] %v17395_v57 }
 0x698   :  { %4581 = vrot.lane.b32.xlu1 %v17359_v60, %s12015_s10  ;;  %v3428_v59 = vpop.permute.xlu0 %3427  ;;  %v3434_v51 = vpop.permute.xlu1 %3433 }
 0x69b   :  { %3383 = vrot.lane.b32.xlu0 %v20225_v56, %s12014_s11 }
 0x69c   :  { %4773 = vrot.lane.b32.xlu1 %v17367_v16, %s12015_s10  ;;  %v3480_v17 = vpop.permute.xlu0 %3479  ;;  %v3430_v52 = vpop.permute.xlu1 %3429 }
 0x69d   :  { %v17414_v45 = vmax.f32 %v20200_v48, %v3480_v17 }
 0x69e   :  { %8172 = vmatmul.mubr.bf16.gmra.mrb[96].mxu1 %v17162_v53 }
 0x69f   :  { %8214 = vmatprep.mubr.bf16.mxu1 %v17196_v32  ;;  %3379 = vrot.lane.b32.xlu0 %v20226_v7, %s12014_s11  ;;  %v17386_v32 = vld [vmem:[#allocation2 + $0x60] sm:$0xff] }
 0x6a0   :  { %3385 = vrot.lane.b32.xlu1 %v20227_v21, %s12014_s11  ;;  %v3476_v4 = vpop.permute.xlu0 %3475  ;;  %v3482_v54 = vpop.permute.xlu1 %3481  ;;  %v17407_v21 = vmax.f32 %v20199_v61, %v3434_v51 }
 0x6a1   :  { %v17425_v61 = vmax.f32 %v20202_v55, %v3476_v4  ;;  %v17428_v48 = vmax.f32 %v20203_v26, %v3482_v54  ;;  %v17468_v54 = vld [vmem:[#allocation2 + $0x88] sm:$0xff] }
 0x6a3   :  { %7012 = vrot.lane.b32.xlu0 %v17379_v13, %s12015_s10 }
 0x6a4   :  { %3381 = vrot.lane.b32.xlu1 %v20228_v30, %s12014_s11  ;;  %v3478_v33 = vpop.permute.xlu1 %3477  ;;  %v3528_v53 = vpop.permute.xlu0 %3527 }
 0x6a5   :  { %v17437_v17 = vmax.f32 %v16903_v62, %v3528_v53  ;;  %v17440_v55 = vmax.f32 %v20204_v44, %v3478_v33 }
 0x6a6   :  { %8215 = vmatmul.mubr.bf16.vlgmr.msra.gmra.mrb[0].mxu1 %v17203_v27  ;;  %v17404_v27 = vmax.f32 %v20198_v47, %v3428_v59 }
 0x6a7   :  { %7001 = vrot.lane.b32.xlu0 %v17386_v32, %s12015_s10 }
 0x6a8   :  { %7014 = vrot.lane.b32.xlu1 %v17390_v22, %s12015_s10  ;;  %v3530_v20 = vpop.permute.xlu1 %3529  ;;  %v3524_v40 = vpop.permute.xlu0 %3523 }
 0x6a9   :  { %v17450_v4 = vmax.f32 %v16908_v39, %v3530_v20 }
 0x6ab   :  { %4871 = vrot.lane.b32.xlu0 %v17395_v57, %s12015_s10  ;;  %v17417_v57 = vmax.f32 %v20201_v34, %v3430_v52 }
 0x6ac   :  { %7003 = vrot.lane.b32.xlu1 %v17399_v24, %s12015_s10  ;;  %v3526_v30 = vpop.permute.xlu1 %3525  ;;  %v6901_v7 = vpop.permute.xlu0 %6900 }
 0x6af   :  { %4867 = vrot.lane.b32.xlu0 %v17404_v27, %s12015_s10 }
 0x6b0   :  { %4873 = vrot.lane.b32.xlu1 %v17407_v21, %s12015_s10  ;;  %v6903_v6 = vpop.permute.xlu1 %6902  ;;  %v6890_v59 = vpop.permute.xlu0 %6889 }
 0x6b1   :  { %v6904_v47 = vsel %vm6870_vm5, %v6901_v7, %v6903_v6  ;;  %v17447_v7 = vmax.f32 %v16905_v38, %v3524_v40  ;;  %v6963_v40 = vld [vmem:[#allocation2 + $0x40] sm:$0xff]  ;;  %v17481_v6 = vld [vmem:[#allocation2 + $0x90] sm:$0xff] }
 0x6b2   :  { %8224 = vmatprep.mubr.bf16.mxu1 %v6904_v47  ;;  %v20230_v47 = vld [vmem:[#allocation60_spill] sm:$0xff] }
 0x6b3   :  { %4919 = vrot.lane.b32.xlu0 %v17414_v45, %s12015_s10 }
 0x6b4   :  { %4869 = vrot.lane.b32.xlu1 %v17417_v57, %s12015_s10  ;;  %v6892_v51 = vpop.permute.xlu1 %6891  ;;  %v6953_v26 = vpop.permute.xlu0 %6952 }
 0x6b5   :  { %v6893_v34 = vsel %vm6870_vm5, %v6890_v59, %v6892_v51  ;;  %v20231_v59 = vld [vmem:[#allocation17_spill] sm:$0xff] }
 0x6b6   :  { %8225 = vmatmul.mubr.bf16.gmra.mrb[4].mxu1 %v6893_v34  ;;  %v17492_v51 = vmax.f32 %v20231_v59, %v20230_v47  ;;  %v20234_v47 = vld [vmem:[#allocation62_spill] sm:$0xff] }
 0x6b7   :  { %4915 = vrot.lane.b32.xlu0 %v17425_v61, %s12015_s10  ;;  %8234 = vmatprep.mubr.bf16.mxu1 %v17207_v3  ;;  %v17459_v3 = vmax.f32 %v16913_v10, %v3526_v30  ;;  %v17473_v10 = vld [vmem:[#allocation2 + $0xa8] sm:$0xff]  ;;  %v17477_v30 = vld [vmem:[#allocation2 + $0x70] sm:$0xff] }
 0x6b8   :  { %4921 = vrot.lane.b32.xlu1 %v17428_v48, %s12015_s10  ;;  %v6955_v52 = vpop.permute.xlu1 %6954  ;;  %v6942_v38 = vpop.permute.xlu0 %6941  ;;  %v20235_v59 = vld [vmem:[#allocation18_spill] sm:$0xff] }
 0x6b9   :  { %v6956_v62 = vsel %vm6870_vm5, %v6953_v26, %v6955_v52  ;;  %v17496_v52 = vld [vmem:[#allocation2 + $0x98] sm:$0xff] }
 0x6bb   :  { %4967 = vrot.lane.b32.xlu0 %v17437_v17, %s12015_s10 }
 0x6bc   :  { %4917 = vrot.lane.b32.xlu1 %v17440_v55, %s12015_s10  ;;  %v6944_v44 = vpop.permute.xlu1 %6943  ;;  %v3192_v33 = vpop.permute.xlu0 %3191 }
 0x6be   :  { %8235 = vmatmul.mubr.bf16.gmra.mrb[8].mxu1 %v17214_v8  ;;  %v6945_v8 = vsel %vm6870_vm5, %v6942_v38, %v6944_v44  ;;  %v20233_v38 = vld [vmem:[#allocation19_spill] sm:$0xff] }
 0x6bf   :  { %4963 = vrot.lane.b32.xlu0 %v17447_v7, %s12015_s10  ;;  %8244 = vmatprep.mubr.bf16.mxu1 %v6956_v62  ;;  %v17501_v62 = vmax.f32 %v20205_v2, %v3192_v33  ;;  %v17516_v2 = vmax.f32 %v20235_v59, %v20234_v47 }
 0x6c0   :  { %4969 = vrot.lane.b32.xlu1 %v17450_v4, %s12015_s10  ;;  %v3194_v39 = vpop.permute.xlu1 %3193  ;;  %v3188_v20 = vpop.permute.xlu0 %3187 }
 0x6c3   :  { %7064 = vrot.lane.b32.xlu0 %v17390_v22, %s12015_s10 }
 0x6c4   :  { %4965 = vrot.lane.b32.xlu1 %v17459_v3, %s12015_s10  ;;  %v3190_v53 = vpop.permute.xlu1 %3189  ;;  %v4488_v26 = vpop.permute.xlu0 %4487 }
 0x6c6   :  { %8245 = vmatmul.mubr.bf16.gmra.mrb[12].mxu1 %v6945_v8 }
 0x6c7   :  { %7053 = vrot.lane.b32.xlu0 %v17399_v24, %s12015_s10  ;;  %8254 = vmatprep.mubr.bf16.mxu1 %v17221_v9  ;;  %v17485_v9 = vld [vmem:[#allocation2 + $0xb0] sm:$0xff] }
 0x6c8   :  { %7066 = vrot.lane.b32.xlu1 %v17468_v54, %s12015_s10  ;;  %v4490_v34 = vpop.permute.xlu1 %4489 }
 0x6c9   :  { %v5306_v44 = vmax.f32 %v17244_v5, %v4490_v34  ;;  %v17521_v5 = vld [vmem:[%s18801_s2] ss:$0 sm:$0xff]  ;;  %v17533_v34 = vmax.f32 %v20206_v37, %v3188_v20 }
 0x6cb   :  { %7124 = vrot.lane.b32.xlu0 %v17473_v10, %s12015_s10  ;;  %v5601_v33 = vadd.f32 %v17521_v5, %v5306_v44 }
 0x6cc   :  { %7055 = vrot.lane.b32.xlu1 %v17477_v30, %s12015_s10 }
 0x6ce   :  { %8255 = vmatmul.mubr.bf16.gmra.mrb[16].mxu1 %v6963_v40  ;;  %v5305_v40 = vmax.f32 %v17236_v43, %v4488_v26  ;;  %v17525_v43 = vmax.f32 %v20207_v12, %v3194_v39  ;;  %v5889_v26 = vmax.f32 %v5601_v33, 0.0 }
 0x6cf   :  { %7113 = vrot.lane.b32.xlu0 %v17481_v6, %s12015_s10  ;;  %8264 = vmatprep.mubr.bf16.mxu1 %v17379_v13  ;;  %v20232_v13 = vld [vmem:[#allocation61_spill] sm:$0xff] }
 0x6d0   :  { %7126 = vrot.lane.b32.xlu1 %v17485_v9, %s12015_s10  ;;  %v17506_v8 = vmax.f32 %v20233_v38, %v20232_v13  ;;  %v20236_v13 = vld [vmem:[#allocation64_spill] sm:$0xff] }
 0x6d1   :  { %v20237_v38 = vld [vmem:[#allocation20_spill] sm:$0xff] }
 0x6d2   :  { %v17537_v47 = vmax.f32 %v20237_v38, %v20236_v13 }
 0x6d3   :  { %4439 = vrot.lane.b32.xlu0 %v17492_v51, %s12015_s10 }
 0x6d4   :  { %7115 = vrot.lane.b32.xlu1 %v17496_v52, %s12015_s10  ;;  %20238 = vst [vmem:[#allocation254_spill] sm:$0xff] %v17537_v47 }
 0x6d6   :  { %8265 = vmatmul.mubr.bf16.gmra.mrb[20].mxu1 %v17386_v32  ;;  %v5600_v32 = vadd.f32 %v17521_v5, %v5305_v40  ;;  %v17544_v40 = vmax.f32 %v20210_v63, %v3190_v53 }
 0x6d7   :  { %4631 = vrot.lane.b32.xlu0 %v17501_v62, %s12015_s10 }
 0x6d8   :  { %4441 = vrot.lane.b32.xlu1 %v17506_v8, %s12015_s10  ;;  %v5888_v44 = vmax.f32 %v5600_v32, 0.0  ;;  %20239 = vst [vmem:[#allocation63_spill] sm:$0xff] %v17544_v40 }
 0x6da   :  { %v6153_v12 = vpack.c.bf16 %v5889_v26, %v5888_v44 }
 0x6db   :  { %4435 = vrot.lane.b32.xlu0 %v17516_v2, %s12015_s10 }
 0x6dc   :  { %4633 = vrot.lane.b32.xlu1 %v17525_v43, %s12015_s10 }
 0x6df   :  { %4627 = vrot.lane.b32.xlu0 %v17533_v34, %s12015_s10 }
 0x6e0   :  { %4437 = vrot.lane.b32.xlu1 %v17537_v47, %s12015_s10 }
 0x6e1   :  { %v4680_v39 = vpop.permute.xlu0 %4679 }
 0x6e2   :  { %v5401_v37 = vmax.f32 %v17250_v41, %v4680_v39 }
 0x6e3   :  { %6321 = vrot.lane.b32.xlu0 %v6153_v12, %s12016_s29 }
 0x6e4   :  { %4629 = vrot.lane.b32.xlu1 %v17544_v40, %s12015_s10  ;;  %v5696_v20 = vadd.f32 %v17521_v5, %v5401_v37 }
 0x6e5   :  { %v4484_v59 = vpop.permute.xlu0 %4483  ;;  %v4682_v33 = vpop.permute.xlu1 %4681 }
 0x6e6   :  { %v5303_v32 = vmax.f32 %v17258_v35, %v4484_v59  ;;  %v5402_v13 = vmax.f32 %v17261_v14, %v4682_v33  ;;  %v5984_v38 = vmax.f32 %v5696_v20, 0.0 }
 0x6e8   :  { %v5697_v26 = vadd.f32 %v17521_v5, %v5402_v13  ;;  %v5598_v41 = vadd.f32 %v17521_v5, %v5303_v32 }
 0x6e9   :  { %v4536_v63 = vpop.permute.xlu0 %4535  ;;  %v4486_v53 = vpop.permute.xlu1 %4485 }
 0x6ea   :  { %v5985_v44 = vmax.f32 %v5697_v26, 0.0  ;;  %v5329_v12 = vmax.f32 %v17273_v50, %v4536_v63  ;;  %v5304_v39 = vmax.f32 %v17269_v28, %v4486_v53  ;;  %v5886_v14 = vmax.f32 %v5598_v41, 0.0 }
 0x6ec   :  { %v6201_v40 = vpack.c.bf16 %v5985_v44, %v5984_v38  ;;  %v5599_v37 = vadd.f32 %v17521_v5, %v5304_v39  ;;  %v5624_v47 = vadd.f32 %v17521_v5, %v5329_v12 }
 0x6ed   :  { %v4676_v35 = vpop.permute.xlu0 %4675  ;;  %v4538_v59 = vpop.permute.xlu1 %4537 }
 0x6ee   :  { %v5887_v33 = vmax.f32 %v5599_v37, 0.0  ;;  %v5399_v20 = vmax.f32 %v17285_v23, %v4676_v35  ;;  %v5330_v13 = vmax.f32 %v17282_v0, %v4538_v59  ;;  %6516 = vrot.lane.b32.xlu1 %v6201_v40, %s12016_s29  ;;  %v5912_v26 = vmax.f32 %v5624_v47, 0.0 }
 0x6f0   :  { %v6152_v32 = vpack.c.bf16 %v5887_v33, %v5886_v14  ;;  %v5625_v50 = vadd.f32 %v17521_v5, %v5330_v13  ;;  %v5694_v63 = vadd.f32 %v17521_v5, %v5399_v20 }
 0x6f1   :  { %v4728_v28 = vpop.permute.xlu0 %4727  ;;  %v4678_v38 = vpop.permute.xlu1 %4677 }
 0x6f2   :  { %v5913_v53 = vmax.f32 %v5625_v50, 0.0  ;;  %v5425_v44 = vmax.f32 %v17292_v49, %v4728_v28  ;;  %v5400_v41 = vmax.f32 %v17295_v18, %v4678_v38  ;;  %6319 = vrot.lane.b32.xlu0 %v6152_v32, %s12016_s29  ;;  %v5982_v37 = vmax.f32 %v5694_v63, 0.0 }
 0x6f4   :  { %v6165_v23 = vpack.c.bf16 %v5913_v53, %v5912_v26  ;;  %v5695_v0 = vadd.f32 %v17521_v5, %v5400_v41  ;;  %v5720_v40 = vadd.f32 %v17521_v5, %v5425_v44 }
 0x6f5   :  { %v4532_v12 = vpop.permute.xlu0 %4531  ;;  %v4730_v39 = vpop.permute.xlu1 %4729 }
 0x6f6   :  { %v5983_v47 = vmax.f32 %v5695_v0, 0.0  ;;  %v5327_v35 = vmax.f32 %v17303_v36, %v4532_v12  ;;  %v5426_v59 = vmax.f32 %v17306_v31, %v4730_v39  ;;  %6382 = vrot.lane.b32.xlu1 %v6165_v23, %s12015_s10  ;;  %v6008_v14 = vmax.f32 %v5720_v40, 0.0 }
 0x6f8   :  { %v6200_v49 = vpack.c.bf16 %v5983_v47, %v5982_v37  ;;  %v5721_v18 = vadd.f32 %v17521_v5, %v5426_v59  ;;  %v5622_v13 = vadd.f32 %v17521_v5, %v5327_v35 }
 0x6f9   :  { %v4584_v33 = vpop.permute.xlu0 %4583  ;;  %v4534_v20 = vpop.permute.xlu1 %4533 }
 0x6fa   :  { %v6009_v32 = vmax.f32 %v5721_v18, 0.0  ;;  %v5353_v50 = vmax.f32 %v17317_v11, %v4584_v33  ;;  %v5328_v26 = vmax.f32 %v17314_v42, %v4534_v20  ;;  %6514 = vrot.lane.b32.xlu0 %v6200_v49, %s12016_s29  ;;  %v5910_v53 = vmax.f32 %v5622_v13, 0.0 }
 0x6fc   :  { %v6213_v36 = vpack.c.bf16 %v6009_v32, %v6008_v14  ;;  %v5623_v31 = vadd.f32 %v17521_v5, %v5328_v26  ;;  %v5648_v28 = vadd.f32 %v17521_v5, %v5353_v50 }
 0x6fd   :  { %v4724_v38 = vpop.permute.xlu0 %4723  ;;  %v4586_v63 = vpop.permute.xlu1 %4585 }
 0x6fe   :  { %v5911_v44 = vmax.f32 %v5623_v31, 0.0  ;;  %v5423_v41 = vmax.f32 %v17324_v29, %v4724_v38  ;;  %v5354_v23 = vmax.f32 %v17327_v58, %v4586_v63  ;;  %6576 = vrot.lane.b32.xlu1 %v6213_v36, %s12015_s10  ;;  %v5936_v0 = vmax.f32 %v5648_v28, 0.0 }
 0x700   :  { %v6164_v11 = vpack.c.bf16 %v5911_v44, %v5910_v53  ;;  %v5649_v42 = vadd.f32 %v17521_v5, %v5354_v23  ;;  %v5718_v39 = vadd.f32 %v17521_v5, %v5423_v41 }
 0x701   :  { %v4776_v40 = vpop.permute.xlu0 %4775  ;;  %v4726_v12 = vpop.permute.xlu1 %4725 }
 0x702   :  { %v5937_v37 = vmax.f32 %v5649_v42, 0.0  ;;  %v5449_v47 = vmax.f32 %v17334_v15, %v4776_v40  ;;  %v5424_v35 = vmax.f32 %v17337_v1, %v4726_v12  ;;  %6380 = vrot.lane.b32.xlu0 %v6164_v11, %s12015_s10  ;;  %v6006_v18 = vmax.f32 %v5718_v39, 0.0 }
 0x704   :  { %v6177_v29 = vpack.c.bf16 %v5937_v37, %v5936_v0  ;;  %v5719_v58 = vadd.f32 %v17521_v5, %v5424_v35  ;;  %v5744_v14 = vadd.f32 %v17521_v5, %v5449_v47 }
 0x705   :  { %v4580_v59 = vpop.permute.xlu0 %4579  ;;  %v4778_v49 = vpop.permute.xlu1 %4777 }
 0x706   :  { %v6007_v33 = vmax.f32 %v5719_v58, 0.0  ;;  %v5450_v20 = vmax.f32 %v17347_v19, %v4778_v49  ;;  %6443 = vrot.lane.b32.xlu1 %v6177_v29, %s12014_s11  ;;  %v5351_v13 = vmax.f32 %v17344_v25, %v4580_v59  ;;  %v6032_v50 = vmax.f32 %v5744_v14, 0.0  ;;  %v17616_v14 = vld [vmem:[#allocation2 + $0xa0] sm:$0xff] }
 0x708   :  { %v6212_v15 = vpack.c.bf16 %v6007_v33, %v6006_v18  ;;  %v5745_v1 = vadd.f32 %v17521_v5, %v5450_v20  ;;  %v5646_v31 = vadd.f32 %v17521_v5, %v5351_v13  ;;  %v20240_v33 = vld [vmem:[#allocation65_spill] sm:$0xff] }
 0x709   :  { %v4772_v32 = vpop.permute.xlu0 %4771 }
 0x70a   :  { %v6033_v26 = vmax.f32 %v5745_v1, 0.0  ;;  %v4582_v36 = vpop.permute.xlu1 %4581  ;;  %6574 = vrot.lane.b32.xlu0 %v6212_v15, %s12015_s10  ;;  %v5447_v28 = vmax.f32 %v17355_v46, %v4772_v32  ;;  %v5934_v44 = vmax.f32 %v5646_v31, 0.0  ;;  %v20241_v15 = vld [vmem:[#allocation156_spill] sm:$0xff] }
 0x70b   :  { %v5352_v38 = vmax.f32 %v17359_v60, %v4582_v36 }
 0x70c   :  { %v6225_v19 = vpack.c.bf16 %v6033_v26, %v6032_v50  ;;  %v5742_v41 = vadd.f32 %v17521_v5, %v5447_v28 }
 0x70d   :  { %v5647_v63 = vadd.f32 %v17521_v5, %v5352_v38  ;;  %v3384_v53 = vpop.permute.xlu0 %3383  ;;  %v20243_v38 = vld [vmem:[#allocation150_spill] sm:$0xff] }
 0x70e   :  { %v4774_v25 = vpop.permute.xlu1 %4773  ;;  %6636 = vrot.lane.b32.xlu1 %v6225_v19, %s12014_s11  ;;  %v6030_v12 = vmax.f32 %v5742_v41, 0.0  ;;  %v17614_v59 = vmax.f32 %v20225_v56, %v3384_v53  ;;  %v20242_v56 = vld [vmem:[#allocation147_spill] sm:$0xff] }
 0x70f   :  { %v5935_v23 = vmax.f32 %v5647_v63, 0.0  ;;  %v5448_v11 = vmax.f32 %v17367_v16, %v4774_v25  ;;  %v17606_v16 = vld [vmem:[#allocation2 + $0xb8] sm:$0xff] }
 0x711   :  { %v6176_v42 = vpack.c.bf16 %v5935_v23, %v5934_v44  ;;  %v5743_v0 = vadd.f32 %v17521_v5, %v5448_v11  ;;  %v3380_v40 = vpop.permute.xlu0 %3379 }
 0x712   :  { %v3386_v46 = vpop.permute.xlu1 %3385  ;;  %v17625_v1 = vmax.f32 %v20241_v15, %v3380_v40 }
 0x713   :  { %v6031_v60 = vmax.f32 %v5743_v0, 0.0  ;;  %6441 = vrot.lane.b32.xlu0 %v6176_v42, %s12014_s11  ;;  %v17628_v32 = vmax.f32 %v20242_v56, %v3386_v46 }
 0x715   :  { %v6224_v39 = vpack.c.bf16 %v6031_v60, %v6030_v12  ;;  %v7013_v37 = vpop.permute.xlu0 %7012 }
 0x716   :  { %v3382_v47 = vpop.permute.xlu1 %3381 }
 0x717   :  { %7176 = vrot.lane.b32.xlu0 %v17485_v9, %s12015_s10  ;;  %6634 = vrot.lane.b32.xlu1 %v6224_v39, %s12014_s11  ;;  %v17639_v19 = vmax.f32 %v20243_v38, %v3382_v47 }
 0x719   :  { %v7002_v35 = vpop.permute.xlu0 %7001 }
 0x71a   :  { %v7015_v29 = vpop.permute.xlu1 %7014 }
 0x71b   :  { %7165 = vrot.lane.b32.xlu0 %v17496_v52, %s12015_s10  ;;  %7178 = vrot.lane.b32.xlu1 %v17606_v16, %s12015_s10  ;;  %v7016_v58 = vsel %vm6870_vm5, %v7013_v37, %v7015_v29 }
 0x71c   :  { %8274 = vmatprep.mubr.bf16.mxu1 %v7016_v58 }
 0x71d   :  { %v4872_v49 = vpop.permute.xlu0 %4871 }
 0x71e   :  { %v7004_v18 = vpop.permute.xlu1 %7003  ;;  %v5497_v20 = vmax.f32 %v20240_v33, %v4872_v49 }
 0x71f   :  { %4823 = vrot.lane.b32.xlu0 %v17614_v59, %s12015_s10  ;;  %7167 = vrot.lane.b32.xlu1 %v17616_v14, %s12015_s10  ;;  %v7005_v13 = vsel %vm6870_vm5, %v7002_v35, %v7004_v18 }
 0x720   :  { %8275 = vmatmul.mubr.bf16.gmra.mrb[24].mxu1 %v7005_v13  ;;  %v5792_v31 = vadd.f32 %v17521_v5, %v5497_v20 }
 0x721   :  { %8284 = vmatprep.mubr.bf16.mxu1 %v17390_v22  ;;  %v4868_v50 = vpop.permute.xlu0 %4867 }
 0x722   :  { %v5495_v26 = vmax.f32 %v17404_v27, %v4868_v50  ;;  %v4874_v36 = vpop.permute.xlu1 %4873  ;;  %v6080_v25 = vmax.f32 %v5792_v31, 0.0 }
 0x723   :  { %v5498_v28 = vmax.f32 %v17407_v21, %v4874_v36  ;;  %4819 = vrot.lane.b32.xlu0 %v17625_v1, %s12015_s10  ;;  %4825 = vrot.lane.b32.xlu1 %v17628_v32, %s12015_s10 }
 0x724   :  { %v5790_v53 = vadd.f32 %v17521_v5, %v5495_v26 }
 0x725   :  { %v5793_v63 = vadd.f32 %v17521_v5, %v5498_v28  ;;  %v4920_v22 = vpop.permute.xlu0 %4919  ;;  %v11894_v28 = vld [vmem:[%s18803_s5 + $0x240] sm:$0xff]  }
 0x726   :  { %v4870_v27 = vpop.permute.xlu1 %4869  ;;  %v5521_v41 = vmax.f32 %v17414_v45, %v4920_v22  ;;  %v6078_v0 = vmax.f32 %v5790_v53, 0.0  ;;  %11152 = vmatprep.subr.bf16.mxu0 %v11894_v28 }
 0x727   :  { %v6081_v44 = vmax.f32 %v5793_v63, 0.0  ;;  %v5496_v21 = vmax.f32 %v17417_v57, %v4870_v27  ;;  %4821 = vrot.lane.b32.xlu1 %v17639_v19, %s12015_s10 }
 0x728   :  { %8285 = vmatmul.mubr.bf16.gmra.mrb[28].mxu1 %v17399_v24  ;;  %v5816_v46 = vadd.f32 %v17521_v5, %v5521_v41 }
 0x729   :  { %v6249_v23 = vpack.c.bf16 %v6081_v44, %v6080_v25  ;;  %v5791_v11 = vadd.f32 %v17521_v5, %v5496_v21  ;;  %v4916_v42 = vpop.permute.xlu0 %4915 }
 0x72a   :  { %v4922_v40 = vpop.permute.xlu1 %4921  ;;  %v5519_v60 = vmax.f32 %v17425_v61, %v4916_v42  ;;  %v6104_v35 = vmax.f32 %v5816_v46, 0.0  ;;  %v17684_v46 = vld [vmem:[#allocation2 + $0xe0] sm:$0xff] }
 0x72b   :  { %v6079_v12 = vmax.f32 %v5791_v11, 0.0  ;;  %v5522_v45 = vmax.f32 %v17428_v48, %v4922_v40  ;;  %6708 = vrot.lane.b32.xlu0 %v6249_v23, %s12016_s29  ;;  %v17682_v40 = vld [vmem:[#allocation2 + $0xc0] sm:$0xff] }
 0x72c   :  { %v5814_v29 = vadd.f32 %v17521_v5, %v5519_v60 }
 0x72d   :  { %v6248_v57 = vpack.c.bf16 %v6079_v12, %v6078_v0  ;;  %v5817_v39 = vadd.f32 %v17521_v5, %v5522_v45  ;;  %v4968_v37 = vpop.permute.xlu0 %4967  ;;  %v17691_v45 = vld [vmem:[#allocation2 + $0xc8] sm:$0xff] }
 0x72e   :  { %v5545_v24 = vmax.f32 %v17437_v17, %v4968_v37  ;;  %v4918_v47 = vpop.permute.xlu1 %4917  ;;  %v6102_v13 = vmax.f32 %v5814_v29, 0.0 }
 0x72f   :  { %v6105_v58 = vmax.f32 %v5817_v39, 0.0  ;;  %v5520_v49 = vmax.f32 %v17440_v55, %v4918_v47  ;;  %6706 = vrot.lane.b32.xlu1 %v6248_v57, %s12016_s29 }
 0x730   :  { %v5840_v33 = vadd.f32 %v17521_v5, %v5545_v24 }
 0x731   :  { %v6261_v61 = vpack.c.bf16 %v6105_v58, %v6104_v35  ;;  %v5815_v48 = vadd.f32 %v17521_v5, %v5520_v49  ;;  %v4964_v18 = vpop.permute.xlu0 %4963  ;;  %v17701_v35 = vld [vmem:[#allocation2 + $0xe8] sm:$0xff] }
 0x732   :  { %v4970_v20 = vpop.permute.xlu1 %4969  ;;  %v5543_v17 = vmax.f32 %v17447_v7, %v4964_v18  ;;  %v6128_v36 = vmax.f32 %v5840_v33, 0.0  ;;  %v11895_v7 = vld [vmem:[%s18803_s5 + $0x200] sm:$0xff]  }
 0x733   :  { %v6103_v15 = vmax.f32 %v5815_v48, 0.0  ;;  %v5546_v56 = vmax.f32 %v17450_v4, %v4970_v20  ;;  %6768 = vrot.lane.b32.xlu0 %v6261_v61, %s12015_s10  ;;  %11153 = vmatpush3.bf16.msra.mxu0 %v11895_v7 }
 0x734   :  { %v5838_v38 = vadd.f32 %v17521_v5, %v5543_v17 }
 0x735   :  { %v6260_v50 = vpack.c.bf16 %v6103_v15, %v6102_v13  ;;  %v5841_v55 = vadd.f32 %v17521_v5, %v5546_v56  ;;  %v7065_v26 = vpop.permute.xlu0 %7064 }
 0x736   :  { %v4966_v31 = vpop.permute.xlu1 %4965  ;;  %v6126_v44 = vmax.f32 %v5838_v38, 0.0 }
 0x737   :  { %v6129_v63 = vmax.f32 %v5841_v55, 0.0  ;;  %v5544_v22 = vmax.f32 %v17459_v3, %v4966_v31  ;;  %6766 = vrot.lane.b32.xlu1 %v6260_v50, %s12015_s10  ;;  %v17676_v3 = vld [vmem:[#allocation2 + $0xd8] sm:$0xff] }
 0x739   :  { %v6273_v4 = vpack.c.bf16 %v6129_v63, %v6128_v36  ;;  %v5839_v53 = vadd.f32 %v17521_v5, %v5544_v22  ;;  %v7054_v27 = vpop.permute.xlu0 %7053 }
 0x73a   :  { %v7067_v25 = vpop.permute.xlu1 %7066 }
 0x73b   :  { %v6127_v41 = vmax.f32 %v5839_v53, 0.0  ;;  %6828 = vrot.lane.b32.xlu0 %v6273_v4, %s12014_s11  ;;  %v7068_v21 = vsel %vm6870_vm5, %v7065_v26, %v7067_v25  ;;  %v20245_v4 = vld [vmem:[#allocation63_spill] sm:$0xff] }
 0x73c   :  { %8294 = vmatprep.mubr.bf16.mxu1 %v7068_v21 }
 0x73d   :  { %v6272_v23 = vpack.c.bf16 %v6127_v41, %v6126_v44  ;;  %v7125_v11 = vpop.permute.xlu0 %7124 }
 0x73e   :  { %v7056_v42 = vpop.permute.xlu1 %7055 }
 0x73f   :  { %7236 = vrot.lane.b32.xlu0 %v17676_v3, %s12015_s10  ;;  %6826 = vrot.lane.b32.xlu1 %v6272_v23, %s12014_s11  ;;  %v7057_v0 = vsel %vm6870_vm5, %v7054_v27, %v7056_v42 }
 0x740   :  { %8295 = vmatmul.mubr.bf16.gmra.mrb[32].mxu1 %v7057_v0 }
 0x741   :  { %8304 = vmatprep.mubr.bf16.mxu1 %v17468_v54  ;;  %v7114_v12 = vpop.permute.xlu0 %7113 }
 0x742   :  { %v7127_v60 = vpop.permute.xlu1 %7126 }
 0x743   :  { %7225 = vrot.lane.b32.xlu0 %v17682_v40, %s12015_s10  ;;  %7238 = vrot.lane.b32.xlu1 %v17684_v46, %s12015_s10  ;;  %v7128_v33 = vsel %vm6870_vm5, %v7125_v11, %v7127_v60 }
 0x745   :  { %v4440_v57 = vpop.permute.xlu0 %4439 }
 0x746   :  { %v7116_v39 = vpop.permute.xlu1 %7115  ;;  %v5281_v37 = vmax.f32 %v17492_v51, %v4440_v57 }
 0x747   :  { %7288 = vrot.lane.b32.xlu0 %v17684_v46, %s12015_s10  ;;  %7227 = vrot.lane.b32.xlu1 %v17691_v45, %s12015_s10  ;;  %v7117_v38 = vsel %vm6870_vm5, %v7114_v12, %v7116_v39 }
 0x748   :  { %8305 = vmatmul.mubr.bf16.gmra.mrb[36].mxu1 %v17477_v30  ;;  %v5576_v29 = vadd.f32 %v17521_v5, %v5281_v37  ;;  %v11896_v37 = vld [vmem:[%s18803_s5 + $0x248] sm:$0xff]  }
 0x749   :  { %8314 = vmatprep.mubr.bf16.mxu1 %v17473_v10  ;;  %v4632_v54 = vpop.permute.xlu0 %4631  ;;  %11154 = vmatprep.subr.bf16.mxu0 %v11896_v37 }
 0x74a   :  { %v5377_v24 = vmax.f32 %v17501_v62, %v4632_v54  ;;  %v4442_v47 = vpop.permute.xlu1 %4441  ;;  %v17711_v62 = vld [vmem:[#allocation2 + $0xd0] sm:$0xff]  ;;  %v5864_v61 = vmax.f32 %v5576_v29, 0.0  ;;  %v11897_v54 = vld [vmem:[%s18803_s5 + $0x208] sm:$0xff]  }
 0x74b   :  { %v5282_v51 = vmax.f32 %v17506_v8, %v4442_v47  ;;  %7277 = vrot.lane.b32.xlu0 %v17691_v45, %s12015_s10  ;;  %7290 = vrot.lane.b32.xlu1 %v17701_v35, %s12015_s10 }
 0x74c   :  { %v5672_v10 = vadd.f32 %v17521_v5, %v5377_v24  ;;  %11155 = vmatpush3.bf16.msra.mxu0 %v11897_v54 }
 0x74d   :  { %v5577_v30 = vadd.f32 %v17521_v5, %v5282_v51  ;;  %v4436_v58 = vpop.permute.xlu0 %4435 }
 0x74e   :  { %v4634_v49 = vpop.permute.xlu1 %4633  ;;  %v5279_v18 = vmax.f32 %v17516_v2, %v4436_v58  ;;  %v5960_v17 = vmax.f32 %v5672_v10, 0.0 }
 0x74f   :  { %v5865_v48 = vmax.f32 %v5577_v30, 0.0  ;;  %v5378_v8 = vmax.f32 %v17525_v43, %v4634_v49  ;;  %7279 = vrot.lane.b32.xlu1 %v17711_v62, %s12015_s10  ;;  %v20244_v43 = vld [vmem:[#allocation254_spill] sm:$0xff] }
 0x750   :  { %8315 = vmatmul.mubr.bf16.gmra.mrb[40].mxu1 %v17481_v6  ;;  %v5574_v50 = vadd.f32 %v17521_v5, %v5279_v18 }
 0x751   :  { %v5673_v20 = vadd.f32 %v17521_v5, %v5378_v8  ;;  %8324 = vmatprep.mubr.bf16.mxu1 %v7128_v33  ;;  %v4628_v13 = vpop.permute.xlu0 %4627  ;;  %v6141_v15 = vpack.c.bf16 %v5865_v48, %v5864_v61 }
 0x752   :  { %v4438_v56 = vpop.permute.xlu1 %4437  ;;  %v5375_v2 = vmax.f32 %v17533_v34, %v4628_v13  ;;  %v5862_v63 = vmax.f32 %v5574_v50, 0.0 }
 0x753   :  { %v5961_v55 = vmax.f32 %v5673_v20, 0.0  ;;  %v5280_v26 = vmax.f32 %v20244_v43, %v4438_v56  ;;  %6286 = vst.msk [vmem:[#allocation2 + $0x108] sm:$0xff] %vm6274_vm1, %v6141_v15 }
 0x754   :  { %v5670_v22 = vadd.f32 %v17521_v5, %v5375_v2 }
 0x755   :  { %v5575_v6 = vadd.f32 %v17521_v5, %v5280_v26  ;;  %v6322_v36 = vpop.permute.xlu0 %6321  ;;  %v6189_v31 = vpack.c.bf16 %v5961_v55, %v5960_v17 }
 0x756   :  { %6347 = vst.msk [vmem:[#allocation2 + $0x108] sm:$0xff] %vm6335_vm2, %v6322_v36  ;;  %v4630_v28 = vpop.permute.xlu1 %4629  ;;  %v5958_v25 = vmax.f32 %v5670_v22, 0.0 }
 0x757   :  { %v5863_v7 = vmax.f32 %v5575_v6, 0.0  ;;  %v5376_v53 = vmax.f32 %v20245_v4, %v4630_v28  ;;  %6481 = vst.msk [vmem:[#allocation2 + $0x110] sm:$0xff] %vm6274_vm1, %v6189_v31 }
 0x758   :  { %8325 = vmatmul.mubr.bf16.gmra.mrb[44].mxu1 %v7117_v38 }
 0x759   :  { %v5671_v34 = vadd.f32 %v17521_v5, %v5376_v53  ;;  %8334 = vmatprep.mubr.bf16.mxu1 %v17485_v9  ;;  %v6140_v27 = vpack.c.bf16 %v5863_v7, %v5862_v63 }
 0x75b   :  { %v5959_v44 = vmax.f32 %v5671_v34, 0.0  ;;  %6285 = vst.msk [vmem:[#allocation2 + $0xf0] sm:$0xff] %vm6274_vm1, %v6140_v27 }
 0x75d   :  { %v6188_v41 = vpack.c.bf16 %v5959_v44, %v5958_v25 }
 0x75f   :  { %6480 = vst.msk [vmem:[#allocation2 + $0xf8] sm:$0xff] %vm6274_vm1, %v6188_v41 }
 0x760   :  { %8335 = vmatmul.mubr.bf16.gmra.mrb[48].mxu1 %v17496_v52  ;;  %v6517_v21 = vpop.permute.xlu1 %6516 }
 0x761   :  { %6541 = vst.msk [vmem:[#allocation2 + $0x110] sm:$0xff] %vm6335_vm2, %v6517_v21 }
 0x764   :  { %v6320_v23 = vpop.permute.xlu0 %6319 }
 0x765   :  { %6346 = vst.msk [vmem:[#allocation2 + $0xf0] sm:$0xff] %vm6335_vm2, %v6320_v23 }
 0x768   :  { %v6383_v11 = vpop.permute.xlu1 %6382 }
 0x769   :  { %6408 = vst.msk [vmem:[#allocation2 + $0x108] sm:$0xff] %vm6396_vm3, %v6383_v11 }
 0x76c   :  { %v6515_v9 = vpop.permute.xlu0 %6514 }
 0x76d   :  { %6540 = vst.msk [vmem:[#allocation2 + $0xf8] sm:$0xff] %vm6335_vm2, %v6515_v9 }
 0x770   :  { %v6577_v5 = vpop.permute.xlu1 %6576 }
 0x771   :  { %6601 = vst.msk [vmem:[#allocation2 + $0x110] sm:$0xff] %vm6396_vm3, %v6577_v5 }
 0x774   :  { %v6381_v42 = vpop.permute.xlu0 %6380 }
 0x775   :  { %6407 = vst.msk [vmem:[#allocation2 + $0xf0] sm:$0xff] %vm6396_vm3, %v6381_v42 }
 0x778   :  { %v6444_v0 = vpop.permute.xlu1 %6443 }
 0x779   :  { %6469 = vst.msk [vmem:[#allocation2 + $0x108] sm:$0xff] %vm6457_vm4, %v6444_v0  ;;  %v17742_v52 = vpop.f32.mrb[0].mxu1 }
 0x77a   :  { %v17744_v12 = vpop.f32.mrb[1].mxu1 }
 0x77b   :  { %v17746_v60 = vpop.f32.mrb[2].mxu1 }
 0x77c   :  { %v17748_v57 = vpop.f32.mrb[3].mxu1  ;;  %v6575_v39 = vpop.permute.xlu0 %6574 }
 0x77d   :  { %6600 = vst.msk [vmem:[#allocation2 + $0xf8] sm:$0xff] %vm6396_vm3, %v6575_v39 }
 0x780   :  { %v6637_v24 = vpop.permute.xlu1 %6636  ;;  %v17757_v47 = vld [vmem:[#allocation2 + $0x108] sm:$0xff] }
 0x781   :  { %6661 = vst.msk [vmem:[#allocation2 + $0x110] sm:$0xff] %vm6457_vm4, %v6637_v24  ;;  %7348 = vrot.lane.b32.xlu0 %v17757_v47, %s12015_s10 }
 0x785   :  { %v6442_v29 = vpop.permute.xlu0 %6441 }
 0x786   :  { %6468 = vst.msk [vmem:[#allocation2 + $0xf0] sm:$0xff] %vm6457_vm4, %v6442_v29 }
 0x788   :  { %v17763_v51 = vld [vmem:[#allocation2 + $0x110] sm:$0xff] }
 0x789   :  { %v7177_v30 = vpop.permute.xlu0 %7176  ;;  %v6635_v58 = vpop.permute.xlu1 %6634  ;;  %7350 = vrot.lane.b32.xlu1 %v17763_v51, %s12015_s10 }
 0x78a   :  { %6660 = vst.msk [vmem:[#allocation2 + $0xf8] sm:$0xff] %vm6457_vm4, %v6635_v58  ;;  %v17768_v10 = vpop.f32.mrb[4].mxu1 }
 0x78b   :  { %v17770_v49 = vpop.f32.mrb[5].mxu1 }
 0x78c   :  { %v17772_v61 = vpop.f32.mrb[6].mxu1 }
 0x78d   :  { %v17774_v48 = vpop.f32.mrb[7].mxu1  ;;  %v7166_v18 = vpop.permute.xlu0 %7165  ;;  %v17776_v8 = vld [vmem:[#allocation2 + $0xf0] sm:$0xff] }
 0x78e   :  { %v7179_v33 = vpop.permute.xlu1 %7178  ;;  %7337 = vrot.lane.b32.xlu0 %v17776_v8, %s12015_s10 }
 0x78f   :  { %v7180_v20 = vsel %vm6870_vm5, %v7177_v30, %v7179_v33 }
 0x790   :  { %8344 = vmatprep.mubr.bf16.mxu1 %v7180_v20 }
 0x791   :  { %v4824_v13 = vpop.permute.xlu0 %4823  ;;  %v17781_v15 = vld [vmem:[#allocation2 + $0xf8] sm:$0xff]  ;;  %v17783_v56 = vpop.f32.mrb[8].mxu1 }
 0x792   :  { %v7168_v17 = vpop.permute.xlu1 %7167  ;;  %7400 = vrot.lane.b32.xlu0 %v17763_v51, %s12015_s10  ;;  %7339 = vrot.lane.b32.xlu1 %v17781_v15, %s12015_s10  ;;  %v5473_v50 = vmax.f32 %v17614_v59, %v4824_v13  ;;  %v17790_v55 = vpop.f32.mrb[9].mxu1  ;;  %v12012_v59 = vld [vmem:[%s18801_s2] ss:$0 sm:$0xff] }
 0x793   :  { %v7169_v2 = vsel %vm6870_vm5, %v7166_v18, %v7168_v17  ;;  %v17793_v43 = vpop.f32.mrb[10].mxu1 }
 0x794   :  { %8345 = vmatmul.mubr.bf16.gmra.mrb[52].mxu1 %v7169_v2  ;;  %v17796_v26 = vpop.f32.mrb[11].mxu1  ;;  %v5768_v31 = vadd.f32 %v12012_v59, %v5473_v50 }
 0x795   :  { %8354 = vmatprep.mubr.bf16.mxu1 %v17606_v16  ;;  %v4820_v6 = vpop.permute.xlu0 %4819 }
 0x796   :  { %v4826_v36 = vpop.permute.xlu1 %4825  ;;  %7389 = vrot.lane.b32.xlu0 %v17781_v15, %s12015_s10  ;;  %v5471_v28 = vmax.f32 %v17625_v1, %v4820_v6  ;;  %v6056_v16 = vmax.f32 %v5768_v31, 0.0  ;;  %v11899_v31 = vld [vmem:[%s18803_s5 + $0x210] sm:$0xff]  }
 0x797   :  { %v5474_v38 = vmax.f32 %v17628_v32, %v4826_v36 }
 0x798   :  { %v5766_v4 = vadd.f32 %v12012_v59, %v5471_v28 }
 0x799   :  { %v5769_v63 = vadd.f32 %v12012_v59, %v5474_v38  ;;  %v17805_v7 = vpop.f32.mrb[12].mxu1 }
 0x79a   :  { %v4822_v22 = vpop.permute.xlu1 %4821  ;;  %8515 = vrot.lane.b32.xlu0 %v17742_v52, %s12015_s10  ;;  %v17810_v27 = vpop.f32.mrb[13].mxu1  ;;  %v6054_v21 = vmax.f32 %v5766_v4, 0.0 }
 0x79b   :  { %v6057_v53 = vmax.f32 %v5769_v63, 0.0  ;;  %v5472_v34 = vmax.f32 %v17639_v19, %v4822_v22  ;;  %v17813_v25 = vpop.f32.mrb[14].mxu1 }
 0x79c   :  { %8355 = vmatmul.mubr.bf16.gmra.mrb[56].mxu1 %v17616_v14  ;;  %v17816_v32 = vpop.f32.mrb[15].mxu1 }
 0x79d   :  { %v5767_v1 = vadd.f32 %v12012_v59, %v5472_v34  ;;  %8364 = vmatprep.mubr.bf16.mxu1 %v17676_v3  ;;  %v6709_v44 = vpop.permute.xlu0 %6708  ;;  %v6237_v41 = vpack.c.bf16 %v6057_v53, %v6056_v16  ;;  %v11898_v59 = vld [vmem:[%s18803_s5 + $0x250] sm:$0xff]  }
 0x79e   :  { %8519 = vrot.lane.b32.xlu0 %v17768_v10, %s12015_s10  ;;  %11156 = vmatprep.subr.bf16.mxu0 %v11898_v59 }
 0x79f   :  { %v6055_v23 = vmax.f32 %v5767_v1, 0.0  ;;  %6673 = vst.msk [vmem:[#allocation2 + $0x118] sm:$0xff] %vm6274_vm1, %v6237_v41  ;;  %11157 = vmatpush3.bf16.msra.mxu0 %v11899_v31 }
 0x7a0   :  { %6733 = vst.msk [vmem:[#allocation2 + $0x118] sm:$0xff] %vm6335_vm2, %v6709_v44 }
 0x7a1   :  { %v6236_v19 = vpack.c.bf16 %v6055_v23, %v6054_v21  ;;  %v6707_v14 = vpop.permute.xlu1 %6706  ;;  %v17822_v11 = vpop.f32.mrb[16].mxu1  ;;  %v11900_v23 = vld [vmem:[%s18803_s5 + $0x258] sm:$0xff]  }
 0x7a2   :  { %8769 = vrot.lane.b32.xlu0 %v17770_v49, %s12015_s10  ;;  %v17827_v3 = vpop.f32.mrb[17].mxu1  ;;  %11158 = vmatprep.subr.bf16.mxu0 %v11900_v23 }
 0x7a3   :  { %6672 = vst.msk [vmem:[#allocation2 + $0x100] sm:$0xff] %vm6274_vm1, %v6236_v19  ;;  %v17831_v9 = vpop.f32.mrb[18].mxu1 }
 0x7a4   :  { %6732 = vst.msk [vmem:[#allocation2 + $0x100] sm:$0xff] %vm6335_vm2, %v6707_v14  ;;  %8365 = vmatmul.mubr.bf16.gmra.mrb[60].mxu1 %v17682_v40  ;;  %v17833_v5 = vpop.f32.mrb[19].mxu1 }
 0x7a5   :  { %v6769_v42 = vpop.permute.xlu0 %6768 }
 0x7a6   :  { %6793 = vst.msk [vmem:[#allocation2 + $0x118] sm:$0xff] %vm6396_vm3, %v6769_v42  ;;  %8523 = vrot.lane.b32.xlu0 %v17783_v56, %s12015_s10  ;;  %v11901_v42 = vld [vmem:[%s18803_s5 + $0x218] sm:$0xff]  }
 0x7a7   :  { %11159 = vmatpush3.bf16.msra.mxu0 %v11901_v42 }
 0x7a9   :  { %v6767_v0 = vpop.permute.xlu1 %6766  ;;  %v17839_v39 = vpop.f32.mrb[20].mxu1 }
 0x7aa   :  { %6792 = vst.msk [vmem:[#allocation2 + $0x100] sm:$0xff] %vm6396_vm3, %v6767_v0  ;;  %8773 = vrot.lane.b32.xlu0 %v17790_v55, %s12015_s10  ;;  %v17843_v37 = vpop.f32.mrb[21].mxu1 }
 0x7ab   :  { %v17845_v40 = vpop.f32.mrb[22].mxu1 }
 0x7ac   :  { %v17847_v54 = vpop.f32.mrb[23].mxu1 }
 0x7ad   :  { %v6829_v24 = vpop.permute.xlu0 %6828 }
 0x7ae   :  { %6853 = vst.msk [vmem:[#allocation2 + $0x118] sm:$0xff] %vm6457_vm4, %v6829_v24  ;;  %8527 = vrot.lane.b32.xlu0 %v17805_v7, %s12015_s10 }
 0x7b1   :  { %v6827_v29 = vpop.permute.xlu1 %6826  ;;  %v7237_v30 = vpop.permute.xlu0 %7236 }
 0x7b2   :  { %6852 = vst.msk [vmem:[#allocation2 + $0x100] sm:$0xff] %vm6457_vm4, %v6827_v29  ;;  %8777 = vrot.lane.b32.xlu0 %v17810_v27, %s12015_s10 }
 0x7b5   :  { %v7239_v58 = vpop.permute.xlu1 %7238  ;;  %v17855_v18 = vld [vmem:[#allocation2 + $0x118] sm:$0xff]  ;;  %v7226_v20 = vpop.permute.xlu0 %7225 }
 0x7b6   :  { %8765 = vrot.lane.b32.xlu0 %v17744_v12, %s12015_s10  ;;  %7402 = vrot.lane.b32.xlu1 %v17855_v18, %s12015_s10  ;;  %v7240_v33 = vsel %vm6870_vm5, %v7237_v30, %v7239_v58 }
 0x7b7   :  { %8374 = vmatprep.mubr.bf16.mxu1 %v7240_v33 }
 0x7b9   :  { %v7228_v13 = vpop.permute.xlu1 %7227  ;;  %v17862_v17 = vld [vmem:[#allocation2 + $0x100] sm:$0xff]  ;;  %v7289_v6 = vpop.permute.xlu0 %7288 }
 0x7ba   :  { %8531 = vrot.lane.b32.xlu0 %v17822_v11, %s12015_s10  ;;  %7391 = vrot.lane.b32.xlu1 %v17862_v17, %s12015_s10  ;;  %v7229_v50 = vsel %vm6870_vm5, %v7226_v20, %v7228_v13 }
 0x7bb   :  { %8375 = vmatmul.mubr.bf16.gmra.mrb[64].mxu1 %v7229_v50 }
 0x7bc   :  { %8384 = vmatprep.mubr.bf16.mxu1 %v17684_v46 }
 0x7bd   :  { %v7291_v2 = vpop.permute.xlu1 %7290  ;;  %v7278_v28 = vpop.permute.xlu0 %7277 }
 0x7be   :  { %8535 = vrot.lane.b32.xlu0 %v17839_v39, %s12015_s10  ;;  %8517 = vrot.lane.b32.xlu1 %v17746_v60, %s12015_s10  ;;  %v7292_v36 = vsel %vm6870_vm5, %v7289_v6, %v7291_v2 }
 0x7c1   :  { %v7280_v46 = vpop.permute.xlu1 %7279 }
 0x7c2   :  { %8785 = vrot.lane.b32.xlu0 %v17843_v37, %s12015_s10  ;;  %8521 = vrot.lane.b32.xlu1 %v17772_v61, %s12015_s10 }
 0x7c3   :  { %8385 = vmatmul.mubr.bf16.gmra.mrb[68].mxu1 %v17691_v45  ;;  %v7281_v45 = vsel %vm6870_vm5, %v7278_v28, %v7280_v46 }
 0x7c4   :  { %8394 = vmatprep.mubr.bf16.mxu1 %v7292_v36 }
 0x7c6   :  { %8771 = vrot.lane.b32.xlu1 %v17774_v48, %s12015_s10 }
 0x7ca   :  { %8525 = vrot.lane.b32.xlu1 %v17793_v43, %s12015_s10 }
 0x7cb   :  { %8395 = vmatmul.mubr.bf16.gmra.mrb[72].mxu1 %v7281_v45 }
 0x7cc   :  { %8404 = vmatprep.mubr.bf16.mxu1 %v17701_v35 }
 0x7ce   :  { %8775 = vrot.lane.b32.xlu1 %v17796_v26, %s12015_s10 }
 0x7d2   :  { %8529 = vrot.lane.b32.xlu1 %v17813_v25, %s12015_s10 }
 0x7d3   :  { %8405 = vmatmul.mubr.bf16.gmra.mrb[76].mxu1 %v17711_v62 }
 0x7d4   :  { %8414 = vmatprep.mubr.bf16.mxu1 %v17757_v47 }
 0x7d6   :  { %8779 = vrot.lane.b32.xlu1 %v17816_v32, %s12015_s10 }
 0x7da   :  { %8767 = vrot.lane.b32.xlu1 %v17748_v57, %s12015_s10 }
 0x7db   :  { %8415 = vmatmul.mubr.bf16.gmra.mrb[80].mxu1 %v17776_v8 }
 0x7de   :  { %8533 = vrot.lane.b32.xlu1 %v17831_v9, %s12015_s10 }
 0x7e2   :  { %8537 = vrot.lane.b32.xlu1 %v17845_v40, %s12015_s10 }
 0x7e6   :  { %8787 = vrot.lane.b32.xlu1 %v17847_v54, %s12015_s10 }
 0x7f3   :  { %v17909_v35 = vpop.f32.mrb[24].mxu1  ;;  %v7349_v8 = vpop.permute.xlu0 %7348 }
 0x7f4   :  { %v17911_v62 = vpop.f32.mrb[25].mxu1  ;;  %8539 = vrot.lane.b32.xlu0 %v17909_v35, %s12015_s10 }
 0x7f5   :  { %v17915_v47 = vpop.f32.mrb[26].mxu1 }
 0x7f6   :  { %v17917_v38 = vpop.f32.mrb[27].mxu1  ;;  %8541 = vrot.lane.b32.xlu1 %v17915_v47, %s12015_s10 }
 0x7f8   :  { %8789 = vrot.lane.b32.xlu0 %v17911_v62, %s12015_s10 }
 0x7fa   :  { %8791 = vrot.lane.b32.xlu1 %v17917_v38, %s12015_s10 }
 0x7fb   :  { %v17925_v63 = vpop.f32.mrb[28].mxu1  ;;  %v7351_v22 = vpop.permute.xlu1 %7350 }
 0x7fc   :  { %v17927_v16 = vpop.f32.mrb[29].mxu1  ;;  %8543 = vrot.lane.b32.xlu0 %v17925_v63, %s12015_s10  ;;  %v7352_v4 = vsel %vm6870_vm5, %v7349_v8, %v7351_v22 }
 0x7fd   :  { %v17932_v53 = vpop.f32.mrb[30].mxu1  ;;  %8424 = vmatprep.mubr.bf16.mxu1 %v7352_v4 }
 0x7fe   :  { %v17934_v34 = vpop.f32.mrb[31].mxu1  ;;  %8545 = vrot.lane.b32.xlu1 %v17932_v53, %s12015_s10 }
 0x800   :  { %v7338_v1 = vpop.permute.xlu0 %7337  ;;  %8793 = vrot.lane.b32.xlu0 %v17927_v16, %s12015_s10 }
 0x802   :  { %8795 = vrot.lane.b32.xlu1 %v17934_v34, %s12015_s10 }
 0x804   :  { %v7401_v44 = vpop.permute.xlu0 %7400  ;;  %8781 = vrot.lane.b32.xlu0 %v17827_v3, %s12015_s10  ;;  %v7340_v41 = vpop.permute.xlu1 %7339 }
 0x805   :  { %v7341_v21 = vsel %vm6870_vm5, %v7338_v1, %v7340_v41 }
 0x806   :  { %8783 = vrot.lane.b32.xlu1 %v17833_v5, %s12015_s10  ;;  %8425 = vmatmul.mubr.bf16.gmra.mrb[84].mxu1 %v7341_v21 }
 0x807   :  { %8434 = vmatprep.mubr.bf16.mxu1 %v17763_v51 }
 0x808   :  { %v7390_v19 = vpop.permute.xlu0 %7389 }
 0x80c   :  { %v8516_v14 = vpop.permute.xlu0 %8515 }
 0x80d   :  { %v8665_v23 = vmax.f32 %v17742_v52, %v8516_v14 }
 0x80e   :  { %8435 = vmatmul.mubr.bf16.gmra.mrb[88].mxu1 %v17781_v15 }
 0x810   :  { %v8520_v0 = vpop.permute.xlu0 %8519 }
 0x811   :  { %v8667_v58 = vmax.f32 %v17768_v10, %v8520_v0 }
 0x813   :  { %v17955_v24 = vpop.f32.mrb[32].mxu1 }
 0x814   :  { %v17957_v29 = vpop.f32.mrb[33].mxu1  ;;  %v8770_v30 = vpop.permute.xlu0 %8769 }
 0x815   :  { %v8917_v51 = vmax.f32 %v17770_v49, %v8770_v30  ;;  %v17961_v33 = vpop.f32.mrb[34].mxu1 }
 0x816   :  { %v17963_v20 = vpop.f32.mrb[35].mxu1 }
 0x817   :  { %v17965_v15 = vmax.f32 %v8667_v58, %v8917_v51 }
 0x818   :  { %v8524_v13 = vpop.permute.xlu0 %8523 }
 0x819   :  { %v8669_v36 = vmax.f32 %v17783_v56, %v8524_v13 }
 0x81b   :  { %v17967_v50 = vpop.f32.mrb[36].mxu1 }
 0x81c   :  { %v17969_v2 = vpop.f32.mrb[37].mxu1  ;;  %8551 = vrot.lane.b32.xlu0 %v17967_v50, %s12015_s10  ;;  %v8774_v6 = vpop.permute.xlu0 %8773 }
 0x81d   :  { %v8919_v10 = vmax.f32 %v17790_v55, %v8774_v6  ;;  %v17975_v49 = vpop.f32.mrb[38].mxu1 }
 0x81e   :  { %v17977_v46 = vpop.f32.mrb[39].mxu1  ;;  %8553 = vrot.lane.b32.xlu1 %v17975_v49, %s12015_s10 }
 0x81f   :  { %v17981_v59 = vmax.f32 %v8669_v36, %v8919_v10 }
 0x820   :  { %8801 = vrot.lane.b32.xlu0 %v17969_v2, %s12015_s10  ;;  %v8528_v31 = vpop.permute.xlu0 %8527 }
 0x821   :  { %v8671_v45 = vmax.f32 %v17805_v7, %v8528_v31 }
 0x822   :  { %8803 = vrot.lane.b32.xlu1 %v17977_v46, %s12015_s10 }
 0x823   :  { %v17987_v28 = vpop.f32.mrb[40].mxu1 }
 0x824   :  { %v17989_v56 = vpop.f32.mrb[41].mxu1  ;;  %v8778_v55 = vpop.permute.xlu0 %8777 }
 0x825   :  { %v8921_v8 = vmax.f32 %v17810_v27, %v8778_v55  ;;  %v17993_v22 = vpop.f32.mrb[42].mxu1 }
 0x826   :  { %v17995_v4 = vpop.f32.mrb[43].mxu1 }
 0x827   :  { %v17997_v1 = vmax.f32 %v8671_v45, %v8921_v8 }
 0x828   :  { %v8766_v41 = vpop.permute.xlu0 %8765  ;;  %v7403_v21 = vpop.permute.xlu1 %7402 }
 0x829   :  { %v8915_v42 = vmax.f32 %v17744_v12, %v8766_v41  ;;  %v7404_v0 = vsel %vm6870_vm5, %v7401_v44, %v7403_v21  ;;  %v11902_v41 = vld [vmem:[%s18803_s5 + $0x40] sm:$0xff]  }
 0x82a   :  { %8444 = vmatprep.mubr.bf16.mxu1 %v7404_v0  ;;  %v18041_v21 = vld [vmem:[%s18804_s4] ss:$0 sm:$0xff]  ;;  %11064 = vmatprep.subr.bf16.mxu1 %v11902_v41 }
 0x82b   :  { %v18002_v30 = vmax.f32 %v8665_v23, %v8915_v42  ;;  %v18004_v7 = vpop.f32.mrb[44].mxu1  ;;  %v11904_v23 = vld [vmem:[%s18803_s5 + $0x48] sm:$0xff]   ;;  %v11906_v0 = vld [vmem:[%s18803_s5 + $0x260] sm:$0xff]  }
 0x82c   :  { %v18006_v27 = vpop.f32.mrb[45].mxu1  ;;  %8559 = vrot.lane.b32.xlu0 %v18004_v7, %s12015_s10  ;;  %v18010_v58 = vpop.permute.xlu0 %8531  ;;  %11160 = vmatprep.subr.bf16.mxu0 %v11906_v0 }
 0x82d   :  { %v7392_v51 = vpop.permute.xlu1 %7391  ;;  %v18012_v13 = vpop.f32.mrb[46].mxu1 }
 0x82e   :  { %v18014_v52 = vpop.f32.mrb[47].mxu1  ;;  %8561 = vrot.lane.b32.xlu1 %v18012_v13, %s12015_s10  ;;  %v7393_v12 = vsel %vm6870_vm5, %v7390_v19, %v7392_v51  ;;  %v11907_v51 = vld [vmem:[%s18803_s5 + $0x220] sm:$0xff]  }
 0x82f   :  { %8445 = vmatmul.mubr.bf16.gmra.mrb[92].mxu1 %v7393_v12  ;;  %v11905_v12 = vld [vmem:[%s18803_s5 + $0x8] sm:$0xff]   ;;  %11161 = vmatpush3.bf16.msra.mxu0 %v11907_v51 }
 0x830   :  { %8454 = vmatprep.mubr.bf16.mxu1 %v17855_v18  ;;  %8809 = vrot.lane.b32.xlu0 %v18006_v27, %s12015_s10  ;;  %v8536_v44 = vpop.permute.xlu0 %8535 }
 0x831   :  { %v8518_v14 = vpop.permute.xlu1 %8517  ;;  %v8675_v31 = vmax.f32 %v17839_v39, %v8536_v44  ;;  %v9024_v44 = vadd.f32 %v18041_v21, %v17965_v15  ;;  %v9026_v15 = vadd.f32 %v18041_v21, %v17981_v59 }
 0x832   :  { %8811 = vrot.lane.b32.xlu1 %v18014_v52, %s12015_s10  ;;  %v8666_v59 = vmax.f32 %v17746_v60, %v8518_v14 }
 0x833   :  { %v18024_v6 = vpop.f32.mrb[48].mxu1  ;;  %v9076_v0 = vmax.f32 %v9026_v15, 0.0 }
 0x834   :  { %v18026_v36 = vpop.f32.mrb[49].mxu1  ;;  %v8786_v10 = vpop.permute.xlu0 %8785 }
 0x835   :  { %v8925_v19 = vmax.f32 %v17843_v37, %v8786_v10  ;;  %v8522_v55 = vpop.permute.xlu1 %8521  ;;  %v18030_v45 = vpop.f32.mrb[50].mxu1  ;;  %v11903_v37 = vld [vmem:[%s18803_s5] sm:$0xff]  }
 0x836   :  { %v18032_v18 = vpop.f32.mrb[51].mxu1  ;;  %11065 = vmatpush3.bf16.msra.mxu1 %v11903_v37 }
 0x837   :  { %v8975_v8 = vmax.f32 %v8675_v31, %v8925_v19  ;;  %8455 = vmatmul.mubr.bf16.gmra.mrb[96].mxu1 %v17862_v17  ;;  %v8668_v17 = vmax.f32 %v17772_v61, %v8522_v55  ;;  %11066 = vmatprep.subr.bf16.mxu1 %v11904_v23  ;;  %v9074_v31 = vmax.f32 %v9024_v44, 0.0 }
 0x839   :  { %v8772_v39 = vpop.permute.xlu1 %8771 }
 0x83a   :  { %v8918_v42 = vmax.f32 %v17774_v48, %v8772_v39  ;;  %11067 = vmatpush3.bf16.msra.mxu1 %v11905_v12 }
 0x83c   :  { %v8968_v10 = vmax.f32 %v8668_v17, %v8918_v42 }
 0x83d   :  { %v8526_v61 = vpop.permute.xlu1 %8525 }
 0x83e   :  { %v9025_v48 = vadd.f32 %v18041_v21, %v8968_v10  ;;  %v8670_v41 = vmax.f32 %v17793_v43, %v8526_v61  ;;  %v9028_v43 = vadd.f32 %v18041_v21, %v17997_v1 }
 0x840   :  { %v9075_v19 = vmax.f32 %v9025_v48, 0.0 }
 0x841   :  { %v8776_v55 = vpop.permute.xlu1 %8775 }
 0x842   :  { %v8920_v39 = vmax.f32 %v17796_v26, %v8776_v55  ;;  %v18065_v37 = vpack.c.bf16 %v9075_v19, %v9074_v31  ;;  %v9078_v55 = vmax.f32 %v9028_v43, 0.0  ;;  %v11908_v43 = vld [vmem:[%s18803_s5 + $0x50] sm:$0xff]  }
 0x843   :  { %11068 = vmatprep.subr.bf16.mxu1 %v11908_v43 }
 0x844   :  { %v8970_v17 = vmax.f32 %v8670_v41, %v8920_v39 }
 0x845   :  { %v8530_v23 = vpop.permute.xlu1 %8529 }
 0x846   :  { %v9027_v42 = vadd.f32 %v18041_v21, %v8970_v17  ;;  %v8672_v12 = vmax.f32 %v17813_v25, %v8530_v23  ;;  %v9022_v25 = vadd.f32 %v18041_v21, %v18002_v30  ;;  %v9032_v30 = vadd.f32 %v18041_v21, %v8975_v8 }
 0x848   :  { %v9077_v51 = vmax.f32 %v9027_v42, 0.0  ;;  %v9072_v17 = vmax.f32 %v9022_v25, 0.0 }
 0x849   :  { %v8780_v10 = vpop.permute.xlu1 %8779 }
 0x84a   :  { %v8922_v44 = vmax.f32 %v17816_v32, %v8780_v10  ;;  %v9124_v48 = vpack.c.bf16 %v9077_v51, %v9076_v0 }
 0x84c   :  { %v8972_v26 = vmax.f32 %v8672_v12, %v8922_v44  ;;  %9155 = vst.msk [vmem:[#allocation4 + $0x8] sm:$0xff] %vm6870_vm5, %v9124_v48  ;;  %v9082_v12 = vmax.f32 %v9032_v30, 0.0  ;;  %v11914_v30 = vld [vmem:[%s18803_s5 + $0x68] sm:$0xff]  }
 0x84d   :  { %v8768_v61 = vpop.permute.xlu1 %8767 }
 0x84e   :  { %v9029_v31 = vadd.f32 %v18041_v21, %v8972_v26  ;;  %v8916_v19 = vmax.f32 %v17748_v57, %v8768_v61  ;;  %v11911_v26 = vld [vmem:[%s18803_s5 + $0x18] sm:$0xff]  }
 0x850   :  { %v9079_v41 = vmax.f32 %v9029_v31, 0.0  ;;  %v8966_v32 = vmax.f32 %v8666_v59, %v8916_v19 }
 0x851   :  { %v18080_v39 = vpop.permute.xlu1 %8533 }
 0x852   :  { %v9023_v1 = vadd.f32 %v18041_v21, %v8966_v32  ;;  %v18083_v15 = vpack.c.bf16 %v9079_v41, %v9078_v55 }
 0x854   :  { %v9073_v23 = vmax.f32 %v9023_v1, 0.0  ;;  %v11912_v1 = vld [vmem:[%s18803_s5 + $0x60] sm:$0xff]  }
 0x855   :  { %v8538_v42 = vpop.permute.xlu1 %8537 }
 0x856   :  { %v8676_v60 = vmax.f32 %v17845_v40, %v8538_v42  ;;  %v9122_v14 = vpack.c.bf16 %v9073_v23, %v9072_v17  ;;  %v11909_v40 = vld [vmem:[%s18803_s5 + $0x10] sm:$0xff]   ;;  %v11913_v23 = vld [vmem:[%s18803_s5 + $0x20] sm:$0xff]  }
 0x857   :  { %11069 = vmatpush3.bf16.msra.mxu1 %v11909_v40 }
 0x858   :  { %9148 = vst.msk [vmem:[#allocation4] sm:$0xff] %vm6870_vm5, %v9122_v14 }
 0x859   :  { %v8788_v57 = vpop.permute.xlu1 %8787 }
 0x85a   :  { %v8926_v0 = vmax.f32 %v17847_v54, %v8788_v57  ;;  %v11910_v54 = vld [vmem:[%s18803_s5 + $0x58] sm:$0xff]  }
 0x85b   :  { %11070 = vmatprep.subr.bf16.mxu1 %v11910_v54 }
 0x85c   :  { %v8976_v51 = vmax.f32 %v8676_v60, %v8926_v0  ;;  %11071 = vmatpush3.bf16.msra.mxu1 %v11911_v26 }
 0x85d   :  { %11072 = vmatprep.subr.bf16.mxu1 %v11912_v1 }
 0x85e   :  { %v9033_v10 = vadd.f32 %v18041_v21, %v8976_v51 }
 0x860   :  { %v9083_v44 = vmax.f32 %v9033_v10, 0.0  ;;  %11073 = vmatpush3.bf16.msra.mxu1 %v11913_v23 }
 0x861   :  { %11074 = vmatprep.subr.bf16.mxu1 %v11914_v30 }
 0x862   :  { %v18090_v48 = vpack.c.bf16 %v9083_v44, %v9082_v12 }
 0x866   :  { %v8540_v8 = vpop.permute.xlu0 %8539 }
 0x867   :  { %v18104_v61 = vpop.f32.mrb[52].mxu1  ;;  %v8677_v41 = vmax.f32 %v17909_v35, %v8540_v8 }
 0x868   :  { %8567 = vrot.lane.b32.xlu0 %v18104_v61, %s12015_s10  ;;  %v18108_v59 = vpop.f32.mrb[53].mxu1  ;;  %v8542_v31 = vpop.permute.xlu1 %8541 }
 0x869   :  { %v18110_v19 = vpop.f32.mrb[54].mxu1  ;;  %v8678_v42 = vmax.f32 %v17915_v47, %v8542_v31  ;;  %v11915_v47 = vld [vmem:[%s18803_s5 + $0x28] sm:$0xff]   ;;  %v11916_v31 = vld [vmem:[%s18803_s5 + $0x70] sm:$0xff]  }
 0x86a   :  { %v18112_v55 = vpop.f32.mrb[55].mxu1  ;;  %8569 = vrot.lane.b32.xlu1 %v18110_v19, %s12015_s10  ;;  %v8790_v25 = vpop.permute.xlu0 %8789  ;;  %11075 = vmatpush3.bf16.msra.mxu1 %v11915_v47 }
 0x86b   :  { %v8927_v32 = vmax.f32 %v17911_v62, %v8790_v25  ;;  %11076 = vmatprep.subr.bf16.mxu1 %v11916_v31  ;;  %v11920_v31 = vld [vmem:[%s18803_s5 + $0xc0] sm:$0xff]  }
 0x86c   :  { %v8792_v17 = vpop.permute.xlu1 %8791 }
 0x86d   :  { %v8977_v60 = vmax.f32 %v8677_v41, %v8927_v32  ;;  %v8928_v14 = vmax.f32 %v17917_v38, %v8792_v17  ;;  %v11917_v41 = vld [vmem:[%s18803_s5 + $0x30] sm:$0xff]  }
 0x86e   :  { %v8544_v57 = vpop.permute.xlu0 %8543  ;;  %11077 = vmatpush3.bf16.msra.mxu1 %v11917_v41 }
 0x86f   :  { %v9034_v35 = vadd.f32 %v18041_v21, %v8977_v60  ;;  %v8978_v62 = vmax.f32 %v8678_v42, %v8928_v14  ;;  %v18127_v0 = vpop.f32.mrb[56].mxu1  ;;  %v8679_v8 = vmax.f32 %v17925_v63, %v8544_v57  ;;  %v8673_v63 = vmax.f32 %v17822_v11, %v18010_v58  ;;  %v11919_v11 = vld [vmem:[%s18803_s5 + $0x38] sm:$0xff]  }
 0x870   :  { %20246 = vst [vmem:[#allocation296_spill] sm:$0xff] %v18127_v0  ;;  %v18132_v51 = vpop.f32.mrb[57].mxu1  ;;  %v8546_v10 = vpop.permute.xlu1 %8545 }
 0x871   :  { %v9035_v38 = vadd.f32 %v18041_v21, %v8978_v62  ;;  %v18138_v12 = vpop.f32.mrb[58].mxu1  ;;  %v9084_v40 = vmax.f32 %v9034_v35, 0.0  ;;  %v8680_v32 = vmax.f32 %v17932_v53, %v8546_v10  ;;  %v11918_v53 = vld [vmem:[%s18803_s5 + $0x78] sm:$0xff]  }
 0x872   :  { %20247 = vst [vmem:[#allocation135_spill] sm:$0xff] %v18138_v12  ;;  %v18140_v44 = vpop.f32.mrb[59].mxu1  ;;  %v8794_v43 = vpop.permute.xlu0 %8793  ;;  %11078 = vmatprep.subr.bf16.mxu1 %v11918_v53 }
 0x873   :  { %v9085_v54 = vmax.f32 %v9035_v38, 0.0  ;;  %v8929_v26 = vmax.f32 %v17927_v16, %v8794_v43  ;;  %11079 = vmatpush3.bf16.msra.mxu1 %v11919_v11 }
 0x874   :  { %v8796_v25 = vpop.permute.xlu1 %8795  ;;  %11086 = vmatprep.subr.bf16.mxu1 %v11920_v31 }
 0x875   :  { %v8979_v1 = vmax.f32 %v8679_v8, %v8929_v26  ;;  %v8930_v17 = vmax.f32 %v17934_v34, %v8796_v25  ;;  %v9128_v23 = vpack.c.bf16 %v9085_v54, %v9084_v40 }
 0x876   :  { %v8782_v42 = vpop.permute.xlu0 %8781 }
 0x877   :  { %v9036_v16 = vadd.f32 %v18041_v21, %v8979_v1  ;;  %v8980_v60 = vmax.f32 %v8680_v32, %v8930_v17  ;;  %v8923_v14 = vmax.f32 %v17827_v3, %v8782_v42  ;;  %v18156_v57 = vpop.f32.mrb[60].mxu1  ;;  %9167 = vst.msk [vmem:[#allocation4 + $0x18] sm:$0xff] %vm6870_vm5, %v9128_v23  ;;  %v8674_v3 = vmax.f32 %v17831_v9, %v18080_v39 }
 0x878   :  { %8575 = vrot.lane.b32.xlu0 %v18156_v57, %s12015_s10  ;;  %v18164_v34 = vpop.f32.mrb[61].mxu1  ;;  %v8784_v35 = vpop.permute.xlu1 %8783 }
 0x879   :  { %v9037_v58 = vadd.f32 %v18041_v21, %v8980_v60  ;;  %v8973_v62 = vmax.f32 %v8673_v63, %v8923_v14  ;;  %v18172_v30 = vpop.f32.mrb[62].mxu1  ;;  %v8924_v10 = vmax.f32 %v17833_v5, %v8784_v35  ;;  %v9086_v38 = vmax.f32 %v9036_v16, 0.0 }
 0x87a   :  { %v18175_v47 = vpop.f32.mrb[63].mxu1  ;;  %8577 = vrot.lane.b32.xlu1 %v18172_v30, %s12015_s10 }
 0x87b   :  { %v9087_v43 = vmax.f32 %v9037_v58, 0.0  ;;  %v9030_v40 = vadd.f32 %v18041_v21, %v8973_v62  ;;  %v8974_v54 = vmax.f32 %v8674_v3, %v8924_v10 }
 0x87c   :  { %8825 = vrot.lane.b32.xlu0 %v18164_v34, %s12015_s10 }
 0x87d   :  { %v18182_v9 = vpack.c.bf16 %v9087_v43, %v9086_v38  ;;  %v9031_v39 = vadd.f32 %v18041_v21, %v8974_v54  ;;  %v9080_v5 = vmax.f32 %v9030_v40, 0.0 }
 0x87e   :  { %8827 = vrot.lane.b32.xlu1 %v18175_v47, %s12015_s10 }
 0x87f   :  { %v9081_v8 = vmax.f32 %v9031_v39, 0.0 }
 0x880   :  { %9157 = vrot.lane.b32.xlu0 %v18083_v15, %s12015_s10 }
 0x881   :  { %v9126_v26 = vpack.c.bf16 %v9081_v8, %v9080_v5 }
 0x882   :  { %9150 = vrot.lane.b32.xlu1 %v18065_v37, %s12015_s10 }
 0x883   :  { %9161 = vst.msk [vmem:[#allocation4 + $0x10] sm:$0xff] %vm6870_vm5, %v9126_v26 }
 0x884   :  { %8817 = vrot.lane.b32.xlu0 %v18108_v59, %s12015_s10 }
 0x886   :  { %8819 = vrot.lane.b32.xlu1 %v18112_v55, %s12015_s10 }
 0x88e   :  { %v8552_v25 = vpop.permute.xlu0 %8551  ;;  %v18199_v41 = vpop.f32.mrb[64].mxu1 }
 0x88f   :  { %v18201_v15 = vpop.f32.mrb[65].mxu1  ;;  %v8683_v23 = vmax.f32 %v17967_v50, %v8552_v25  ;;  %v11930_v25 = vld [vmem:[%s18803_s5 + $0x268] sm:$0xff]  }
 0x890   :  { %v18203_v32 = vpop.f32.mrb[66].mxu1  ;;  %v8554_v37 = vpop.permute.xlu1 %8553  ;;  %11162 = vmatprep.subr.bf16.mxu0 %v11930_v25 }
 0x891   :  { %v18205_v1 = vpop.f32.mrb[67].mxu1  ;;  %v8684_v16 = vmax.f32 %v17975_v49, %v8554_v37  ;;  %v11931_v37 = vld [vmem:[%s18803_s5 + $0x228] sm:$0xff]  }
 0x892   :  { %v8802_v17 = vpop.permute.xlu0 %8801  ;;  %11163 = vmatpush3.bf16.msra.mxu0 %v11931_v37 }
 0x893   :  { %v8933_v42 = vmax.f32 %v17969_v2, %v8802_v17 }
 0x894   :  { %v8804_v63 = vpop.permute.xlu1 %8803 }
 0x895   :  { %v8983_v60 = vmax.f32 %v8683_v23, %v8933_v42  ;;  %v8934_v14 = vmax.f32 %v17977_v46, %v8804_v63 }
 0x896   :  { %v18211_v53 = vpop.f32.mrb[68].mxu1 }
 0x897   :  { %v9040_v35 = vadd.f32 %v18041_v21, %v8983_v60  ;;  %v8984_v11 = vmax.f32 %v8684_v16, %v8934_v14  ;;  %v18214_v3 = vpop.f32.mrb[69].mxu1  ;;  %8583 = vrot.lane.b32.xlu0 %v18211_v53, %s12015_s10 }
 0x898   :  { %v18218_v58 = vpop.f32.mrb[70].mxu1 }
 0x899   :  { %v9041_v50 = vadd.f32 %v18041_v21, %v8984_v11  ;;  %v18221_v2 = vpop.f32.mrb[71].mxu1  ;;  %8585 = vrot.lane.b32.xlu1 %v18218_v58, %s12015_s10  ;;  %v9090_v49 = vmax.f32 %v9040_v35, 0.0 }
 0x89b   :  { %v9091_v46 = vmax.f32 %v9041_v50, 0.0  ;;  %8833 = vrot.lane.b32.xlu0 %v18214_v3, %s12015_s10 }
 0x89d   :  { %v18227_v62 = vpack.c.bf16 %v9091_v46, %v9090_v49  ;;  %8835 = vrot.lane.b32.xlu1 %v18221_v2, %s12015_s10 }
 0x89e   :  { %v8560_v10 = vpop.permute.xlu0 %8559  ;;  %v18231_v38 = vpop.f32.mrb[72].mxu1 }
 0x89f   :  { %v18233_v43 = vpop.f32.mrb[73].mxu1  ;;  %8555 = vrot.lane.b32.xlu0 %v17987_v28, %s12015_s10  ;;  %v8687_v8 = vmax.f32 %v18004_v7, %v8560_v10 }
 0x8a0   :  { %v18237_v40 = vpop.f32.mrb[74].mxu1  ;;  %v8562_v54 = vpop.permute.xlu1 %8561 }
 0x8a1   :  { %v18239_v39 = vpop.f32.mrb[75].mxu1  ;;  %8557 = vrot.lane.b32.xlu1 %v17993_v22, %s12015_s10  ;;  %v8688_v17 = vmax.f32 %v18012_v13, %v8562_v54 }
 0x8a2   :  { %v8810_v5 = vpop.permute.xlu0 %8809 }
 0x8a3   :  { %v8937_v26 = vmax.f32 %v18006_v27, %v8810_v5  ;;  %8805 = vrot.lane.b32.xlu0 %v17989_v56, %s12015_s10 }
 0x8a4   :  { %v8812_v31 = vpop.permute.xlu1 %8811 }
 0x8a5   :  { %v8987_v23 = vmax.f32 %v8687_v8, %v8937_v26  ;;  %v8938_v42 = vmax.f32 %v18014_v52, %v8812_v31  ;;  %8807 = vrot.lane.b32.xlu1 %v17995_v4, %s12015_s10  ;;  %v11938_v8 = vld [vmem:[%s18803_s5 + $0x270] sm:$0xff]  }
 0x8a6   :  { %v18257_v7 = vpop.f32.mrb[76].mxu1  ;;  %v11940_v26 = vld [vmem:[%s18803_s5 + $0x230] sm:$0xff]   ;;  %11164 = vmatprep.subr.bf16.mxu0 %v11938_v8 }
 0x8a7   :  { %v9044_v27 = vadd.f32 %v18041_v21, %v8987_v23  ;;  %v8988_v63 = vmax.f32 %v8688_v17, %v8938_v42  ;;  %v18260_v16 = vpop.f32.mrb[77].mxu1  ;;  %8591 = vrot.lane.b32.xlu0 %v18257_v7, %s12015_s10  ;;  %11165 = vmatpush3.bf16.msra.mxu0 %v11940_v26 }
 0x8a8   :  { %v18264_v60 = vpop.f32.mrb[78].mxu1 }
 0x8a9   :  { %v9045_v13 = vadd.f32 %v18041_v21, %v8988_v63  ;;  %v18267_v52 = vpop.f32.mrb[79].mxu1  ;;  %8593 = vrot.lane.b32.xlu1 %v18264_v60, %s12015_s10  ;;  %v9094_v14 = vmax.f32 %v9044_v27, 0.0 }
 0x8ab   :  { %v9095_v35 = vmax.f32 %v9045_v13, 0.0  ;;  %8841 = vrot.lane.b32.xlu0 %v18260_v16, %s12015_s10 }
 0x8ad   :  { %v18273_v11 = vpack.c.bf16 %v9095_v35, %v9094_v14  ;;  %8843 = vrot.lane.b32.xlu1 %v18267_v52, %s12015_s10 }
 0x8ae   :  { %v18277_v50 = vpop.f32.mrb[80].mxu1 }
 0x8af   :  { %v18279_v49 = vpop.f32.mrb[81].mxu1  ;;  %9169 = vrot.lane.b32.xlu0 %v18182_v9, %s12015_s10 }
 0x8b0   :  { %v18283_v46 = vpop.f32.mrb[82].mxu1 }
 0x8b1   :  { %v18285_v10 = vpop.f32.mrb[83].mxu1  ;;  %9163 = vrot.lane.b32.xlu1 %v18090_v48, %s12015_s10 }
 0x8b2   :  { %20248 = vst [vmem:[#allocation297_spill] sm:$0xff] %v18285_v10 }
 0x8b3   :  { %8547 = vrot.lane.b32.xlu0 %v17955_v24, %s12015_s10 }
 0x8b5   :  { %8549 = vrot.lane.b32.xlu1 %v17961_v33, %s12015_s10 }
 0x8b7   :  { %8797 = vrot.lane.b32.xlu0 %v17957_v29, %s12015_s10 }
 0x8b9   :  { %8799 = vrot.lane.b32.xlu1 %v17963_v20, %s12015_s10 }
 0x8d9   :  { %v18297_v9 = vpop.f32.mrb[84].mxu1 }
 0x8da   :  { %20249 = vst [vmem:[#allocation133_spill] sm:$0xff] %v18297_v9  ;;  %v18299_v54 = vpop.f32.mrb[85].mxu1  ;;  %8599 = vrot.lane.b32.xlu0 %v18297_v9, %s12015_s10  ;;  %v8568_v23 = vpop.permute.xlu0 %8567 }
 0x8db   :  { %20250 = vst [vmem:[#allocation240_spill] sm:$0xff] %v18299_v54  ;;  %v18303_v48 = vpop.f32.mrb[86].mxu1 }
 0x8dc   :  { %20251 = vst [vmem:[#allocation211_spill] sm:$0xff] %v18303_v48  ;;  %v18305_v5 = vpop.f32.mrb[87].mxu1  ;;  %8601 = vrot.lane.b32.xlu1 %v18303_v48, %s12015_s10  ;;  %v8570_v42 = vpop.permute.xlu1 %8569 }
 0x8dd   :  { %20252 = vst [vmem:[#allocation232_spill] sm:$0xff] %v18305_v5 }
 0x8de   :  { %8849 = vrot.lane.b32.xlu0 %v18299_v54, %s12015_s10 }
 0x8e0   :  { %8851 = vrot.lane.b32.xlu1 %v18305_v5, %s12015_s10 }
 0x8e1   :  { %v18319_v31 = vpop.f32.mrb[88].mxu1 }
 0x8e2   :  { %v18321_v25 = vpop.f32.mrb[89].mxu1  ;;  %8571 = vrot.lane.b32.xlu0 %v18127_v0, %s12015_s10 }
 0x8e3   :  { %v18325_v37 = vpop.f32.mrb[90].mxu1 }
 0x8e4   :  { %v18327_v17 = vpop.f32.mrb[91].mxu1  ;;  %8573 = vrot.lane.b32.xlu1 %v18138_v12, %s12015_s10 }
 0x8ea   :  { %v8576_v27 = vpop.permute.xlu0 %8575 }
 0x8eb   :  { %v8695_v14 = vmax.f32 %v18156_v57, %v8576_v27 }
 0x8ec   :  { %v8578_v63 = vpop.permute.xlu1 %8577 }
 0x8ed   :  { %v8696_v26 = vmax.f32 %v18172_v30, %v8578_v63 }
 0x8ee   :  { %v8826_v13 = vpop.permute.xlu0 %8825 }
 0x8ef   :  { %v8945_v35 = vmax.f32 %v18164_v34, %v8826_v13  ;;  %v8691_v34 = vmax.f32 %v18104_v61, %v8568_v23 }
 0x8f0   :  { %v8828_v8 = vpop.permute.xlu1 %8827 }
 0x8f1   :  { %v8995_v0 = vmax.f32 %v8695_v14, %v8945_v35  ;;  %v8946_v5 = vmax.f32 %v18175_v47, %v8828_v8  ;;  %v8692_v47 = vmax.f32 %v18110_v19, %v8570_v42  ;;  %v11924_v42 = vld [vmem:[%s18803_s5 + $0xd0] sm:$0xff]  }
 0x8f2   :  { %v9158_v48 = vpop.permute.xlu0 %9157 }
 0x8f3   :  { %v9052_v54 = vadd.f32 %v18041_v21, %v8995_v0  ;;  %v8996_v12 = vmax.f32 %v8696_v26, %v8946_v5  ;;  %9160 = vst.msk [vmem:[#allocation4 + $0x8] sm:$0xff] %vm9153_vm6, %v9158_v48  ;;  %v11925_v26 = vld [vmem:[%s18803_s5 + $0x90] sm:$0xff]  }
 0x8f4   :  { %v9151_v9 = vpop.permute.xlu1 %9150 }
 0x8f5   :  { %v9053_v10 = vadd.f32 %v18041_v21, %v8996_v12  ;;  %9154 = vst.msk [vmem:[#allocation4] sm:$0xff] %vm9153_vm6, %v9151_v9  ;;  %v9102_v27 = vmax.f32 %v9052_v54, 0.0  ;;  %v11921_v12 = vld [vmem:[%s18803_s5 + $0x80] sm:$0xff]  }
 0x8f6   :  { %v8818_v57 = vpop.permute.xlu0 %8817 }
 0x8f7   :  { %v9103_v13 = vmax.f32 %v9053_v10, 0.0  ;;  %v8941_v30 = vmax.f32 %v18108_v59, %v8818_v57  ;;  %v11922_v59 = vld [vmem:[%s18803_s5 + $0xc8] sm:$0xff]  }
 0x8f8   :  { %v8820_v63 = vpop.permute.xlu1 %8819 }
 0x8f9   :  { %v18342_v14 = vpack.c.bf16 %v9103_v13, %v9102_v27  ;;  %v8991_v0 = vmax.f32 %v8691_v34, %v8941_v30  ;;  %v8942_v48 = vmax.f32 %v18112_v55, %v8820_v63  ;;  %v11923_v55 = vld [vmem:[%s18803_s5 + $0x88] sm:$0xff]   ;;  %v11926_v34 = vld [vmem:[%s18803_s5 + $0xd8] sm:$0xff]   ;;  %v11928_v63 = vld [vmem:[%s18803_s5 + $0xe0] sm:$0xff]  }
 0x8fa   :  { %v9223_v5 = vld [vmem:[#allocation4 + $0x8] sm:$0xff]  ;;  %v11927_v30 = vld [vmem:[%s18803_s5 + $0x98] sm:$0xff]  }
 0x8fb   :  { %v9048_v9 = vadd.f32 %v18041_v21, %v8991_v0  ;;  %v8992_v61 = vmax.f32 %v8692_v47, %v8942_v48  ;;  %10077 = vmatprep.mubr.bf16.mxu1 %v9223_v5  ;;  %v11929_v48 = vld [vmem:[%s18803_s5 + $0xa0] sm:$0xff]  }
 0x8fc   :  { %v9222_v10 = vld [vmem:[#allocation4] sm:$0xff] }
 0x8fd   :  { %v9049_v19 = vadd.f32 %v18041_v21, %v8992_v61  ;;  %10078 = vmatmul.mubr.bf16.vlgmr.msra.gmra.mrb[100].mxu1 %v9222_v10  ;;  %v9098_v54 = vmax.f32 %v9048_v9, 0.0  ;;  %v11932_v9 = vld [vmem:[%s18803_s5 + $0xe8] sm:$0xff]  }
 0x8fe   :  { %11087 = vmatpush3.bf16.msra.mxu1 %v11921_v12 }
 0x8ff   :  { %v9099_v23 = vmax.f32 %v9049_v19, 0.0  ;;  %11088 = vmatprep.subr.bf16.mxu1 %v11922_v59 }
 0x901   :  { %v18359_v35 = vpack.c.bf16 %v9099_v23, %v9098_v54  ;;  %v11934_v23 = vld [vmem:[%s18803_s5 + $0xf0] sm:$0xff]  }
 0x902   :  { %v18361_v8 = vpop.f32.mrb[92].mxu1  ;;  %11089 = vmatpush3.bf16.msra.mxu1 %v11923_v55 }
 0x903   :  { %v18366_v57 = vpop.f32.mrb[93].mxu1  ;;  %8607 = vrot.lane.b32.xlu0 %v18361_v8, %s12015_s10  ;;  %11090 = vmatprep.subr.bf16.mxu1 %v11924_v42 }
 0x904   :  { %v18373_v27 = vpop.f32.mrb[94].mxu1 }
 0x905   :  { %v18375_v13 = vpop.f32.mrb[95].mxu1  ;;  %8609 = vrot.lane.b32.xlu1 %v18373_v27, %s12015_s10 }
 0x906   :  { %11091 = vmatpush3.bf16.msra.mxu1 %v11925_v26 }
 0x907   :  { %8857 = vrot.lane.b32.xlu0 %v18366_v57, %s12015_s10  ;;  %11092 = vmatprep.subr.bf16.mxu1 %v11926_v34 }
 0x909   :  { %8859 = vrot.lane.b32.xlu1 %v18375_v13, %s12015_s10  ;;  %v8584_v47 = vpop.permute.xlu0 %8583 }
 0x90a   :  { %v18389_v0 = vpop.f32.mrb[96].mxu1  ;;  %11093 = vmatpush3.bf16.msra.mxu1 %v11927_v30  ;;  %v8699_v19 = vmax.f32 %v18211_v53, %v8584_v47  ;;  %v11935_v30 = vld [vmem:[%s18803_s5 + $0xb0] sm:$0xff]  }
 0x90b   :  { %v18394_v5 = vpop.f32.mrb[97].mxu1  ;;  %9181 = vrot.lane.b32.xlu0 %v18273_v11, %s12015_s10  ;;  %v8586_v12 = vpop.permute.xlu1 %8585  ;;  %11094 = vmatprep.subr.bf16.mxu1 %v11928_v63  ;;  %v11933_v11 = vld [vmem:[%s18803_s5 + $0xa8] sm:$0xff]  }
 0x90c   :  { %v18401_v61 = vpop.f32.mrb[98].mxu1 }
 0x90d   :  { %v18403_v59 = vpop.f32.mrb[99].mxu1  ;;  %9175 = vrot.lane.b32.xlu1 %v18227_v62, %s12015_s10  ;;  %v8834_v10 = vpop.permute.xlu0 %8833  ;;  %v8700_v62 = vmax.f32 %v18218_v58, %v8586_v12  ;;  %v11936_v58 = vld [vmem:[%s18803_s5 + $0xf8] sm:$0xff]  }
 0x90e   :  { %v8949_v55 = vmax.f32 %v18214_v3, %v8834_v10  ;;  %11095 = vmatpush3.bf16.msra.mxu1 %v11929_v48 }
 0x90f   :  { %8821 = vrot.lane.b32.xlu0 %v18132_v51, %s12015_s10  ;;  %v8836_v54 = vpop.permute.xlu1 %8835  ;;  %11096 = vmatprep.subr.bf16.mxu1 %v11932_v9 }
 0x910   :  { %v8999_v42 = vmax.f32 %v8699_v19, %v8949_v55  ;;  %v8950_v53 = vmax.f32 %v18221_v2, %v8836_v54  ;;  %v11937_v19 = vld [vmem:[%s18803_s5 + $0xb8] sm:$0xff]  }
 0x911   :  { %8823 = vrot.lane.b32.xlu1 %v18140_v44, %s12015_s10  ;;  %v8556_v3 = vpop.permute.xlu0 %8555 }
 0x912   :  { %v9056_v26 = vadd.f32 %v18041_v21, %v8999_v42  ;;  %v9000_v34 = vmax.f32 %v8700_v62, %v8950_v53  ;;  %11097 = vmatpush3.bf16.msra.mxu1 %v11933_v11  ;;  %v8685_v9 = vmax.f32 %v17987_v28, %v8556_v3  ;;  %v11939_v11 = vld [vmem:[%s18803_s5 + $0x140] sm:$0xff]  }
 0x913   :  { %8563 = vrot.lane.b32.xlu0 %v18024_v6, %s12015_s10  ;;  %v8558_v63 = vpop.permute.xlu1 %8557  ;;  %11098 = vmatprep.subr.bf16.mxu1 %v11934_v23 }
 0x914   :  { %v9057_v2 = vadd.f32 %v18041_v21, %v9000_v34  ;;  %v9106_v48 = vmax.f32 %v9056_v26, 0.0  ;;  %v8686_v28 = vmax.f32 %v17993_v22, %v8558_v63 }
 0x915   :  { %8565 = vrot.lane.b32.xlu1 %v18030_v45, %s12015_s10  ;;  %v8806_v47 = vpop.permute.xlu0 %8805 }
 0x916   :  { %v9107_v12 = vmax.f32 %v9057_v2, 0.0  ;;  %v8935_v10 = vmax.f32 %v17989_v56, %v8806_v47  ;;  %11099 = vmatpush3.bf16.msra.mxu1 %v11935_v30 }
 0x917   :  { %8813 = vrot.lane.b32.xlu0 %v18026_v36, %s12015_s10  ;;  %v8808_v55 = vpop.permute.xlu1 %8807  ;;  %11100 = vmatprep.subr.bf16.mxu1 %v11936_v58 }
 0x918   :  { %v18443_v54 = vpack.c.bf16 %v9107_v12, %v9106_v48  ;;  %v8985_v23 = vmax.f32 %v8685_v9, %v8935_v10  ;;  %v8936_v56 = vmax.f32 %v17995_v4, %v8808_v55 }
 0x919   :  { %8815 = vrot.lane.b32.xlu1 %v18032_v18, %s12015_s10  ;;  %v8592_v62 = vpop.permute.xlu0 %8591 }
 0x91a   :  { %v9042_v42 = vadd.f32 %v18041_v21, %v8985_v23  ;;  %v8986_v53 = vmax.f32 %v8686_v28, %v8936_v56  ;;  %11101 = vmatpush3.bf16.msra.mxu1 %v11937_v19  ;;  %v8703_v30 = vmax.f32 %v18257_v7, %v8592_v62  ;;  %v11941_v62 = vld [vmem:[%s18803_s5 + $0x100] sm:$0xff]  }
 0x91b   :  { %8587 = vrot.lane.b32.xlu0 %v18231_v38, %s12015_s10  ;;  %v8594_v3 = vpop.permute.xlu1 %8593  ;;  %11108 = vmatprep.subr.bf16.mxu1 %v11939_v11 }
 0x91c   :  { %v9043_v26 = vadd.f32 %v18041_v21, %v8986_v53  ;;  %v9092_v4 = vmax.f32 %v9042_v42, 0.0  ;;  %v8704_v2 = vmax.f32 %v18264_v60, %v8594_v3  ;;  %v11942_v3 = vld [vmem:[%s18803_s5 + $0x148] sm:$0xff]  }
 0x91d   :  { %8589 = vrot.lane.b32.xlu1 %v18237_v40, %s12015_s10  ;;  %v8842_v22 = vpop.permute.xlu0 %8841 }
 0x91e   :  { %v9093_v34 = vmax.f32 %v9043_v26, 0.0  ;;  %v8953_v63 = vmax.f32 %v18260_v16, %v8842_v22 }
 0x91f   :  { %8837 = vrot.lane.b32.xlu0 %v18233_v43, %s12015_s10  ;;  %v8844_v58 = vpop.permute.xlu1 %8843 }
 0x920   :  { %v9003_v47 = vmax.f32 %v8703_v30, %v8953_v63  ;;  %v8954_v48 = vmax.f32 %v18267_v52, %v8844_v58  ;;  %v9132_v12 = vpack.c.bf16 %v9093_v34, %v9092_v4 }
 0x921   :  { %8839 = vrot.lane.b32.xlu1 %v18239_v39, %s12015_s10  ;;  %v9170_v9 = vpop.permute.xlu0 %9169 }
 0x922   :  { %v9060_v10 = vadd.f32 %v18041_v21, %v9003_v47  ;;  %v9004_v19 = vmax.f32 %v8704_v2, %v8954_v48  ;;  %9172 = vst.msk [vmem:[#allocation4 + $0x18] sm:$0xff] %vm9153_vm6, %v9170_v9  ;;  %v11946_v2 = vld [vmem:[%s18803_s5 + $0x158] sm:$0xff]   ;;  %v11948_v9 = vld [vmem:[%s18803_s5 + $0x160] sm:$0xff]  }
 0x923   :  { %9179 = vst.msk [vmem:[#allocation4 + $0x28] sm:$0xff] %vm6870_vm5, %v9132_v12  ;;  %8579 = vrot.lane.b32.xlu0 %v18199_v41, %s12015_s10  ;;  %v9164_v7 = vpop.permute.xlu1 %9163  ;;  %v11972_v48 = vld [vmem:[%s18803_s5 + $0x278] sm:$0xff]  }
 0x924   :  { %v9061_v16 = vadd.f32 %v18041_v21, %v9004_v19  ;;  %9166 = vst.msk [vmem:[#allocation4 + $0x10] sm:$0xff] %vm9153_vm6, %v9164_v7  ;;  %v9110_v52 = vmax.f32 %v9060_v10, 0.0  ;;  %v11947_v12 = vld [vmem:[%s18803_s5 + $0x118] sm:$0xff]   ;;  %11166 = vmatprep.subr.bf16.mxu0 %v11972_v48  ;;  %v11949_v19 = vld [vmem:[%s18803_s5 + $0x120] sm:$0xff]   ;;  %v11950_v7 = vld [vmem:[%s18803_s5 + $0x168] sm:$0xff]  }
 0x925   :  { %8581 = vrot.lane.b32.xlu1 %v18203_v32, %s12015_s10  ;;  %v8548_v60 = vpop.permute.xlu0 %8547  ;;  %v11973_v10 = vld [vmem:[%s18803_s5 + $0x238] sm:$0xff]  }
 0x926   :  { %v9111_v55 = vmax.f32 %v9061_v16, 0.0  ;;  %v8681_v42 = vmax.f32 %v17955_v24, %v8548_v60  ;;  %v11943_v24 = vld [vmem:[%s18803_s5 + $0x108] sm:$0xff]   ;;  %11167 = vmatpush3.bf16.msra.mxu0 %v11973_v10 }
 0x927   :  { %8829 = vrot.lane.b32.xlu0 %v18201_v15, %s12015_s10  ;;  %v8550_v11 = vpop.permute.xlu1 %8549  ;;  %v20253_v16 = vld [vmem:[#allocation297_spill] sm:$0xff] }
 0x928   :  { %v9141_v28 = vpack.c.bf16 %v9111_v55, %v9110_v52  ;;  %v8682_v4 = vmax.f32 %v17961_v33, %v8550_v11  ;;  %v11944_v33 = vld [vmem:[%s18803_s5 + $0x150] sm:$0xff]   ;;  %v11951_v60 = vld [vmem:[%s18803_s5 + $0x128] sm:$0xff]   ;;  %v12017_v55 = vmov 0.0  }
 0x929   :  { %8831 = vrot.lane.b32.xlu1 %v18205_v1, %s12015_s10  ;;  %v8798_v23 = vpop.permute.xlu0 %8797  ;;  %v9225_v56 = vld [vmem:[#allocation4 + $0x18] sm:$0xff]  ;;  %v11952_v52 = vld [vmem:[%s18803_s5 + $0x170] sm:$0xff]   ;;  %11501 = vmatprep.subr.bf16.mxu0 %v12017_v55 }
 0x92a   :  { %v8931_v53 = vmax.f32 %v17957_v29, %v8798_v23  ;;  %10118 = vmatprep.mubr.bf16.mxu1 %v9225_v56  ;;  %v11953_v11 = vld [vmem:[%s18803_s5 + $0x130] sm:$0xff]   ;;  %v11954_v23 = vld [vmem:[%s18803_s5 + $0x178] sm:$0xff]  }
 0x92b   :  { %9193 = vrot.lane.b32.xlu0 %v18342_v14, %s12015_s10  ;;  %v8800_v26 = vpop.permute.xlu1 %8799  ;;  %v9224_v22 = vld [vmem:[#allocation4 + $0x10] sm:$0xff] }
 0x92c   :  { %v8981_v34 = vmax.f32 %v8681_v42, %v8931_v53  ;;  %v8932_v30 = vmax.f32 %v17963_v20, %v8800_v26  ;;  %10119 = vmatmul.mubr.bf16.vlgmr.msra.gmra.mrb[104].mxu1 %v9224_v22  ;;  %v11945_v14 = vld [vmem:[%s18803_s5 + $0x110] sm:$0xff]   ;;  %v20254_v53 = vld [vmem:[#allocation133_spill] sm:$0xff]  ;;  %v20255_v26 = vld [vmem:[#allocation240_spill] sm:$0xff] }
 0x92d   :  { %9187 = vrot.lane.b32.xlu1 %v18359_v35, %s12015_s10  ;;  %11109 = vmatpush3.bf16.msra.mxu1 %v11941_v62 }
 0x92e   :  { %v9038_v29 = vadd.f32 %v18041_v21, %v8981_v34  ;;  %v8982_v63 = vmax.f32 %v8682_v4, %v8932_v30  ;;  %11110 = vmatprep.subr.bf16.mxu1 %v11942_v3  ;;  %v20256_v34 = vld [vmem:[#allocation211_spill] sm:$0xff] }
 0x92f   :  { %8603 = vrot.lane.b32.xlu0 %v18319_v31, %s12015_s10 }
 0x930   :  { %v9039_v20 = vadd.f32 %v18041_v21, %v8982_v63  ;;  %v9088_v35 = vmax.f32 %v9038_v29, 0.0  ;;  %v20257_v29 = vld [vmem:[#allocation232_spill] sm:$0xff] }
 0x931   :  { %8605 = vrot.lane.b32.xlu1 %v18325_v37, %s12015_s10  ;;  %11111 = vmatpush3.bf16.msra.mxu1 %v11943_v24 }
 0x932   :  { %v9089_v58 = vmax.f32 %v9039_v20, 0.0  ;;  %11112 = vmatprep.subr.bf16.mxu1 %v11944_v33 }
 0x933   :  { %8853 = vrot.lane.b32.xlu0 %v18321_v25, %s12015_s10 }
 0x934   :  { %v9130_v47 = vpack.c.bf16 %v9089_v58, %v9088_v35 }
 0x935   :  { %8855 = vrot.lane.b32.xlu1 %v18327_v17, %s12015_s10  ;;  %11113 = vmatpush3.bf16.msra.mxu1 %v11945_v14 }
 0x936   :  { %11114 = vmatprep.subr.bf16.mxu1 %v11946_v2  ;;  %9173 = vst.msk [vmem:[#allocation4 + $0x20] sm:$0xff] %vm6870_vm5, %v9130_v47 }
 0x937   :  { %8595 = vrot.lane.b32.xlu0 %v18277_v50, %s12015_s10 }
 0x939   :  { %8597 = vrot.lane.b32.xlu1 %v18283_v46, %s12015_s10  ;;  %11115 = vmatpush3.bf16.msra.mxu1 %v11947_v12 }
 0x93a   :  { %11116 = vmatprep.subr.bf16.mxu1 %v11948_v9 }
 0x93b   :  { %8845 = vrot.lane.b32.xlu0 %v18279_v49, %s12015_s10 }
 0x93d   :  { %8847 = vrot.lane.b32.xlu1 %v20253_v16, %s12015_s10  ;;  %11117 = vmatpush3.bf16.msra.mxu1 %v11949_v19 }
 0x93e   :  { %11118 = vmatprep.subr.bf16.mxu1 %v11950_v7 }
 0x93f   :  { %9205 = vrot.lane.b32.xlu0 %v9141_v28, %s12015_s10  ;;  %v11956_v28 = vld [vmem:[%s18803_s5 + $0x1c0] sm:$0xff]  }
 0x941   :  { %9199 = vrot.lane.b32.xlu1 %v18443_v54, %s12015_s10  ;;  %11119 = vmatpush3.bf16.msra.mxu1 %v11951_v60  ;;  %v11955_v54 = vld [vmem:[%s18803_s5 + $0x138] sm:$0xff]  }
 0x942   :  { %11120 = vmatprep.subr.bf16.mxu1 %v11952_v52 }
 0x943   :  { %8611 = vrot.lane.b32.xlu0 %v18389_v0, %s12015_s10 }
 0x945   :  { %8613 = vrot.lane.b32.xlu1 %v18401_v61, %s12015_s10  ;;  %11121 = vmatpush3.bf16.msra.mxu1 %v11953_v11 }
 0x946   :  { %11122 = vmatprep.subr.bf16.mxu1 %v11954_v23 }
 0x947   :  { %8861 = vrot.lane.b32.xlu0 %v18394_v5, %s12015_s10 }
 0x949   :  { %8863 = vrot.lane.b32.xlu1 %v18403_v59, %s12015_s10  ;;  %11123 = vmatpush3.bf16.msra.mxu1 %v11955_v54 }
 0x94a   :  { %11130 = vmatprep.subr.bf16.mxu1 %v11956_v28 }
 0x94c   :  { %v8600_v56 = vpop.permute.xlu0 %8599 }
 0x94d   :  { %v8707_v3 = vmax.f32 %v20254_v53, %v8600_v56  ;;  %v20258_v53 = vld [vmem:[#allocation296_spill] sm:$0xff] }
 0x94e   :  { %v8602_v62 = vpop.permute.xlu1 %8601 }
 0x94f   :  { %v8708_v30 = vmax.f32 %v20256_v34, %v8602_v62 }
 0x950   :  { %v8850_v42 = vpop.permute.xlu0 %8849 }
 0x951   :  { %v8957_v22 = vmax.f32 %v20255_v26, %v8850_v42 }
 0x952   :  { %v8852_v4 = vpop.permute.xlu1 %8851 }
 0x953   :  { %v9007_v24 = vmax.f32 %v8707_v3, %v8957_v22  ;;  %v8958_v63 = vmax.f32 %v20257_v29, %v8852_v4 }
 0x954   :  { %v8572_v47 = vpop.permute.xlu0 %8571 }
 0x955   :  { %v9064_v33 = vadd.f32 %v18041_v21, %v9007_v24  ;;  %v9008_v20 = vmax.f32 %v8708_v30, %v8958_v63 }
 0x956   :  { %v8574_v48 = vpop.permute.xlu1 %8573 }
 0x957   :  { %v9065_v14 = vadd.f32 %v18041_v21, %v9008_v20  ;;  %v9114_v35 = vmax.f32 %v9064_v33, 0.0  ;;  %v18594_v33 = vld [vmem:[%s18804_s4] ss:$0 sm:$0xff] }
 0x959   :  { %v9115_v58 = vmax.f32 %v9065_v14, 0.0 }
 0x95b   :  { %v9143_v2 = vpack.c.bf16 %v9115_v58, %v9114_v35 }
 0x95d   :  { %9211 = vrot.lane.b32.xlu1 %v9143_v2, %s12015_s10 }
 0x975   :  { %v8608_v12 = vpop.permute.xlu0 %8607 }
 0x976   :  { %v8711_v19 = vmax.f32 %v18361_v8, %v8608_v12 }
 0x977   :  { %v8610_v9 = vpop.permute.xlu1 %8609 }
 0x978   :  { %v8712_v52 = vmax.f32 %v18373_v27, %v8610_v9 }
 0x979   :  { %v8858_v10 = vpop.permute.xlu0 %8857 }
 0x97a   :  { %v8961_v7 = vmax.f32 %v18366_v57, %v8858_v10  ;;  %v8693_v57 = vmax.f32 %v20258_v53, %v8572_v47  ;;  %v11959_v47 = vld [vmem:[%s18803_s5 + $0x188] sm:$0xff]  }
 0x97b   :  { %v8860_v60 = vpop.permute.xlu1 %8859 }
 0x97c   :  { %v9011_v11 = vmax.f32 %v8711_v19, %v8961_v7  ;;  %v8962_v23 = vmax.f32 %v18375_v13, %v8860_v60  ;;  %v20259_v13 = vld [vmem:[#allocation135_spill] sm:$0xff]  ;;  %v11960_v19 = vld [vmem:[%s18803_s5 + $0x1d0] sm:$0xff]  }
 0x97d   :  { %v9182_v54 = vpop.permute.xlu0 %9181  ;;  %v8694_v4 = vmax.f32 %v20259_v13, %v8574_v48 }
 0x97e   :  { %v9068_v28 = vadd.f32 %v18041_v21, %v9011_v11  ;;  %v9012_v56 = vmax.f32 %v8712_v52, %v8962_v23  ;;  %9184 = vst.msk [vmem:[#allocation4 + $0x28] sm:$0xff] %vm9153_vm6, %v9182_v54 }
 0x97f   :  { %v9176_v62 = vpop.permute.xlu1 %9175 }
 0x980   :  { %v9069_v42 = vadd.f32 %v18041_v21, %v9012_v56  ;;  %9178 = vst.msk [vmem:[#allocation4 + $0x20] sm:$0xff] %vm9153_vm6, %v9176_v62  ;;  %v9118_v3 = vmax.f32 %v9068_v28, 0.0  ;;  %v11957_v21 = vld [vmem:[%s18803_s5 + $0x180] sm:$0xff]   ;;  %v11962_v56 = vld [vmem:[%s18803_s5 + $0x1d8] sm:$0xff]  }
 0x981   :  { %v8822_v8 = vpop.permute.xlu0 %8821 }
 0x982   :  { %v9119_v26 = vmax.f32 %v9069_v42, 0.0  ;;  %v8943_v27 = vmax.f32 %v18132_v51, %v8822_v8  ;;  %v11963_v42 = vld [vmem:[%s18803_s5 + $0x198] sm:$0xff]  }
 0x983   :  { %v8824_v22 = vpop.permute.xlu1 %8823 }
 0x984   :  { %v9145_v34 = vpack.c.bf16 %v9119_v26, %v9118_v3  ;;  %v8993_v30 = vmax.f32 %v8693_v57, %v8943_v27  ;;  %v8944_v24 = vmax.f32 %v18140_v44, %v8824_v22  ;;  %v11958_v44 = vld [vmem:[%s18803_s5 + $0x1c8] sm:$0xff]   ;;  %v11964_v26 = vld [vmem:[%s18803_s5 + $0x1e0] sm:$0xff]  }
 0x985   :  { %v8564_v29 = vpop.permute.xlu0 %8563  ;;  %v9227_v63 = vld [vmem:[#allocation4 + $0x28] sm:$0xff] }
 0x986   :  { %v9050_v51 = vadd.f32 %v18594_v33, %v8993_v30  ;;  %v8994_v20 = vmax.f32 %v8694_v4, %v8944_v24  ;;  %10159 = vmatprep.mubr.bf16.mxu1 %v9227_v63  ;;  %9217 = vrot.lane.b32.xlu0 %v9145_v34, %s12015_s10  ;;  %v8689_v9 = vmax.f32 %v18024_v6, %v8564_v29  ;;  %v11961_v6 = vld [vmem:[%s18803_s5 + $0x190] sm:$0xff]   ;;  %v11966_v29 = vld [vmem:[%s18803_s5 + $0x1e8] sm:$0xff]  }
 0x987   :  { %v8566_v14 = vpop.permute.xlu1 %8565  ;;  %v9226_v35 = vld [vmem:[#allocation4 + $0x20] sm:$0xff] }
 0x988   :  { %v9051_v58 = vadd.f32 %v18594_v33, %v8994_v20  ;;  %10160 = vmatmul.mubr.bf16.vlgmr.msra.gmra.mrb[108].mxu1 %v9226_v35  ;;  %v9100_v48 = vmax.f32 %v9050_v51, 0.0  ;;  %v8690_v60 = vmax.f32 %v18030_v45, %v8566_v14  ;;  %v11968_v35 = vld [vmem:[%s18803_s5 + $0x1f0] sm:$0xff]  }
 0x989   :  { %v8814_v2 = vpop.permute.xlu0 %8813  ;;  %11131 = vmatpush3.bf16.msra.mxu1 %v11957_v21  ;;  %v11967_v21 = vld [vmem:[%s18803_s5 + $0x1a8] sm:$0xff]  }
 0x98a   :  { %v9101_v12 = vmax.f32 %v9051_v58, 0.0  ;;  %v8939_v10 = vmax.f32 %v18026_v36, %v8814_v2  ;;  %11132 = vmatprep.subr.bf16.mxu1 %v11958_v44 }
 0x98b   :  { %v8816_v7 = vpop.permute.xlu1 %8815 }
 0x98c   :  { %v8989_v52 = vmax.f32 %v8689_v9, %v8939_v10  ;;  %v8940_v11 = vmax.f32 %v18032_v18, %v8816_v7  ;;  %v9136_v23 = vpack.c.bf16 %v9101_v12, %v9100_v48 }
 0x98d   :  { %v8588_v54 = vpop.permute.xlu0 %8587  ;;  %11133 = vmatpush3.bf16.msra.mxu1 %v11959_v47 }
 0x98e   :  { %v9046_v36 = vadd.f32 %v18594_v33, %v8989_v52  ;;  %v8990_v28 = vmax.f32 %v8690_v60, %v8940_v11  ;;  %11134 = vmatprep.subr.bf16.mxu1 %v11960_v19  ;;  %9191 = vst.msk [vmem:[#allocation4 + $0x38] sm:$0xff] %vm6870_vm5, %v9136_v23  ;;  %v8701_v57 = vmax.f32 %v18231_v38, %v8588_v54  ;;  %v11965_v38 = vld [vmem:[%s18803_s5 + $0x1a0] sm:$0xff]   ;;  %v11971_v60 = vld [vmem:[%s18803_s5 + $0x1b8] sm:$0xff]  }
 0x98f   :  { %v8590_v45 = vpop.permute.xlu1 %8589  ;;  %v11978_v23 = vld [vmem:[%s18803_s5 + $0x2c0] sm:$0xff]  }
 0x990   :  { %v9047_v18 = vadd.f32 %v18594_v33, %v8990_v28  ;;  %v9096_v8 = vmax.f32 %v9046_v36, 0.0  ;;  %v8702_v22 = vmax.f32 %v18237_v40, %v8590_v45 }
 0x991   :  { %v8838_v62 = vpop.permute.xlu0 %8837  ;;  %11135 = vmatpush3.bf16.msra.mxu1 %v11961_v6 }
 0x992   :  { %v9097_v53 = vmax.f32 %v9047_v18, 0.0  ;;  %v8951_v3 = vmax.f32 %v18233_v43, %v8838_v62  ;;  %11136 = vmatprep.subr.bf16.mxu1 %v11962_v56  ;;  %v11979_v56 = vld [vmem:[%s18803_s5 + $0x280] sm:$0xff]   ;;  %v11980_v62 = vld [vmem:[%s18803_s5 + $0x2c8] sm:$0xff]  }
 0x993   :  { %v8840_v27 = vpop.permute.xlu1 %8839 }
 0x994   :  { %v9001_v13 = vmax.f32 %v8701_v57, %v8951_v3  ;;  %v8952_v4 = vmax.f32 %v18239_v39, %v8840_v27  ;;  %v9134_v34 = vpack.c.bf16 %v9097_v53, %v9096_v8 }
 0x995   :  { %v8580_v30 = vpop.permute.xlu0 %8579  ;;  %11137 = vmatpush3.bf16.msra.mxu1 %v11963_v42 }
 0x996   :  { %v9058_v43 = vadd.f32 %v18594_v33, %v9001_v13  ;;  %v9002_v24 = vmax.f32 %v8702_v22, %v8952_v4  ;;  %11138 = vmatprep.subr.bf16.mxu1 %v11964_v26  ;;  %9185 = vst.msk [vmem:[#allocation4 + $0x30] sm:$0xff] %vm6870_vm5, %v9134_v34  ;;  %v8697_v44 = vmax.f32 %v18199_v41, %v8580_v30  ;;  %v11969_v41 = vld [vmem:[%s18803_s5 + $0x1b0] sm:$0xff]  }
 0x997   :  { %v8582_v40 = vpop.permute.xlu1 %8581  ;;  %v11982_v22 = vld [vmem:[%s18803_s5 + $0x2d0] sm:$0xff]  }
 0x998   :  { %v9059_v39 = vadd.f32 %v18594_v33, %v9002_v24  ;;  %v9108_v51 = vmax.f32 %v9058_v43, 0.0  ;;  %v8698_v2 = vmax.f32 %v18203_v32, %v8582_v40  ;;  %v11970_v32 = vld [vmem:[%s18803_s5 + $0x1f8] sm:$0xff]  }
 0x999   :  { %v8830_v63 = vpop.permute.xlu0 %8829  ;;  %11139 = vmatpush3.bf16.msra.mxu1 %v11965_v38  ;;  %v11984_v24 = vld [vmem:[%s18803_s5 + $0x2d8] sm:$0xff]  }
 0x99a   :  { %v9109_v20 = vmax.f32 %v9059_v39, 0.0  ;;  %v8947_v14 = vmax.f32 %v18201_v15, %v8830_v63  ;;  %11140 = vmatprep.subr.bf16.mxu1 %v11966_v29 }
 0x99b   :  { %v8832_v58 = vpop.permute.xlu1 %8831 }
 0x99c   :  { %v8997_v47 = vmax.f32 %v8697_v44, %v8947_v14  ;;  %v8948_v48 = vmax.f32 %v18205_v1, %v8832_v58  ;;  %v9140_v12 = vpack.c.bf16 %v9109_v20, %v9108_v51 }
 0x99d   :  { %v9194_v9 = vpop.permute.xlu0 %9193  ;;  %11141 = vmatpush3.bf16.msra.mxu1 %v11967_v21 }
 0x99e   :  { %v9054_v15 = vadd.f32 %v18594_v33, %v8997_v47  ;;  %v8998_v10 = vmax.f32 %v8698_v2, %v8948_v48  ;;  %9196 = vst.msk [vmem:[#allocation4 + $0x38] sm:$0xff] %vm9153_vm6, %v9194_v9  ;;  %11142 = vmatprep.subr.bf16.mxu1 %v11968_v35  ;;  %v11987_v35 = vld [vmem:[%s18803_s5 + $0x2a0] sm:$0xff]   ;;  %v11988_v47 = vld [vmem:[%s18803_s5 + $0x2e8] sm:$0xff]  }
 0x99f   :  { %9203 = vst.msk [vmem:[#allocation4 + $0x48] sm:$0xff] %vm6870_vm5, %v9140_v12  ;;  %v9188_v1 = vpop.permute.xlu1 %9187 }
 0x9a0   :  { %v9055_v19 = vadd.f32 %v18594_v33, %v8998_v10  ;;  %9190 = vst.msk [vmem:[#allocation4 + $0x30] sm:$0xff] %vm9153_vm6, %v9188_v1  ;;  %v9104_v52 = vmax.f32 %v9054_v15, 0.0  ;;  %v11974_v15 = vld [vmem:[%s18803_s5 + $0x300] sm:$0xff]   ;;  %v11989_v1 = vld [vmem:[%s18803_s5 + $0x2a8] sm:$0xff]  }
 0x9a1   :  { %v8604_v7 = vpop.permute.xlu0 %8603  ;;  %11143 = vmatpush3.bf16.msra.mxu1 %v11969_v41 }
 0x9a2   :  { %v9105_v11 = vmax.f32 %v9055_v19, 0.0  ;;  %11144 = vmatprep.subr.bf16.mxu1 %v11970_v32  ;;  %v8709_v45 = vmax.f32 %v18319_v31, %v8604_v7  ;;  %v11981_v31 = vld [vmem:[%s18803_s5 + $0x288] sm:$0xff]  }
 0x9a3   :  { %v8606_v54 = vpop.permute.xlu1 %8605 }
 0x9a4   :  { %v9138_v6 = vpack.c.bf16 %v9105_v11, %v9104_v52  ;;  %v8710_v53 = vmax.f32 %v18325_v37, %v8606_v54 }
 0x9a5   :  { %v8854_v36 = vpop.permute.xlu0 %8853  ;;  %11145 = vmatpush3.bf16.msra.mxu1 %v11971_v60  ;;  %v9229_v28 = vld [vmem:[#allocation4 + $0x38] sm:$0xff]  ;;  %v11990_v60 = vld [vmem:[%s18803_s5 + $0x2f0] sm:$0xff]  }
 0x9a6   :  { %v8959_v18 = vmax.f32 %v18321_v25, %v8854_v36  ;;  %10200 = vmatprep.mubr.bf16.mxu1 %v9229_v28  ;;  %9197 = vst.msk [vmem:[#allocation4 + $0x40] sm:$0xff] %vm6870_vm5, %v9138_v6  ;;  %11174 = vmatprep.subr.bf16.mxu1 %v11978_v23  ;;  %v11976_v36 = vld [vmem:[%s18803_s5 + $0x310] sm:$0xff]  }
 0x9a7   :  { %v8856_v42 = vpop.permute.xlu1 %8855  ;;  %v9228_v8 = vld [vmem:[#allocation4 + $0x30] sm:$0xff] }
 0x9a8   :  { %v9009_v57 = vmax.f32 %v8709_v45, %v8959_v18  ;;  %v8960_v3 = vmax.f32 %v18327_v17, %v8856_v42  ;;  %10201 = vmatmul.mubr.bf16.vlgmr.msra.gmra.mrb[112].mxu1 %v9228_v8  ;;  %v11983_v17 = vld [vmem:[%s18803_s5 + $0x290] sm:$0xff]   ;;  %v11993_v45 = vld [vmem:[%s18803_s5 + $0x2b8] sm:$0xff]  }
 0x9a9   :  { %v8596_v26 = vpop.permute.xlu0 %8595  ;;  %11175 = vmatpush3.bf16.msra.mxu1 %v11979_v56 }
 0x9aa   :  { %v9066_v25 = vadd.f32 %v18594_v33, %v9009_v57  ;;  %v9010_v27 = vmax.f32 %v8710_v53, %v8960_v3  ;;  %11176 = vmatprep.subr.bf16.mxu1 %v11980_v62  ;;  %v8705_v38 = vmax.f32 %v18277_v50, %v8596_v26  ;;  %v11985_v50 = vld [vmem:[%s18803_s5 + $0x298] sm:$0xff]  }
 0x9ab   :  { %v8598_v13 = vpop.permute.xlu1 %8597 }
 0x9ac   :  { %v9067_v37 = vadd.f32 %v18594_v33, %v9010_v27  ;;  %v9116_v34 = vmax.f32 %v9066_v25, 0.0  ;;  %v8706_v40 = vmax.f32 %v18283_v46, %v8598_v13  ;;  %v11986_v46 = vld [vmem:[%s18803_s5 + $0x2e0] sm:$0xff]  }
 0x9ad   :  { %v8846_v4 = vpop.permute.xlu0 %8845  ;;  %11177 = vmatpush3.bf16.msra.mxu1 %v11981_v31 }
 0x9ae   :  { %v9117_v30 = vmax.f32 %v9067_v37, 0.0  ;;  %v8955_v43 = vmax.f32 %v18279_v49, %v8846_v4  ;;  %11178 = vmatprep.subr.bf16.mxu1 %v11982_v22 }
 0x9af   :  { %v8848_v29 = vpop.permute.xlu1 %8847 }
 0x9b0   :  { %v9005_v39 = vmax.f32 %v8705_v38, %v8955_v43  ;;  %v8956_v63 = vmax.f32 %v20253_v16, %v8848_v29  ;;  %v9144_v21 = vpack.c.bf16 %v9117_v30, %v9116_v34 }
 0x9b1   :  { %v9206_v51 = vpop.permute.xlu0 %9205  ;;  %11179 = vmatpush3.bf16.msra.mxu1 %v11983_v17 }
 0x9b2   :  { %v9062_v49 = vadd.f32 %v18594_v33, %v9005_v39  ;;  %v9006_v20 = vmax.f32 %v8706_v40, %v8956_v63  ;;  %9208 = vst.msk [vmem:[#allocation4 + $0x48] sm:$0xff] %vm9153_vm6, %v9206_v51  ;;  %11180 = vmatprep.subr.bf16.mxu1 %v11984_v24  ;;  %v10334_v40 = vld [vmem:[%s18806_s7] sm:$0xff]  ;;  %v10335_v39 = vld [vmem:[%s18806_s7 + $0x8] sm:$0xff]  ;;  %v10337_v51 = vld [vmem:[%s18806_s7 + $0x18] sm:$0xff] }
 0x9b3   :  { %9215 = vst.msk [vmem:[#allocation4 + $0x58] sm:$0xff] %vm6870_vm5, %v9144_v21  ;;  %v9200_v16 = vpop.permute.xlu1 %9199  ;;  %v11532_v63 = vpack.c.bf16 %v10335_v39, %v10334_v40  ;;  %v10336_v21 = vld [vmem:[%s18806_s7 + $0x10] sm:$0xff] }
 0x9b4   :  { %v9063_v44 = vadd.f32 %v18594_v33, %v9006_v20  ;;  %9202 = vst.msk [vmem:[#allocation4 + $0x40] sm:$0xff] %vm9153_vm6, %v9200_v16  ;;  %v9112_v58 = vmax.f32 %v9062_v49, 0.0  ;;  %v10338_v49 = vld [vmem:[%s18806_s7 + $0x20] sm:$0xff]  ;;  %v10339_v20 = vld [vmem:[%s18806_s7 + $0x28] sm:$0xff]  ;;  %v10340_v16 = vld [vmem:[%s18806_s7 + $0x30] sm:$0xff] }
 0x9b5   :  { %v8612_v14 = vpop.permute.xlu0 %8611  ;;  %11181 = vmatpush3.bf16.msra.mxu1 %v11985_v50  ;;  %v11536_v50 = vpack.c.bf16 %v10337_v51, %v10336_v21 }
 0x9b6   :  { %v9113_v2 = vmax.f32 %v9063_v44, 0.0  ;;  %11182 = vmatprep.subr.bf16.mxu1 %v11986_v46  ;;  %v8713_v10 = vmax.f32 %v18389_v0, %v8612_v14  ;;  %v11540_v46 = vpack.c.bf16 %v10339_v20, %v10338_v49  ;;  %v10341_v44 = vld [vmem:[%s18806_s7 + $0x38] sm:$0xff] }
 0x9b7   :  { %v8614_v48 = vpop.permute.xlu1 %8613 }
 0x9b8   :  { %v9142_v12 = vpack.c.bf16 %v9113_v2, %v9112_v58  ;;  %v8714_v52 = vmax.f32 %v18401_v61, %v8614_v48  ;;  %v11991_v61 = vld [vmem:[%s18803_s5 + $0x2b0] sm:$0xff]  }
 0x9b9   :  { %v8862_v9 = vpop.permute.xlu0 %8861  ;;  %v9231_v41 = vld [vmem:[#allocation4 + $0x48] sm:$0xff]  ;;  %11183 = vmatpush3.bf16.msra.mxu1 %v11987_v35  ;;  %v11544_v35 = vpack.c.bf16 %v10341_v44, %v10340_v16 }
 0x9ba   :  { %v8963_v32 = vmax.f32 %v18394_v5, %v8862_v9  ;;  %10241 = vmatprep.mubr.bf16.mxu0 %v9231_v41  ;;  %9209 = vst.msk [vmem:[#allocation4 + $0x50] sm:$0xff] %vm6870_vm5, %v9142_v12  ;;  %11184 = vmatprep.subr.bf16.mxu1 %v11988_v47  ;;  %v11975_v5 = vld [vmem:[%s18803_s5 + $0x308] sm:$0xff]  }
 0x9bb   :  { %v8864_v19 = vpop.permute.xlu1 %8863  ;;  %v9230_v7 = vld [vmem:[#allocation4 + $0x40] sm:$0xff] }
 0x9bc   :  { %v9013_v11 = vmax.f32 %v8713_v10, %v8963_v32  ;;  %v8964_v0 = vmax.f32 %v18403_v59, %v8864_v19  ;;  %10242 = vmatmul.mubr.bf16.vlgmr.msra.gmra.mrb[32].mxu0 %v9230_v7  ;;  %v11992_v59 = vld [vmem:[%s18803_s5 + $0x2f8] sm:$0xff]  }
 0x9bd   :  { %11502 = vmatpush3.bf16.msra.mxu0 %v11974_v15  ;;  %11509 = vmatprep.mubr.msk.bf16.mxu0 %vm12018_vm7, %v12017_v55 }
 0x9be   :  { %v9070_v23 = vadd.f32 %v18594_v33, %v9013_v11  ;;  %v9014_v54 = vmax.f32 %v8714_v52, %v8964_v0  ;;  %11503 = vmatprep.subr.bf16.mxu0 %v12017_v55  ;;  %11185 = vmatpush3.bf16.msra.mxu1 %v11989_v1 }
 0x9bf   :  { %11186 = vmatprep.subr.bf16.mxu1 %v11990_v60 }
 0x9c0   :  { %v9071_v6 = vadd.f32 %v18594_v33, %v9014_v54  ;;  %v9120_v28 = vmax.f32 %v9070_v23, 0.0  ;;  %v11977_v33 = vld [vmem:[%s18803_s5 + $0x318] sm:$0xff]  }
 0x9c1   :  { %11504 = vmatpush3.bf16.msra.mxu0 %v11975_v5 }
 0x9c2   :  { %v9121_v56 = vmax.f32 %v9071_v6, 0.0  ;;  %11505 = vmatprep.subr.bf16.mxu0 %v12017_v55  ;;  %11187 = vmatpush3.bf16.msra.mxu1 %v11991_v61 }
 0x9c3   :  { %11188 = vmatprep.subr.bf16.mxu1 %v11992_v59 }
 0x9c4   :  { %v9146_v18 = vpack.c.bf16 %v9121_v56, %v9120_v28 }
 0x9c5   :  { %11506 = vmatpush3.bf16.msra.mxu0 %v11976_v36 }
 0x9c6   :  { %9221 = vst.msk [vmem:[#allocation4 + $0x60] sm:$0xff] %vm6870_vm5, %v9146_v18  ;;  %11507 = vmatprep.subr.bf16.mxu0 %v12017_v55  ;;  %11189 = vmatpush3.bf16.msra.mxu1 %v11993_v45  ;;  %v10814_v55 = vld [vmem:[%s18805_s6] ss:$0 sm:$0xff] }
 0x9c7   :  { %11533 = vmatprep.subr.bf16.mxu1 %v11532_v63 }
 0x9c9   :  { %11508 = vmatpush3.bf16.msra.mxu0 %v11977_v33 }
 0x9cd   :  { %v9234_v62 = vld [vmem:[#allocation4 + $0x60] sm:$0xff] }
 0x9ce   :  { %11510 = vmatmul.mubr.msk.bf16.vlgmr.msra.gmra.mrb[36].mxu0 %vm6870_vm5, %v9234_v62 }
 0x9cf   :  { %v9212_v42 = vpop.permute.xlu1 %9211 }
 0x9d0   :  { %v11080_v8 = vpop.f32.mrb[100].mxu1  ;;  %9214 = vst.msk [vmem:[#allocation4 + $0x50] sm:$0xff] %vm9153_vm6, %v9212_v42 }
 0x9d1   :  { %v11081_v53 = vpop.f32.mrb[101].mxu1 }
 0x9d2   :  { %v11082_v57 = vadd.f32 %v11081_v53, %v11080_v8  ;;  %v11083_v3 = vpop.f32.mrb[102].mxu1 }
 0x9d3   :  { %v11084_v26 = vpop.f32.mrb[103].mxu1 }
 0x9d4   :  { %v11085_v31 = vadd.f32 %v11084_v26, %v11083_v3  ;;  %v10080_v37 = vadd.f32 %v11082_v57, %v10814_v55 }
 0x9d6   :  { %v10083_v38 = vadd.f32 %v11085_v31, %v10814_v55 }
 0x9d7   :  { %v9232_v34 = vld [vmem:[#allocation4 + $0x50] sm:$0xff] }
 0x9f8   :  { %v9218_v25 = vpop.permute.xlu0 %9217 }
 0x9f9   :  { %9220 = vst.msk [vmem:[#allocation4 + $0x58] sm:$0xff] %vm9153_vm6, %v9218_v25 }
 0x9ff   :  { %v11102_v27 = vpop.f32.mrb[104].mxu1 }
 0xa00   :  { %v11103_v22 = vpop.f32.mrb[105].mxu1  ;;  %v9233_v13 = vld [vmem:[#allocation4 + $0x58] sm:$0xff] }
 0xa01   :  { %v11104_v4 = vadd.f32 %v11103_v22, %v11102_v27  ;;  %10282 = vmatprep.mubr.bf16.mxu1 %v9233_v13  ;;  %v11105_v17 = vpop.f32.mrb[106].mxu1  ;;  %v10916_v27 = vld [vmem:[%s18807_s8] ss:$0 sm:$0xff] }
 0xa02   :  { %10283 = vmatmul.mubr.bf16.vlgmr.msra.gmra.mrb[116].mxu1 %v9232_v34  ;;  %v11106_v30 = vpop.f32.mrb[107].mxu1 }
 0xa03   :  { %v10121_v43 = vadd.f32 %v11104_v4, %v10080_v37  ;;  %v11107_v24 = vadd.f32 %v11106_v30, %v11105_v17  ;;  %11535 = vmatpush3.bf16.msra.mxu1 %v11532_v63 }
 0xa04   :  { %11537 = vmatprep.subr.bf16.mxu1 %v11536_v50 }
 0xa05   :  { %v10124_v29 = vadd.f32 %v11107_v24, %v10083_v38 }
 0xa07   :  { %11539 = vmatpush3.bf16.msra.mxu1 %v11536_v50 }
 0xa08   :  { %11541 = vmatprep.subr.bf16.mxu1 %v11540_v46 }
 0xa0b   :  { %11543 = vmatpush3.bf16.msra.mxu1 %v11540_v46 }
 0xa0c   :  { %11545 = vmatprep.subr.bf16.mxu1 %v11544_v35 }
 0xa0f   :  { %11547 = vmatpush3.bf16.msra.mxu1 %v11544_v35 }
 0xa5b   :  { %v11124_v14 = vpop.f32.mrb[108].mxu1 }
 0xa5c   :  { %v11125_v58 = vpop.f32.mrb[109].mxu1 }
 0xa5d   :  { %v11126_v2 = vadd.f32 %v11125_v58, %v11124_v14  ;;  %v11127_v47 = vpop.f32.mrb[110].mxu1 }
 0xa5e   :  { %v11128_v48 = vpop.f32.mrb[111].mxu1 }
 0xa5f   :  { %v10162_v12 = vadd.f32 %v11126_v2, %v10121_v43  ;;  %v11129_v9 = vadd.f32 %v11128_v48, %v11127_v47 }
 0xa61   :  { %v10165_v41 = vadd.f32 %v11129_v9, %v10124_v29 }
 0xa7b   :  { %v11146_v15 = vpop.f32.mrb[112].mxu1 }
 0xa7c   :  { %v11147_v10 = vpop.f32.mrb[113].mxu1 }
 0xa7d   :  { %v11148_v32 = vadd.f32 %v11147_v10, %v11146_v15  ;;  %v11149_v1 = vpop.f32.mrb[114].mxu1 }
 0xa7e   :  { %v11150_v19 = vpop.f32.mrb[115].mxu1 }
 0xa7f   :  { %v10203_v7 = vadd.f32 %v11148_v32, %v10162_v12  ;;  %v11151_v60 = vadd.f32 %v11150_v19, %v11149_v1 }
 0xa81   :  { %v10206_v52 = vadd.f32 %v11151_v60, %v10165_v41 }
 0xa8f   :  { %v11168_v11 = vpop.f32.mrb[32].mxu0 }
 0xa90   :  { %v11169_v0 = vpop.f32.mrb[33].mxu0 }
 0xa91   :  { %v11170_v5 = vadd.f32 %v11169_v0, %v11168_v11  ;;  %v11171_v23 = vpop.f32.mrb[34].mxu0 }
 0xa92   :  { %v11172_v54 = vpop.f32.mrb[35].mxu0 }
 0xa93   :  { %v10244_v61 = vadd.f32 %v11170_v5, %v10203_v7  ;;  %v11173_v59 = vadd.f32 %v11172_v54, %v11171_v23 }
 0xa95   :  { %v10247_v6 = vadd.f32 %v11173_v59, %v10206_v52 }
 0xaa1   :  { %v10325_v36 = vpop.f32.mrb[36].mxu0 }
 0xaa2   :  { %v11511_v28 = vpop.f32.mrb[37].mxu0 }
 0xaa3   :  { %v10328_v56 = vpop.f32.mrb[38].mxu0 }
 0xaa4   :  { %v11512_v45 = vpop.f32.mrb[39].mxu0 }
 0xad5   :  { %v11190_v18 = vpop.f32.mrb[116].mxu1 }
 0xad6   :  { %v11191_v33 = vpop.f32.mrb[117].mxu1 }
 0xad7   :  { %v11192_v62 = vadd.f32 %v11191_v33, %v11190_v18  ;;  %v11193_v42 = vpop.f32.mrb[118].mxu1 }
 0xad8   :  { %v11194_v8 = vpop.f32.mrb[119].mxu1 }
 0xad9   :  { %v10285_v53 = vadd.f32 %v11192_v62, %v10244_v61  ;;  %v11195_v57 = vadd.f32 %v11194_v8, %v11193_v42 }
 0xadb   :  { %v10326_v3 = vadd.f32 %v10325_v36, %v10285_v53  ;;  %v10288_v26 = vadd.f32 %v11195_v57, %v10247_v6 }
 0xadd   :  { %v10332_v31 = vmax.f32 %v10326_v3, 0.0  ;;  %v10329_v25 = vadd.f32 %v10328_v56, %v10288_v26 }
 0xadf   :  { %v10333_v55 = vmax.f32 %v10329_v25, 0.0  ;;  %11529 = vmatprep.mubr.msk.f32.mxu1 %vm6870_vm5, %v10332_v31 }
 0xae1   :  { %11530 = vmatmul.mubr.msk.f32.vlgmr.msra.gmra.mrb[120].mxu1 %vm6870_vm5, %v10333_v55 }
 0xbb4   :  { %v11531_v22 = vpop.f32.mrb[120].mxu1 }
 0xbb5   :  { %v10427_v13 = vadd.f32 %v11531_v22, %v10916_v27  ;;  %v10421_v37 = vpop.f32.mrb[121].mxu1 }
 0xbb6   :  { %v10422_v4 = vadd.f32 %v10916_v27, %v10421_v37 }
 0xbb7   :  { %v10434_v17 = vsel %vm10430_vm8, %v10427_v13, -inf }
 0xbb8   :  { %10435 = vmax.xlane.f32.xlu1 %v10434_v17  ;;  %v10431_v34 = vsel %vm10430_vm8, %v10422_v4, -inf }
 0xbb9   :  { %10432 = vmax.xlane.f32.xlu0 %v10431_v34 }
 0xc45   :  { %v10436_v30 = vpop.xlane.xlu1 %10435 }
 0xc46   :  { %v10438_v38 = vsub.f32 %v10427_v13, %v10436_v30  ;;  %v10433_v43 = vpop.xlane.xlu0 %10432 }
 0xc47   :  { %v10437_v24 = vsub.f32 %v10422_v4, %v10433_v43 }
 0xc48   :  { %v10441_v29 = vmul.f32 1.442695, %v10438_v38 }
 0xc49   :  { %v10439_v40 = vmul.f32 1.442695, %v10437_v24 }
 0xc4b   :  { %11994 = vpow2.f32 %v10439_v40 }
 0xc4c   :  { %11996 = vpow2.f32 %v10441_v29 }
 0xc55   :  { %v11995_v39 = vpop.eup %11994 }
 0xc56   :  { %v10443_v63 = vsel %vm10430_vm8, %v11995_v39, 0.0  ;;  %v11997_v21 = vpop.eup %11996 }
 0xc57   :  { %10444 = vadd.xlane.f32.xlu0 %v10443_v63  ;;  %v10446_v51 = vsel %vm10430_vm8, %v11997_v21, 0.0 }
 0xc5b   :  { %10447 = vadd.xlane.f32.xlu0 %v10446_v51 }
 0xce4   :  { %v10445_v50 = vpop.xlane.xlu0 %10444 }
 0xce5   :  { %11998 = vrcp.f32 %v10445_v50 }
 0xce8   :  { %v10448_v49 = vpop.xlane.xlu0 %10447 }
 0xce9   :  { %12000 = vrcp.f32 %v10448_v49 }
 0xcef   :  { %v11999_v20 = vpop.eup %11998 }
 0xcf0   :  { %v10450_v46 = vmul.f32 %v11999_v20, %v11995_v39 }
 0xcf2   :  { %10453 = vst.msk [vmem:[%s18808_s9] sm:$0xff] %vm10430_vm8, %v10450_v46 }
 0xcf3   :  { %v12001_v16 = vpop.eup %12000 }
 0xcf4   :  { %v10452_v44 = vmul.f32 %v12001_v16, %v11997_v21 }
 0xcf6   :  { %10454 = vst.msk [vmem:[%s18808_s9 + $0x8] sm:$0xff] %vm10430_vm8, %v10452_v44 }

</bundles_post_ra>
